<compile_context>
chip_gen: v5e
topology: v5e:2x2
jax: 0.10.0
libtpu: 0.0.40
codegen_flags: <defaults>
</compile_context>

<pallas_src>
import numpy as np
import jax
import jax.numpy as jnp
from jax.experimental import pallas as pl
from jax.experimental.pallas import tpu as pltpu

G_CH_D = 128
G_CH_RECON = 128
G_CH_SRC_D = 8 * 8                                        # 64 -> pixel_shuffle(8)
FFN_CH = max(min(G_CH_RECON * 4, 1024), G_CH_RECON * 2)   # 512
_LANE = 128


def _bf16r(a):
    """Round to bf16-representable f32 (keeps kernel/ref comparison tight)."""
    return a.astype(jnp.bfloat16).astype(jnp.float32)


# ---------------------------------------------------------------------------
# Generation-aware tiling / compiler-parameter helpers
# ---------------------------------------------------------------------------
def _vmem_capacity_bytes():
    try:
        info = pltpu.get_tpu_info()
        cap = getattr(info, "vmem_capacity_bytes", None)
        if cap:
            return int(cap)
    except Exception:
        pass
    return 128 << 20


def _max_rows_budget():
    # ~2k rows/step on v7x (64 MiB VMEM/TC), ~4k rows/step on v5e/v6e (128 MiB).
    return 2048 if _vmem_capacity_bytes() <= (64 << 20) else 4096


def _pick_row_tile(N, H, W, max_rows):
    """Largest divisor of H whose row-tile (TH*W rows) fits the budget,
    preferring a grid with >= 2 total steps for 2-TC (v7x) balance."""
    divisors = [d for d in range(1, H + 1) if H % d == 0]
    fits = [d for d in divisors if d * W <= max_rows] or [1]
    balanced = [d for d in fits if N * (H // d) >= 2] or fits
    return max(balanced)


def _block_vmem_estimate(TH, W, C, FF, CO):
    bf16, f32 = 2, 4
    R = TH * W
    Rh = R + 2 * W
    io = 2 * (Rh * C * bf16 + R * max(C, CO) * bf16)          # double-buffered io
    weights = 2 * ((2 * C * C + 2 * C * FF + C * CO) * bf16
                   + (13 * C + FF + CO) * f32)
    interm = (4 * Rh * C + R * (3 * C + FF)) * f32            # depthwise + FFN peaks
    return io + weights + interm


def _compiler_params(dims, working_set_bytes):
    cap = _vmem_capacity_bytes()
    gen_cap = (44 << 20) if cap <= (64 << 20) else (96 << 20)
    limit = int(min(gen_cap, max(32 << 20, int(1.5 * working_set_bytes))))
    return pltpu.CompilerParams(dimension_semantics=dims,
                                vmem_limit_bytes=limit)


# ---------------------------------------------------------------------------
# Fused DepthConvBlock kernel (DepthConv + ConvFFN), one (batch, row-tile)
# per grid step.  The final block optionally fuses the head 1x1 (with the
# quant step pre-folded into its weight) + clamp(0, 1) as its output.
# ---------------------------------------------------------------------------
def _make_block_kernel(TH, W, C, with_head, CO):
    def kernel(*refs):
        if with_head:
            (xc_ref, xt_ref, xb_ref,
             w1_ref, b1_ref, wd_ref, bd_ref, w2_ref, b2_ref,
             wa_ref, ba_ref, wb_ref, bb_ref, hw_ref, hb_ref, o_ref) = refs
        else:
            (xc_ref, xt_ref, xb_ref,
             w1_ref, b1_ref, wd_ref, bd_ref, w2_ref, b2_ref,
             wa_ref, ba_ref, wb_ref, bb_ref, o_ref) = refs

        h = pl.program_id(1)
        nh = pl.num_programs(1)

        xc = xc_ref[0].astype(jnp.float32)                  # (TH, W, C) tile
        xt = xt_ref[0].astype(jnp.float32)                  # (1, W, C) top halo
        xb = xb_ref[0].astype(jnp.float32)                  # (1, W, C) bot halo

        # ---- DepthConv: 1x1 -> LeakyReLU(0.01), on tile + halo rows ----
        rows = jnp.concatenate([xt, xc, xb], axis=0)        # (TH+2, W, C)
        y1 = jnp.dot(rows.reshape((TH + 2) * W, C).astype(jnp.bfloat16),
                     w1_ref[...], preferred_element_type=jnp.float32)
        y1 = y1 + b1_ref[...]
        y1 = jnp.maximum(y1, 0.01 * y1)
        t = y1.reshape(TH + 2, W, C)                        # f32

        # zero out-of-image halo rows (torch zero padding) via a tiny row mask
        top_keep = (h != 0).astype(jnp.float32)
        bot_keep = (h != nh - 1).astype(jnp.float32)
        row_i = jax.lax.broadcasted_iota(jnp.int32, (TH + 2, 1, 1), 0)
        keep = jnp.where(row_i == 0, top_keep, 1.0)
        keep = jnp.where(row_i == TH + 1, bot_keep, keep)
        t = t * keep

        # ---- depthwise 3x3, padding=1 ----
        # +-1 column shifts via XLU sublane roll; zero the single wrapped
        # edge column (column 0 for the left tap, W-1 for the right tap).
        col_i = jax.lax.broadcasted_iota(jnp.int32, (1, W, 1), 1)
        t_l = jnp.where(col_i == 0, 0.0, pltpu.roll(t, shift=1, axis=1))      # w-1
        t_r = jnp.where(col_i == W - 1, 0.0, pltpu.roll(t, shift=W - 1, axis=1))  # w+1

        wd = wd_ref[...]                                     # (9, C), idx=dh*3+dw
        wds = [wd[k].reshape(1, 1, C) for k in range(9)]     # hoisted broadcasts
        acc = t_l[0:TH] * wds[0]
        acc = acc + t[0:TH] * wds[1]
        acc = acc + t_r[0:TH] * wds[2]
        for dh in (1, 2):
            acc = acc + t_l[dh:dh + TH] * wds[dh * 3 + 0]
            acc = acc + t[dh:dh + TH] * wds[dh * 3 + 1]
            acc = acc + t_r[dh:dh + TH] * wds[dh * 3 + 2]
        acc = acc + bd_ref[...].reshape(1, 1, C)

        # ---- DepthConv: closing 1x1 + identity residual ----
        y2 = jnp.dot(acc.reshape(TH * W, C).astype(jnp.bfloat16),
                     w2_ref[...], preferred_element_type=jnp.float32)
        t2 = y2 + b2_ref[...] + xc.reshape(TH * W, C)        # (TH*W, C) f32

        # ---- ConvFFN: 1x1 -> LReLU(0.1) -> 1x1 -> LReLU(0.1), + identity ----
        u = jnp.dot(t2.astype(jnp.bfloat16), wa_ref[...],
                    preferred_element_type=jnp.float32) + ba_ref[...]
        u = jnp.maximum(u, 0.1 * u)                          # (TH*W, FF) in VMEM
        v = jnp.dot(u.astype(jnp.bfloat16), wb_ref[...],
                    preferred_element_type=jnp.float32) + bb_ref[...]
        v = jnp.maximum(v, 0.1 * v)
        out = t2 + v

        if with_head:
            # quant step already folded into hw; 1x1 (128 -> 64 padded to a
            # lane-dense 128-wide store) + clamp(0, 1), bf16 output
            y = jnp.dot(out.astype(jnp.bfloat16), hw_ref[...],
                        preferred_element_type=jnp.float32) + hb_ref[...]
            y = jnp.clip(y, 0.0, 1.0)
            o_ref[0] = y.reshape(TH, W, CO).astype(o_ref.dtype)
        else:
            o_ref[0] = out.reshape(TH, W, C).astype(o_ref.dtype)

    return kernel


def _fused_block(x_nhwc, blk, TH, head_w=None, head_b=None):
    """One DepthConvBlock: NHWC bf16 -> NHWC bf16 (optionally + fused head)."""
    N, H, W, C = x_nhwc.shape
    FF = blk["wa"].shape[1]
    nH = H // TH
    with_head = head_w is not None
    CO = head_w.shape[1] if with_head else C

    def tile_map(n, h):
        return (n, h, 0, 0)

    def top_map(n, h):                       # 1-row halo above the tile
        return (n, jnp.maximum(h * TH - 1, 0), 0, 0)

    def bot_map(n, h):                       # 1-row halo below the tile
        return (n, jnp.minimum(h * TH + TH, H - 1), 0, 0)

    def const(n, h):
        return (0, 0)

    in_specs = [
        pl.BlockSpec((1, TH, W, C), tile_map),
        pl.BlockSpec((1, 1, W, C), top_map),
        pl.BlockSpec((1, 1, W, C), bot_map),
        pl.BlockSpec((C, C), const),     # w1 (bf16)
        pl.BlockSpec((1, C), const),     # b1
        pl.BlockSpec((9, C), const),     # wd
        pl.BlockSpec((1, C), const),     # bd
        pl.BlockSpec((C, C), const),     # w2 (bf16)
        pl.BlockSpec((1, C), const),     # b2
        pl.BlockSpec((C, FF), const),    # wa (bf16)
        pl.BlockSpec((1, FF), const),    # ba
        pl.BlockSpec((FF, C), const),    # wb (bf16)
        pl.BlockSpec((1, C), const),     # bb
    ]
    args = [x_nhwc, x_nhwc, x_nhwc,
            blk["w1"], blk["b1"], blk["wd"], blk["bd"], blk["w2"], blk["b2"],
            blk["wa"], blk["ba"], blk["wb"], blk["bb"]]
    if with_head:
        in_specs += [pl.BlockSpec((C, CO), const),   # head weight (bf16, q folded)
                     pl.BlockSpec((1, CO), const)]   # head bias
        args += [head_w, head_b]

    est = _block_vmem_estimate(TH, W, C, FF, CO)
    return pl.pallas_call(
        _make_block_kernel(TH, W, C, with_head, CO),
        out_shape=jax.ShapeDtypeStruct((N, H, W, CO), jnp.bfloat16),
        grid=(N, nH),
        in_specs=in_specs,
        out_specs=pl.BlockSpec((1, TH, W, CO), tile_map),
        compiler_params=_compiler_params(("parallel", "parallel"), est),
    )(*args)


# ---------------------------------------------------------------------------
# Full forward (NCHW in / NCHW out, like the PyTorch module)
# ---------------------------------------------------------------------------
def recon_generation_forward(x_nchw, quant_step, kparams):
    N, C, H, W = x_nchw.shape

    # channels-last; bf16 inter-kernel activations (half the HBM traffic)
    x = jnp.transpose(x_nchw, (0, 2, 3, 1)).astype(jnp.bfloat16)

    TH = _pick_row_tile(N, H, W, _max_rows_budget())
    for blk in kparams["blocks"][:-1]:
        x = _fused_block(x, blk, TH)

    # Fold the per-channel quant step into the (f32) head weight, cast bf16,
    # and fuse the head + clamp into the last block's kernel.
    q = quant_step.reshape(C, 1).astype(jnp.float32)
    head_w = (q * kparams["head_w_f32"]).astype(jnp.bfloat16)
    y = _fused_block(x, kparams["blocks"][-1], TH,
                     head_w=head_w, head_b=kparams["head_b"])

    # pixel_shuffle(8): (N, H, W, 64) -> (N, 1, 8H, 8W)   # layout glue only
    r = 8
    y = y[..., :G_CH_SRC_D].reshape(N, H, W, r, r)
    y = jnp.transpose(y, (0, 1, 3, 2, 4)).reshape(N, 1, H * r, W * r)
    return y.astype(jnp.float32)


# ---------------------------------------------------------------------------
# Deterministic parameter init (synthetic; shapes from the module __init__)
# ---------------------------------------------------------------------------
def init_params(key):
    keys = iter(jax.random.split(key, 48))

    def dense(cin, cout, gain=1.0):
        w = jax.random.normal(next(keys), (cin, cout), jnp.float32)
        w = _bf16r(w * (gain / float(np.sqrt(cin))))
        b = _bf16r(jax.random.normal(next(keys), (1, cout), jnp.float32) * 0.01)
        return w, b

    blocks = []
    for _ in range(4):
        w1, b1 = dense(G_CH_RECON, G_CH_RECON)
        wd = _bf16r(jax.random.normal(next(keys), (9, G_CH_RECON), jnp.float32) / 3.0)
        bd = _bf16r(jax.random.normal(next(keys), (1, G_CH_RECON), jnp.float32) * 0.01)
        # residual-branch closing convs get a small gain (as in trained nets);
        # keeps activation growth modest so the bf16 kernel vs f32 reference
        # comparison stays tight across 4 blocks.
        w2, b2 = dense(G_CH_RECON, G_CH_RECON, gain=0.25)
        wa, ba = dense(G_CH_RECON, FFN_CH)
        wb, bb = dense(FFN_CH, G_CH_RECON, gain=0.25)
        blocks.append(dict(w1=w1, b1=b1, wd=wd, bd=bd, w2=w2, b2=b2,
                           wa=wa, ba=ba, wb=wb, bb=bb))
    head_w, head_b = dense(G_CH_RECON, G_CH_SRC_D)
    return dict(blocks=blocks, head_w=head_w, head_b=head_b)


def make_kernel_params(params):
    """bf16 matmul weights; head weight kept f32 (quant step folded at call
    time) and padded to a 128-lane output together with its bias."""
    def blk(b):
        return dict(w1=b["w1"].astype(jnp.bfloat16), b1=b["b1"],
                    wd=b["wd"], bd=b["bd"],
                    w2=b["w2"].astype(jnp.bfloat16), b2=b["b2"],
                    wa=b["wa"].astype(jnp.bfloat16), ba=b["ba"],
                    wb=b["wb"].astype(jnp.bfloat16), bb=b["bb"])
    cout = params["head_w"].shape[1]
    pad = (-cout) % _LANE
    head_w_f32 = jnp.pad(params["head_w"], ((0, 0), (0, pad)))
    head_b = jnp.pad(params["head_b"], ((0, 0), (0, pad)))
    return dict(blocks=[blk(b) for b in params["blocks"]],
                head_w_f32=head_w_f32, head_b=head_b)


# ---------------------------------------------------------------------------
# Pure-JAX reference (NCHW, lax.conv, f32 HIGHEST) for correctness checking
# ---------------------------------------------------------------------------
def ref_forward(x_nchw, quant_step, params):
    dn = ("NCHW", "OIHW", "NCHW")
    hp = jax.lax.Precision.HIGHEST

    def pw(x, w2d, b, slope=None):
        w = jnp.transpose(w2d)[:, :, None, None]
        y = jax.lax.conv_general_dilated(x, w, (1, 1), "VALID",
                                         dimension_numbers=dn, precision=hp)
        y = y + b.reshape(1, -1, 1, 1)
        if slope is not None:
            y = jnp.where(y >= 0.0, y, slope * y)
        return y

    def dw(x, w9c, b):
        C = x.shape[1]
        w = jnp.transpose(w9c).reshape(C, 1, 3, 3)
        y = jax.lax.conv_general_dilated(x, w, (1, 1), ((1, 1), (1, 1)),
                                         dimension_numbers=dn,
                                         feature_group_count=C, precision=hp)
        return y + b.reshape(1, -1, 1, 1)

    out = x_nchw
    for blk in params["blocks"]:
        idt = out
        t = pw(out, blk["w1"], blk["b1"], slope=0.01)
        t = dw(t, blk["wd"], blk["bd"])
        t = pw(t, blk["w2"], blk["b2"]) + idt
        idt = t
        u = pw(t, blk["wa"], blk["ba"], slope=0.1)
        u = pw(u, blk["wb"], blk["bb"], slope=0.1)
        out = idt + u
    out = out * quant_step
    out = pw(out, params["head_w"], params["head_b"])
    N, _, H, W = out.shape
    r = 8
    out = out.reshape(N, 1, r, r, H, W)
    out = jnp.transpose(out, (0, 1, 4, 2, 5, 3)).reshape(N, 1, H * r, W * r)
    return jnp.clip(out, 0.0, 1.0)


if __name__ == "__main__":
    key = jax.random.PRNGKey(0)
    kx, kq, kp = jax.random.split(key, 3)

    N, H, W = 2, 8, 8
    x = _bf16r(jax.random.normal(kx, (N, G_CH_D, H, W), jnp.float32))
    quant_step = _bf16r(jax.random.uniform(kq, (1, G_CH_RECON, 1, 1),
                                           jnp.float32, minval=0.5, maxval=1.5))
    params = init_params(kp)
    kparams = make_kernel_params(params)

    out = jax.jit(recon_generation_forward)(x, quant_step, kparams)
    out = jax.block_until_ready(out)
    assert out.shape == (N, 1, H * 8, W * 8), out.shape

    ref = jax.block_until_ready(jax.jit(ref_forward)(x, quant_step, params))
    # Kernel uses bf16 MXU matmuls + bf16 inter-block/head activations; the
    # reference is f32 at Precision.HIGHEST -> relaxed tolerance.
    np.testing.assert_allclose(np.asarray(out), np.asarray(ref),
                               rtol=5e-2, atol=7.5e-2)

    print("KERNEL_OK")
</pallas_src>

<mosaic_0001>
module attributes {stable_mosaic.version = 11 : i64} {
  func.func @kernel(%arg0: i32, %arg1: i32, %arg2: memref<1x8x8x128xbf16, #tpu.memory_space<vmem>>, %arg3: memref<1x1x8x128xbf16, #tpu.memory_space<vmem>>, %arg4: memref<1x1x8x128xbf16, #tpu.memory_space<vmem>>, %arg5: memref<128x128xbf16, #tpu.memory_space<vmem>>, %arg6: memref<1x128xf32, #tpu.memory_space<vmem>>, %arg7: memref<9x128xf32, #tpu.memory_space<vmem>>, %arg8: memref<1x128xf32, #tpu.memory_space<vmem>>, %arg9: memref<128x128xbf16, #tpu.memory_space<vmem>>, %arg10: memref<1x128xf32, #tpu.memory_space<vmem>>, %arg11: memref<128x512xbf16, #tpu.memory_space<vmem>>, %arg12: memref<1x512xf32, #tpu.memory_space<vmem>>, %arg13: memref<512x128xbf16, #tpu.memory_space<vmem>>, %arg14: memref<1x128xf32, #tpu.memory_space<vmem>>, %arg15: memref<1x8x8x128xbf16, #tpu.memory_space<vmem>>) attributes {dimension_semantics = [#tpu.dimension_semantics<parallel>, #tpu.dimension_semantics<parallel>], iteration_bounds = array<i64: 2, 1>, scalar_prefetch = 0 : i64, scratch_operands = 0 : i64, tpu.core_type = #tpu.core_type<tc>, window_params = [{transform_indices = @transform_0, window_bounds = array<i64: 1, 8, 8, 128>}, {transform_indices = @transform_1, window_bounds = array<i64: 1, 1, 8, 128>}, {transform_indices = @transform_2, window_bounds = array<i64: 1, 1, 8, 128>}, {pipeline_mode = #tpu.pipeline_mode<synchronous>, transform_indices = @transform_3, window_bounds = array<i64: 128, 128>}, {pipeline_mode = #tpu.pipeline_mode<synchronous>, transform_indices = @transform_4, window_bounds = array<i64: 1, 128>}, {pipeline_mode = #tpu.pipeline_mode<synchronous>, transform_indices = @transform_5, window_bounds = array<i64: 9, 128>}, {pipeline_mode = #tpu.pipeline_mode<synchronous>, transform_indices = @transform_6, window_bounds = array<i64: 1, 128>}, {pipeline_mode = #tpu.pipeline_mode<synchronous>, transform_indices = @transform_7, window_bounds = array<i64: 128, 128>}, {pipeline_mode = #tpu.pipeline_mode<synchronous>, transform_indices = @transform_8, window_bounds = array<i64: 1, 128>}, {pipeline_mode = #tpu.pipeline_mode<synchronous>, transform_indices = @transform_9, window_bounds = array<i64: 128, 512>}, {pipeline_mode = #tpu.pipeline_mode<synchronous>, transform_indices = @transform_10, window_bounds = array<i64: 1, 512>}, {pipeline_mode = #tpu.pipeline_mode<synchronous>, transform_indices = @transform_11, window_bounds = array<i64: 512, 128>}, {pipeline_mode = #tpu.pipeline_mode<synchronous>, transform_indices = @transform_12, window_bounds = array<i64: 1, 128>}, {transform_indices = @transform_13, window_bounds = array<i64: 1, 8, 8, 128>}]} {
    %c0 = arith.constant 0 : index
    %c0_0 = arith.constant 0 : index
    %c0_1 = arith.constant 0 : index
    %c0_2 = arith.constant 0 : index
    %0 = vector.load %arg2[%c0, %c0_0, %c0_1, %c0_2] : memref<1x8x8x128xbf16, #tpu.memory_space<vmem>>, vector<1x8x8x128xbf16>
    %1 = vector.shape_cast %0 : vector<1x8x8x128xbf16> to vector<8x8x128xbf16>
    %2 = arith.extf %1 : vector<8x8x128xbf16> to vector<8x8x128xf32>
    %c0_3 = arith.constant 0 : index
    %c0_4 = arith.constant 0 : index
    %c0_5 = arith.constant 0 : index
    %c0_6 = arith.constant 0 : index
    %3 = vector.load %arg3[%c0_3, %c0_4, %c0_5, %c0_6] : memref<1x1x8x128xbf16, #tpu.memory_space<vmem>>, vector<1x1x8x128xbf16>
    %4 = vector.shape_cast %3 : vector<1x1x8x128xbf16> to vector<1x8x128xbf16>
    %5 = arith.extf %4 : vector<1x8x128xbf16> to vector<1x8x128xf32>
    %c0_7 = arith.constant 0 : index
    %c0_8 = arith.constant 0 : index
    %c0_9 = arith.constant 0 : index
    %c0_10 = arith.constant 0 : index
    %6 = vector.load %arg4[%c0_7, %c0_8, %c0_9, %c0_10] : memref<1x1x8x128xbf16, #tpu.memory_space<vmem>>, vector<1x1x8x128xbf16>
    %7 = vector.shape_cast %6 : vector<1x1x8x128xbf16> to vector<1x8x128xbf16>
    %8 = arith.extf %7 : vector<1x8x128xbf16> to vector<1x8x128xf32>
    %9 = tpu.concatenate %5, %2, %8 in 0 : vector<1x8x128xf32>, vector<8x8x128xf32>, vector<1x8x128xf32> -> vector<10x8x128xf32>
    %10 = vector.shape_cast %9 : vector<10x8x128xf32> to vector<80x128xf32>
    %11 = arith.truncf %10 : vector<80x128xf32> to vector<80x128xbf16>
    %c0_11 = arith.constant 0 : index
    %c0_12 = arith.constant 0 : index
    %12 = vector.load %arg5[%c0_11, %c0_12] : memref<128x128xbf16, #tpu.memory_space<vmem>>, vector<128x128xbf16>
    %cst = arith.constant dense<0.000000e+00> : vector<80x128xf32>
    %13 = tpu.matmul %11, %12, %cst {dimension_numbers = #tpu.dot_dimension_numbers<[1], [0], [0], [1], [0, 0, 1, 1], [], []>} : vector<80x128xbf16>, vector<128x128xbf16>, vector<80x128xf32> -> vector<80x128xf32>
    %c0_13 = arith.constant 0 : index
    %c0_14 = arith.constant 0 : index
    %14 = vector.load %arg6[%c0_13, %c0_14] : memref<1x128xf32, #tpu.memory_space<vmem>>, vector<1x128xf32>
    %15 = vector.broadcast %14 : vector<1x128xf32> to vector<80x128xf32>
    %16 = arith.addf %13, %15 : vector<80x128xf32>
    %cst_15 = arith.constant 0.00999999977 : f32
    %17 = vector.broadcast %cst_15 : f32 to vector<80x128xf32>
    %18 = arith.mulf %17, %16 : vector<80x128xf32>
    %19 = arith.maximumf %16, %18 : vector<80x128xf32>
    %20 = vector.shape_cast %19 : vector<80x128xf32> to vector<10x8x128xf32>
    %c0_i32 = arith.constant 0 : i32
    %21 = arith.cmpi ne, %arg1, %c0_i32 : i32
    %22 = arith.extui %21 : i1 to i32
    %23 = arith.sitofp %22 : i32 to f32
    %c0_i32_16 = arith.constant 0 : i32
    %24 = arith.cmpi ne, %arg1, %c0_i32_16 : i32
    %25 = arith.extui %24 : i1 to i32
    %26 = arith.sitofp %25 : i32 to f32
    %27 = tpu.iota {dimensions = array<i32: 0>} : vector<10x1x1xi32>
    %c0_i32_17 = arith.constant 0 : i32
    %28 = vector.broadcast %c0_i32_17 : i32 to vector<10x1x1xi32>
    %29 = arith.cmpi eq, %27, %28 : vector<10x1x1xi32>
    %cst_18 = arith.constant 1.000000e+00 : f32
    %30 = vector.broadcast %23 : f32 to vector<10x1x1xf32>
    %31 = vector.broadcast %cst_18 : f32 to vector<10x1x1xf32>
    %32 = arith.select %29, %30, %31 : vector<10x1x1xi1>, vector<10x1x1xf32>
    %c9_i32 = arith.constant 9 : i32
    %33 = vector.broadcast %c9_i32 : i32 to vector<10x1x1xi32>
    %34 = arith.cmpi eq, %27, %33 : vector<10x1x1xi32>
    %35 = vector.broadcast %26 : f32 to vector<10x1x1xf32>
    %36 = arith.select %34, %35, %32 : vector<10x1x1xi1>, vector<10x1x1xf32>
    %37 = vector.broadcast %36 : vector<10x1x1xf32> to vector<10x8x128xf32>
    %38 = arith.mulf %20, %37 : vector<10x8x128xf32>
    %39 = tpu.iota {dimensions = array<i32: 1>} : vector<1x8x1xi32>
    %c0_i32_19 = arith.constant 0 : i32
    %40 = vector.broadcast %c0_i32_19 : i32 to vector<1x8x1xi32>
    %41 = arith.cmpi eq, %39, %40 : vector<1x8x1xi32>
    %c1_i32 = arith.constant 1 : i32
    %42 = tpu.dynamic_rotate %38 by %c1_i32 dim 1 : vector<10x8x128xf32>, i32 -> vector<10x8x128xf32>
    %cst_20 = arith.constant 0.000000e+00 : f32
    %43 = vector.shape_cast %41 : vector<1x8x1xi1> to vector<1x8x1xi1>
    %44 = vector.broadcast %43 : vector<1x8x1xi1> to vector<10x8x128xi1>
    %45 = vector.broadcast %cst_20 : f32 to vector<10x8x128xf32>
    %46 = arith.select %44, %45, %42 : vector<10x8x128xi1>, vector<10x8x128xf32>
    %c7_i32 = arith.constant 7 : i32
    %47 = vector.broadcast %c7_i32 : i32 to vector<1x8x1xi32>
    %48 = arith.cmpi eq, %39, %47 : vector<1x8x1xi32>
    %c7_i32_21 = arith.constant 7 : i32
    %49 = tpu.dynamic_rotate %38 by %c7_i32_21 dim 1 : vector<10x8x128xf32>, i32 -> vector<10x8x128xf32>
    %cst_22 = arith.constant 0.000000e+00 : f32
    %50 = vector.shape_cast %48 : vector<1x8x1xi1> to vector<1x8x1xi1>
    %51 = vector.broadcast %50 : vector<1x8x1xi1> to vector<10x8x128xi1>
    %52 = vector.broadcast %cst_22 : f32 to vector<10x8x128xf32>
    %53 = arith.select %51, %52, %49 : vector<10x8x128xi1>, vector<10x8x128xf32>
    %c0_23 = arith.constant 0 : index
    %c0_24 = arith.constant 0 : index
    %54 = vector.load %arg7[%c0_23, %c0_24] : memref<9x128xf32, #tpu.memory_space<vmem>>, vector<9x128xf32>
    %55 = vector.extract_strided_slice %54 {offsets = [0, 0], sizes = [1, 128], strides = [1, 1]} : vector<9x128xf32> to vector<1x128xf32>
    %56 = vector.shape_cast %55 : vector<1x128xf32> to vector<128xf32>
    %57 = vector.shape_cast %56 : vector<128xf32> to vector<1x1x128xf32>
    %58 = vector.extract_strided_slice %54 {offsets = [1, 0], sizes = [1, 128], strides = [1, 1]} : vector<9x128xf32> to vector<1x128xf32>
    %59 = vector.shape_cast %58 : vector<1x128xf32> to vector<128xf32>
    %60 = vector.shape_cast %59 : vector<128xf32> to vector<1x1x128xf32>
    %61 = vector.extract_strided_slice %54 {offsets = [2, 0], sizes = [1, 128], strides = [1, 1]} : vector<9x128xf32> to vector<1x128xf32>
    %62 = vector.shape_cast %61 : vector<1x128xf32> to vector<128xf32>
    %63 = vector.shape_cast %62 : vector<128xf32> to vector<1x1x128xf32>
    %64 = vector.extract_strided_slice %54 {offsets = [3, 0], sizes = [1, 128], strides = [1, 1]} : vector<9x128xf32> to vector<1x128xf32>
    %65 = vector.shape_cast %64 : vector<1x128xf32> to vector<128xf32>
    %66 = vector.shape_cast %65 : vector<128xf32> to vector<1x1x128xf32>
    %67 = vector.extract_strided_slice %54 {offsets = [4, 0], sizes = [1, 128], strides = [1, 1]} : vector<9x128xf32> to vector<1x128xf32>
    %68 = vector.shape_cast %67 : vector<1x128xf32> to vector<128xf32>
    %69 = vector.shape_cast %68 : vector<128xf32> to vector<1x1x128xf32>
    %70 = vector.extract_strided_slice %54 {offsets = [5, 0], sizes = [1, 128], strides = [1, 1]} : vector<9x128xf32> to vector<1x128xf32>
    %71 = vector.shape_cast %70 : vector<1x128xf32> to vector<128xf32>
    %72 = vector.shape_cast %71 : vector<128xf32> to vector<1x1x128xf32>
    %73 = vector.extract_strided_slice %54 {offsets = [6, 0], sizes = [1, 128], strides = [1, 1]} : vector<9x128xf32> to vector<1x128xf32>
    %74 = vector.shape_cast %73 : vector<1x128xf32> to vector<128xf32>
    %75 = vector.shape_cast %74 : vector<128xf32> to vector<1x1x128xf32>
    %76 = vector.extract_strided_slice %54 {offsets = [7, 0], sizes = [1, 128], strides = [1, 1]} : vector<9x128xf32> to vector<1x128xf32>
    %77 = vector.shape_cast %76 : vector<1x128xf32> to vector<128xf32>
    %78 = vector.shape_cast %77 : vector<128xf32> to vector<1x1x128xf32>
    %79 = vector.extract_strided_slice %54 {offsets = [8, 0], sizes = [1, 128], strides = [1, 1]} : vector<9x128xf32> to vector<1x128xf32>
    %80 = vector.shape_cast %79 : vector<1x128xf32> to vector<128xf32>
    %81 = vector.shape_cast %80 : vector<128xf32> to vector<1x1x128xf32>
    %82 = vector.extract_strided_slice %46 {offsets = [0, 0, 0], sizes = [8, 8, 128], strides = [1, 1, 1]} : vector<10x8x128xf32> to vector<8x8x128xf32>
    %83 = vector.broadcast %57 : vector<1x1x128xf32> to vector<8x8x128xf32>
    %84 = arith.mulf %82, %83 : vector<8x8x128xf32>
    %85 = vector.extract_strided_slice %38 {offsets = [0, 0, 0], sizes = [8, 8, 128], strides = [1, 1, 1]} : vector<10x8x128xf32> to vector<8x8x128xf32>
    %86 = vector.broadcast %60 : vector<1x1x128xf32> to vector<8x8x128xf32>
    %87 = arith.mulf %85, %86 : vector<8x8x128xf32>
    %88 = arith.addf %84, %87 : vector<8x8x128xf32>
    %89 = vector.extract_strided_slice %53 {offsets = [0, 0, 0], sizes = [8, 8, 128], strides = [1, 1, 1]} : vector<10x8x128xf32> to vector<8x8x128xf32>
    %90 = vector.broadcast %63 : vector<1x1x128xf32> to vector<8x8x128xf32>
    %91 = arith.mulf %89, %90 : vector<8x8x128xf32>
    %92 = arith.addf %88, %91 : vector<8x8x128xf32>
    %93 = vector.extract_strided_slice %46 {offsets = [1, 0, 0], sizes = [8, 8, 128], strides = [1, 1, 1]} : vector<10x8x128xf32> to vector<8x8x128xf32>
    %94 = vector.broadcast %66 : vector<1x1x128xf32> to vector<8x8x128xf32>
    %95 = arith.mulf %93, %94 : vector<8x8x128xf32>
    %96 = arith.addf %92, %95 : vector<8x8x128xf32>
    %97 = vector.extract_strided_slice %38 {offsets = [1, 0, 0], sizes = [8, 8, 128], strides = [1, 1, 1]} : vector<10x8x128xf32> to vector<8x8x128xf32>
    %98 = vector.broadcast %69 : vector<1x1x128xf32> to vector<8x8x128xf32>
    %99 = arith.mulf %97, %98 : vector<8x8x128xf32>
    %100 = arith.addf %96, %99 : vector<8x8x128xf32>
    %101 = vector.extract_strided_slice %53 {offsets = [1, 0, 0], sizes = [8, 8, 128], strides = [1, 1, 1]} : vector<10x8x128xf32> to vector<8x8x128xf32>
    %102 = vector.broadcast %72 : vector<1x1x128xf32> to vector<8x8x128xf32>
    %103 = arith.mulf %101, %102 : vector<8x8x128xf32>
    %104 = arith.addf %100, %103 : vector<8x8x128xf32>
    %105 = vector.extract_strided_slice %46 {offsets = [2, 0, 0], sizes = [8, 8, 128], strides = [1, 1, 1]} : vector<10x8x128xf32> to vector<8x8x128xf32>
    %106 = vector.broadcast %75 : vector<1x1x128xf32> to vector<8x8x128xf32>
    %107 = arith.mulf %105, %106 : vector<8x8x128xf32>
    %108 = arith.addf %104, %107 : vector<8x8x128xf32>
    %109 = vector.extract_strided_slice %38 {offsets = [2, 0, 0], sizes = [8, 8, 128], strides = [1, 1, 1]} : vector<10x8x128xf32> to vector<8x8x128xf32>
    %110 = vector.broadcast %78 : vector<1x1x128xf32> to vector<8x8x128xf32>
    %111 = arith.mulf %109, %110 : vector<8x8x128xf32>
    %112 = arith.addf %108, %111 : vector<8x8x128xf32>
    %113 = vector.extract_strided_slice %53 {offsets = [2, 0, 0], sizes = [8, 8, 128], strides = [1, 1, 1]} : vector<10x8x128xf32> to vector<8x8x128xf32>
    %114 = vector.broadcast %81 : vector<1x1x128xf32> to vector<8x8x128xf32>
    %115 = arith.mulf %113, %114 : vector<8x8x128xf32>
    %116 = arith.addf %112, %115 : vector<8x8x128xf32>
    %c0_25 = arith.constant 0 : index
    %c0_26 = arith.constant 0 : index
    %117 = vector.load %arg8[%c0_25, %c0_26] : memref<1x128xf32, #tpu.memory_space<vmem>>, vector<1x128xf32>
    %118 = vector.shape_cast %117 : vector<1x128xf32> to vector<1x1x128xf32>
    %119 = vector.broadcast %118 : vector<1x1x128xf32> to vector<8x8x128xf32>
    %120 = arith.addf %116, %119 : vector<8x8x128xf32>
    %121 = vector.shape_cast %120 : vector<8x8x128xf32> to vector<64x128xf32>
    %122 = arith.truncf %121 : vector<64x128xf32> to vector<64x128xbf16>
    %c0_27 = arith.constant 0 : index
    %c0_28 = arith.constant 0 : index
    %123 = vector.load %arg9[%c0_27, %c0_28] : memref<128x128xbf16, #tpu.memory_space<vmem>>, vector<128x128xbf16>
    %cst_29 = arith.constant dense<0.000000e+00> : vector<64x128xf32>
    %124 = tpu.matmul %122, %123, %cst_29 {dimension_numbers = #tpu.dot_dimension_numbers<[1], [0], [0], [1], [0, 0, 1, 1], [], []>} : vector<64x128xbf16>, vector<128x128xbf16>, vector<64x128xf32> -> vector<64x128xf32>
    %c0_30 = arith.constant 0 : index
    %c0_31 = arith.constant 0 : index
    %125 = vector.load %arg10[%c0_30, %c0_31] : memref<1x128xf32, #tpu.memory_space<vmem>>, vector<1x128xf32>
    %126 = vector.broadcast %125 : vector<1x128xf32> to vector<64x128xf32>
    %127 = arith.addf %124, %126 : vector<64x128xf32>
    %128 = vector.shape_cast %2 : vector<8x8x128xf32> to vector<64x128xf32>
    %129 = arith.addf %127, %128 : vector<64x128xf32>
    %130 = arith.truncf %129 : vector<64x128xf32> to vector<64x128xbf16>
    %c0_32 = arith.constant 0 : index
    %c0_33 = arith.constant 0 : index
    %131 = vector.load %arg11[%c0_32, %c0_33] : memref<128x512xbf16, #tpu.memory_space<vmem>>, vector<128x512xbf16>
    %cst_34 = arith.constant dense<0.000000e+00> : vector<64x512xf32>
    %132 = tpu.matmul %130, %131, %cst_34 {dimension_numbers = #tpu.dot_dimension_numbers<[1], [0], [0], [1], [0, 0, 1, 1], [], []>} : vector<64x128xbf16>, vector<128x512xbf16>, vector<64x512xf32> -> vector<64x512xf32>
    %c0_35 = arith.constant 0 : index
    %c0_36 = arith.constant 0 : index
    %133 = vector.load %arg12[%c0_35, %c0_36] : memref<1x512xf32, #tpu.memory_space<vmem>>, vector<1x512xf32>
    %134 = vector.broadcast %133 : vector<1x512xf32> to vector<64x512xf32>
    %135 = arith.addf %132, %134 : vector<64x512xf32>
    %cst_37 = arith.constant 1.000000e-01 : f32
    %136 = vector.broadcast %cst_37 : f32 to vector<64x512xf32>
    %137 = arith.mulf %136, %135 : vector<64x512xf32>
    %138 = arith.maximumf %135, %137 : vector<64x512xf32>
    %139 = arith.truncf %138 : vector<64x512xf32> to vector<64x512xbf16>
    %c0_38 = arith.constant 0 : index
    %c0_39 = arith.constant 0 : index
    %140 = vector.load %arg13[%c0_38, %c0_39] : memref<512x128xbf16, #tpu.memory_space<vmem>>, vector<512x128xbf16>
    %cst_40 = arith.constant dense<0.000000e+00> : vector<64x128xf32>
    %141 = tpu.matmul %139, %140, %cst_40 {dimension_numbers = #tpu.dot_dimension_numbers<[1], [0], [0], [1], [0, 0, 1, 1], [], []>} : vector<64x512xbf16>, vector<512x128xbf16>, vector<64x128xf32> -> vector<64x128xf32>
    %c0_41 = arith.constant 0 : index
    %c0_42 = arith.constant 0 : index
    %142 = vector.load %arg14[%c0_41, %c0_42] : memref<1x128xf32, #tpu.memory_space<vmem>>, vector<1x128xf32>
    %143 = vector.broadcast %142 : vector<1x128xf32> to vector<64x128xf32>
    %144 = arith.addf %141, %143 : vector<64x128xf32>
    %cst_43 = arith.constant 1.000000e-01 : f32
    %145 = vector.broadcast %cst_43 : f32 to vector<64x128xf32>
    %146 = arith.mulf %145, %144 : vector<64x128xf32>
    %147 = arith.maximumf %144, %146 : vector<64x128xf32>
    %148 = arith.addf %129, %147 : vector<64x128xf32>
    %149 = vector.shape_cast %148 : vector<64x128xf32> to vector<8x8x128xf32>
    %150 = arith.truncf %149 : vector<8x8x128xf32> to vector<8x8x128xbf16>
    %c0_44 = arith.constant 0 : index
    %c0_45 = arith.constant 0 : index
    %c0_46 = arith.constant 0 : index
    %c0_47 = arith.constant 0 : index
    %151 = vector.load %arg15[%c0_44, %c0_45, %c0_46, %c0_47] : memref<1x8x8x128xbf16, #tpu.memory_space<vmem>>, vector<1x8x8x128xbf16>
    %152 = vector.shape_cast %151 : vector<1x8x8x128xbf16> to vector<8x8x128xbf16>
    %153 = vector.shape_cast %150 : vector<8x8x128xbf16> to vector<1x8x8x128xbf16>
    tpu.vector_store %arg15[%c0_44, %c0_45, %c0_46, %c0_47], %153 {strides = array<i32>} : memref<1x8x8x128xbf16, #tpu.memory_space<vmem>>, vector<1x8x8x128xbf16>,
    return
  }
  func.func @transform_0(%arg0: i32, %arg1: i32) -> (i32, i32, i32, i32) {
    %c0_i32 = arith.constant 0 : i32
    %c0_i32_0 = arith.constant 0 : i32
    %c0_i32_1 = arith.constant 0 : i32
    return %arg0, %arg1, %c0_i32, %c0_i32_0 : i32, i32, i32, i32
  }
  func.func @transform_1(%arg0: i32, %arg1: i32) -> (i32, i32, i32, i32) {
    %c8_i32 = arith.constant 8 : i32
    %0 = arith.muli %arg1, %c8_i32 : i32
    %c1_i32 = arith.constant 1 : i32
    %1 = arith.subi %0, %c1_i32 : i32
    %c0_i32 = arith.constant 0 : i32
    %2 = arith.maxsi %1, %c0_i32 : i32
    %c0_i32_0 = arith.constant 0 : i32
    %c0_i32_1 = arith.constant 0 : i32
    %c0_i32_2 = arith.constant 0 : i32
    return %arg0, %2, %c0_i32_0, %c0_i32_1 : i32, i32, i32, i32
  }
  func.func @transform_2(%arg0: i32, %arg1: i32) -> (i32, i32, i32, i32) {
    %c8_i32 = arith.constant 8 : i32
    %0 = arith.muli %arg1, %c8_i32 : i32
    %c8_i32_0 = arith.constant 8 : i32
    %1 = arith.addi %0, %c8_i32_0 : i32
    %c7_i32 = arith.constant 7 : i32
    %2 = arith.minsi %1, %c7_i32 : i32
    %c0_i32 = arith.constant 0 : i32
    %c0_i32_1 = arith.constant 0 : i32
    %c0_i32_2 = arith.constant 0 : i32
    return %arg0, %2, %c0_i32, %c0_i32_1 : i32, i32, i32, i32
  }
  func.func @transform_3(%arg0: i32, %arg1: i32) -> (i32, i32) {
    %c0_i32 = arith.constant 0 : i32
    %c0_i32_0 = arith.constant 0 : i32
    %c0_i32_1 = arith.constant 0 : i32
    return %c0_i32, %c0_i32_0 : i32, i32
  }
  func.func @transform_4(%arg0: i32, %arg1: i32) -> (i32, i32) {
    %c0_i32 = arith.constant 0 : i32
    %c0_i32_0 = arith.constant 0 : i32
    %c0_i32_1 = arith.constant 0 : i32
    return %c0_i32, %c0_i32_0 : i32, i32
  }
  func.func @transform_5(%arg0: i32, %arg1: i32) -> (i32, i32) {
    %c0_i32 = arith.constant 0 : i32
    %c0_i32_0 = arith.constant 0 : i32
    %c0_i32_1 = arith.constant 0 : i32
    return %c0_i32, %c0_i32_0 : i32, i32
  }
  func.func @transform_6(%arg0: i32, %arg1: i32) -> (i32, i32) {
    %c0_i32 = arith.constant 0 : i32
    %c0_i32_0 = arith.constant 0 : i32
    %c0_i32_1 = arith.constant 0 : i32
    return %c0_i32, %c0_i32_0 : i32, i32
  }
  func.func @transform_7(%arg0: i32, %arg1: i32) -> (i32, i32) {
    %c0_i32 = arith.constant 0 : i32
    %c0_i32_0 = arith.constant 0 : i32
    %c0_i32_1 = arith.constant 0 : i32
    return %c0_i32, %c0_i32_0 : i32, i32
  }
  func.func @transform_8(%arg0: i32, %arg1: i32) -> (i32, i32) {
    %c0_i32 = arith.constant 0 : i32
    %c0_i32_0 = arith.constant 0 : i32
    %c0_i32_1 = arith.constant 0 : i32
    return %c0_i32, %c0_i32_0 : i32, i32
  }
  func.func @transform_9(%arg0: i32, %arg1: i32) -> (i32, i32) {
    %c0_i32 = arith.constant 0 : i32
    %c0_i32_0 = arith.constant 0 : i32
    %c0_i32_1 = arith.constant 0 : i32
    return %c0_i32, %c0_i32_0 : i32, i32
  }
  func.func @transform_10(%arg0: i32, %arg1: i32) -> (i32, i32) {
    %c0_i32 = arith.constant 0 : i32
    %c0_i32_0 = arith.constant 0 : i32
    %c0_i32_1 = arith.constant 0 : i32
    return %c0_i32, %c0_i32_0 : i32, i32
  }
  func.func @transform_11(%arg0: i32, %arg1: i32) -> (i32, i32) {
    %c0_i32 = arith.constant 0 : i32
    %c0_i32_0 = arith.constant 0 : i32
    %c0_i32_1 = arith.constant 0 : i32
    return %c0_i32, %c0_i32_0 : i32, i32
  }
  func.func @transform_12(%arg0: i32, %arg1: i32) -> (i32, i32) {
    %c0_i32 = arith.constant 0 : i32
    %c0_i32_0 = arith.constant 0 : i32
    %c0_i32_1 = arith.constant 0 : i32
    return %c0_i32, %c0_i32_0 : i32, i32
  }
  func.func @transform_13(%arg0: i32, %arg1: i32) -> (i32, i32, i32, i32) {
    %c0_i32 = arith.constant 0 : i32
    %c0_i32_0 = arith.constant 0 : i32
    %c0_i32_1 = arith.constant 0 : i32
    return %arg0, %arg1, %c0_i32, %c0_i32_0 : i32, i32, i32, i32
  }
}

module attributes {stable_mosaic.version = 11 : i64} {
  func.func @kernel(%arg0: i32, %arg1: i32, %arg2: memref<1x8x8x128xbf16, #tpu.memory_space<vmem>>, %arg3: memref<1x1x8x128xbf16, #tpu.memory_space<vmem>>, %arg4: memref<1x1x8x128xbf16, #tpu.memory_space<vmem>>, %arg5: memref<128x128xbf16, #tpu.memory_space<vmem>>, %arg6: memref<1x128xf32, #tpu.memory_space<vmem>>, %arg7: memref<9x128xf32, #tpu.memory_space<vmem>>, %arg8: memref<1x128xf32, #tpu.memory_space<vmem>>, %arg9: memref<128x128xbf16, #tpu.memory_space<vmem>>, %arg10: memref<1x128xf32, #tpu.memory_space<vmem>>, %arg11: memref<128x512xbf16, #tpu.memory_space<vmem>>, %arg12: memref<1x512xf32, #tpu.memory_space<vmem>>, %arg13: memref<512x128xbf16, #tpu.memory_space<vmem>>, %arg14: memref<1x128xf32, #tpu.memory_space<vmem>>, %arg15: memref<1x8x8x128xbf16, #tpu.memory_space<vmem>>) attributes {dimension_semantics = [#tpu.dimension_semantics<parallel>, #tpu.dimension_semantics<parallel>], iteration_bounds = array<i64: 2, 1>, scalar_prefetch = 0 : i64, scratch_operands = 0 : i64, tpu.core_type = #tpu.core_type<tc>, window_params = [{transform_indices = @transform_0, window_bounds = array<i64: 1, 8, 8, 128>}, {transform_indices = @transform_1, window_bounds = array<i64: 1, 1, 8, 128>}, {transform_indices = @transform_2, window_bounds = array<i64: 1, 1, 8, 128>}, {pipeline_mode = #tpu.pipeline_mode<synchronous>, transform_indices = @transform_3, window_bounds = array<i64: 128, 128>}, {pipeline_mode = #tpu.pipeline_mode<synchronous>, transform_indices = @transform_4, window_bounds = array<i64: 1, 128>}, {pipeline_mode = #tpu.pipeline_mode<synchronous>, transform_indices = @transform_5, window_bounds = array<i64: 9, 128>}, {pipeline_mode = #tpu.pipeline_mode<synchronous>, transform_indices = @transform_6, window_bounds = array<i64: 1, 128>}, {pipeline_mode = #tpu.pipeline_mode<synchronous>, transform_indices = @transform_7, window_bounds = array<i64: 128, 128>}, {pipeline_mode = #tpu.pipeline_mode<synchronous>, transform_indices = @transform_8, window_bounds = array<i64: 1, 128>}, {pipeline_mode = #tpu.pipeline_mode<synchronous>, transform_indices = @transform_9, window_bounds = array<i64: 128, 512>}, {pipeline_mode = #tpu.pipeline_mode<synchronous>, transform_indices = @transform_10, window_bounds = array<i64: 1, 512>}, {pipeline_mode = #tpu.pipeline_mode<synchronous>, transform_indices = @transform_11, window_bounds = array<i64: 512, 128>}, {pipeline_mode = #tpu.pipeline_mode<synchronous>, transform_indices = @transform_12, window_bounds = array<i64: 1, 128>}, {transform_indices = @transform_13, window_bounds = array<i64: 1, 8, 8, 128>}]} {
    %c0 = arith.constant 0 : index
    %c0_0 = arith.constant 0 : index
    %c0_1 = arith.constant 0 : index
    %c0_2 = arith.constant 0 : index
    %0 = vector.load %arg2[%c0, %c0_0, %c0_1, %c0_2] : memref<1x8x8x128xbf16, #tpu.memory_space<vmem>>, vector<1x8x8x128xbf16>
    %1 = vector.shape_cast %0 : vector<1x8x8x128xbf16> to vector<8x8x128xbf16>
    %2 = arith.extf %1 : vector<8x8x128xbf16> to vector<8x8x128xf32>
    %c0_3 = arith.constant 0 : index
    %c0_4 = arith.constant 0 : index
    %c0_5 = arith.constant 0 : index
    %c0_6 = arith.constant 0 : index
    %3 = vector.load %arg3[%c0_3, %c0_4, %c0_5, %c0_6] : memref<1x1x8x128xbf16, #tpu.memory_space<vmem>>, vector<1x1x8x128xbf16>
    %4 = vector.shape_cast %3 : vector<1x1x8x128xbf16> to vector<1x8x128xbf16>
    %5 = arith.extf %4 : vector<1x8x128xbf16> to vector<1x8x128xf32>
    %c0_7 = arith.constant 0 : index
    %c0_8 = arith.constant 0 : index
    %c0_9 = arith.constant 0 : index
    %c0_10 = arith.constant 0 : index
    %6 = vector.load %arg4[%c0_7, %c0_8, %c0_9, %c0_10] : memref<1x1x8x128xbf16, #tpu.memory_space<vmem>>, vector<1x1x8x128xbf16>
    %7 = vector.shape_cast %6 : vector<1x1x8x128xbf16> to vector<1x8x128xbf16>
    %8 = arith.extf %7 : vector<1x8x128xbf16> to vector<1x8x128xf32>
    %9 = tpu.concatenate %5, %2, %8 in 0 : vector<1x8x128xf32>, vector<8x8x128xf32>, vector<1x8x128xf32> -> vector<10x8x128xf32>
    %10 = vector.shape_cast %9 : vector<10x8x128xf32> to vector<80x128xf32>
    %11 = arith.truncf %10 : vector<80x128xf32> to vector<80x128xbf16>
    %c0_11 = arith.constant 0 : index
    %c0_12 = arith.constant 0 : index
    %12 = vector.load %arg5[%c0_11, %c0_12] : memref<128x128xbf16, #tpu.memory_space<vmem>>, vector<128x128xbf16>
    %cst = arith.constant dense<0.000000e+00> : vector<80x128xf32>
    %13 = tpu.matmul %11, %12, %cst {dimension_numbers = #tpu.dot_dimension_numbers<[1], [0], [0], [1], [0, 0, 1, 1], [], []>} : vector<80x128xbf16>, vector<128x128xbf16>, vector<80x128xf32> -> vector<80x128xf32>
    %c0_13 = arith.constant 0 : index
    %c0_14 = arith.constant 0 : index
    %14 = vector.load %arg6[%c0_13, %c0_14] : memref<1x128xf32, #tpu.memory_space<vmem>>, vector<1x128xf32>
    %15 = vector.broadcast %14 : vector<1x128xf32> to vector<80x128xf32>
    %16 = arith.addf %13, %15 : vector<80x128xf32>
    %cst_15 = arith.constant 0.00999999977 : f32
    %17 = vector.broadcast %cst_15 : f32 to vector<80x128xf32>
    %18 = arith.mulf %17, %16 : vector<80x128xf32>
    %19 = arith.maximumf %16, %18 : vector<80x128xf32>
    %20 = vector.shape_cast %19 : vector<80x128xf32> to vector<10x8x128xf32>
    %c0_i32 = arith.constant 0 : i32
    %21 = arith.cmpi ne, %arg1, %c0_i32 : i32
    %22 = arith.extui %21 : i1 to i32
    %23 = arith.sitofp %22 : i32 to f32
    %c0_i32_16 = arith.constant 0 : i32
    %24 = arith.cmpi ne, %arg1, %c0_i32_16 : i32
    %25 = arith.extui %24 : i1 to i32
    %26 = arith.sitofp %25 : i32 to f32
    %27 = tpu.iota {dimensions = array<i32: 0>} : vector<10x1x1xi32>
    %c0_i32_17 = arith.constant 0 : i32
    %28 = vector.broadcast %c0_i32_17 : i32 to vector<10x1x1xi32>
    %29 = arith.cmpi eq, %27, %28 : vector<10x1x1xi32>
    %cst_18 = arith.constant 1.000000e+00 : f32
    %30 = vector.broadcast %23 : f32 to vector<10x1x1xf32>
    %31 = vector.broadcast %cst_18 : f32 to vector<10x1x1xf32>
    %32 = arith.select %29, %30, %31 : vector<10x1x1xi1>, vector<10x1x1xf32>
    %c9_i32 = arith.constant 9 : i32
    %33 = vector.broadcast %c9_i32 : i32 to vector<10x1x1xi32>
    %34 = arith.cmpi eq, %27, %33 : vector<10x1x1xi32>
    %35 = vector.broadcast %26 : f32 to vector<10x1x1xf32>
    %36 = arith.select %34, %35, %32 : vector<10x1x1xi1>, vector<10x1x1xf32>
    %37 = vector.broadcast %36 : vector<10x1x1xf32> to vector<10x8x128xf32>
    %38 = arith.mulf %20, %37 : vector<10x8x128xf32>
    %39 = tpu.iota {dimensions = array<i32: 1>} : vector<1x8x1xi32>
    %c0_i32_19 = arith.constant 0 : i32
    %40 = vector.broadcast %c0_i32_19 : i32 to vector<1x8x1xi32>
    %41 = arith.cmpi eq, %39, %40 : vector<1x8x1xi32>
    %c1_i32 = arith.constant 1 : i32
    %42 = tpu.dynamic_rotate %38 by %c1_i32 dim 1 : vector<10x8x128xf32>, i32 -> vector<10x8x128xf32>
    %cst_20 = arith.constant 0.000000e+00 : f32
    %43 = vector.shape_cast %41 : vector<1x8x1xi1> to vector<1x8x1xi1>
    %44 = vector.broadcast %43 : vector<1x8x1xi1> to vector<10x8x128xi1>
    %45 = vector.broadcast %cst_20 : f32 to vector<10x8x128xf32>
    %46 = arith.select %44, %45, %42 : vector<10x8x128xi1>, vector<10x8x128xf32>
    %c7_i32 = arith.constant 7 : i32
    %47 = vector.broadcast %c7_i32 : i32 to vector<1x8x1xi32>
    %48 = arith.cmpi eq, %39, %47 : vector<1x8x1xi32>
    %c7_i32_21 = arith.constant 7 : i32
    %49 = tpu.dynamic_rotate %38 by %c7_i32_21 dim 1 : vector<10x8x128xf32>, i32 -> vector<10x8x128xf32>
    %cst_22 = arith.constant 0.000000e+00 : f32
    %50 = vector.shape_cast %48 : vector<1x8x1xi1> to vector<1x8x1xi1>
    %51 = vector.broadcast %50 : vector<1x8x1xi1> to vector<10x8x128xi1>
    %52 = vector.broadcast %cst_22 : f32 to vector<10x8x128xf32>
    %53 = arith.select %51, %52, %49 : vector<10x8x128xi1>, vector<10x8x128xf32>
    %c0_23 = arith.constant 0 : index
    %c0_24 = arith.constant 0 : index
    %54 = vector.load %arg7[%c0_23, %c0_24] : memref<9x128xf32, #tpu.memory_space<vmem>>, vector<9x128xf32>
    %55 = vector.extract_strided_slice %54 {offsets = [0, 0], sizes = [1, 128], strides = [1, 1]} : vector<9x128xf32> to vector<1x128xf32>
    %56 = vector.shape_cast %55 : vector<1x128xf32> to vector<128xf32>
    %57 = vector.shape_cast %56 : vector<128xf32> to vector<1x1x128xf32>
    %58 = vector.extract_strided_slice %54 {offsets = [1, 0], sizes = [1, 128], strides = [1, 1]} : vector<9x128xf32> to vector<1x128xf32>
    %59 = vector.shape_cast %58 : vector<1x128xf32> to vector<128xf32>
    %60 = vector.shape_cast %59 : vector<128xf32> to vector<1x1x128xf32>
    %61 = vector.extract_strided_slice %54 {offsets = [2, 0], sizes = [1, 128], strides = [1, 1]} : vector<9x128xf32> to vector<1x128xf32>
    %62 = vector.shape_cast %61 : vector<1x128xf32> to vector<128xf32>
    %63 = vector.shape_cast %62 : vector<128xf32> to vector<1x1x128xf32>
    %64 = vector.extract_strided_slice %54 {offsets = [3, 0], sizes = [1, 128], strides = [1, 1]} : vector<9x128xf32> to vector<1x128xf32>
    %65 = vector.shape_cast %64 : vector<1x128xf32> to vector<128xf32>
    %66 = vector.shape_cast %65 : vector<128xf32> to vector<1x1x128xf32>
    %67 = vector.extract_strided_slice %54 {offsets = [4, 0], sizes = [1, 128], strides = [1, 1]} : vector<9x128xf32> to vector<1x128xf32>
    %68 = vector.shape_cast %67 : vector<1x128xf32> to vector<128xf32>
    %69 = vector.shape_cast %68 : vector<128xf32> to vector<1x1x128xf32>
    %70 = vector.extract_strided_slice %54 {offsets = [5, 0], sizes = [1, 128], strides = [1, 1]} : vector<9x128xf32> to vector<1x128xf32>
    %71 = vector.shape_cast %70 : vector<1x128xf32> to vector<128xf32>
    %72 = vector.shape_cast %71 : vector<128xf32> to vector<1x1x128xf32>
    %73 = vector.extract_strided_slice %54 {offsets = [6, 0], sizes = [1, 128], strides = [1, 1]} : vector<9x128xf32> to vector<1x128xf32>
    %74 = vector.shape_cast %73 : vector<1x128xf32> to vector<128xf32>
    %75 = vector.shape_cast %74 : vector<128xf32> to vector<1x1x128xf32>
    %76 = vector.extract_strided_slice %54 {offsets = [7, 0], sizes = [1, 128], strides = [1, 1]} : vector<9x128xf32> to vector<1x128xf32>
    %77 = vector.shape_cast %76 : vector<1x128xf32> to vector<128xf32>
    %78 = vector.shape_cast %77 : vector<128xf32> to vector<1x1x128xf32>
    %79 = vector.extract_strided_slice %54 {offsets = [8, 0], sizes = [1, 128], strides = [1, 1]} : vector<9x128xf32> to vector<1x128xf32>
    %80 = vector.shape_cast %79 : vector<1x128xf32> to vector<128xf32>
    %81 = vector.shape_cast %80 : vector<128xf32> to vector<1x1x128xf32>
    %82 = vector.extract_strided_slice %46 {offsets = [0, 0, 0], sizes = [8, 8, 128], strides = [1, 1, 1]} : vector<10x8x128xf32> to vector<8x8x128xf32>
    %83 = vector.broadcast %57 : vector<1x1x128xf32> to vector<8x8x128xf32>
    %84 = arith.mulf %82, %83 : vector<8x8x128xf32>
    %85 = vector.extract_strided_slice %38 {offsets = [0, 0, 0], sizes = [8, 8, 128], strides = [1, 1, 1]} : vector<10x8x128xf32> to vector<8x8x128xf32>
    %86 = vector.broadcast %60 : vector<1x1x128xf32> to vector<8x8x128xf32>
    %87 = arith.mulf %85, %86 : vector<8x8x128xf32>
    %88 = arith.addf %84, %87 : vector<8x8x128xf32>
    %89 = vector.extract_strided_slice %53 {offsets = [0, 0, 0], sizes = [8, 8, 128], strides = [1, 1, 1]} : vector<10x8x128xf32> to vector<8x8x128xf32>
    %90 = vector.broadcast %63 : vector<1x1x128xf32> to vector<8x8x128xf32>
    %91 = arith.mulf %89, %90 : vector<8x8x128xf32>
    %92 = arith.addf %88, %91 : vector<8x8x128xf32>
    %93 = vector.extract_strided_slice %46 {offsets = [1, 0, 0], sizes = [8, 8, 128], strides = [1, 1, 1]} : vector<10x8x128xf32> to vector<8x8x128xf32>
    %94 = vector.broadcast %66 : vector<1x1x128xf32> to vector<8x8x128xf32>
    %95 = arith.mulf %93, %94 : vector<8x8x128xf32>
    %96 = arith.addf %92, %95 : vector<8x8x128xf32>
    %97 = vector.extract_strided_slice %38 {offsets = [1, 0, 0], sizes = [8, 8, 128], strides = [1, 1, 1]} : vector<10x8x128xf32> to vector<8x8x128xf32>
    %98 = vector.broadcast %69 : vector<1x1x128xf32> to vector<8x8x128xf32>
    %99 = arith.mulf %97, %98 : vector<8x8x128xf32>
    %100 = arith.addf %96, %99 : vector<8x8x128xf32>
    %101 = vector.extract_strided_slice %53 {offsets = [1, 0, 0], sizes = [8, 8, 128], strides = [1, 1, 1]} : vector<10x8x128xf32> to vector<8x8x128xf32>
    %102 = vector.broadcast %72 : vector<1x1x128xf32> to vector<8x8x128xf32>
    %103 = arith.mulf %101, %102 : vector<8x8x128xf32>
    %104 = arith.addf %100, %103 : vector<8x8x128xf32>
    %105 = vector.extract_strided_slice %46 {offsets = [2, 0, 0], sizes = [8, 8, 128], strides = [1, 1, 1]} : vector<10x8x128xf32> to vector<8x8x128xf32>
    %106 = vector.broadcast %75 : vector<1x1x128xf32> to vector<8x8x128xf32>
    %107 = arith.mulf %105, %106 : vector<8x8x128xf32>
    %108 = arith.addf %104, %107 : vector<8x8x128xf32>
    %109 = vector.extract_strided_slice %38 {offsets = [2, 0, 0], sizes = [8, 8, 128], strides = [1, 1, 1]} : vector<10x8x128xf32> to vector<8x8x128xf32>
    %110 = vector.broadcast %78 : vector<1x1x128xf32> to vector<8x8x128xf32>
    %111 = arith.mulf %109, %110 : vector<8x8x128xf32>
    %112 = arith.addf %108, %111 : vector<8x8x128xf32>
    %113 = vector.extract_strided_slice %53 {offsets = [2, 0, 0], sizes = [8, 8, 128], strides = [1, 1, 1]} : vector<10x8x128xf32> to vector<8x8x128xf32>
    %114 = vector.broadcast %81 : vector<1x1x128xf32> to vector<8x8x128xf32>
    %115 = arith.mulf %113, %114 : vector<8x8x128xf32>
    %116 = arith.addf %112, %115 : vector<8x8x128xf32>
    %c0_25 = arith.constant 0 : index
    %c0_26 = arith.constant 0 : index
    %117 = vector.load %arg8[%c0_25, %c0_26] : memref<1x128xf32, #tpu.memory_space<vmem>>, vector<1x128xf32>
    %118 = vector.shape_cast %117 : vector<1x128xf32> to vector<1x1x128xf32>
    %119 = vector.broadcast %118 : vector<1x1x128xf32> to vector<8x8x128xf32>
    %120 = arith.addf %116, %119 : vector<8x8x128xf32>
    %121 = vector.shape_cast %120 : vector<8x8x128xf32> to vector<64x128xf32>
    %122 = arith.truncf %121 : vector<64x128xf32> to vector<64x128xbf16>
    %c0_27 = arith.constant 0 : index
    %c0_28 = arith.constant 0 : index
    %123 = vector.load %arg9[%c0_27, %c0_28] : memref<128x128xbf16, #tpu.memory_space<vmem>>, vector<128x128xbf16>
    %cst_29 = arith.constant dense<0.000000e+00> : vector<64x128xf32>
    %124 = tpu.matmul %122, %123, %cst_29 {dimension_numbers = #tpu.dot_dimension_numbers<[1], [0], [0], [1], [0, 0, 1, 1], [], []>} : vector<64x128xbf16>, vector<128x128xbf16>, vector<64x128xf32> -> vector<64x128xf32>
    %c0_30 = arith.constant 0 : index
    %c0_31 = arith.constant 0 : index
    %125 = vector.load %arg10[%c0_30, %c0_31] : memref<1x128xf32, #tpu.memory_space<vmem>>, vector<1x128xf32>
    %126 = vector.broadcast %125 : vector<1x128xf32> to vector<64x128xf32>
    %127 = arith.addf %124, %126 : vector<64x128xf32>
    %128 = vector.shape_cast %2 : vector<8x8x128xf32> to vector<64x128xf32>
    %129 = arith.addf %127, %128 : vector<64x128xf32>
    %130 = arith.truncf %129 : vector<64x128xf32> to vector<64x128xbf16>
    %c0_32 = arith.constant 0 : index
    %c0_33 = arith.constant 0 : index
    %131 = vector.load %arg11[%c0_32, %c0_33] : memref<128x512xbf16, #tpu.memory_space<vmem>>, vector<128x512xbf16>
    %cst_34 = arith.constant dense<0.000000e+00> : vector<64x512xf32>
    %132 = tpu.matmul %130, %131, %cst_34 {dimension_numbers = #tpu.dot_dimension_numbers<[1], [0], [0], [1], [0, 0, 1, 1], [], []>} : vector<64x128xbf16>, vector<128x512xbf16>, vector<64x512xf32> -> vector<64x512xf32>
    %c0_35 = arith.constant 0 : index
    %c0_36 = arith.constant 0 : index
    %133 = vector.load %arg12[%c0_35, %c0_36] : memref<1x512xf32, #tpu.memory_space<vmem>>, vector<1x512xf32>
    %134 = vector.broadcast %133 : vector<1x512xf32> to vector<64x512xf32>
    %135 = arith.addf %132, %134 : vector<64x512xf32>
    %cst_37 = arith.constant 1.000000e-01 : f32
    %136 = vector.broadcast %cst_37 : f32 to vector<64x512xf32>
    %137 = arith.mulf %136, %135 : vector<64x512xf32>
    %138 = arith.maximumf %135, %137 : vector<64x512xf32>
    %139 = arith.truncf %138 : vector<64x512xf32> to vector<64x512xbf16>
    %c0_38 = arith.constant 0 : index
    %c0_39 = arith.constant 0 : index
    %140 = vector.load %arg13[%c0_38, %c0_39] : memref<512x128xbf16, #tpu.memory_space<vmem>>, vector<512x128xbf16>
    %cst_40 = arith.constant dense<0.000000e+00> : vector<64x128xf32>
    %141 = tpu.matmul %139, %140, %cst_40 {dimension_numbers = #tpu.dot_dimension_numbers<[1], [0], [0], [1], [0, 0, 1, 1], [], []>} : vector<64x512xbf16>, vector<512x128xbf16>, vector<64x128xf32> -> vector<64x128xf32>
    %c0_41 = arith.constant 0 : index
    %c0_42 = arith.constant 0 : index
    %142 = vector.load %arg14[%c0_41, %c0_42] : memref<1x128xf32, #tpu.memory_space<vmem>>, vector<1x128xf32>
    %143 = vector.broadcast %142 : vector<1x128xf32> to vector<64x128xf32>
    %144 = arith.addf %141, %143 : vector<64x128xf32>
    %cst_43 = arith.constant 1.000000e-01 : f32
    %145 = vector.broadcast %cst_43 : f32 to vector<64x128xf32>
    %146 = arith.mulf %145, %144 : vector<64x128xf32>
    %147 = arith.maximumf %144, %146 : vector<64x128xf32>
    %148 = arith.addf %129, %147 : vector<64x128xf32>
    %149 = vector.shape_cast %148 : vector<64x128xf32> to vector<8x8x128xf32>
    %150 = arith.truncf %149 : vector<8x8x128xf32> to vector<8x8x128xbf16>
    %c0_44 = arith.constant 0 : index
    %c0_45 = arith.constant 0 : index
    %c0_46 = arith.constant 0 : index
    %c0_47 = arith.constant 0 : index
    %151 = vector.load %arg15[%c0_44, %c0_45, %c0_46, %c0_47] : memref<1x8x8x128xbf16, #tpu.memory_space<vmem>>, vector<1x8x8x128xbf16>
    %152 = vector.shape_cast %151 : vector<1x8x8x128xbf16> to vector<8x8x128xbf16>
    %153 = vector.shape_cast %150 : vector<8x8x128xbf16> to vector<1x8x8x128xbf16>
    tpu.vector_store %arg15[%c0_44, %c0_45, %c0_46, %c0_47], %153 {strides = array<i32>} : memref<1x8x8x128xbf16, #tpu.memory_space<vmem>>, vector<1x8x8x128xbf16>,
    return
  }
  func.func @transform_0(%arg0: i32, %arg1: i32) -> (i32, i32, i32, i32) {
    %c0_i32 = arith.constant 0 : i32
    %c0_i32_0 = arith.constant 0 : i32
    %c0_i32_1 = arith.constant 0 : i32
    return %arg0, %arg1, %c0_i32, %c0_i32_0 : i32, i32, i32, i32
  }
  func.func @transform_1(%arg0: i32, %arg1: i32) -> (i32, i32, i32, i32) {
    %c8_i32 = arith.constant 8 : i32
    %0 = arith.muli %arg1, %c8_i32 : i32
    %c1_i32 = arith.constant 1 : i32
    %1 = arith.subi %0, %c1_i32 : i32
    %c0_i32 = arith.constant 0 : i32
    %2 = arith.maxsi %1, %c0_i32 : i32
    %c0_i32_0 = arith.constant 0 : i32
    %c0_i32_1 = arith.constant 0 : i32
    %c0_i32_2 = arith.constant 0 : i32
    return %arg0, %2, %c0_i32_0, %c0_i32_1 : i32, i32, i32, i32
  }
  func.func @transform_2(%arg0: i32, %arg1: i32) -> (i32, i32, i32, i32) {
    %c8_i32 = arith.constant 8 : i32
    %0 = arith.muli %arg1, %c8_i32 : i32
    %c8_i32_0 = arith.constant 8 : i32
    %1 = arith.addi %0, %c8_i32_0 : i32
    %c7_i32 = arith.constant 7 : i32
    %2 = arith.minsi %1, %c7_i32 : i32
    %c0_i32 = arith.constant 0 : i32
    %c0_i32_1 = arith.constant 0 : i32
    %c0_i32_2 = arith.constant 0 : i32
    return %arg0, %2, %c0_i32, %c0_i32_1 : i32, i32, i32, i32
  }
  func.func @transform_3(%arg0: i32, %arg1: i32) -> (i32, i32) {
    %c0_i32 = arith.constant 0 : i32
    %c0_i32_0 = arith.constant 0 : i32
    %c0_i32_1 = arith.constant 0 : i32
    return %c0_i32, %c0_i32_0 : i32, i32
  }
  func.func @transform_4(%arg0: i32, %arg1: i32) -> (i32, i32) {
    %c0_i32 = arith.constant 0 : i32
    %c0_i32_0 = arith.constant 0 : i32
    %c0_i32_1 = arith.constant 0 : i32
    return %c0_i32, %c0_i32_0 : i32, i32
  }
  func.func @transform_5(%arg0: i32, %arg1: i32) -> (i32, i32) {
    %c0_i32 = arith.constant 0 : i32
    %c0_i32_0 = arith.constant 0 : i32
    %c0_i32_1 = arith.constant 0 : i32
    return %c0_i32, %c0_i32_0 : i32, i32
  }
  func.func @transform_6(%arg0: i32, %arg1: i32) -> (i32, i32) {
    %c0_i32 = arith.constant 0 : i32
    %c0_i32_0 = arith.constant 0 : i32
    %c0_i32_1 = arith.constant 0 : i32
    return %c0_i32, %c0_i32_0 : i32, i32
  }
  func.func @transform_7(%arg0: i32, %arg1: i32) -> (i32, i32) {
    %c0_i32 = arith.constant 0 : i32
    %c0_i32_0 = arith.constant 0 : i32
    %c0_i32_1 = arith.constant 0 : i32
    return %c0_i32, %c0_i32_0 : i32, i32
  }
  func.func @transform_8(%arg0: i32, %arg1: i32) -> (i32, i32) {
    %c0_i32 = arith.constant 0 : i32
    %c0_i32_0 = arith.constant 0 : i32
    %c0_i32_1 = arith.constant 0 : i32
    return %c0_i32, %c0_i32_0 : i32, i32
  }
  func.func @transform_9(%arg0: i32, %arg1: i32) -> (i32, i32) {
    %c0_i32 = arith.constant 0 : i32
    %c0_i32_0 = arith.constant 0 : i32
    %c0_i32_1 = arith.constant 0 : i32
    return %c0_i32, %c0_i32_0 : i32, i32
  }
  func.func @transform_10(%arg0: i32, %arg1: i32) -> (i32, i32) {
    %c0_i32 = arith.constant 0 : i32
    %c0_i32_0 = arith.constant 0 : i32
    %c0_i32_1 = arith.constant 0 : i32
    return %c0_i32, %c0_i32_0 : i32, i32
  }
  func.func @transform_11(%arg0: i32, %arg1: i32) -> (i32, i32) {
    %c0_i32 = arith.constant 0 : i32
    %c0_i32_0 = arith.constant 0 : i32
    %c0_i32_1 = arith.constant 0 : i32
    return %c0_i32, %c0_i32_0 : i32, i32
  }
  func.func @transform_12(%arg0: i32, %arg1: i32) -> (i32, i32) {
    %c0_i32 = arith.constant 0 : i32
    %c0_i32_0 = arith.constant 0 : i32
    %c0_i32_1 = arith.constant 0 : i32
    return %c0_i32, %c0_i32_0 : i32, i32
  }
  func.func @transform_13(%arg0: i32, %arg1: i32) -> (i32, i32, i32, i32) {
    %c0_i32 = arith.constant 0 : i32
    %c0_i32_0 = arith.constant 0 : i32
    %c0_i32_1 = arith.constant 0 : i32
    return %arg0, %arg1, %c0_i32, %c0_i32_0 : i32, i32, i32, i32
  }
}

module attributes {stable_mosaic.version = 11 : i64} {
  func.func @kernel(%arg0: i32, %arg1: i32, %arg2: memref<1x8x8x128xbf16, #tpu.memory_space<vmem>>, %arg3: memref<1x1x8x128xbf16, #tpu.memory_space<vmem>>, %arg4: memref<1x1x8x128xbf16, #tpu.memory_space<vmem>>, %arg5: memref<128x128xbf16, #tpu.memory_space<vmem>>, %arg6: memref<1x128xf32, #tpu.memory_space<vmem>>, %arg7: memref<9x128xf32, #tpu.memory_space<vmem>>, %arg8: memref<1x128xf32, #tpu.memory_space<vmem>>, %arg9: memref<128x128xbf16, #tpu.memory_space<vmem>>, %arg10: memref<1x128xf32, #tpu.memory_space<vmem>>, %arg11: memref<128x512xbf16, #tpu.memory_space<vmem>>, %arg12: memref<1x512xf32, #tpu.memory_space<vmem>>, %arg13: memref<512x128xbf16, #tpu.memory_space<vmem>>, %arg14: memref<1x128xf32, #tpu.memory_space<vmem>>, %arg15: memref<1x8x8x128xbf16, #tpu.memory_space<vmem>>) attributes {dimension_semantics = [#tpu.dimension_semantics<parallel>, #tpu.dimension_semantics<parallel>], iteration_bounds = array<i64: 2, 1>, scalar_prefetch = 0 : i64, scratch_operands = 0 : i64, tpu.core_type = #tpu.core_type<tc>, window_params = [{transform_indices = @transform_0, window_bounds = array<i64: 1, 8, 8, 128>}, {transform_indices = @transform_1, window_bounds = array<i64: 1, 1, 8, 128>}, {transform_indices = @transform_2, window_bounds = array<i64: 1, 1, 8, 128>}, {pipeline_mode = #tpu.pipeline_mode<synchronous>, transform_indices = @transform_3, window_bounds = array<i64: 128, 128>}, {pipeline_mode = #tpu.pipeline_mode<synchronous>, transform_indices = @transform_4, window_bounds = array<i64: 1, 128>}, {pipeline_mode = #tpu.pipeline_mode<synchronous>, transform_indices = @transform_5, window_bounds = array<i64: 9, 128>}, {pipeline_mode = #tpu.pipeline_mode<synchronous>, transform_indices = @transform_6, window_bounds = array<i64: 1, 128>}, {pipeline_mode = #tpu.pipeline_mode<synchronous>, transform_indices = @transform_7, window_bounds = array<i64: 128, 128>}, {pipeline_mode = #tpu.pipeline_mode<synchronous>, transform_indices = @transform_8, window_bounds = array<i64: 1, 128>}, {pipeline_mode = #tpu.pipeline_mode<synchronous>, transform_indices = @transform_9, window_bounds = array<i64: 128, 512>}, {pipeline_mode = #tpu.pipeline_mode<synchronous>, transform_indices = @transform_10, window_bounds = array<i64: 1, 512>}, {pipeline_mode = #tpu.pipeline_mode<synchronous>, transform_indices = @transform_11, window_bounds = array<i64: 512, 128>}, {pipeline_mode = #tpu.pipeline_mode<synchronous>, transform_indices = @transform_12, window_bounds = array<i64: 1, 128>}, {transform_indices = @transform_13, window_bounds = array<i64: 1, 8, 8, 128>}]} {
    %c0 = arith.constant 0 : index
    %c0_0 = arith.constant 0 : index
    %c0_1 = arith.constant 0 : index
    %c0_2 = arith.constant 0 : index
    %0 = vector.load %arg2[%c0, %c0_0, %c0_1, %c0_2] : memref<1x8x8x128xbf16, #tpu.memory_space<vmem>>, vector<1x8x8x128xbf16>
    %1 = vector.shape_cast %0 : vector<1x8x8x128xbf16> to vector<8x8x128xbf16>
    %2 = arith.extf %1 : vector<8x8x128xbf16> to vector<8x8x128xf32>
    %c0_3 = arith.constant 0 : index
    %c0_4 = arith.constant 0 : index
    %c0_5 = arith.constant 0 : index
    %c0_6 = arith.constant 0 : index
    %3 = vector.load %arg3[%c0_3, %c0_4, %c0_5, %c0_6] : memref<1x1x8x128xbf16, #tpu.memory_space<vmem>>, vector<1x1x8x128xbf16>
    %4 = vector.shape_cast %3 : vector<1x1x8x128xbf16> to vector<1x8x128xbf16>
    %5 = arith.extf %4 : vector<1x8x128xbf16> to vector<1x8x128xf32>
    %c0_7 = arith.constant 0 : index
    %c0_8 = arith.constant 0 : index
    %c0_9 = arith.constant 0 : index
    %c0_10 = arith.constant 0 : index
    %6 = vector.load %arg4[%c0_7, %c0_8, %c0_9, %c0_10] : memref<1x1x8x128xbf16, #tpu.memory_space<vmem>>, vector<1x1x8x128xbf16>
    %7 = vector.shape_cast %6 : vector<1x1x8x128xbf16> to vector<1x8x128xbf16>
    %8 = arith.extf %7 : vector<1x8x128xbf16> to vector<1x8x128xf32>
    %9 = tpu.concatenate %5, %2, %8 in 0 : vector<1x8x128xf32>, vector<8x8x128xf32>, vector<1x8x128xf32> -> vector<10x8x128xf32>
    %10 = vector.shape_cast %9 : vector<10x8x128xf32> to vector<80x128xf32>
    %11 = arith.truncf %10 : vector<80x128xf32> to vector<80x128xbf16>
    %c0_11 = arith.constant 0 : index
    %c0_12 = arith.constant 0 : index
    %12 = vector.load %arg5[%c0_11, %c0_12] : memref<128x128xbf16, #tpu.memory_space<vmem>>, vector<128x128xbf16>
    %cst = arith.constant dense<0.000000e+00> : vector<80x128xf32>
    %13 = tpu.matmul %11, %12, %cst {dimension_numbers = #tpu.dot_dimension_numbers<[1], [0], [0], [1], [0, 0, 1, 1], [], []>} : vector<80x128xbf16>, vector<128x128xbf16>, vector<80x128xf32> -> vector<80x128xf32>
    %c0_13 = arith.constant 0 : index
    %c0_14 = arith.constant 0 : index
    %14 = vector.load %arg6[%c0_13, %c0_14] : memref<1x128xf32, #tpu.memory_space<vmem>>, vector<1x128xf32>
    %15 = vector.broadcast %14 : vector<1x128xf32> to vector<80x128xf32>
    %16 = arith.addf %13, %15 : vector<80x128xf32>
    %cst_15 = arith.constant 0.00999999977 : f32
    %17 = vector.broadcast %cst_15 : f32 to vector<80x128xf32>
    %18 = arith.mulf %17, %16 : vector<80x128xf32>
    %19 = arith.maximumf %16, %18 : vector<80x128xf32>
    %20 = vector.shape_cast %19 : vector<80x128xf32> to vector<10x8x128xf32>
    %c0_i32 = arith.constant 0 : i32
    %21 = arith.cmpi ne, %arg1, %c0_i32 : i32
    %22 = arith.extui %21 : i1 to i32
    %23 = arith.sitofp %22 : i32 to f32
    %c0_i32_16 = arith.constant 0 : i32
    %24 = arith.cmpi ne, %arg1, %c0_i32_16 : i32
    %25 = arith.extui %24 : i1 to i32
    %26 = arith.sitofp %25 : i32 to f32
    %27 = tpu.iota {dimensions = array<i32: 0>} : vector<10x1x1xi32>
    %c0_i32_17 = arith.constant 0 : i32
    %28 = vector.broadcast %c0_i32_17 : i32 to vector<10x1x1xi32>
    %29 = arith.cmpi eq, %27, %28 : vector<10x1x1xi32>
    %cst_18 = arith.constant 1.000000e+00 : f32
    %30 = vector.broadcast %23 : f32 to vector<10x1x1xf32>
    %31 = vector.broadcast %cst_18 : f32 to vector<10x1x1xf32>
    %32 = arith.select %29, %30, %31 : vector<10x1x1xi1>, vector<10x1x1xf32>
    %c9_i32 = arith.constant 9 : i32
    %33 = vector.broadcast %c9_i32 : i32 to vector<10x1x1xi32>
    %34 = arith.cmpi eq, %27, %33 : vector<10x1x1xi32>
    %35 = vector.broadcast %26 : f32 to vector<10x1x1xf32>
    %36 = arith.select %34, %35, %32 : vector<10x1x1xi1>, vector<10x1x1xf32>
    %37 = vector.broadcast %36 : vector<10x1x1xf32> to vector<10x8x128xf32>
    %38 = arith.mulf %20, %37 : vector<10x8x128xf32>
    %39 = tpu.iota {dimensions = array<i32: 1>} : vector<1x8x1xi32>
    %c0_i32_19 = arith.constant 0 : i32
    %40 = vector.broadcast %c0_i32_19 : i32 to vector<1x8x1xi32>
    %41 = arith.cmpi eq, %39, %40 : vector<1x8x1xi32>
    %c1_i32 = arith.constant 1 : i32
    %42 = tpu.dynamic_rotate %38 by %c1_i32 dim 1 : vector<10x8x128xf32>, i32 -> vector<10x8x128xf32>
    %cst_20 = arith.constant 0.000000e+00 : f32
    %43 = vector.shape_cast %41 : vector<1x8x1xi1> to vector<1x8x1xi1>
    %44 = vector.broadcast %43 : vector<1x8x1xi1> to vector<10x8x128xi1>
    %45 = vector.broadcast %cst_20 : f32 to vector<10x8x128xf32>
    %46 = arith.select %44, %45, %42 : vector<10x8x128xi1>, vector<10x8x128xf32>
    %c7_i32 = arith.constant 7 : i32
    %47 = vector.broadcast %c7_i32 : i32 to vector<1x8x1xi32>
    %48 = arith.cmpi eq, %39, %47 : vector<1x8x1xi32>
    %c7_i32_21 = arith.constant 7 : i32
    %49 = tpu.dynamic_rotate %38 by %c7_i32_21 dim 1 : vector<10x8x128xf32>, i32 -> vector<10x8x128xf32>
    %cst_22 = arith.constant 0.000000e+00 : f32
    %50 = vector.shape_cast %48 : vector<1x8x1xi1> to vector<1x8x1xi1>
    %51 = vector.broadcast %50 : vector<1x8x1xi1> to vector<10x8x128xi1>
    %52 = vector.broadcast %cst_22 : f32 to vector<10x8x128xf32>
    %53 = arith.select %51, %52, %49 : vector<10x8x128xi1>, vector<10x8x128xf32>
    %c0_23 = arith.constant 0 : index
    %c0_24 = arith.constant 0 : index
    %54 = vector.load %arg7[%c0_23, %c0_24] : memref<9x128xf32, #tpu.memory_space<vmem>>, vector<9x128xf32>
    %55 = vector.extract_strided_slice %54 {offsets = [0, 0], sizes = [1, 128], strides = [1, 1]} : vector<9x128xf32> to vector<1x128xf32>
    %56 = vector.shape_cast %55 : vector<1x128xf32> to vector<128xf32>
    %57 = vector.shape_cast %56 : vector<128xf32> to vector<1x1x128xf32>
    %58 = vector.extract_strided_slice %54 {offsets = [1, 0], sizes = [1, 128], strides = [1, 1]} : vector<9x128xf32> to vector<1x128xf32>
    %59 = vector.shape_cast %58 : vector<1x128xf32> to vector<128xf32>
    %60 = vector.shape_cast %59 : vector<128xf32> to vector<1x1x128xf32>
    %61 = vector.extract_strided_slice %54 {offsets = [2, 0], sizes = [1, 128], strides = [1, 1]} : vector<9x128xf32> to vector<1x128xf32>
    %62 = vector.shape_cast %61 : vector<1x128xf32> to vector<128xf32>
    %63 = vector.shape_cast %62 : vector<128xf32> to vector<1x1x128xf32>
    %64 = vector.extract_strided_slice %54 {offsets = [3, 0], sizes = [1, 128], strides = [1, 1]} : vector<9x128xf32> to vector<1x128xf32>
    %65 = vector.shape_cast %64 : vector<1x128xf32> to vector<128xf32>
    %66 = vector.shape_cast %65 : vector<128xf32> to vector<1x1x128xf32>
    %67 = vector.extract_strided_slice %54 {offsets = [4, 0], sizes = [1, 128], strides = [1, 1]} : vector<9x128xf32> to vector<1x128xf32>
    %68 = vector.shape_cast %67 : vector<1x128xf32> to vector<128xf32>
    %69 = vector.shape_cast %68 : vector<128xf32> to vector<1x1x128xf32>
    %70 = vector.extract_strided_slice %54 {offsets = [5, 0], sizes = [1, 128], strides = [1, 1]} : vector<9x128xf32> to vector<1x128xf32>
    %71 = vector.shape_cast %70 : vector<1x128xf32> to vector<128xf32>
    %72 = vector.shape_cast %71 : vector<128xf32> to vector<1x1x128xf32>
    %73 = vector.extract_strided_slice %54 {offsets = [6, 0], sizes = [1, 128], strides = [1, 1]} : vector<9x128xf32> to vector<1x128xf32>
    %74 = vector.shape_cast %73 : vector<1x128xf32> to vector<128xf32>
    %75 = vector.shape_cast %74 : vector<128xf32> to vector<1x1x128xf32>
    %76 = vector.extract_strided_slice %54 {offsets = [7, 0], sizes = [1, 128], strides = [1, 1]} : vector<9x128xf32> to vector<1x128xf32>
    %77 = vector.shape_cast %76 : vector<1x128xf32> to vector<128xf32>
    %78 = vector.shape_cast %77 : vector<128xf32> to vector<1x1x128xf32>
    %79 = vector.extract_strided_slice %54 {offsets = [8, 0], sizes = [1, 128], strides = [1, 1]} : vector<9x128xf32> to vector<1x128xf32>
    %80 = vector.shape_cast %79 : vector<1x128xf32> to vector<128xf32>
    %81 = vector.shape_cast %80 : vector<128xf32> to vector<1x1x128xf32>
    %82 = vector.extract_strided_slice %46 {offsets = [0, 0, 0], sizes = [8, 8, 128], strides = [1, 1, 1]} : vector<10x8x128xf32> to vector<8x8x128xf32>
    %83 = vector.broadcast %57 : vector<1x1x128xf32> to vector<8x8x128xf32>
    %84 = arith.mulf %82, %83 : vector<8x8x128xf32>
    %85 = vector.extract_strided_slice %38 {offsets = [0, 0, 0], sizes = [8, 8, 128], strides = [1, 1, 1]} : vector<10x8x128xf32> to vector<8x8x128xf32>
    %86 = vector.broadcast %60 : vector<1x1x128xf32> to vector<8x8x128xf32>
    %87 = arith.mulf %85, %86 : vector<8x8x128xf32>
    %88 = arith.addf %84, %87 : vector<8x8x128xf32>
    %89 = vector.extract_strided_slice %53 {offsets = [0, 0, 0], sizes = [8, 8, 128], strides = [1, 1, 1]} : vector<10x8x128xf32> to vector<8x8x128xf32>
    %90 = vector.broadcast %63 : vector<1x1x128xf32> to vector<8x8x128xf32>
    %91 = arith.mulf %89, %90 : vector<8x8x128xf32>
    %92 = arith.addf %88, %91 : vector<8x8x128xf32>
    %93 = vector.extract_strided_slice %46 {offsets = [1, 0, 0], sizes = [8, 8, 128], strides = [1, 1, 1]} : vector<10x8x128xf32> to vector<8x8x128xf32>
    %94 = vector.broadcast %66 : vector<1x1x128xf32> to vector<8x8x128xf32>
    %95 = arith.mulf %93, %94 : vector<8x8x128xf32>
    %96 = arith.addf %92, %95 : vector<8x8x128xf32>
    %97 = vector.extract_strided_slice %38 {offsets = [1, 0, 0], sizes = [8, 8, 128], strides = [1, 1, 1]} : vector<10x8x128xf32> to vector<8x8x128xf32>
    %98 = vector.broadcast %69 : vector<1x1x128xf32> to vector<8x8x128xf32>
    %99 = arith.mulf %97, %98 : vector<8x8x128xf32>
    %100 = arith.addf %96, %99 : vector<8x8x128xf32>
    %101 = vector.extract_strided_slice %53 {offsets = [1, 0, 0], sizes = [8, 8, 128], strides = [1, 1, 1]} : vector<10x8x128xf32> to vector<8x8x128xf32>
    %102 = vector.broadcast %72 : vector<1x1x128xf32> to vector<8x8x128xf32>
    %103 = arith.mulf %101, %102 : vector<8x8x128xf32>
    %104 = arith.addf %100, %103 : vector<8x8x128xf32>
    %105 = vector.extract_strided_slice %46 {offsets = [2, 0, 0], sizes = [8, 8, 128], strides = [1, 1, 1]} : vector<10x8x128xf32> to vector<8x8x128xf32>
    %106 = vector.broadcast %75 : vector<1x1x128xf32> to vector<8x8x128xf32>
    %107 = arith.mulf %105, %106 : vector<8x8x128xf32>
    %108 = arith.addf %104, %107 : vector<8x8x128xf32>
    %109 = vector.extract_strided_slice %38 {offsets = [2, 0, 0], sizes = [8, 8, 128], strides = [1, 1, 1]} : vector<10x8x128xf32> to vector<8x8x128xf32>
    %110 = vector.broadcast %78 : vector<1x1x128xf32> to vector<8x8x128xf32>
    %111 = arith.mulf %109, %110 : vector<8x8x128xf32>
    %112 = arith.addf %108, %111 : vector<8x8x128xf32>
    %113 = vector.extract_strided_slice %53 {offsets = [2, 0, 0], sizes = [8, 8, 128], strides = [1, 1, 1]} : vector<10x8x128xf32> to vector<8x8x128xf32>
    %114 = vector.broadcast %81 : vector<1x1x128xf32> to vector<8x8x128xf32>
    %115 = arith.mulf %113, %114 : vector<8x8x128xf32>
    %116 = arith.addf %112, %115 : vector<8x8x128xf32>
    %c0_25 = arith.constant 0 : index
    %c0_26 = arith.constant 0 : index
    %117 = vector.load %arg8[%c0_25, %c0_26] : memref<1x128xf32, #tpu.memory_space<vmem>>, vector<1x128xf32>
    %118 = vector.shape_cast %117 : vector<1x128xf32> to vector<1x1x128xf32>
    %119 = vector.broadcast %118 : vector<1x1x128xf32> to vector<8x8x128xf32>
    %120 = arith.addf %116, %119 : vector<8x8x128xf32>
    %121 = vector.shape_cast %120 : vector<8x8x128xf32> to vector<64x128xf32>
    %122 = arith.truncf %121 : vector<64x128xf32> to vector<64x128xbf16>
    %c0_27 = arith.constant 0 : index
    %c0_28 = arith.constant 0 : index
    %123 = vector.load %arg9[%c0_27, %c0_28] : memref<128x128xbf16, #tpu.memory_space<vmem>>, vector<128x128xbf16>
    %cst_29 = arith.constant dense<0.000000e+00> : vector<64x128xf32>
    %124 = tpu.matmul %122, %123, %cst_29 {dimension_numbers = #tpu.dot_dimension_numbers<[1], [0], [0], [1], [0, 0, 1, 1], [], []>} : vector<64x128xbf16>, vector<128x128xbf16>, vector<64x128xf32> -> vector<64x128xf32>
    %c0_30 = arith.constant 0 : index
    %c0_31 = arith.constant 0 : index
    %125 = vector.load %arg10[%c0_30, %c0_31] : memref<1x128xf32, #tpu.memory_space<vmem>>, vector<1x128xf32>
    %126 = vector.broadcast %125 : vector<1x128xf32> to vector<64x128xf32>
    %127 = arith.addf %124, %126 : vector<64x128xf32>
    %128 = vector.shape_cast %2 : vector<8x8x128xf32> to vector<64x128xf32>
    %129 = arith.addf %127, %128 : vector<64x128xf32>
    %130 = arith.truncf %129 : vector<64x128xf32> to vector<64x128xbf16>
    %c0_32 = arith.constant 0 : index
    %c0_33 = arith.constant 0 : index
    %131 = vector.load %arg11[%c0_32, %c0_33] : memref<128x512xbf16, #tpu.memory_space<vmem>>, vector<128x512xbf16>
    %cst_34 = arith.constant dense<0.000000e+00> : vector<64x512xf32>
    %132 = tpu.matmul %130, %131, %cst_34 {dimension_numbers = #tpu.dot_dimension_numbers<[1], [0], [0], [1], [0, 0, 1, 1], [], []>} : vector<64x128xbf16>, vector<128x512xbf16>, vector<64x512xf32> -> vector<64x512xf32>
    %c0_35 = arith.constant 0 : index
    %c0_36 = arith.constant 0 : index
    %133 = vector.load %arg12[%c0_35, %c0_36] : memref<1x512xf32, #tpu.memory_space<vmem>>, vector<1x512xf32>
    %134 = vector.broadcast %133 : vector<1x512xf32> to vector<64x512xf32>
    %135 = arith.addf %132, %134 : vector<64x512xf32>
    %cst_37 = arith.constant 1.000000e-01 : f32
    %136 = vector.broadcast %cst_37 : f32 to vector<64x512xf32>
    %137 = arith.mulf %136, %135 : vector<64x512xf32>
    %138 = arith.maximumf %135, %137 : vector<64x512xf32>
    %139 = arith.truncf %138 : vector<64x512xf32> to vector<64x512xbf16>
    %c0_38 = arith.constant 0 : index
    %c0_39 = arith.constant 0 : index
    %140 = vector.load %arg13[%c0_38, %c0_39] : memref<512x128xbf16, #tpu.memory_space<vmem>>, vector<512x128xbf16>
    %cst_40 = arith.constant dense<0.000000e+00> : vector<64x128xf32>
    %141 = tpu.matmul %139, %140, %cst_40 {dimension_numbers = #tpu.dot_dimension_numbers<[1], [0], [0], [1], [0, 0, 1, 1], [], []>} : vector<64x512xbf16>, vector<512x128xbf16>, vector<64x128xf32> -> vector<64x128xf32>
    %c0_41 = arith.constant 0 : index
    %c0_42 = arith.constant 0 : index
    %142 = vector.load %arg14[%c0_41, %c0_42] : memref<1x128xf32, #tpu.memory_space<vmem>>, vector<1x128xf32>
    %143 = vector.broadcast %142 : vector<1x128xf32> to vector<64x128xf32>
    %144 = arith.addf %141, %143 : vector<64x128xf32>
    %cst_43 = arith.constant 1.000000e-01 : f32
    %145 = vector.broadcast %cst_43 : f32 to vector<64x128xf32>
    %146 = arith.mulf %145, %144 : vector<64x128xf32>
    %147 = arith.maximumf %144, %146 : vector<64x128xf32>
    %148 = arith.addf %129, %147 : vector<64x128xf32>
    %149 = vector.shape_cast %148 : vector<64x128xf32> to vector<8x8x128xf32>
    %150 = arith.truncf %149 : vector<8x8x128xf32> to vector<8x8x128xbf16>
    %c0_44 = arith.constant 0 : index
    %c0_45 = arith.constant 0 : index
    %c0_46 = arith.constant 0 : index
    %c0_47 = arith.constant 0 : index
    %151 = vector.load %arg15[%c0_44, %c0_45, %c0_46, %c0_47] : memref<1x8x8x128xbf16, #tpu.memory_space<vmem>>, vector<1x8x8x128xbf16>
    %152 = vector.shape_cast %151 : vector<1x8x8x128xbf16> to vector<8x8x128xbf16>
    %153 = vector.shape_cast %150 : vector<8x8x128xbf16> to vector<1x8x8x128xbf16>
    tpu.vector_store %arg15[%c0_44, %c0_45, %c0_46, %c0_47], %153 {strides = array<i32>} : memref<1x8x8x128xbf16, #tpu.memory_space<vmem>>, vector<1x8x8x128xbf16>,
    return
  }
  func.func @transform_0(%arg0: i32, %arg1: i32) -> (i32, i32, i32, i32) {
    %c0_i32 = arith.constant 0 : i32
    %c0_i32_0 = arith.constant 0 : i32
    %c0_i32_1 = arith.constant 0 : i32
    return %arg0, %arg1, %c0_i32, %c0_i32_0 : i32, i32, i32, i32
  }
  func.func @transform_1(%arg0: i32, %arg1: i32) -> (i32, i32, i32, i32) {
    %c8_i32 = arith.constant 8 : i32
    %0 = arith.muli %arg1, %c8_i32 : i32
    %c1_i32 = arith.constant 1 : i32
    %1 = arith.subi %0, %c1_i32 : i32
    %c0_i32 = arith.constant 0 : i32
    %2 = arith.maxsi %1, %c0_i32 : i32
    %c0_i32_0 = arith.constant 0 : i32
    %c0_i32_1 = arith.constant 0 : i32
    %c0_i32_2 = arith.constant 0 : i32
    return %arg0, %2, %c0_i32_0, %c0_i32_1 : i32, i32, i32, i32
  }
  func.func @transform_2(%arg0: i32, %arg1: i32) -> (i32, i32, i32, i32) {
    %c8_i32 = arith.constant 8 : i32
    %0 = arith.muli %arg1, %c8_i32 : i32
    %c8_i32_0 = arith.constant 8 : i32
    %1 = arith.addi %0, %c8_i32_0 : i32
    %c7_i32 = arith.constant 7 : i32
    %2 = arith.minsi %1, %c7_i32 : i32
    %c0_i32 = arith.constant 0 : i32
    %c0_i32_1 = arith.constant 0 : i32
    %c0_i32_2 = arith.constant 0 : i32
    return %arg0, %2, %c0_i32, %c0_i32_1 : i32, i32, i32, i32
  }
  func.func @transform_3(%arg0: i32, %arg1: i32) -> (i32, i32) {
    %c0_i32 = arith.constant 0 : i32
    %c0_i32_0 = arith.constant 0 : i32
    %c0_i32_1 = arith.constant 0 : i32
    return %c0_i32, %c0_i32_0 : i32, i32
  }
  func.func @transform_4(%arg0: i32, %arg1: i32) -> (i32, i32) {
    %c0_i32 = arith.constant 0 : i32
    %c0_i32_0 = arith.constant 0 : i32
    %c0_i32_1 = arith.constant 0 : i32
    return %c0_i32, %c0_i32_0 : i32, i32
  }
  func.func @transform_5(%arg0: i32, %arg1: i32) -> (i32, i32) {
    %c0_i32 = arith.constant 0 : i32
    %c0_i32_0 = arith.constant 0 : i32
    %c0_i32_1 = arith.constant 0 : i32
    return %c0_i32, %c0_i32_0 : i32, i32
  }
  func.func @transform_6(%arg0: i32, %arg1: i32) -> (i32, i32) {
    %c0_i32 = arith.constant 0 : i32
    %c0_i32_0 = arith.constant 0 : i32
    %c0_i32_1 = arith.constant 0 : i32
    return %c0_i32, %c0_i32_0 : i32, i32
  }
  func.func @transform_7(%arg0: i32, %arg1: i32) -> (i32, i32) {
    %c0_i32 = arith.constant 0 : i32
    %c0_i32_0 = arith.constant 0 : i32
    %c0_i32_1 = arith.constant 0 : i32
    return %c0_i32, %c0_i32_0 : i32, i32
  }
  func.func @transform_8(%arg0: i32, %arg1: i32) -> (i32, i32) {
    %c0_i32 = arith.constant 0 : i32
    %c0_i32_0 = arith.constant 0 : i32
    %c0_i32_1 = arith.constant 0 : i32
    return %c0_i32, %c0_i32_0 : i32, i32
  }
  func.func @transform_9(%arg0: i32, %arg1: i32) -> (i32, i32) {
    %c0_i32 = arith.constant 0 : i32
    %c0_i32_0 = arith.constant 0 : i32
    %c0_i32_1 = arith.constant 0 : i32
    return %c0_i32, %c0_i32_0 : i32, i32
  }
  func.func @transform_10(%arg0: i32, %arg1: i32) -> (i32, i32) {
    %c0_i32 = arith.constant 0 : i32
    %c0_i32_0 = arith.constant 0 : i32
    %c0_i32_1 = arith.constant 0 : i32
    return %c0_i32, %c0_i32_0 : i32, i32
  }
  func.func @transform_11(%arg0: i32, %arg1: i32) -> (i32, i32) {
    %c0_i32 = arith.constant 0 : i32
    %c0_i32_0 = arith.constant 0 : i32
    %c0_i32_1 = arith.constant 0 : i32
    return %c0_i32, %c0_i32_0 : i32, i32
  }
  func.func @transform_12(%arg0: i32, %arg1: i32) -> (i32, i32) {
    %c0_i32 = arith.constant 0 : i32
    %c0_i32_0 = arith.constant 0 : i32
    %c0_i32_1 = arith.constant 0 : i32
    return %c0_i32, %c0_i32_0 : i32, i32
  }
  func.func @transform_13(%arg0: i32, %arg1: i32) -> (i32, i32, i32, i32) {
    %c0_i32 = arith.constant 0 : i32
    %c0_i32_0 = arith.constant 0 : i32
    %c0_i32_1 = arith.constant 0 : i32
    return %arg0, %arg1, %c0_i32, %c0_i32_0 : i32, i32, i32, i32
  }
}

module attributes {stable_mosaic.version = 11 : i64} {
  func.func @kernel(%arg0: i32, %arg1: i32, %arg2: memref<1x8x8x128xbf16, #tpu.memory_space<vmem>>, %arg3: memref<1x1x8x128xbf16, #tpu.memory_space<vmem>>, %arg4: memref<1x1x8x128xbf16, #tpu.memory_space<vmem>>, %arg5: memref<128x128xbf16, #tpu.memory_space<vmem>>, %arg6: memref<1x128xf32, #tpu.memory_space<vmem>>, %arg7: memref<9x128xf32, #tpu.memory_space<vmem>>, %arg8: memref<1x128xf32, #tpu.memory_space<vmem>>, %arg9: memref<128x128xbf16, #tpu.memory_space<vmem>>, %arg10: memref<1x128xf32, #tpu.memory_space<vmem>>, %arg11: memref<128x512xbf16, #tpu.memory_space<vmem>>, %arg12: memref<1x512xf32, #tpu.memory_space<vmem>>, %arg13: memref<512x128xbf16, #tpu.memory_space<vmem>>, %arg14: memref<1x128xf32, #tpu.memory_space<vmem>>, %arg15: memref<128x128xbf16, #tpu.memory_space<vmem>>, %arg16: memref<1x128xf32, #tpu.memory_space<vmem>>, %arg17: memref<1x8x8x128xbf16, #tpu.memory_space<vmem>>) attributes {dimension_semantics = [#tpu.dimension_semantics<parallel>, #tpu.dimension_semantics<parallel>], iteration_bounds = array<i64: 2, 1>, scalar_prefetch = 0 : i64, scratch_operands = 0 : i64, tpu.core_type = #tpu.core_type<tc>, window_params = [{transform_indices = @transform_0, window_bounds = array<i64: 1, 8, 8, 128>}, {transform_indices = @transform_1, window_bounds = array<i64: 1, 1, 8, 128>}, {transform_indices = @transform_2, window_bounds = array<i64: 1, 1, 8, 128>}, {pipeline_mode = #tpu.pipeline_mode<synchronous>, transform_indices = @transform_3, window_bounds = array<i64: 128, 128>}, {pipeline_mode = #tpu.pipeline_mode<synchronous>, transform_indices = @transform_4, window_bounds = array<i64: 1, 128>}, {pipeline_mode = #tpu.pipeline_mode<synchronous>, transform_indices = @transform_5, window_bounds = array<i64: 9, 128>}, {pipeline_mode = #tpu.pipeline_mode<synchronous>, transform_indices = @transform_6, window_bounds = array<i64: 1, 128>}, {pipeline_mode = #tpu.pipeline_mode<synchronous>, transform_indices = @transform_7, window_bounds = array<i64: 128, 128>}, {pipeline_mode = #tpu.pipeline_mode<synchronous>, transform_indices = @transform_8, window_bounds = array<i64: 1, 128>}, {pipeline_mode = #tpu.pipeline_mode<synchronous>, transform_indices = @transform_9, window_bounds = array<i64: 128, 512>}, {pipeline_mode = #tpu.pipeline_mode<synchronous>, transform_indices = @transform_10, window_bounds = array<i64: 1, 512>}, {pipeline_mode = #tpu.pipeline_mode<synchronous>, transform_indices = @transform_11, window_bounds = array<i64: 512, 128>}, {pipeline_mode = #tpu.pipeline_mode<synchronous>, transform_indices = @transform_12, window_bounds = array<i64: 1, 128>}, {pipeline_mode = #tpu.pipeline_mode<synchronous>, transform_indices = @transform_13, window_bounds = array<i64: 128, 128>}, {pipeline_mode = #tpu.pipeline_mode<synchronous>, transform_indices = @transform_14, window_bounds = array<i64: 1, 128>}, {transform_indices = @transform_15, window_bounds = array<i64: 1, 8, 8, 128>}]} {
    %c0 = arith.constant 0 : index
    %c0_0 = arith.constant 0 : index
    %c0_1 = arith.constant 0 : index
    %c0_2 = arith.constant 0 : index
    %0 = vector.load %arg2[%c0, %c0_0, %c0_1, %c0_2] : memref<1x8x8x128xbf16, #tpu.memory_space<vmem>>, vector<1x8x8x128xbf16>
    %1 = vector.shape_cast %0 : vector<1x8x8x128xbf16> to vector<8x8x128xbf16>
    %2 = arith.extf %1 : vector<8x8x128xbf16> to vector<8x8x128xf32>
    %c0_3 = arith.constant 0 : index
    %c0_4 = arith.constant 0 : index
    %c0_5 = arith.constant 0 : index
    %c0_6 = arith.constant 0 : index
    %3 = vector.load %arg3[%c0_3, %c0_4, %c0_5, %c0_6] : memref<1x1x8x128xbf16, #tpu.memory_space<vmem>>, vector<1x1x8x128xbf16>
    %4 = vector.shape_cast %3 : vector<1x1x8x128xbf16> to vector<1x8x128xbf16>
    %5 = arith.extf %4 : vector<1x8x128xbf16> to vector<1x8x128xf32>
    %c0_7 = arith.constant 0 : index
    %c0_8 = arith.constant 0 : index
    %c0_9 = arith.constant 0 : index
    %c0_10 = arith.constant 0 : index
    %6 = vector.load %arg4[%c0_7, %c0_8, %c0_9, %c0_10] : memref<1x1x8x128xbf16, #tpu.memory_space<vmem>>, vector<1x1x8x128xbf16>
    %7 = vector.shape_cast %6 : vector<1x1x8x128xbf16> to vector<1x8x128xbf16>
    %8 = arith.extf %7 : vector<1x8x128xbf16> to vector<1x8x128xf32>
    %9 = tpu.concatenate %5, %2, %8 in 0 : vector<1x8x128xf32>, vector<8x8x128xf32>, vector<1x8x128xf32> -> vector<10x8x128xf32>
    %10 = vector.shape_cast %9 : vector<10x8x128xf32> to vector<80x128xf32>
    %11 = arith.truncf %10 : vector<80x128xf32> to vector<80x128xbf16>
    %c0_11 = arith.constant 0 : index
    %c0_12 = arith.constant 0 : index
    %12 = vector.load %arg5[%c0_11, %c0_12] : memref<128x128xbf16, #tpu.memory_space<vmem>>, vector<128x128xbf16>
    %cst = arith.constant dense<0.000000e+00> : vector<80x128xf32>
    %13 = tpu.matmul %11, %12, %cst {dimension_numbers = #tpu.dot_dimension_numbers<[1], [0], [0], [1], [0, 0, 1, 1], [], []>} : vector<80x128xbf16>, vector<128x128xbf16>, vector<80x128xf32> -> vector<80x128xf32>
    %c0_13 = arith.constant 0 : index
    %c0_14 = arith.constant 0 : index
    %14 = vector.load %arg6[%c0_13, %c0_14] : memref<1x128xf32, #tpu.memory_space<vmem>>, vector<1x128xf32>
    %15 = vector.broadcast %14 : vector<1x128xf32> to vector<80x128xf32>
    %16 = arith.addf %13, %15 : vector<80x128xf32>
    %cst_15 = arith.constant 0.00999999977 : f32
    %17 = vector.broadcast %cst_15 : f32 to vector<80x128xf32>
    %18 = arith.mulf %17, %16 : vector<80x128xf32>
    %19 = arith.maximumf %16, %18 : vector<80x128xf32>
    %20 = vector.shape_cast %19 : vector<80x128xf32> to vector<10x8x128xf32>
    %c0_i32 = arith.constant 0 : i32
    %21 = arith.cmpi ne, %arg1, %c0_i32 : i32
    %22 = arith.extui %21 : i1 to i32
    %23 = arith.sitofp %22 : i32 to f32
    %c0_i32_16 = arith.constant 0 : i32
    %24 = arith.cmpi ne, %arg1, %c0_i32_16 : i32
    %25 = arith.extui %24 : i1 to i32
    %26 = arith.sitofp %25 : i32 to f32
    %27 = tpu.iota {dimensions = array<i32: 0>} : vector<10x1x1xi32>
    %c0_i32_17 = arith.constant 0 : i32
    %28 = vector.broadcast %c0_i32_17 : i32 to vector<10x1x1xi32>
    %29 = arith.cmpi eq, %27, %28 : vector<10x1x1xi32>
    %cst_18 = arith.constant 1.000000e+00 : f32
    %30 = vector.broadcast %23 : f32 to vector<10x1x1xf32>
    %31 = vector.broadcast %cst_18 : f32 to vector<10x1x1xf32>
    %32 = arith.select %29, %30, %31 : vector<10x1x1xi1>, vector<10x1x1xf32>
    %c9_i32 = arith.constant 9 : i32
    %33 = vector.broadcast %c9_i32 : i32 to vector<10x1x1xi32>
    %34 = arith.cmpi eq, %27, %33 : vector<10x1x1xi32>
    %35 = vector.broadcast %26 : f32 to vector<10x1x1xf32>
    %36 = arith.select %34, %35, %32 : vector<10x1x1xi1>, vector<10x1x1xf32>
    %37 = vector.broadcast %36 : vector<10x1x1xf32> to vector<10x8x128xf32>
    %38 = arith.mulf %20, %37 : vector<10x8x128xf32>
    %39 = tpu.iota {dimensions = array<i32: 1>} : vector<1x8x1xi32>
    %c0_i32_19 = arith.constant 0 : i32
    %40 = vector.broadcast %c0_i32_19 : i32 to vector<1x8x1xi32>
    %41 = arith.cmpi eq, %39, %40 : vector<1x8x1xi32>
    %c1_i32 = arith.constant 1 : i32
    %42 = tpu.dynamic_rotate %38 by %c1_i32 dim 1 : vector<10x8x128xf32>, i32 -> vector<10x8x128xf32>
    %cst_20 = arith.constant 0.000000e+00 : f32
    %43 = vector.shape_cast %41 : vector<1x8x1xi1> to vector<1x8x1xi1>
    %44 = vector.broadcast %43 : vector<1x8x1xi1> to vector<10x8x128xi1>
    %45 = vector.broadcast %cst_20 : f32 to vector<10x8x128xf32>
    %46 = arith.select %44, %45, %42 : vector<10x8x128xi1>, vector<10x8x128xf32>
    %c7_i32 = arith.constant 7 : i32
    %47 = vector.broadcast %c7_i32 : i32 to vector<1x8x1xi32>
    %48 = arith.cmpi eq, %39, %47 : vector<1x8x1xi32>
    %c7_i32_21 = arith.constant 7 : i32
    %49 = tpu.dynamic_rotate %38 by %c7_i32_21 dim 1 : vector<10x8x128xf32>, i32 -> vector<10x8x128xf32>
    %cst_22 = arith.constant 0.000000e+00 : f32
    %50 = vector.shape_cast %48 : vector<1x8x1xi1> to vector<1x8x1xi1>
    %51 = vector.broadcast %50 : vector<1x8x1xi1> to vector<10x8x128xi1>
    %52 = vector.broadcast %cst_22 : f32 to vector<10x8x128xf32>
    %53 = arith.select %51, %52, %49 : vector<10x8x128xi1>, vector<10x8x128xf32>
    %c0_23 = arith.constant 0 : index
    %c0_24 = arith.constant 0 : index
    %54 = vector.load %arg7[%c0_23, %c0_24] : memref<9x128xf32, #tpu.memory_space<vmem>>, vector<9x128xf32>
    %55 = vector.extract_strided_slice %54 {offsets = [0, 0], sizes = [1, 128], strides = [1, 1]} : vector<9x128xf32> to vector<1x128xf32>
    %56 = vector.shape_cast %55 : vector<1x128xf32> to vector<128xf32>
    %57 = vector.shape_cast %56 : vector<128xf32> to vector<1x1x128xf32>
    %58 = vector.extract_strided_slice %54 {offsets = [1, 0], sizes = [1, 128], strides = [1, 1]} : vector<9x128xf32> to vector<1x128xf32>
    %59 = vector.shape_cast %58 : vector<1x128xf32> to vector<128xf32>
    %60 = vector.shape_cast %59 : vector<128xf32> to vector<1x1x128xf32>
    %61 = vector.extract_strided_slice %54 {offsets = [2, 0], sizes = [1, 128], strides = [1, 1]} : vector<9x128xf32> to vector<1x128xf32>
    %62 = vector.shape_cast %61 : vector<1x128xf32> to vector<128xf32>
    %63 = vector.shape_cast %62 : vector<128xf32> to vector<1x1x128xf32>
    %64 = vector.extract_strided_slice %54 {offsets = [3, 0], sizes = [1, 128], strides = [1, 1]} : vector<9x128xf32> to vector<1x128xf32>
    %65 = vector.shape_cast %64 : vector<1x128xf32> to vector<128xf32>
    %66 = vector.shape_cast %65 : vector<128xf32> to vector<1x1x128xf32>
    %67 = vector.extract_strided_slice %54 {offsets = [4, 0], sizes = [1, 128], strides = [1, 1]} : vector<9x128xf32> to vector<1x128xf32>
    %68 = vector.shape_cast %67 : vector<1x128xf32> to vector<128xf32>
    %69 = vector.shape_cast %68 : vector<128xf32> to vector<1x1x128xf32>
    %70 = vector.extract_strided_slice %54 {offsets = [5, 0], sizes = [1, 128], strides = [1, 1]} : vector<9x128xf32> to vector<1x128xf32>
    %71 = vector.shape_cast %70 : vector<1x128xf32> to vector<128xf32>
    %72 = vector.shape_cast %71 : vector<128xf32> to vector<1x1x128xf32>
    %73 = vector.extract_strided_slice %54 {offsets = [6, 0], sizes = [1, 128], strides = [1, 1]} : vector<9x128xf32> to vector<1x128xf32>
    %74 = vector.shape_cast %73 : vector<1x128xf32> to vector<128xf32>
    %75 = vector.shape_cast %74 : vector<128xf32> to vector<1x1x128xf32>
    %76 = vector.extract_strided_slice %54 {offsets = [7, 0], sizes = [1, 128], strides = [1, 1]} : vector<9x128xf32> to vector<1x128xf32>
    %77 = vector.shape_cast %76 : vector<1x128xf32> to vector<128xf32>
    %78 = vector.shape_cast %77 : vector<128xf32> to vector<1x1x128xf32>
    %79 = vector.extract_strided_slice %54 {offsets = [8, 0], sizes = [1, 128], strides = [1, 1]} : vector<9x128xf32> to vector<1x128xf32>
    %80 = vector.shape_cast %79 : vector<1x128xf32> to vector<128xf32>
    %81 = vector.shape_cast %80 : vector<128xf32> to vector<1x1x128xf32>
    %82 = vector.extract_strided_slice %46 {offsets = [0, 0, 0], sizes = [8, 8, 128], strides = [1, 1, 1]} : vector<10x8x128xf32> to vector<8x8x128xf32>
    %83 = vector.broadcast %57 : vector<1x1x128xf32> to vector<8x8x128xf32>
    %84 = arith.mulf %82, %83 : vector<8x8x128xf32>
    %85 = vector.extract_strided_slice %38 {offsets = [0, 0, 0], sizes = [8, 8, 128], strides = [1, 1, 1]} : vector<10x8x128xf32> to vector<8x8x128xf32>
    %86 = vector.broadcast %60 : vector<1x1x128xf32> to vector<8x8x128xf32>
    %87 = arith.mulf %85, %86 : vector<8x8x128xf32>
    %88 = arith.addf %84, %87 : vector<8x8x128xf32>
    %89 = vector.extract_strided_slice %53 {offsets = [0, 0, 0], sizes = [8, 8, 128], strides = [1, 1, 1]} : vector<10x8x128xf32> to vector<8x8x128xf32>
    %90 = vector.broadcast %63 : vector<1x1x128xf32> to vector<8x8x128xf32>
    %91 = arith.mulf %89, %90 : vector<8x8x128xf32>
    %92 = arith.addf %88, %91 : vector<8x8x128xf32>
    %93 = vector.extract_strided_slice %46 {offsets = [1, 0, 0], sizes = [8, 8, 128], strides = [1, 1, 1]} : vector<10x8x128xf32> to vector<8x8x128xf32>
    %94 = vector.broadcast %66 : vector<1x1x128xf32> to vector<8x8x128xf32>
    %95 = arith.mulf %93, %94 : vector<8x8x128xf32>
    %96 = arith.addf %92, %95 : vector<8x8x128xf32>
    %97 = vector.extract_strided_slice %38 {offsets = [1, 0, 0], sizes = [8, 8, 128], strides = [1, 1, 1]} : vector<10x8x128xf32> to vector<8x8x128xf32>
    %98 = vector.broadcast %69 : vector<1x1x128xf32> to vector<8x8x128xf32>
    %99 = arith.mulf %97, %98 : vector<8x8x128xf32>
    %100 = arith.addf %96, %99 : vector<8x8x128xf32>
    %101 = vector.extract_strided_slice %53 {offsets = [1, 0, 0], sizes = [8, 8, 128], strides = [1, 1, 1]} : vector<10x8x128xf32> to vector<8x8x128xf32>
    %102 = vector.broadcast %72 : vector<1x1x128xf32> to vector<8x8x128xf32>
    %103 = arith.mulf %101, %102 : vector<8x8x128xf32>
    %104 = arith.addf %100, %103 : vector<8x8x128xf32>
    %105 = vector.extract_strided_slice %46 {offsets = [2, 0, 0], sizes = [8, 8, 128], strides = [1, 1, 1]} : vector<10x8x128xf32> to vector<8x8x128xf32>
    %106 = vector.broadcast %75 : vector<1x1x128xf32> to vector<8x8x128xf32>
    %107 = arith.mulf %105, %106 : vector<8x8x128xf32>
    %108 = arith.addf %104, %107 : vector<8x8x128xf32>
    %109 = vector.extract_strided_slice %38 {offsets = [2, 0, 0], sizes = [8, 8, 128], strides = [1, 1, 1]} : vector<10x8x128xf32> to vector<8x8x128xf32>
    %110 = vector.broadcast %78 : vector<1x1x128xf32> to vector<8x8x128xf32>
    %111 = arith.mulf %109, %110 : vector<8x8x128xf32>
    %112 = arith.addf %108, %111 : vector<8x8x128xf32>
    %113 = vector.extract_strided_slice %53 {offsets = [2, 0, 0], sizes = [8, 8, 128], strides = [1, 1, 1]} : vector<10x8x128xf32> to vector<8x8x128xf32>
    %114 = vector.broadcast %81 : vector<1x1x128xf32> to vector<8x8x128xf32>
    %115 = arith.mulf %113, %114 : vector<8x8x128xf32>
    %116 = arith.addf %112, %115 : vector<8x8x128xf32>
    %c0_25 = arith.constant 0 : index
    %c0_26 = arith.constant 0 : index
    %117 = vector.load %arg8[%c0_25, %c0_26] : memref<1x128xf32, #tpu.memory_space<vmem>>, vector<1x128xf32>
    %118 = vector.shape_cast %117 : vector<1x128xf32> to vector<1x1x128xf32>
    %119 = vector.broadcast %118 : vector<1x1x128xf32> to vector<8x8x128xf32>
    %120 = arith.addf %116, %119 : vector<8x8x128xf32>
    %121 = vector.shape_cast %120 : vector<8x8x128xf32> to vector<64x128xf32>
    %122 = arith.truncf %121 : vector<64x128xf32> to vector<64x128xbf16>
    %c0_27 = arith.constant 0 : index
    %c0_28 = arith.constant 0 : index
    %123 = vector.load %arg9[%c0_27, %c0_28] : memref<128x128xbf16, #tpu.memory_space<vmem>>, vector<128x128xbf16>
    %cst_29 = arith.constant dense<0.000000e+00> : vector<64x128xf32>
    %124 = tpu.matmul %122, %123, %cst_29 {dimension_numbers = #tpu.dot_dimension_numbers<[1], [0], [0], [1], [0, 0, 1, 1], [], []>} : vector<64x128xbf16>, vector<128x128xbf16>, vector<64x128xf32> -> vector<64x128xf32>
    %c0_30 = arith.constant 0 : index
    %c0_31 = arith.constant 0 : index
    %125 = vector.load %arg10[%c0_30, %c0_31] : memref<1x128xf32, #tpu.memory_space<vmem>>, vector<1x128xf32>
    %126 = vector.broadcast %125 : vector<1x128xf32> to vector<64x128xf32>
    %127 = arith.addf %124, %126 : vector<64x128xf32>
    %128 = vector.shape_cast %2 : vector<8x8x128xf32> to vector<64x128xf32>
    %129 = arith.addf %127, %128 : vector<64x128xf32>
    %130 = arith.truncf %129 : vector<64x128xf32> to vector<64x128xbf16>
    %c0_32 = arith.constant 0 : index
    %c0_33 = arith.constant 0 : index
    %131 = vector.load %arg11[%c0_32, %c0_33] : memref<128x512xbf16, #tpu.memory_space<vmem>>, vector<128x512xbf16>
    %cst_34 = arith.constant dense<0.000000e+00> : vector<64x512xf32>
    %132 = tpu.matmul %130, %131, %cst_34 {dimension_numbers = #tpu.dot_dimension_numbers<[1], [0], [0], [1], [0, 0, 1, 1], [], []>} : vector<64x128xbf16>, vector<128x512xbf16>, vector<64x512xf32> -> vector<64x512xf32>
    %c0_35 = arith.constant 0 : index
    %c0_36 = arith.constant 0 : index
    %133 = vector.load %arg12[%c0_35, %c0_36] : memref<1x512xf32, #tpu.memory_space<vmem>>, vector<1x512xf32>
    %134 = vector.broadcast %133 : vector<1x512xf32> to vector<64x512xf32>
    %135 = arith.addf %132, %134 : vector<64x512xf32>
    %cst_37 = arith.constant 1.000000e-01 : f32
    %136 = vector.broadcast %cst_37 : f32 to vector<64x512xf32>
    %137 = arith.mulf %136, %135 : vector<64x512xf32>
    %138 = arith.maximumf %135, %137 : vector<64x512xf32>
    %139 = arith.truncf %138 : vector<64x512xf32> to vector<64x512xbf16>
    %c0_38 = arith.constant 0 : index
    %c0_39 = arith.constant 0 : index
    %140 = vector.load %arg13[%c0_38, %c0_39] : memref<512x128xbf16, #tpu.memory_space<vmem>>, vector<512x128xbf16>
    %cst_40 = arith.constant dense<0.000000e+00> : vector<64x128xf32>
    %141 = tpu.matmul %139, %140, %cst_40 {dimension_numbers = #tpu.dot_dimension_numbers<[1], [0], [0], [1], [0, 0, 1, 1], [], []>} : vector<64x512xbf16>, vector<512x128xbf16>, vector<64x128xf32> -> vector<64x128xf32>
    %c0_41 = arith.constant 0 : index
    %c0_42 = arith.constant 0 : index
    %142 = vector.load %arg14[%c0_41, %c0_42] : memref<1x128xf32, #tpu.memory_space<vmem>>, vector<1x128xf32>
    %143 = vector.broadcast %142 : vector<1x128xf32> to vector<64x128xf32>
    %144 = arith.addf %141, %143 : vector<64x128xf32>
    %cst_43 = arith.constant 1.000000e-01 : f32
    %145 = vector.broadcast %cst_43 : f32 to vector<64x128xf32>
    %146 = arith.mulf %145, %144 : vector<64x128xf32>
    %147 = arith.maximumf %144, %146 : vector<64x128xf32>
    %148 = arith.addf %129, %147 : vector<64x128xf32>
    %149 = arith.truncf %148 : vector<64x128xf32> to vector<64x128xbf16>
    %c0_44 = arith.constant 0 : index
    %c0_45 = arith.constant 0 : index
    %150 = vector.load %arg15[%c0_44, %c0_45] : memref<128x128xbf16, #tpu.memory_space<vmem>>, vector<128x128xbf16>
    %cst_46 = arith.constant dense<0.000000e+00> : vector<64x128xf32>
    %151 = tpu.matmul %149, %150, %cst_46 {dimension_numbers = #tpu.dot_dimension_numbers<[1], [0], [0], [1], [0, 0, 1, 1], [], []>} : vector<64x128xbf16>, vector<128x128xbf16>, vector<64x128xf32> -> vector<64x128xf32>
    %c0_47 = arith.constant 0 : index
    %c0_48 = arith.constant 0 : index
    %152 = vector.load %arg16[%c0_47, %c0_48] : memref<1x128xf32, #tpu.memory_space<vmem>>, vector<1x128xf32>
    %153 = vector.broadcast %152 : vector<1x128xf32> to vector<64x128xf32>
    %154 = arith.addf %151, %153 : vector<64x128xf32>
    %cst_49 = arith.constant 0.000000e+00 : f32
    %cst_50 = arith.constant 1.000000e+00 : f32
    %155 = vector.broadcast %cst_49 : f32 to vector<64x128xf32>
    %156 = arith.maximumf %155, %154 : vector<64x128xf32>
    %157 = vector.broadcast %cst_50 : f32 to vector<64x128xf32>
    %158 = arith.minimumf %157, %156 : vector<64x128xf32>
    %159 = vector.shape_cast %158 : vector<64x128xf32> to vector<8x8x128xf32>
    %160 = arith.truncf %159 : vector<8x8x128xf32> to vector<8x8x128xbf16>
    %c0_51 = arith.constant 0 : index
    %c0_52 = arith.constant 0 : index
    %c0_53 = arith.constant 0 : index
    %c0_54 = arith.constant 0 : index
    %161 = vector.load %arg17[%c0_51, %c0_52, %c0_53, %c0_54] : memref<1x8x8x128xbf16, #tpu.memory_space<vmem>>, vector<1x8x8x128xbf16>
    %162 = vector.shape_cast %161 : vector<1x8x8x128xbf16> to vector<8x8x128xbf16>
    %163 = vector.shape_cast %160 : vector<8x8x128xbf16> to vector<1x8x8x128xbf16>
    tpu.vector_store %arg17[%c0_51, %c0_52, %c0_53, %c0_54], %163 {strides = array<i32>} : memref<1x8x8x128xbf16, #tpu.memory_space<vmem>>, vector<1x8x8x128xbf16>,
    return
  }
  func.func @transform_0(%arg0: i32, %arg1: i32) -> (i32, i32, i32, i32) {
    %c0_i32 = arith.constant 0 : i32
    %c0_i32_0 = arith.constant 0 : i32
    %c0_i32_1 = arith.constant 0 : i32
    return %arg0, %arg1, %c0_i32, %c0_i32_0 : i32, i32, i32, i32
  }
  func.func @transform_1(%arg0: i32, %arg1: i32) -> (i32, i32, i32, i32) {
    %c8_i32 = arith.constant 8 : i32
    %0 = arith.muli %arg1, %c8_i32 : i32
    %c1_i32 = arith.constant 1 : i32
    %1 = arith.subi %0, %c1_i32 : i32
    %c0_i32 = arith.constant 0 : i32
    %2 = arith.maxsi %1, %c0_i32 : i32
    %c0_i32_0 = arith.constant 0 : i32
    %c0_i32_1 = arith.constant 0 : i32
    %c0_i32_2 = arith.constant 0 : i32
    return %arg0, %2, %c0_i32_0, %c0_i32_1 : i32, i32, i32, i32
  }
  func.func @transform_2(%arg0: i32, %arg1: i32) -> (i32, i32, i32, i32) {
    %c8_i32 = arith.constant 8 : i32
    %0 = arith.muli %arg1, %c8_i32 : i32
    %c8_i32_0 = arith.constant 8 : i32
    %1 = arith.addi %0, %c8_i32_0 : i32
    %c7_i32 = arith.constant 7 : i32
    %2 = arith.minsi %1, %c7_i32 : i32
    %c0_i32 = arith.constant 0 : i32
    %c0_i32_1 = arith.constant 0 : i32
    %c0_i32_2 = arith.constant 0 : i32
    return %arg0, %2, %c0_i32, %c0_i32_1 : i32, i32, i32, i32
  }
  func.func @transform_3(%arg0: i32, %arg1: i32) -> (i32, i32) {
    %c0_i32 = arith.constant 0 : i32
    %c0_i32_0 = arith.constant 0 : i32
    %c0_i32_1 = arith.constant 0 : i32
    return %c0_i32, %c0_i32_0 : i32, i32
  }
  func.func @transform_4(%arg0: i32, %arg1: i32) -> (i32, i32) {
    %c0_i32 = arith.constant 0 : i32
    %c0_i32_0 = arith.constant 0 : i32
    %c0_i32_1 = arith.constant 0 : i32
    return %c0_i32, %c0_i32_0 : i32, i32
  }
  func.func @transform_5(%arg0: i32, %arg1: i32) -> (i32, i32) {
    %c0_i32 = arith.constant 0 : i32
    %c0_i32_0 = arith.constant 0 : i32
    %c0_i32_1 = arith.constant 0 : i32
    return %c0_i32, %c0_i32_0 : i32, i32
  }
  func.func @transform_6(%arg0: i32, %arg1: i32) -> (i32, i32) {
    %c0_i32 = arith.constant 0 : i32
    %c0_i32_0 = arith.constant 0 : i32
    %c0_i32_1 = arith.constant 0 : i32
    return %c0_i32, %c0_i32_0 : i32, i32
  }
  func.func @transform_7(%arg0: i32, %arg1: i32) -> (i32, i32) {
    %c0_i32 = arith.constant 0 : i32
    %c0_i32_0 = arith.constant 0 : i32
    %c0_i32_1 = arith.constant 0 : i32
    return %c0_i32, %c0_i32_0 : i32, i32
  }
  func.func @transform_8(%arg0: i32, %arg1: i32) -> (i32, i32) {
    %c0_i32 = arith.constant 0 : i32
    %c0_i32_0 = arith.constant 0 : i32
    %c0_i32_1 = arith.constant 0 : i32
    return %c0_i32, %c0_i32_0 : i32, i32
  }
  func.func @transform_9(%arg0: i32, %arg1: i32) -> (i32, i32) {
    %c0_i32 = arith.constant 0 : i32
    %c0_i32_0 = arith.constant 0 : i32
    %c0_i32_1 = arith.constant 0 : i32
    return %c0_i32, %c0_i32_0 : i32, i32
  }
  func.func @transform_10(%arg0: i32, %arg1: i32) -> (i32, i32) {
    %c0_i32 = arith.constant 0 : i32
    %c0_i32_0 = arith.constant 0 : i32
    %c0_i32_1 = arith.constant 0 : i32
    return %c0_i32, %c0_i32_0 : i32, i32
  }
  func.func @transform_11(%arg0: i32, %arg1: i32) -> (i32, i32) {
    %c0_i32 = arith.constant 0 : i32
    %c0_i32_0 = arith.constant 0 : i32
    %c0_i32_1 = arith.constant 0 : i32
    return %c0_i32, %c0_i32_0 : i32, i32
  }
  func.func @transform_12(%arg0: i32, %arg1: i32) -> (i32, i32) {
    %c0_i32 = arith.constant 0 : i32
    %c0_i32_0 = arith.constant 0 : i32
    %c0_i32_1 = arith.constant 0 : i32
    return %c0_i32, %c0_i32_0 : i32, i32
  }
  func.func @transform_13(%arg0: i32, %arg1: i32) -> (i32, i32) {
    %c0_i32 = arith.constant 0 : i32
    %c0_i32_0 = arith.constant 0 : i32
    %c0_i32_1 = arith.constant 0 : i32
    return %c0_i32, %c0_i32_0 : i32, i32
  }
  func.func @transform_14(%arg0: i32, %arg1: i32) -> (i32, i32) {
    %c0_i32 = arith.constant 0 : i32
    %c0_i32_0 = arith.constant 0 : i32
    %c0_i32_1 = arith.constant 0 : i32
    return %c0_i32, %c0_i32_0 : i32, i32
  }
  func.func @transform_15(%arg0: i32, %arg1: i32) -> (i32, i32, i32, i32) {
    %c0_i32 = arith.constant 0 : i32
    %c0_i32_0 = arith.constant 0 : i32
    %c0_i32_1 = arith.constant 0 : i32
    return %arg0, %arg1, %c0_i32, %c0_i32_0 : i32, i32, i32, i32
  }
}

</mosaic_0001>

<bundles_post_ra>
// kernel: recon_generation_forward.4
= control target key start
LH: loop header
LB: loop body
LE: loop exit
PB: predicated region body
PF: predicated region fallthrough
CT: control target
= control target key end

     0   :  { %s3580_s0 = inlined_call_operand.vmem [shape: bf16[2,8,8,128], index: 0, kind: input, shape index: {}, may-alias: {0,1,2}]   ;;  %s3581_s1 = inlined_call_operand.vmem [shape: bf16[2,8,8,128], index: 1, kind: input, shape index: {}, may-alias: {0,1,2}]   ;;  %s3582_s2 = inlined_call_operand.vmem [shape: bf16[2,8,8,128], index: 2, kind: input, shape index: {}, may-alias: {0,1,2}]   ;;  %s3583_s3 = inlined_call_operand.vmem [shape: bf16[128,128], index: 3, kind: input, shape index: {}]   ;;  %s3584_s4 = inlined_call_operand.hbm [shape: f32[1,128], index: 4, kind: input, shape index: {}]   ;;  %s3585_s5 = inlined_call_operand.vmem [shape: f32[9,128], index: 5, kind: input, shape index: {}]   ;;  %s3586_s6 = inlined_call_operand.hbm [shape: f32[1,128], index: 6, kind: input, shape index: {}]   ;;  %s3587_s7 = inlined_call_operand.hbm [shape: bf16[128,128], index: 7, kind: input, shape index: {}]   ;;  %s3588_s8 = inlined_call_operand.hbm [shape: f32[1,128], index: 8, kind: input, shape index: {}]   ;;  %s3589_s9 = inlined_call_operand.hbm [shape: bf16[128,512], index: 9, kind: input, shape index: {}]   ;;  %s3590_s10 = inlined_call_operand.vmem [shape: f32[1,512], index: 10, kind: input, shape index: {}]   ;;  %s3591_s11 = inlined_call_operand.hbm [shape: bf16[512,128], index: 11, kind: input, shape index: {}]   ;;  %s3592_s12 = inlined_call_operand.hbm [shape: f32[1,128], index: 12, kind: input, shape index: {}]   ;;  %s3593_s13 = inlined_call_operand.vmem [shape: bf16[2,8,8,128], index: 13, kind: output, shape index: {}]  }
   0x1   :  { %3595 = sst [smem:[#allocation18_spill]] %s3584_s4 }
   0x2   :  { %3596 = sst [smem:[#allocation19_spill]] %s3586_s6 }
   0x3   :  { %3597 = sst [smem:[#allocation20_spill]] %s3587_s7 }
   0x4   :  { %3598 = sst [smem:[#allocation21_spill]] %s3588_s8 }
   0x5   :  { %3599 = sst [smem:[#allocation22_spill]] %s3591_s11 }
   0x6   :  { %18 = vsyncpa [#allocation3], 0 }
   0x7   :  { %19 = vsyncpa [#allocation5], 0 }
   0x8   :  { %20 = vsyncpa [#allocation8], 0 }
   0x9   :  { %21 = vsyncpa [#allocation11], 0  ;;  %s3113_s25 = smov 0   ;;  %s3115_s26 = smov 0  }
   0xa   :  { %s3117_s27 = smov 0  }
   0xb LB: > { %3600 = sst [smem:[#allocation17_spill]] %s3030_s27  ;;  %s2185_s14 = sadd.s32 4294967295, %s3030_s27   ;;  %s3030_s27 = sphi %s3117_s27, %s27_s27   ;;  %s3026_s26 = sphi %s3115_s26, %s3611_s26   ;;  %s3022_s25 = sphi %s3113_s25, %s3610_s25  }
   0xc   : > { %s3601_s6 = sld [smem:[#allocation19_spill]]  ;;  %p2187_p0 = scmp.ge.s32.totalorder %s3030_s27, 1 }
   0xd   : > { %p382_p1 = scmp.lt.s32.totalorder %s3030_s27, 3  ;;  %p3134_p2 = scmp.eq.s32.totalorder %s2185_s14, 0 }
   0xe   : > { %s3032_s17 = smov [#allocation4]   ;;  %s3604_s8 = sld [smem:[#allocation21_spill]] }
   0xf   : > { %p3138_p3 = pnand %p2187_p0, %p382_p1  ;;  %s414_s18 = sshll.u32 %s3032_s17, 4  ;;  %s415_s18 = int_to_ptr.vmem [resolvable:$true] %s414_s18 }
  0x10   : > { %s3033_s23 = smov [#allocation7]   ;;  %s3606_s11 = sld [smem:[#allocation22_spill]] }
  0x11   : > { %p2706_p4 = pneg %p3138_p3  ;;  %s440_s24 = sshll.u32 %s3033_s23, 4  ;;  %s441_s24 = int_to_ptr.vmem [resolvable:$true] %s440_s24 }
  0x12   : > { %s412_s30 = sshll.u32 %s3601_s6, 4  ;;  %s3034_s17 = smov [#allocation10]   ;;  %s413_s30 = int_to_ptr.hbm [resolvable:$true] %s412_s30 }
  0x13   : > { %p3149_p5 = pnand %p3134_p2, %p2706_p4  ;;  %s468_s19 = sshll.u32 %s3034_s17, 4  ;;  %s469_s19 = int_to_ptr.vmem [resolvable:$true] %s468_s19 }
  0x14   : > { %s438_s21 = sshll.u32 %s3604_s8, 4  ;;  %s3035_s20 = smov 64   ;;  %s439_s21 = int_to_ptr.hbm [resolvable:$true] %s438_s21 }
  0x15   : > { %2712 = dma.hbm_to_vmem [thread:$0]  (!%p3149_p5), %s413_s30, 16, %s415_s18, [#allocation5]  }
  0x16   : > { %s466_s14 = sshll.u32 %s3606_s11, 4  ;;  %s3036_s6 = smov 4   ;;  %s467_s14 = int_to_ptr.hbm [resolvable:$true] %s466_s14 }
  0x17   : > { %2718 = dma.hbm_to_vmem [thread:$0]  (!%p3149_p5), %s439_s21, 16, %s441_s24, [#allocation8]  }
  0x18   : > { %2724 = dma.hbm_to_vmem [thread:$0]  (!%p3149_p5), %s467_s14, 4096, %s469_s19, [#allocation11], %s3035_s20, %s3035_s20, %s3036_s6  }
  0x19   : > { %s39_s8 = sadd.s32 1, %s3026_s26  ;;  %s3607_s4 = sld [smem:[#allocation18_spill]] }
  0x1a   : > { %p41_p6 = scmp.ge.s32.totalorder %s39_s8, 2  ;;  %s3608_s7 = sld [smem:[#allocation20_spill]] }
  0x1b   : > { %s3037_s24 = smov [#allocation2]   ;;  %s3038_s14 = smov [#allocation6]  }
  0x1c   : > { %s3613_s8 = smov (%p41_p6, %s39_s8), 0  ;;  %s399_s29 = sshll.u32 %s3037_s24, 4  ;;  %s400_s29 = int_to_ptr.vmem [resolvable:$true] %s399_s29 }
  0x1d   : > { %s425_s17 = sshll.u32 %s3038_s14, 4  ;;  %s449_s23 = sshll.u32 %s3589_s9, 4  ;;  %s426_s17 = int_to_ptr.vmem [resolvable:$true] %s425_s17  ;;  %s450_s23 = int_to_ptr.hbm [resolvable:$true] %s449_s23 }
  0x1e   : > { %s3039_s30 = smov [#allocation9]   ;;  %s3040_s11 = smov 256  }
  0x1f   : > { %s397_s28 = sshll.u32 %s3607_s4, 4  ;;  %s451_s18 = sshll.u32 %s3039_s30, 4  ;;  %s398_s28 = int_to_ptr.hbm [resolvable:$true] %s397_s28  ;;  %s452_s18 = int_to_ptr.vmem [resolvable:$true] %s451_s18 }
  0x20   : > { %s423_s21 = sshll.u32 %s3608_s7, 4  ;;  %s481_s7 = sshll.u32 %s3592_s12, 4  ;;  %s424_s21 = int_to_ptr.hbm [resolvable:$true] %s423_s21  ;;  %s482_s7 = int_to_ptr.hbm [resolvable:$true] %s481_s7 }
  0x21   : > { %2709 = dma.hbm_to_vmem [thread:$0]  (!%p3149_p5), %s398_s28, 16, %s400_s29, [#allocation3]  }
  0x22   : > { %2715 = dma.hbm_to_vmem [thread:$0]  (!%p3149_p5), %s424_s21, 1024, %s426_s17, [#allocation5], %s3035_s20, %s3035_s20, %s3036_s6  }
  0x23   : > { %s3041_s28 = smov 16   ;;  %s3042_s29 = smov [#allocation12]  }
  0x24   : > { %2721 = dma.hbm_to_vmem [thread:$0]  (!%p3149_p5), %s450_s23, 4096, %s452_s18, [#allocation8], %s3040_s11, %s3040_s11, %s3041_s28  }
  0x25   : > { %s483_s14 = sshll.u32 %s3042_s29, 4  ;;  %547 = sbr.rel (%p3138_p3) target bundleno = 811 (0x32b), region = 72  ;;  %s484_s14 = int_to_ptr.vmem [resolvable:$true] %s483_s14 }
  0x26   : > { %2727 = dma.hbm_to_vmem [thread:$0]  (!%p3149_p5), %s482_s7, 16, %s484_s14, [#allocation11]  }
  0x2a   : > { %3005 = dma.done.wait (%p3134_p2), [#allocation3], 16  }
  0x2b   : > { %3007 = vsyncadd (%p3134_p2), [#allocation3], 4294967280 }
  0x2c   : > { %3009 = dma.done.wait (%p3134_p2), [#allocation5], 1040  }
  0x2d   : > { %3011 = vsyncadd (%p3134_p2), [#allocation5], 4294966256 }
  0x2e   : > { %3013 = dma.done.wait (%p3134_p2), [#allocation8], 4112  }
  0x2f   : > { %3015 = vsyncadd (%p3134_p2), [#allocation8], 4294963184 }
  0x30   : > { %3017 = dma.done.wait (%p3134_p2), [#allocation11], 4112  }
  0x31   : > { %3019 = vsyncadd (%p3134_p2), [#allocation11], 4294963184  ;;  %v2546_v0 = vld [vmem:[%s3583_s3 + $0x38] sm:$0xff]  ;;  %v2545_v1 = vld [vmem:[%s3583_s3 + $0x30] sm:$0xff]  ;;  %p655_p7 = scmp.lt.s32.totalorder %s3022_s25, 1  ;;  %v859_v36 = vlaneseq }
  0x32   : > { %799 = vmatpush.bf16.msra.mxu0 %v2546_v0  ;;  %v2544_v2 = vld [vmem:[%s3583_s3 + $0x28] sm:$0xff]  ;;  %v2543_v3 = vld [vmem:[%s3583_s3 + $0x20] sm:$0xff]  ;;  %v2542_v4 = vld [vmem:[%s3583_s3 + $0x18] sm:$0xff] }
  0x33   : > { %s3615_s25 = smov (!%p655_p7, %s3022_s25), 1  ;;  %v2541_v5 = vld [vmem:[%s3583_s3 + $0x10] sm:$0xff]  ;;  %v2540_v6 = vld [vmem:[%s3583_s3 + $0x8] sm:$0xff]  ;;  %v2539_v11 = vld [vmem:[%s3583_s3] sm:$0xff]  ;;  %v3278_v40 = vshrl.u32 %v859_v36, 7 }
  0x34   : > { %s3220_s27 = sshll.u32 %s3615_s25, 5  ;;  %v2554_v29 = vld [vmem:[#allocation6 + $0x38] sm:$0xff]  ;;  %v2553_v30 = vld [vmem:[#allocation6 + $0x30] sm:$0xff]  ;;  %v2552_v31 = vld [vmem:[#allocation6 + $0x28] sm:$0xff] }
  0x35   : > { %s662_s24 = scalar_lea.vmem %s3580_s0, %s3220_s27  ;;  %s675_s14 = scalar_lea.vmem %s3581_s1, %s3220_s27  ;;  %1138 = vmatpush.bf16.msra.mxu1 %v2554_v29  ;;  %2662 = vmatpush.bf16.msra.mxu3 %v2554_v29  ;;  %v2551_v32 = vld [vmem:[#allocation6 + $0x20] sm:$0xff]  ;;  %v3275_v33 = vld [vmem:[#allocation2] ss:$0 sm:$0xff]  ;;  %v2549_v38 = vld [vmem:[#allocation6 + $0x10] sm:$0xff]  ;;  %vm861_vm0 = vcmp.eq.s32.totalorder %v3278_v40, 0  ;;  %vm884_vm1 = vcmp.eq.s32.totalorder %v3278_v40, 7 }
  0x36   : > { %800 = vmatpush.bf16.msra.mxu0 %v2545_v1  ;;  %v3236_v7 = vld [vmem:[%s662_s24] sm:$0xff]   ;;  %v3244_v13 = vld [vmem:[%s662_s24 + $0x8] sm:$0xff]   ;;  %v3252_v17 = vld [vmem:[%s662_s24 + $0x10] sm:$0xff]   ;;  %s2537_s11 = sadd.s32 28, %s3220_s27  ;;  %s3555_s28 = scalar_lea.vmem %s3593_s13, %s3220_s27 }
  0x37   : > { %v722_v8 = vld [vmem:[%s675_s14] sm:$0xf]  ;;  %v2621_v9 = vunpack.c.l.bf16 %v3236_v7  ;;  %v2622_v14 = vunpack.c.h.bf16 %v3236_v7  ;;  %v2625_v15 = vunpack.c.l.bf16 %v3244_v13  ;;  %v2626_v18 = vunpack.c.h.bf16 %v3244_v13  ;;  %v3260_v21 = vld [vmem:[%s662_s24 + $0x18] sm:$0xff]   ;;  %s691_s15 = scalar_lea.vmem %s3582_s2, %s2537_s11  ;;  %v2548_v42 = vld [vmem:[#allocation6 + $0x8] sm:$0xff] }
  0x38   : > { %v723_v10 = vunpack.c.l.bf16 %v722_v8  ;;  %v2629_v19 = vunpack.c.l.bf16 %v3252_v17  ;;  %v2630_v22 = vunpack.c.h.bf16 %v3252_v17  ;;  %v2633_v23 = vunpack.c.l.bf16 %v3260_v21  ;;  %v724_v25 = vld [vmem:[%s691_s15] sm:$0xf]  ;;  %v2547_v50 = vld [vmem:[#allocation6] sm:$0xff] }
  0x39   : > { %v727_v16 = vpack.c.bf16 %v2625_v15, %v2622_v14  ;;  %v2634_v26 = vunpack.c.h.bf16 %v3260_v21  ;;  %v725_v27 = vunpack.c.l.bf16 %v724_v25  ;;  %1139 = vmatpush.bf16.msra.mxu1 %v2553_v30  ;;  %2663 = vmatpush.bf16.msra.mxu3 %v2553_v30  ;;  %v2550_v34 = vld [vmem:[#allocation6 + $0x18] sm:$0xff]  ;;  %v2567_v40 = vld [vmem:[#allocation9 + $0x64] sm:$0xf]  ;;  %v2592_v21 = vld [vmem:[#allocation10 + $0x28] sm:$0xff] }
  0x3a   : > { %801 = vmatpush.bf16.msra.mxu0 %v2544_v2  ;;  %v726_v12 = vpack.c.bf16 %v2621_v9, %v723_v10  ;;  %v728_v20 = vpack.c.bf16 %v2629_v19, %v2626_v18  ;;  %v729_v24 = vpack.c.bf16 %v2633_v23, %v2630_v22  ;;  %v907_v43 = vld [vmem:[%s3585_s5] sm:$0xff] }
  0x3b   : > { %v730_v28 = vpack.c.bf16 %v725_v27, %v2634_v26  ;;  %v3284_v45 = vperm.slane %v907_v43, 0  ;;  %v3286_v48 = vperm.slane %v907_v43, 1  ;;  %v3294_v56 = vperm.slane %v907_v43, 2  ;;  %v2336_v13 = vld [vmem:[#allocation9 + $0x78] sm:$0xf0] }
  0x3c   : > { %v3298_v59 = vperm.slane %v907_v43, 3  ;;  %v3312_v27 = vperm.slane %v907_v43, 5 }
  0x3d   : > { %1140 = vmatpush.bf16.msra.mxu1 %v2552_v31  ;;  %2664 = vmatpush.bf16.msra.mxu3 %v2552_v31 }
  0x3e   : > { %802 = vmatpush.bf16.msra.mxu0 %v2543_v3 }
  0x41   : > { %1141 = vmatpush.bf16.msra.mxu1 %v2551_v32  ;;  %2665 = vmatpush.bf16.msra.mxu3 %v2551_v32 }
  0x42   : > { %803 = vmatpush.bf16.msra.mxu0 %v2542_v4 }
  0x45   : > { %1142 = vmatpush.bf16.msra.mxu1 %v2550_v34  ;;  %2666 = vmatpush.bf16.msra.mxu3 %v2550_v34 }
  0x46   : > { %804 = vmatpush.bf16.msra.mxu0 %v2541_v5 }
  0x49   : > { %1143 = vmatpush.bf16.msra.mxu1 %v2549_v38  ;;  %2667 = vmatpush.bf16.msra.mxu3 %v2549_v38 }
  0x4a   : > { %805 = vmatpush.bf16.msra.mxu0 %v2540_v6  ;;  %v3306_v6 = vperm.slane %v907_v43, 4 }
  0x4d   : > { %1144 = vmatpush.bf16.msra.mxu1 %v2548_v42  ;;  %2668 = vmatpush.bf16.msra.mxu3 %v2548_v42 }
  0x4e   : > { %806 = vmatpush.bf16.msra.mxu0 %v2539_v11 }
  0x51   : > { %807 = vmatmul.bf16.vlgmr.msra.gmra.mxu0 %v726_v12  ;;  %1145 = vmatpush.bf16.msra.mxu1 %v2547_v50 }
  0x52   : > { %2669 = vmatpush.bf16.msra.mxu3 %v2547_v50 }
  0x61   : > { %812 = vmatmul.bf16.gmra.mxu0 %v727_v16 }
  0x71   : > { %817 = vmatmul.bf16.gmra.mxu0 %v728_v20 }
  0x81   : > { %822 = vmatmul.bf16.gmra.mxu0 %v729_v24 }
  0x91   : > { %827 = vmatmul.bf16.gmra.mxu0 %v730_v28  ;;  %v3314_v28 = vperm.slane %v907_v43, 6 }
  0xce   : > { %v808_v35 = vpop.f32.mrf.mxu0 }
  0xcf   : > { %v809_v37 = vadd.f32 %v3275_v33, %v808_v35 }
  0xd1   : > { %v833_v39 = vmul.f32 0.01, %v809_v37 }
  0xd3   : > { %v843_v41 = vmax.f32 %v809_v37, %v833_v39 }
  0xd5   : > { %v857_v44 = vmul.f32 0.0, %v843_v41 }
  0xd6   : > { %v810_v46 = vpop.f32.mrf.mxu0 }
  0xd7   : > { %v862_v47 = vrot.slane %v857_v44, 7  ;;  %v811_v49 = vadd.f32 %v3275_v33, %v810_v46  ;;  %v885_v51 = vrot.slane %v857_v44, 1  ;;  %v919_v55 = vmul.f32 %v3286_v48, %v857_v44 }
  0xd9   : > { %v874_v52 = vsel %vm861_vm0, 0.0, %v862_v47  ;;  %v834_v53 = vmul.f32 0.01, %v811_v49  ;;  %v897_v58 = vsel %vm884_vm1, 0.0, %v885_v51  ;;  %v3325_v47 = vperm.slane %v907_v43, 7 }
  0xda   : > { %v910_v54 = vmul.f32 %v3284_v45, %v874_v52  ;;  %v936_v63 = vmul.f32 %v3294_v56, %v897_v58 }
  0xdb   : > { %v844_v57 = vmax.f32 %v811_v49, %v834_v53 }
  0xdc   : > { %v927_v60 = vadd.f32 %v919_v55, %v910_v54 }
  0xdd   : > { %v863_v61 = vrot.slane %v844_v57, 7  ;;  %v886_v1 = vrot.slane %v844_v57, 1  ;;  %v920_v10 = vmul.f32 %v3286_v48, %v844_v57  ;;  %v970_v24 = vmul.f32 %v3306_v6, %v844_v57 }
  0xde   : > { %v813_v62 = vpop.f32.mrf.mxu0  ;;  %v944_v5 = vadd.f32 %v936_v63, %v927_v60 }
  0xdf   : > { %v875_v0 = vsel %vm861_vm0, 0.0, %v863_v61  ;;  %v814_v2 = vadd.f32 %v3275_v33, %v813_v62  ;;  %v898_v11 = vsel %vm884_vm1, 0.0, %v886_v1  ;;  %v3339_v1 = vld [vmem:[%s3585_s5 + $0x8] ss:$0 sm:$0xff] }
  0xe0   : > { %v911_v3 = vmul.f32 %v3284_v45, %v875_v0  ;;  %v953_v4 = vmul.f32 %v3298_v59, %v875_v0  ;;  %v937_v29 = vmul.f32 %v3294_v56, %v898_v11  ;;  %v987_v41 = vmul.f32 %v3312_v27, %v898_v11 }
  0xe1   : > { %v835_v8 = vmul.f32 0.01, %v814_v2 }
  0xe2   : > { %v961_v12 = vadd.f32 %v953_v4, %v944_v5  ;;  %v928_v20 = vadd.f32 %v920_v10, %v911_v3 }
  0xe3   : > { %v845_v16 = vmax.f32 %v814_v2, %v835_v8 }
  0xe4   : > { %v978_v31 = vadd.f32 %v970_v24, %v961_v12  ;;  %v945_v36 = vadd.f32 %v937_v29, %v928_v20 }
  0xe5   : > { %v864_v25 = vrot.slane %v845_v16, 7  ;;  %v887_v35 = vrot.slane %v845_v16, 1  ;;  %v921_v44 = vmul.f32 %v3286_v48, %v845_v16  ;;  %v971_v49 = vmul.f32 %v3306_v6, %v845_v16 }
  0xe6   : > { %v815_v30 = vpop.f32.mrf.mxu0  ;;  %v995_v52 = vadd.f32 %v987_v41, %v978_v31  ;;  %v1021_v0 = vmul.f32 %v3325_v47, %v845_v16 }
  0xe7   : > { %v816_v32 = vadd.f32 %v3275_v33, %v815_v30  ;;  %v876_v34 = vsel %vm861_vm0, 0.0, %v864_v25  ;;  %v899_v51 = vsel %vm884_vm1, 0.0, %v887_v35 }
  0xe8   : > { %v912_v37 = vmul.f32 %v3284_v45, %v876_v34  ;;  %v954_v38 = vmul.f32 %v3298_v59, %v876_v34  ;;  %v1004_v42 = vmul.f32 %v3314_v28, %v876_v34  ;;  %v938_v61 = vmul.f32 %v3294_v56, %v899_v51 }
  0xe9   : > { %v836_v39 = vmul.f32 0.01, %v816_v32  ;;  %v988_v63 = vmul.f32 %v3312_v27, %v899_v51  ;;  %v1038_v30 = vmul.f32 %v3339_v1, %v899_v51 }
  0xea   : > { %v962_v46 = vadd.f32 %v954_v38, %v945_v36  ;;  %v929_v53 = vadd.f32 %v921_v44, %v912_v37  ;;  %v1012_v57 = vadd.f32 %v1004_v42, %v995_v52  ;;  %v3351_v38 = vld [vmem:[#allocation4] ss:$0 sm:$0xff] }
  0xeb   : > { %v846_v50 = vmax.f32 %v816_v32, %v836_v39 }
  0xec   : > { %v979_v55 = vadd.f32 %v971_v49, %v962_v46  ;;  %v946_v3 = vadd.f32 %v938_v61, %v929_v53  ;;  %v1029_v11 = vadd.f32 %v1021_v0, %v1012_v57 }
  0xed   : > { %v865_v54 = vrot.slane %v846_v50, 7  ;;  %v888_v60 = vrot.slane %v846_v50, 1  ;;  %v922_v12 = vmul.f32 %v3286_v48, %v846_v50  ;;  %v1022_v29 = vmul.f32 %v3325_v47, %v846_v50 }
  0xee   : > { %v818_v58 = vpop.f32.mrf.mxu0  ;;  %v996_v8 = vadd.f32 %v988_v63, %v979_v55  ;;  %v972_v31 = vmul.f32 %v3306_v6, %v846_v50  ;;  %v1046_v37 = vadd.f32 %v1038_v30, %v1029_v11 }
  0xef   : > { %v819_v62 = vadd.f32 %v3275_v33, %v818_v58  ;;  %v877_v43 = vsel %vm861_vm0, 0.0, %v865_v54  ;;  %v900_v16 = vsel %vm884_vm1, 0.0, %v888_v60 }
  0xf0   : > { %v913_v2 = vmul.f32 %v3284_v45, %v877_v43  ;;  %v955_v4 = vmul.f32 %v3298_v59, %v877_v43  ;;  %v1005_v10 = vmul.f32 %v3314_v28, %v877_v43  ;;  %v1039_v36 = vmul.f32 %v3339_v1, %v900_v16 }
  0xf1   : > { %v837_v5 = vmul.f32 0.01, %v819_v62  ;;  %v939_v41 = vmul.f32 %v3294_v56, %v900_v16  ;;  %v989_v49 = vmul.f32 %v3312_v27, %v900_v16  ;;  %v1058_v60 = vadd.f32 %v3351_v38, %v1046_v37 }
  0xf2   : > { %v963_v20 = vadd.f32 %v955_v4, %v946_v3  ;;  %v1013_v25 = vadd.f32 %v1005_v10, %v996_v8  ;;  %v930_v32 = vadd.f32 %v922_v12, %v913_v2 }
  0xf3   : > { %v847_v24 = vmax.f32 %v819_v62, %v837_v5 }
  0xf4   : > { %v1030_v35 = vadd.f32 %v1022_v29, %v1013_v25  ;;  %v980_v44 = vadd.f32 %v972_v31, %v963_v20  ;;  %v947_v52 = vadd.f32 %v939_v41, %v930_v32 }
  0xf5   : > { %v866_v34 = vrot.slane %v847_v24, 7  ;;  %v889_v42 = vrot.slane %v847_v24, 1  ;;  %v923_v57 = vmul.f32 %v3286_v48, %v847_v24  ;;  %v973_v0 = vmul.f32 %v3306_v6, %v847_v24 }
  0xf6   : > { %v820_v39 = vpop.f32.mrf.mxu0  ;;  %v1047_v51 = vadd.f32 %v1039_v36, %v1030_v35  ;;  %v997_v63 = vadd.f32 %v989_v49, %v980_v44  ;;  %v1023_v20 = vmul.f32 %v3325_v47, %v847_v24 }
  0xf7   : > { %v821_v46 = vadd.f32 %v3275_v33, %v820_v39  ;;  %v878_v50 = vsel %vm861_vm0, 0.0, %v866_v34  ;;  %v901_v62 = vsel %vm884_vm1, 0.0, %v889_v42 }
  0xf8   : > { %v914_v53 = vmul.f32 %v3284_v45, %v878_v50  ;;  %v956_v54 = vmul.f32 %v3298_v59, %v878_v50  ;;  %v1006_v55 = vmul.f32 %v3314_v28, %v878_v50  ;;  %v1059_v61 = vadd.f32 %v3351_v38, %v1047_v51 }
  0xf9   : > { %v838_v58 = vmul.f32 0.01, %v821_v46  ;;  %v940_v11 = vmul.f32 %v3294_v56, %v901_v62  ;;  %v990_v31 = vmul.f32 %v3312_v27, %v901_v62 }
  0xfa   : > { %v964_v43 = vadd.f32 %v956_v54, %v947_v52  ;;  %v1066_v3 = vpack.c.bf16 %v1059_v61, %v1058_v60  ;;  %v931_v4 = vadd.f32 %v923_v57, %v914_v53  ;;  %v1014_v5 = vadd.f32 %v1006_v55, %v997_v63 }
  0xfb   : > { %v848_v2 = vmax.f32 %v821_v46, %v838_v58  ;;  %v1040_v52 = vmul.f32 %v3339_v1, %v901_v62 }
  0xfc   : > { %1146 = vmatmul.bf16.vlgmr.msra.gmra.mxu1 %v1066_v3  ;;  %v981_v12 = vadd.f32 %v973_v0, %v964_v43  ;;  %v948_v30 = vadd.f32 %v940_v11, %v931_v4  ;;  %v1031_v36 = vadd.f32 %v1023_v20, %v1014_v5 }
  0xfd   : > { %v867_v8 = vrot.slane %v848_v2, 7  ;;  %v890_v10 = vrot.slane %v848_v2, 1  ;;  %v924_v32 = vmul.f32 %v3286_v48, %v848_v2  ;;  %v974_v42 = vmul.f32 %v3306_v6, %v848_v2 }
  0xfe   : > { %v823_v16 = vpop.f32.mrf.mxu0  ;;  %v998_v24 = vadd.f32 %v990_v31, %v981_v12  ;;  %v1024_v50 = vmul.f32 %v3325_v47, %v848_v2  ;;  %v1048_v60 = vadd.f32 %v1040_v52, %v1031_v36  ;;  %v2583_v52 = vld [vmem:[#allocation9 + $0xe4] sm:$0xf] }
  0xff   : > { %v824_v25 = vadd.f32 %v3275_v33, %v823_v16  ;;  %v879_v29 = vsel %vm861_vm0, 0.0, %v867_v8  ;;  %v902_v39 = vsel %vm884_vm1, 0.0, %v890_v10 }
 0x100   : > { %v915_v34 = vmul.f32 %v3284_v45, %v879_v29  ;;  %v957_v35 = vmul.f32 %v3298_v59, %v879_v29  ;;  %v1007_v41 = vmul.f32 %v3314_v28, %v879_v29  ;;  %v941_v53 = vmul.f32 %v3294_v56, %v902_v39 }
 0x101   : > { %v839_v37 = vmul.f32 0.01, %v824_v25  ;;  %v1041_v58 = vmul.f32 %v3339_v1, %v902_v39  ;;  %v991_v63 = vmul.f32 %v3312_v27, %v902_v39  ;;  %v1060_v12 = vadd.f32 %v3351_v38, %v1048_v60 }
 0x102   : > { %v932_v44 = vadd.f32 %v924_v32, %v915_v34  ;;  %v965_v46 = vadd.f32 %v957_v35, %v948_v30  ;;  %v1015_v51 = vadd.f32 %v1007_v41, %v998_v24 }
 0x103   : > { %v849_v49 = vmax.f32 %v824_v25, %v839_v37 }
 0x104   : > { %v982_v54 = vadd.f32 %v974_v42, %v965_v46  ;;  %v1032_v57 = vadd.f32 %v1024_v50, %v1015_v51  ;;  %v949_v43 = vadd.f32 %v941_v53, %v932_v44  ;;  %v2390_v51 = vld [vmem:[#allocation9 + $0xe0] sm:$0xf]  ;;  %v2585_v50 = vld [vmem:[#allocation9 + $0xec] sm:$0xf0] }
 0x105   : > { %v868_v55 = vrot.slane %v849_v49, 7  ;;  %v891_v4 = vrot.slane %v849_v49, 1  ;;  %v925_v20 = vmul.f32 %v3286_v48, %v849_v49  ;;  %v975_v30 = vmul.f32 %v3306_v6, %v849_v49 }
 0x106   : > { %v825_v61 = vpop.f32.mrf.mxu0  ;;  %v1049_v3 = vadd.f32 %v1041_v58, %v1032_v57  ;;  %v999_v8 = vadd.f32 %v991_v63, %v982_v54  ;;  %v1025_v36 = vmul.f32 %v3325_v47, %v849_v49  ;;  %v2392_v57 = vld [vmem:[#allocation9 + $0xf0] sm:$0xf0]  ;;  %v2398_v58 = vld [vmem:[#allocation9 + $0xe8] sm:$0xf] }
 0x107   : > { %v826_v0 = vadd.f32 %v3275_v33, %v825_v61  ;;  %v880_v2 = vsel %vm861_vm0, 0.0, %v868_v55  ;;  %v903_v34 = vsel %vm884_vm1, 0.0, %v891_v4  ;;  %v2391_v55 = vor.u32 %v2585_v50, %v2390_v51  ;;  %v2575_v51 = vld [vmem:[#allocation9 + $0xa4] sm:$0xf]  ;;  %v2360_v50 = vld [vmem:[#allocation9 + $0xb0] sm:$0xf0] }
 0x108   : > { %v916_v62 = vmul.f32 %v3284_v45, %v880_v2  ;;  %v958_v5 = vmul.f32 %v3298_v59, %v880_v2  ;;  %v1008_v10 = vmul.f32 %v3314_v28, %v880_v2  ;;  %v1061_v16 = vadd.f32 %v3351_v38, %v1049_v3  ;;  %v2374_v3 = vld [vmem:[#allocation9 + $0xc0] sm:$0xf]  ;;  %v2581_v2 = vld [vmem:[#allocation9 + $0xcc] sm:$0xf0] }
 0x109   : > { %v840_v11 = vmul.f32 0.01, %v826_v0  ;;  %v942_v42 = vmul.f32 %v3294_v56, %v903_v34  ;;  %v992_v44 = vmul.f32 %v3312_v27, %v903_v34  ;;  %v1042_v63 = vmul.f32 %v3339_v1, %v903_v34  ;;  %1381 = vmatpush.bf16.msrb.mxu0 %v2391_v55  ;;  %2670 = vmatpush.bf16.msra.mxu2 %v2391_v55  ;;  %v2578_v55 = vld [vmem:[#allocation9 + $0xb4] sm:$0xf0] }
 0x10a   : > { %v966_v25 = vadd.f32 %v958_v5, %v949_v43  ;;  %v1016_v29 = vadd.f32 %v1008_v10, %v999_v8  ;;  %v1067_v32 = vpack.c.bf16 %v1061_v16, %v1060_v12  ;;  %v933_v35 = vadd.f32 %v925_v20, %v916_v62  ;;  %v2579_v10 = vld [vmem:[#allocation9 + $0xc4] sm:$0xf] }
 0x10b   : > { %v850_v31 = vmax.f32 %v826_v0, %v840_v11  ;;  %v2586_v0 = vld [vmem:[#allocation9 + $0xf4] sm:$0xf0]  ;;  %v2376_v11 = vld [vmem:[#allocation9 + $0xd0] sm:$0xf0]  ;;  %v2395_v16 = vor.u32 %v2583_v52, %v2392_v57 }
 0x10c   : > { %1151 = vmatmul.bf16.gmra.mxu1 %v1067_v32  ;;  %v983_v24 = vadd.f32 %v975_v30, %v966_v25  ;;  %v1033_v46 = vadd.f32 %v1025_v36, %v1016_v29  ;;  %v950_v61 = vadd.f32 %v942_v42, %v933_v35  ;;  %v2399_v20 = vor.u32 %v2586_v0, %v2398_v58  ;;  %v2382_v25 = vld [vmem:[#allocation9 + $0xc8] sm:$0xf]  ;;  %v2582_v29 = vld [vmem:[#allocation9 + $0xd4] sm:$0xf0]  ;;  %v2358_v35 = vld [vmem:[#allocation9 + $0xa0] sm:$0xf] }
 0x10d   : > { %v869_v37 = vrot.slane %v850_v31, 7  ;;  %v892_v39 = vrot.slane %v850_v31, 1  ;;  %v926_v4 = vmul.f32 %v3286_v48, %v850_v31  ;;  %v2375_v48 = vor.u32 %v2581_v2, %v2374_v3  ;;  %v2577_v36 = vld [vmem:[#allocation9 + $0xac] sm:$0xf0]  ;;  %1410 = vmatpush.bf16.msrb.mxu3 %v2395_v16 }
 0x10e   : > { %v828_v41 = vpop.f32.mrf.mxu0  ;;  %v1000_v5 = vadd.f32 %v992_v44, %v983_v24  ;;  %v1050_v12 = vadd.f32 %v1042_v63, %v1033_v46  ;;  %1439 = vmatpush.bf16.msrb.mxu1 %v2399_v20  ;;  %v2379_v24 = vor.u32 %v2579_v10, %v2376_v11  ;;  %v2383_v46 = vor.u32 %v2582_v29, %v2382_v25  ;;  %v2573_v63 = vld [vmem:[#allocation9 + $0x8c] sm:$0xf0]  ;;  %v2344_v10 = vld [vmem:[#allocation9 + $0x90] sm:$0xf0]  ;;  %v2350_v20 = vld [vmem:[#allocation9 + $0x88] sm:$0xf] }
 0x10f   : > { %v829_v53 = vadd.f32 %v3275_v33, %v828_v41  ;;  %v881_v54 = vsel %vm861_vm0, 0.0, %v869_v37  ;;  %v3405_v49 = vsel %vm884_vm1, 0.0, %v892_v39  ;;  %1382 = vmatpush.bf16.msrb.mxu0 %v2375_v48  ;;  %2671 = vmatpush.bf16.msra.mxu2 %v2375_v48  ;;  %v976_v52 = vmul.f32 %v3306_v6, %v850_v31  ;;  %v2574_v25 = vld [vmem:[#allocation9 + $0x94] sm:$0xf0] }
 0x110   : > { %v917_v60 = vmul.f32 %v3284_v45, %v881_v54  ;;  %v959_v43 = vmul.f32 %v3298_v59, %v881_v54  ;;  %v1009_v8 = vmul.f32 %v3314_v28, %v881_v54  ;;  %v1026_v45 = vmul.f32 %v3325_v47, %v850_v31 }
 0x111   : > { %v841_v62 = vmul.f32 0.01, %v829_v53  ;;  %v943_v37 = vmul.f32 %v3294_v56, %v3405_v49  ;;  %v1043_v44 = vmul.f32 %v3339_v1, %v3405_v49  ;;  %v2359_v54 = vor.u32 %v2577_v36, %v2358_v35  ;;  %v2366_v56 = vld [vmem:[#allocation9 + $0xa8] sm:$0xf]  ;;  %1411 = vmatpush.bf16.msrb.mxu3 %v2379_v24 }
 0x112   : > { %v934_v32 = vadd.f32 %v926_v4, %v917_v60  ;;  %v1017_v34 = vadd.f32 %v1009_v8, %v1000_v5  ;;  %v967_v39 = vadd.f32 %v959_v43, %v950_v61  ;;  %v2342_v43 = vld [vmem:[#allocation9 + $0x80] sm:$0xf]  ;;  %v2363_v31 = vor.u32 %v2575_v51, %v2360_v50  ;;  %1440 = vmatpush.bf16.msrb.mxu1 %v2383_v46  ;;  %v2571_v8 = vld [vmem:[#allocation9 + $0x84] sm:$0xf] }
 0x113   : > { %v3413_v30 = vmax.f32 %v829_v53, %v841_v62  ;;  %v1062_v62 = vadd.f32 %v3351_v38, %v1050_v12  ;;  %1383 = vmatpush.bf16.msrb.mxu0 %v2359_v54  ;;  %v993_v11 = vmul.f32 %v3312_v27, %v3405_v49  ;;  %2672 = vmatpush.bf16.msra.mxu2 %v2359_v54 }
 0x114   : > { %v1034_v42 = vadd.f32 %v1026_v45, %v1017_v34  ;;  %v951_v58 = vadd.f32 %v943_v37, %v934_v32  ;;  %v984_v2 = vadd.f32 %v976_v52, %v967_v39  ;;  %v2347_v48 = vor.u32 %v2571_v8, %v2344_v10  ;;  %v2566_v8 = vld [vmem:[#allocation9 + $0x54] sm:$0xf0] }
 0x115   : > { %v870_v41 = vrot.slane %v3413_v30, 7  ;;  %v893_v0 = vrot.slane %v3413_v30, 1  ;;  %v977_v12 = vmul.f32 %v3306_v6, %v3413_v30  ;;  %1412 = vmatpush.bf16.msrb.mxu3 %v2363_v31  ;;  %v2351_v36 = vor.u32 %v2574_v25, %v2350_v20  ;;  %v2296_v25 = vld [vmem:[#allocation9 + $0x30] sm:$0xf0] }
 0x116   : > { %v830_v53 = vpop.f32.mrf.mxu0  ;;  %v1051_v60 = vadd.f32 %v1043_v44, %v1034_v42  ;;  %v1001_v34 = vadd.f32 %v993_v11, %v984_v2  ;;  %v1027_v6 = vmul.f32 %v3325_v47, %v3413_v30 }
 0x117   : > { %v831_v57 = vadd.f32 %v3275_v33, %v830_v53  ;;  %v882_v61 = vsel %vm861_vm0, 0.0, %v870_v41  ;;  %v2367_v33 = vor.u32 %v2578_v55, %v2366_v56  ;;  %v905_v49 = vsel %vm884_vm1, 0.0, %v893_v0  ;;  %v2328_v0 = vld [vmem:[#allocation9 + $0x70] sm:$0xf0] }
 0x118   : > { %v960_v3 = vmul.f32 %v3298_v59, %v882_v61  ;;  %v1063_v5 = vadd.f32 %v3351_v38, %v1051_v60  ;;  %v1010_v16 = vmul.f32 %v3314_v28, %v882_v61  ;;  %v2343_v59 = vor.u32 %v2573_v63, %v2342_v43  ;;  %v2326_v61 = vld [vmem:[#allocation9 + $0x60] sm:$0xf]  ;;  %v2569_v43 = vld [vmem:[#allocation9 + $0x6c] sm:$0xf0] }
 0x119   : > { %v842_v4 = vmul.f32 0.01, %v831_v57  ;;  %1441 = vmatpush.bf16.msrb.mxu1 %v2367_v33  ;;  %v994_v42 = vmul.f32 %v3312_v27, %v905_v49  ;;  %1413 = vmatpush.bf16.msrb.mxu3 %v2347_v48  ;;  %v1044_v27 = vmul.f32 %v3339_v1, %v905_v49  ;;  %v2327_v63 = vor.u32 %v2569_v43, %v2326_v61  ;;  %v2318_v33 = vld [vmem:[#allocation9 + $0x48] sm:$0xf]  ;;  %v2278_v48 = vld [vmem:[#allocation9] sm:$0xf] }
 0x11a   : > { %v968_v45 = vadd.f32 %v960_v3, %v951_v58  ;;  %v1068_v32 = vpack.c.bf16 %v1063_v5, %v1062_v62  ;;  %v1018_v39 = vadd.f32 %v1010_v16, %v1001_v34  ;;  %1384 = vmatpush.bf16.msrb.mxu0 %v2343_v59  ;;  %2673 = vmatpush.bf16.msra.mxu2 %v2343_v59  ;;  %v2570_v3 = vld [vmem:[#allocation9 + $0x74] sm:$0xf0]  ;;  %v2563_v62 = vld [vmem:[#allocation9 + $0x44] sm:$0xf]  ;;  %v2561_v16 = vld [vmem:[#allocation9 + $0x2c] sm:$0xf0] }
 0x11b   : > { %v852_v29 = vmax.f32 %v831_v57, %v842_v4  ;;  %v2331_v2 = vor.u32 %v2567_v40, %v2328_v0  ;;  %v2565_v4 = vld [vmem:[#allocation9 + $0x4c] sm:$0xf0]  ;;  %v2319_v11 = vor.u32 %v2566_v8, %v2318_v33  ;;  %v2559_v59 = vld [vmem:[#allocation9 + $0x24] sm:$0xf]  ;;  %v2368_v40 = vld [vmem:[#allocation9 + $0xb8] sm:$0xf0] }
 0x11c   : > { %1156 = vmatmul.bf16.vlgmr.msra.gmra.mxu3 %v1068_v32  ;;  %v985_v37 = vadd.f32 %v977_v12, %v968_v45  ;;  %v1035_v50 = vadd.f32 %v1027_v6, %v1018_v39  ;;  %v2294_v45 = vld [vmem:[#allocation9 + $0x20] sm:$0xf]  ;;  %v2562_v32 = vld [vmem:[#allocation9 + $0x34] sm:$0xf0]  ;;  %v2299_v12 = vor.u32 %v2559_v59, %v2296_v25  ;;  %v2555_v49 = vld [vmem:[#allocation9 + $0x4] sm:$0xf] }
 0x11d   : > { %v858_v35 = vmul.f32 0.0, %v852_v29  ;;  %1442 = vmatpush.bf16.msrb.mxu1 %v2351_v36  ;;  %1414 = vmatpush.bf16.msrb.mxu3 %v2331_v2  ;;  %v2295_v20 = vor.u32 %v2561_v16, %v2294_v45  ;;  %v2302_v29 = vld [vmem:[#allocation9 + $0x28] sm:$0xf]  ;;  %v2556_v45 = vld [vmem:[#allocation9 + $0xc] sm:$0xf] }
 0x11e   : > { %v1002_v51 = vadd.f32 %v994_v42, %v985_v37  ;;  %v1052_v55 = vadd.f32 %v1044_v27, %v1035_v50  ;;  %1385 = vmatpush.bf16.msrb.mxu0 %v2327_v63  ;;  %2674 = vmatpush.bf16.msra.mxu2 %v2327_v63  ;;  %v2303_v34 = vor.u32 %v2562_v32, %v2302_v29  ;;  %v2280_v37 = vld [vmem:[#allocation9 + $0x10] sm:$0xf0]  ;;  %v2286_v39 = vld [vmem:[#allocation9 + $0x8] sm:$0xf]  ;;  %v2288_v16 = vld [vmem:[#allocation9 + $0x18] sm:$0xf0] }
 0x11f   : > { %v871_v24 = vrot.slane %v858_v35, 7  ;;  %v894_v41 = vrot.slane %v858_v35, 1  ;;  %v1028_v53 = vmul.f32 %v3325_v47, %v858_v35  ;;  %v2334_v47 = vld [vmem:[#allocation9 + $0x68] sm:$0xf]  ;;  %v2557_v35 = vld [vmem:[#allocation9 + $0xc] sm:$0xf0]  ;;  %v2291_v25 = vor.u32 %v2556_v45, %v2288_v16 }
 0x120   : > { %v1064_v58 = vadd.f32 %v3351_v38, %v1052_v55  ;;  %v2335_v31 = vor.u32 %v2570_v3, %v2334_v47  ;;  %v2279_v36 = vor.u32 %v2557_v35, %v2278_v48  ;;  %v2572_v47 = vld [vmem:[#allocation9 + $0x8c] sm:$0xf]  ;;  %v2352_v3 = vld [vmem:[#allocation9 + $0x98] sm:$0xf0] }
 0x121   : > { %v883_v44 = vsel %vm861_vm0, 0.0, %v871_v24  ;;  %v906_v52 = vsel %vm884_vm1, 0.0, %v894_v41  ;;  %v2558_v24 = vld [vmem:[#allocation9 + $0x14] sm:$0xf0]  ;;  %v2283_v41 = vor.u32 %v2555_v49, %v2280_v37  ;;  %v2355_v2 = vor.u32 %v2572_v47, %v2352_v3  ;;  %v2593_v37 = vld [vmem:[#allocation10 + $0x30] sm:$0xff] }
 0x122   : > { %v1011_v46 = vmul.f32 %v3314_v28, %v883_v44  ;;  %v1045_v30 = vmul.f32 %v3339_v1, %v906_v52  ;;  %1443 = vmatpush.bf16.msrb.mxu1 %v2335_v31  ;;  %v2310_v1 = vld [vmem:[#allocation9 + $0x40] sm:$0xf]  ;;  %v2287_v42 = vor.u32 %v2558_v24, %v2286_v39  ;;  %v3448_v44 = vld [vmem:[#allocation7] ss:$0 sm:$0xff]  ;;  %v2568_v31 = vld [vmem:[#allocation9 + $0x6c] sm:$0xf] }
 0x123   : > { %v2311_v5 = vor.u32 %v2565_v4, %v2310_v1  ;;  %v2339_v1 = vor.u32 %v2568_v31, %v2336_v13  ;;  %v2320_v4 = vld [vmem:[#allocation9 + $0x58] sm:$0xf0]  ;;  %v2601_v39 = vld [vmem:[#allocation10 + $0x70] sm:$0xff]  ;;  %v2591_v24 = vld [vmem:[#allocation10 + $0x20] sm:$0xff] }
 0x124   : > { %v1019_v54 = vadd.f32 %v1011_v46, %v1002_v51  ;;  %v2594_v35 = vld [vmem:[#allocation10 + $0x38] sm:$0xff] }
 0x125   : > { %1386 = vmatpush.bf16.msrb.mxu0 %v2311_v5  ;;  %2675 = vmatpush.bf16.msra.mxu2 %v2311_v5  ;;  %v2560_v5 = vld [vmem:[#allocation9 + $0x2c] sm:$0xf]  ;;  %v2610_v49 = vld [vmem:[#allocation10 + $0xb8] sm:$0xff] }
 0x126   : > { %v1036_v56 = vadd.f32 %v1028_v53, %v1019_v54  ;;  %1444 = vmatpush.bf16.msrb.mxu1 %v2319_v11 }
 0x128   : > { %v1053_v57 = vadd.f32 %v1045_v30, %v1036_v56  ;;  %v2584_v56 = vld [vmem:[#allocation9 + $0xec] sm:$0xf]  ;;  %v2400_v30 = vld [vmem:[#allocation9 + $0xf8] sm:$0xf0] }
 0x129   : > { %1387 = vmatpush.bf16.msrb.mxu0 %v2295_v20  ;;  %2676 = vmatpush.bf16.msra.mxu2 %v2295_v20  ;;  %v2403_v55 = vor.u32 %v2584_v56, %v2400_v30  ;;  %v2604_v56 = vld [vmem:[#allocation10 + $0x88] sm:$0xff]  ;;  %v2597_v30 = vld [vmem:[#allocation10 + $0x50] sm:$0xff] }
 0x12a   : > { %v1065_v60 = vadd.f32 %v3351_v38, %v1053_v57  ;;  %v2312_v38 = vld [vmem:[#allocation9 + $0x50] sm:$0xf0]  ;;  %1445 = vmatpush.bf16.msrb.mxu1 %v2303_v34 }
 0x12b   : > { %v2315_v10 = vor.u32 %v2563_v62, %v2312_v38  ;;  %v2304_v38 = vld [vmem:[#allocation9 + $0x38] sm:$0xf0] }
 0x12c   : > { %v1069_v28 = vpack.c.bf16 %v1065_v60, %v1064_v58  ;;  %v2384_v58 = vld [vmem:[#allocation9 + $0xd8] sm:$0xf0]  ;;  %v2576_v60 = vld [vmem:[#allocation9 + $0xac] sm:$0xf] }
 0x12d   : > { %1415 = vmatpush.bf16.msrb.mxu3 %v2315_v10  ;;  %1388 = vmatpush.bf16.msrb.mxu0 %v2279_v36  ;;  %v2371_v0 = vor.u32 %v2576_v60, %v2368_v40  ;;  %v2307_v10 = vor.u32 %v2560_v5, %v2304_v38 }
 0x12e   : > { %1161 = vmatmul.bf16.gmra.mxu3 %v1069_v28  ;;  %2677 = vmatpush.bf16.msra.mxu2 %v2279_v36  ;;  %v2602_v36 = vld [vmem:[#allocation10 + $0x78] sm:$0xff] }
 0x12f   : > { %1446 = vmatpush.bf16.msrb.mxu1 %v2287_v42  ;;  %v2600_v42 = vld [vmem:[#allocation10 + $0x68] sm:$0xff] }
 0x131   : > { %1416 = vmatpush.bf16.msrb.mxu3 %v2299_v12  ;;  %1866 = vmatpush.bf16.msra.mxu0 %v2602_v36  ;;  %v2616_v36 = vld [vmem:[#allocation10 + $0xe8] sm:$0xff] }
 0x132   : > { %1468 = vmatpush.bf16.msrb.mxu2 %v2403_v55  ;;  %v2603_v55 = vld [vmem:[#allocation10 + $0x80] sm:$0xff] }
 0x133   : > { %1895 = vmatpush.bf16.msra.mxu1 %v2610_v49 }
 0x135   : > { %1417 = vmatpush.bf16.msrb.mxu3 %v2283_v41  ;;  %v2607_v41 = vld [vmem:[#allocation10 + $0xa0] sm:$0xff]  ;;  %1867 = vmatpush.bf16.msra.mxu0 %v2601_v39 }
 0x139   : > { %1837 = vmatpush.bf16.msra.mxu3 %v2594_v35  ;;  %1868 = vmatpush.bf16.msra.mxu0 %v2600_v42 }
 0x13d   : > { %1838 = vmatpush.bf16.msra.mxu3 %v2593_v37 }
 0x141   : > { %1839 = vmatpush.bf16.msra.mxu3 %v2592_v21 }
 0x145   : > { %1840 = vmatpush.bf16.msra.mxu3 %v2591_v24 }
 0x179   : > { %v1147_v6 = vpop.f32.mrf.mxu1 }
 0x17a   : > { %v1148_v46 = vadd.f32 %v3448_v44, %v1147_v6  ;;  %v2590_v6 = vld [vmem:[#allocation10 + $0x18] sm:$0xff] }
 0x17b   : > { %1841 = vmatpush.bf16.msra.mxu3 %v2590_v6  ;;  %v2615_v6 = vld [vmem:[#allocation10 + $0xe0] sm:$0xff] }
 0x17c   : > { %v3454_v52 = vadd.f32 %v2621_v9, %v1148_v46  ;;  %v2599_v46 = vld [vmem:[#allocation10 + $0x60] sm:$0xff] }
 0x17d   : > { %1869 = vmatpush.bf16.msra.mxu0 %v2599_v46 }
 0x181   : > { %v1149_v51 = vpop.f32.mrf.mxu1 }
 0x182   : > { %v1150_v50 = vadd.f32 %v3448_v44, %v1149_v51  ;;  %v2589_v51 = vld [vmem:[#allocation10 + $0x10] sm:$0xff] }
 0x183   : > { %1842 = vmatpush.bf16.msra.mxu3 %v2589_v51 }
 0x184   : > { %v3458_v53 = vadd.f32 %v2622_v14, %v1150_v50  ;;  %v2580_v14 = vld [vmem:[#allocation9 + $0xcc] sm:$0xf]  ;;  %v2605_v50 = vld [vmem:[#allocation10 + $0x90] sm:$0xff] }
 0x185   : > { %v2387_v43 = vor.u32 %v2580_v14, %v2384_v58  ;;  %v3507_v14 = vld [vmem:[%s3590_s10] sm:$0xf] }
 0x186   : > { %v3462_v54 = vpack.c.bf16 %v3458_v53, %v3454_v52  ;;  %v3510_v60 = vperm.slane %v3507_v14, 0  ;;  %v3513_v40 = vperm.slane %v3507_v14, 2 }
 0x187   : > { %1469 = vmatpush.bf16.msrb.mxu2 %v2387_v43 }
 0x188   : > { %1389 = vmatmul.bf16.vlgmr.msrb.gmra.mxu0 %v3462_v54  ;;  %1418 = vmatmul.bf16.vlgmr.msrb.gmra.mxu3 %v3462_v54 }
 0x189   : > { %1447 = vmatmul.bf16.vlgmr.msrb.gmra.mxu1 %v3462_v54  ;;  %v1152_v27 = vpop.f32.mrf.mxu1 }
 0x18a   : > { %v1153_v9 = vadd.f32 %v3448_v44, %v1152_v27  ;;  %v2588_v27 = vld [vmem:[#allocation10 + $0x8] sm:$0xff] }
 0x18b   : > { %1470 = vmatpush.bf16.msrb.mxu2 %v2371_v0  ;;  %1843 = vmatpush.bf16.msra.mxu3 %v2588_v27 }
 0x18c   : > { %v3471_v28 = vadd.f32 %v2625_v15, %v1153_v9  ;;  %v2587_v9 = vld [vmem:[#allocation10] sm:$0xff] }
 0x18f   : > { %1471 = vmatpush.bf16.msrb.mxu2 %v2355_v2  ;;  %1844 = vmatpush.bf16.msra.mxu3 %v2587_v9  ;;  %v3518_v2 = vperm.slane %v3507_v14, 1 }
 0x191   : > { %v1154_v57 = vpop.f32.mrf.mxu1 }
 0x192   : > { %v1155_v7 = vadd.f32 %v3448_v44, %v1154_v57  ;;  %v2596_v57 = vld [vmem:[#allocation10 + $0x48] sm:$0xff] }
 0x193   : > { %1472 = vmatpush.bf16.msrb.mxu2 %v2339_v1 }
 0x194   : > { %v3475_v61 = vadd.f32 %v2626_v18, %v1155_v7  ;;  %v2564_v18 = vld [vmem:[#allocation9 + $0x4c] sm:$0xf]  ;;  %v2595_v7 = vld [vmem:[#allocation10 + $0x40] sm:$0xff] }
 0x195   : > { %v2323_v62 = vor.u32 %v2564_v18, %v2320_v4 }
 0x196   : > { %v1176_v63 = vpack.c.bf16 %v3475_v61, %v3471_v28 }
 0x197   : > { %1473 = vmatpush.bf16.msrb.mxu2 %v2323_v62 }
 0x198   : > { %1394 = vmatmul.bf16.gmra.mxu0 %v1176_v63  ;;  %1423 = vmatmul.bf16.gmra.mxu3 %v1176_v63 }
 0x199   : > { %1452 = vmatmul.bf16.gmra.mxu1 %v1176_v63 }
 0x19b   : > { %1474 = vmatpush.bf16.msrb.mxu2 %v2307_v10 }
 0x19f   : > { %v1157_v15 = vpop.f32.mrf.mxu3  ;;  %1475 = vmatpush.bf16.msrb.mxu2 %v2291_v25 }
 0x1a0   : > { %v1158_v33 = vadd.f32 %v3448_v44, %v1157_v15 }
 0x1a2   : > { %v3483_v59 = vadd.f32 %v2629_v19, %v1158_v33  ;;  %v2617_v33 = vld [vmem:[#allocation10 + $0xf0] sm:$0xff] }
 0x1a7   : > { %v1159_v8 = vpop.f32.mrf.mxu3 }
 0x1a8   : > { %v1160_v11 = vadd.f32 %v3448_v44, %v1159_v8 }
 0x1aa   : > { %v3487_v20 = vadd.f32 %v2630_v22, %v1160_v11 }
 0x1ac   : > { %v1177_v29 = vpack.c.bf16 %v3487_v20, %v3483_v59 }
 0x1ae   : > { %1399 = vmatmul.bf16.vlgmr.msra.gmra.mxu2 %v1177_v29  ;;  %1428 = vmatmul.bf16.gmra.mxu3 %v1177_v29 }
 0x1af   : > { %1457 = vmatmul.bf16.gmra.mxu1 %v1177_v29 }
 0x1b1   : > { %v1162_v32 = vpop.f32.mrf.mxu3 }
 0x1b2   : > { %v1163_v12 = vadd.f32 %v3448_v44, %v1162_v32 }
 0x1b4   : > { %v3495_v17 = vadd.f32 %v2633_v23, %v1163_v12  ;;  %v2609_v23 = vld [vmem:[#allocation10 + $0xb0] sm:$0xff] }
 0x1b5   : > { %1896 = vmatpush.bf16.msra.mxu1 %v2609_v23 }
 0x1b9   : > { %v1164_v34 = vpop.f32.mrf.mxu3 }
 0x1ba   : > { %v1165_v19 = vadd.f32 %v3448_v44, %v1164_v34  ;;  %v2606_v44 = vld [vmem:[#allocation10 + $0x98] sm:$0xff] }
 0x1bc   : > { %v3499_v22 = vadd.f32 %v2634_v26, %v1165_v19  ;;  %v2608_v26 = vld [vmem:[#allocation10 + $0xa8] sm:$0xff] }
 0x1bd   : > { %1897 = vmatpush.bf16.msra.mxu1 %v2608_v26 }
 0x1be   : > { %v1178_v48 = vpack.c.bf16 %v3499_v22, %v3495_v17 }
 0x1c0   : > { %1404 = vmatmul.bf16.gmra.mxu2 %v1178_v48  ;;  %1433 = vmatmul.bf16.gmra.mxu3 %v1178_v48 }
 0x1c1   : > { %1462 = vmatmul.bf16.gmra.mxu1 %v1178_v48 }
 0x1c2   : > { %1898 = vmatpush.bf16.msra.mxu1 %v2607_v41 }
 0x1c6   : > { %1899 = vmatpush.bf16.msra.mxu1 %v2606_v44 }
 0x1ca   : > { %1900 = vmatpush.bf16.msra.mxu1 %v2605_v50 }
 0x1ce   : > { %1901 = vmatpush.bf16.msra.mxu1 %v2604_v56 }
 0x1d0   : > { %1476 = vmatmul.bf16.vlgmr.msrb.gmra.mxu2 %v3462_v54  ;;  %v2598_v54 = vld [vmem:[#allocation10 + $0x58] sm:$0xff] }
 0x1d1   : > { %1870 = vmatpush.bf16.msra.mxu0 %v2598_v54 }
 0x1d2   : > { %1902 = vmatpush.bf16.msra.mxu1 %v2603_v55 }
 0x1d5   : > { %1871 = vmatpush.bf16.msra.mxu0 %v2597_v30 }
 0x1d9   : > { %1872 = vmatpush.bf16.msra.mxu0 %v2596_v57 }
 0x1dd   : > { %1873 = vmatpush.bf16.msra.mxu0 %v2595_v7 }
 0x1e0   : > { %1481 = vmatmul.bf16.gmra.mxu2 %v1176_v63  ;;  %v2618_v63 = vld [vmem:[#allocation10 + $0xf8] sm:$0xff] }
 0x1e1   : > { %1924 = vmatpush.bf16.msra.mxu2 %v2618_v63 }
 0x1e5   : > { %1925 = vmatpush.bf16.msra.mxu2 %v2617_v33 }
 0x1e9   : > { %1926 = vmatpush.bf16.msra.mxu2 %v2616_v36 }
 0x1ed   : > { %1927 = vmatpush.bf16.msra.mxu2 %v2615_v6 }
 0x1f0   : > { %1486 = vmatmul.bf16.gmra.mxu2 %v1177_v29 }
 0x200   : > { %1491 = vmatmul.bf16.gmra.mxu2 %v1178_v48 }
 0x205   : > { %v1390_v58 = vpop.f32.mrf.mxu0 }
 0x206   : > { %v1448_v43 = vpop.f32.mrf.mxu1  ;;  %v1391_v0 = vadd.f32 %v1390_v58, %v3510_v60 }
 0x207   : > { %v1449_v47 = vadd.f32 %v1448_v43, %v3513_v40 }
 0x208   : > { %v1497_v31 = vmul.f32 0.1, %v1391_v0 }
 0x209   : > { %v1499_v1 = vmul.f32 0.1, %v1449_v47 }
 0x20a   : > { %v1529_v8 = vmax.f32 %v1391_v0, %v1497_v31  ;;  %v2614_v0 = vld [vmem:[#allocation10 + $0xd8] sm:$0xff] }
 0x20b   : > { %v1419_v3 = vpop.f32.mrf.mxu3  ;;  %v1531_v11 = vmax.f32 %v1449_v47, %v1499_v1  ;;  %1928 = vmatpush.bf16.msra.mxu2 %v2614_v0 }
 0x20c   : > { %v1420_v62 = vadd.f32 %v1419_v3, %v3518_v2 }
 0x20d   : > { %v1392_v15 = vpop.f32.mrf.mxu0 }
 0x20e   : > { %v1393_v13 = vadd.f32 %v1392_v15, %v3510_v60  ;;  %v1450_v18 = vpop.f32.mrf.mxu1  ;;  %v1498_v25 = vmul.f32 0.1, %v1420_v62 }
 0x20f   : > { %v1451_v4 = vadd.f32 %v1450_v18, %v3513_v40 }
 0x210   : > { %v1501_v5 = vmul.f32 0.1, %v1393_v13  ;;  %v1530_v35 = vmax.f32 %v1420_v62, %v1498_v25 }
 0x211   : > { %v1503_v38 = vmul.f32 0.1, %v1451_v4 }
 0x212   : > { %v1533_v10 = vmax.f32 %v1393_v13, %v1501_v5  ;;  %v2613_v13 = vld [vmem:[#allocation10 + $0xd0] sm:$0xff] }
 0x213   : > { %v1535_v45 = vmax.f32 %v1451_v4, %v1503_v38  ;;  %v1421_v16 = vpop.f32.mrf.mxu3  ;;  %1929 = vmatpush.bf16.msra.mxu2 %v2613_v13 }
 0x214   : > { %v1561_v29 = vpack.c.bf16 %v1533_v10, %v1529_v8  ;;  %v1422_v32 = vadd.f32 %v1421_v16, %v3518_v2 }
 0x215   : > { %v1563_v12 = vpack.c.bf16 %v1535_v45, %v1531_v11  ;;  %v1395_v34 = vpop.f32.mrf.mxu0  ;;  %v2612_v11 = vld [vmem:[#allocation10 + $0xc8] sm:$0xff] }
 0x216   : > { %v1502_v19 = vmul.f32 0.1, %v1422_v32  ;;  %v1453_v48 = vpop.f32.mrf.mxu1  ;;  %1845 = vmatmul.bf16.vlgmr.msra.gmra.mxu3 %v1561_v29  ;;  %v1396_v23 = vadd.f32 %v1395_v34, %v3510_v60 }
 0x217   : > { %1903 = vmatmul.bf16.vlgmr.msra.gmra.mxu1 %v1563_v12  ;;  %v1454_v21 = vadd.f32 %v1453_v48, %v3513_v40  ;;  %1930 = vmatpush.bf16.msra.mxu2 %v2612_v11 }
 0x218   : > { %v1534_v49 = vmax.f32 %v1422_v32, %v1502_v19  ;;  %v1505_v24 = vmul.f32 0.1, %v1396_v23 }
 0x219   : > { %v1507_v44 = vmul.f32 0.1, %v1454_v21 }
 0x21a   : > { %v1562_v37 = vpack.c.bf16 %v1534_v49, %v1530_v35  ;;  %v1537_v27 = vmax.f32 %v1396_v23, %v1505_v24 }
 0x21b   : > { %v1424_v26 = vpop.f32.mrf.mxu3  ;;  %v1539_v30 = vmax.f32 %v1454_v21, %v1507_v44 }
 0x21c   : > { %1874 = vmatmul.bf16.vlgmr.msra.gmra.mxu0 %v1562_v37  ;;  %v1425_v51 = vadd.f32 %v1424_v26, %v3518_v2 }
 0x21d   : > { %v1397_v39 = vpop.f32.mrf.mxu0 }
 0x21e   : > { %v1398_v41 = vadd.f32 %v1397_v39, %v3510_v60  ;;  %v1455_v42 = vpop.f32.mrf.mxu1  ;;  %v1506_v57 = vmul.f32 0.1, %v1425_v51 }
 0x21f   : > { %v1456_v46 = vadd.f32 %v1455_v42, %v3513_v40 }
 0x220   : > { %v1509_v50 = vmul.f32 0.1, %v1398_v41  ;;  %v1538_v47 = vmax.f32 %v1425_v51, %v1506_v57 }
 0x221   : > { %v1511_v54 = vmul.f32 0.1, %v1456_v46 }
 0x222   : > { %v1541_v56 = vmax.f32 %v1398_v41, %v1509_v50  ;;  %v2611_v41 = vld [vmem:[#allocation10 + $0xc0] sm:$0xff] }
 0x223   : > { %v1543_v9 = vmax.f32 %v1456_v46, %v1511_v54  ;;  %v1426_v55 = vpop.f32.mrf.mxu3  ;;  %1931 = vmatpush.bf16.msra.mxu2 %v2611_v41 }
 0x224   : > { %v1427_v7 = vadd.f32 %v1426_v55, %v3518_v2  ;;  %v1565_v58 = vpack.c.bf16 %v1541_v56, %v1537_v27 }
 0x225   : > { %v1567_v43 = vpack.c.bf16 %v1543_v9, %v1539_v30 }
 0x226   : > { %v1510_v63 = vmul.f32 0.1, %v1427_v7  ;;  %1850 = vmatmul.bf16.gmra.mxu3 %v1565_v58 }
 0x227   : > { %1908 = vmatmul.bf16.gmra.mxu1 %v1567_v43 }
 0x228   : > { %v1542_v3 = vmax.f32 %v1427_v7, %v1510_v63 }
 0x22a   : > { %v1566_v15 = vpack.c.bf16 %v1542_v3, %v1538_v47 }
 0x22c   : > { %v1458_v31 = vpop.f32.mrf.mxu1  ;;  %1879 = vmatmul.bf16.gmra.mxu0 %v1566_v15 }
 0x22d   : > { %v1459_v18 = vadd.f32 %v1458_v31, %v3513_v40 }
 0x22f   : > { %v1515_v5 = vmul.f32 0.1, %v1459_v18 }
 0x231   : > { %v1400_v1 = vpop.f32.mrf.mxu2  ;;  %v1429_v4 = vpop.f32.mrf.mxu3  ;;  %v1547_v45 = vmax.f32 %v1459_v18, %v1515_v5 }
 0x232   : > { %v1401_v33 = vadd.f32 %v1400_v1, %v3510_v60  ;;  %v1430_v8 = vadd.f32 %v1429_v4, %v3518_v2 }
 0x234   : > { %v1460_v62 = vpop.f32.mrf.mxu1  ;;  %v1513_v32 = vmul.f32 0.1, %v1401_v33  ;;  %v1514_v12 = vmul.f32 0.1, %v1430_v8 }
 0x235   : > { %v1461_v38 = vadd.f32 %v1460_v62, %v3513_v40  ;;  %v1216_v62 = vperm.slane %v3507_v14, 3 }
 0x236   : > { %v1545_v37 = vmax.f32 %v1401_v33, %v1513_v32  ;;  %v1546_v23 = vmax.f32 %v1430_v8, %v1514_v12 }
 0x237   : > { %v1519_v10 = vmul.f32 0.1, %v1461_v38 }
 0x239   : > { %v1551_v16 = vmax.f32 %v1461_v38, %v1519_v10  ;;  %v1402_v25 = vpop.f32.mrf.mxu2  ;;  %v1431_v29 = vpop.f32.mrf.mxu3 }
 0x23a   : > { %v1403_v34 = vadd.f32 %v1402_v25, %v3510_v60  ;;  %v1432_v19 = vadd.f32 %v1431_v29, %v3518_v2 }
 0x23b   : > { %v1571_v48 = vpack.c.bf16 %v1551_v16, %v1547_v45 }
 0x23c   : > { %v1517_v35 = vmul.f32 0.1, %v1403_v34  ;;  %v1518_v49 = vmul.f32 0.1, %v1432_v19 }
 0x23d   : > { %1913 = vmatmul.bf16.gmra.mxu1 %v1571_v48 }
 0x23e   : > { %v1463_v36 = vpop.f32.mrf.mxu1  ;;  %v1549_v21 = vmax.f32 %v1403_v34, %v1517_v35  ;;  %v1550_v26 = vmax.f32 %v1432_v19, %v1518_v49 }
 0x23f   : > { %v1464_v42 = vadd.f32 %v1463_v36, %v3513_v40 }
 0x240   : > { %v1569_v39 = vpack.c.bf16 %v1549_v21, %v1545_v37  ;;  %v1570_v24 = vpack.c.bf16 %v1550_v26, %v1546_v23 }
 0x241   : > { %v1523_v51 = vmul.f32 0.1, %v1464_v42 }
 0x242   : > { %1855 = vmatmul.bf16.gmra.mxu3 %v1569_v39  ;;  %1884 = vmatmul.bf16.gmra.mxu0 %v1570_v24 }
 0x243   : > { %v1405_v6 = vpop.f32.mrf.mxu2  ;;  %v1434_v44 = vpop.f32.mrf.mxu3  ;;  %v1555_v30 = vmax.f32 %v1464_v42, %v1523_v51 }
 0x244   : > { %v1406_v54 = vadd.f32 %v1405_v6, %v3510_v60  ;;  %v1435_v27 = vadd.f32 %v1434_v44, %v3518_v2 }
 0x246   : > { %v1465_v46 = vpop.f32.mrf.mxu1  ;;  %v1521_v7 = vmul.f32 0.1, %v1406_v54  ;;  %v1522_v58 = vmul.f32 0.1, %v1435_v27 }
 0x247   : > { %v1466_v50 = vadd.f32 %v1465_v46, %v3513_v40 }
 0x248   : > { %v1553_v40 = vmax.f32 %v1406_v54, %v1521_v7  ;;  %v1554_v15 = vmax.f32 %v1435_v27, %v1522_v58 }
 0x249   : > { %v1527_v56 = vmul.f32 0.1, %v1466_v50 }
 0x24b   : > { %v1559_v9 = vmax.f32 %v1466_v50, %v1527_v56  ;;  %v1407_v55 = vpop.f32.mrf.mxu2  ;;  %v1436_v57 = vpop.f32.mrf.mxu3 }
 0x24c   : > { %v1408_v43 = vadd.f32 %v1407_v55, %v3510_v60  ;;  %v1437_v63 = vadd.f32 %v1436_v57, %v3518_v2  ;;  %v3543_v55 = vld [vmem:[#allocation12] ss:$0 sm:$0xff] }
 0x24d   : > { %v1575_v0 = vpack.c.bf16 %v1559_v9, %v1555_v30 }
 0x24e   : > { %v1525_v47 = vmul.f32 0.1, %v1408_v43  ;;  %v1526_v3 = vmul.f32 0.1, %v1437_v63 }
 0x24f   : > { %1918 = vmatmul.bf16.gmra.mxu1 %v1575_v0 }
 0x250   : > { %v1557_v31 = vmax.f32 %v1408_v43, %v1525_v47  ;;  %v1558_v13 = vmax.f32 %v1437_v63, %v1526_v3 }
 0x252   : > { %v1573_v18 = vpack.c.bf16 %v1557_v31, %v1553_v40  ;;  %v1574_v1 = vpack.c.bf16 %v1558_v13, %v1554_v15 }
 0x253   : > { %v1477_v4 = vpop.f32.mrf.mxu2 }
 0x254   : > { %1860 = vmatmul.bf16.gmra.mxu3 %v1573_v18  ;;  %1889 = vmatmul.bf16.gmra.mxu0 %v1574_v1  ;;  %v1478_v5 = vadd.f32 %v1477_v4, %v1216_v62 }
 0x256   : > { %v1500_v60 = vmul.f32 0.1, %v1478_v5 }
 0x258   : > { %v1532_v8 = vmax.f32 %v1478_v5, %v1500_v60 }
 0x25b   : > { %v1479_v38 = vpop.f32.mrf.mxu2 }
 0x25c   : > { %v1480_v33 = vadd.f32 %v1479_v38, %v1216_v62 }
 0x25e   : > { %v1504_v2 = vmul.f32 0.1, %v1480_v33 }
 0x260   : > { %v1536_v10 = vmax.f32 %v1480_v33, %v1504_v2 }
 0x262   : > { %v1564_v11 = vpack.c.bf16 %v1536_v10, %v1532_v8 }
 0x263   : > { %v1482_v45 = vpop.f32.mrf.mxu2 }
 0x264   : > { %1932 = vmatmul.bf16.vlgmr.msra.gmra.mxu2 %v1564_v11  ;;  %v1483_v16 = vadd.f32 %v1482_v45, %v1216_v62 }
 0x266   : > { %v1508_v29 = vmul.f32 0.1, %v1483_v16 }
 0x268   : > { %v1540_v34 = vmax.f32 %v1483_v16, %v1508_v29 }
 0x26b   : > { %v1484_v25 = vpop.f32.mrf.mxu2 }
 0x26c   : > { %v1485_v32 = vadd.f32 %v1484_v25, %v1216_v62 }
 0x26e   : > { %v1512_v12 = vmul.f32 0.1, %v1485_v32 }
 0x270   : > { %v1544_v19 = vmax.f32 %v1485_v32, %v1512_v12 }
 0x272   : > { %v1568_v14 = vpack.c.bf16 %v1544_v19, %v1540_v34 }
 0x273   : > { %v1487_v48 = vpop.f32.mrf.mxu2 }
 0x274   : > { %1937 = vmatmul.bf16.gmra.mxu2 %v1568_v14  ;;  %v1488_v35 = vadd.f32 %v1487_v48, %v1216_v62 }
 0x276   : > { %v1516_v36 = vmul.f32 0.1, %v1488_v35 }
 0x278   : > { %v1548_v21 = vmax.f32 %v1488_v35, %v1516_v36 }
 0x27b   : > { %v1489_v49 = vpop.f32.mrf.mxu2 }
 0x27c   : > { %v1490_v37 = vadd.f32 %v1489_v49, %v1216_v62 }
 0x27e   : > { %v1520_v23 = vmul.f32 0.1, %v1490_v37 }
 0x280   : > { %v1552_v26 = vmax.f32 %v1490_v37, %v1520_v23 }
 0x282   : > { %v1572_v39 = vpack.c.bf16 %v1552_v26, %v1548_v21 }
 0x283   : > { %v1492_v24 = vpop.f32.mrf.mxu2 }
 0x284   : > { %1942 = vmatmul.bf16.gmra.mxu2 %v1572_v39  ;;  %v1493_v41 = vadd.f32 %v1492_v24, %v1216_v62 }
 0x286   : > { %v1524_v6 = vmul.f32 0.1, %v1493_v41 }
 0x288   : > { %v1556_v51 = vmax.f32 %v1493_v41, %v1524_v6 }
 0x28b   : > { %v1494_v42 = vpop.f32.mrf.mxu2 }
 0x28c   : > { %v1495_v44 = vadd.f32 %v1494_v42, %v1216_v62 }
 0x28e   : > { %v1528_v46 = vmul.f32 0.1, %v1495_v44 }
 0x290   : > { %v1560_v50 = vmax.f32 %v1495_v44, %v1528_v46 }
 0x292   : > { %v1576_v54 = vpack.c.bf16 %v1560_v50, %v1556_v51 }
 0x294   : > { %1947 = vmatmul.bf16.gmra.mxu2 %v1576_v54  ;;  %v1904_v30 = vpop.f32.mrf.mxu1 }
 0x299   : > { %v1846_v27 = vpop.f32.mrf.mxu3  ;;  %v1875_v56 = vpop.f32.mrf.mxu0 }
 0x29a   : > { %v1847_v57 = vadd.f32 %v3543_v55, %v1846_v27 }
 0x29c   : > { %v1876_v58 = vadd.f32 %v1875_v56, %v1847_v57  ;;  %v1906_v43 = vpop.f32.mrf.mxu1 }
 0x29e   : > { %v1905_v3 = vadd.f32 %v1904_v30, %v1876_v58 }
 0x2a1   : > { %v1848_v9 = vpop.f32.mrf.mxu3  ;;  %v1877_v7 = vpop.f32.mrf.mxu0 }
 0x2a2   : > { %v1849_v0 = vadd.f32 %v3543_v55, %v1848_v9 }
 0x2a4   : > { %v1878_v40 = vadd.f32 %v1877_v7, %v1849_v0  ;;  %v1909_v13 = vpop.f32.mrf.mxu1 }
 0x2a6   : > { %v1907_v1 = vadd.f32 %v1906_v43, %v1878_v40 }
 0x2a9   : > { %v1851_v63 = vpop.f32.mrf.mxu3  ;;  %v1880_v31 = vpop.f32.mrf.mxu0 }
 0x2aa   : > { %v1852_v5 = vadd.f32 %v3543_v55, %v1851_v63 }
 0x2ac   : > { %v1881_v2 = vadd.f32 %v1880_v31, %v1852_v5  ;;  %v1911_v34 = vpop.f32.mrf.mxu1 }
 0x2ae   : > { %v1910_v12 = vadd.f32 %v1909_v13, %v1881_v2 }
 0x2b1   : > { %v1853_v4 = vpop.f32.mrf.mxu3  ;;  %v1882_v10 = vpop.f32.mrf.mxu0 }
 0x2b2   : > { %v1854_v11 = vadd.f32 %v3543_v55, %v1853_v4 }
 0x2b4   : > { %v1883_v19 = vadd.f32 %v1882_v10, %v1854_v11 }
 0x2b6   : > { %v1912_v49 = vadd.f32 %v1911_v34, %v1883_v19 }
 0x2ba   : > { %v1914_v37 = vpop.f32.mrf.mxu1 }
 0x2bf   : > { %v1885_v48 = vpop.f32.mrf.mxu0 }
 0x2c2   : > { %v1916_v30 = vpop.f32.mrf.mxu1 }
 0x2c5   : > { %v1856_v25 = vpop.f32.mrf.mxu3 }
 0x2c7   : > { %v1887_v44 = vpop.f32.mrf.mxu0 }
 0x2cd   : > { %v1858_v23 = vpop.f32.mrf.mxu3 }
 0x2ce   : > { %v1859_v41 = vadd.f32 %v3543_v55, %v1858_v23 }
 0x2d0   : > { %v1888_v27 = vadd.f32 %v1887_v44, %v1859_v41 }
 0x2d1   : > { %v1890_v7 = vpop.f32.mrf.mxu0 }
 0x2d2   : > { %v1917_v57 = vadd.f32 %v1916_v30, %v1888_v27 }
 0x2d7   : > { %v1861_v54 = vpop.f32.mrf.mxu3 }
 0x2d8   : > { %v1862_v43 = vadd.f32 %v3543_v55, %v1861_v54 }
 0x2e7   : > { %v1933_v47 = vpop.f32.mrf.mxu2 }
 0x2e8   : > { %v1934_v15 = vadd.f32 %v1933_v47, %v1905_v3  ;;  %v1863_v47 = vpop.f32.mrf.mxu3  ;;  %v1891_v3 = vadd.f32 %v1890_v7, %v1862_v43 }
 0x2ea   : > { %v1953_v18 = vmul.f32 0.1, %v1934_v15 }
 0x2ec   : > { %v1961_v60 = vmax.f32 %v1934_v15, %v1953_v18  ;;  %v1864_v15 = vadd.f32 %v3543_v55, %v1863_v47 }
 0x2ee   : > { %v1969_v45 = vadd.f32 %v1961_v60, %v3454_v52 }
 0x2ef   : > { %v1935_v62 = vpop.f32.mrf.mxu2 }
 0x2f0   : > { %v1936_v38 = vadd.f32 %v1935_v62, %v1907_v1  ;;  %v1892_v62 = vpop.f32.mrf.mxu0 }
 0x2f1   : > { %v1893_v5 = vadd.f32 %v1892_v62, %v1864_v15 }
 0x2f2   : > { %v1954_v33 = vmul.f32 0.1, %v1936_v38 }
 0x2f4   : > { %v1962_v8 = vmax.f32 %v1936_v38, %v1954_v33 }
 0x2f6   : > { %v1970_v16 = vadd.f32 %v1962_v8, %v3458_v53  ;;  %v1857_v53 = vadd.f32 %v3543_v55, %v1856_v25 }
 0x2f7   : > { %v1938_v29 = vpop.f32.mrf.mxu2 }
 0x2f8   : > { %v2638_v32 = vpack.c.bf16 %v1970_v16, %v1969_v45  ;;  %v1939_v14 = vadd.f32 %v1938_v29, %v1910_v12  ;;  %v1886_v39 = vadd.f32 %v1885_v48, %v1857_v53 }
 0x2fa   : > { %2639 = vst [vmem:[%s3555_s28] sm:$0xff] %v2638_v32   ;;  %v1955_v35 = vmul.f32 0.1, %v1939_v14  ;;  %v1915_v50 = vadd.f32 %v1914_v37, %v1886_v39 }
 0x2fc   : > { %v1963_v21 = vmax.f32 %v1939_v14, %v1955_v35 }
 0x2fe   : > { %v1971_v42 = vadd.f32 %v1963_v21, %v3471_v28 }
 0x2ff   : > { %v1940_v52 = vpop.f32.mrf.mxu2 }
 0x300   : > { %v1941_v36 = vadd.f32 %v1940_v52, %v1912_v49 }
 0x302   : > { %v1956_v26 = vmul.f32 0.1, %v1941_v36 }
 0x304   : > { %v1964_v24 = vmax.f32 %v1941_v36, %v1956_v26 }
 0x306   : > { %v1972_v6 = vadd.f32 %v1964_v24, %v3475_v61  ;;  %v1919_v61 = vpop.f32.mrf.mxu1 }
 0x307   : > { %v1943_v46 = vpop.f32.mrf.mxu2  ;;  %v1920_v4 = vadd.f32 %v1919_v61, %v1891_v3 }
 0x308   : > { %v2643_v51 = vpack.c.bf16 %v1972_v6, %v1971_v42  ;;  %v1944_v56 = vadd.f32 %v1943_v46, %v1915_v50 }
 0x30a   : > { %2659 = vst [vmem:[%s3555_s28 + $0x8] sm:$0xff] %v2643_v51   ;;  %v1957_v9 = vmul.f32 0.1, %v1944_v56 }
 0x30c   : > { %v1965_v28 = vmax.f32 %v1944_v56, %v1957_v9 }
 0x30e   : > { %v1973_v31 = vadd.f32 %v1965_v28, %v3483_v59  ;;  %v1921_v60 = vpop.f32.mrf.mxu1 }
 0x30f   : > { %v1945_v58 = vpop.f32.mrf.mxu2  ;;  %v1922_v2 = vadd.f32 %v1921_v60, %v1893_v5 }
 0x310   : > { %v1946_v63 = vadd.f32 %v1945_v58, %v1917_v57 }
 0x312   : > { %v1958_v0 = vmul.f32 0.1, %v1946_v63 }
 0x314   : > { %v1966_v40 = vmax.f32 %v1946_v63, %v1958_v0 }
 0x316   : > { %v1974_v13 = vadd.f32 %v1966_v40, %v3487_v20 }
 0x317   : > { %v1948_v18 = vpop.f32.mrf.mxu2 }
 0x318   : > { %v2648_v1 = vpack.c.bf16 %v1974_v13, %v1973_v31  ;;  %v1949_v38 = vadd.f32 %v1948_v18, %v1920_v4 }
 0x31a   : > { %2660 = vst [vmem:[%s3555_s28 + $0x10] sm:$0xff] %v2648_v1   ;;  %v1959_v33 = vmul.f32 0.1, %v1949_v38 }
 0x31c   : > { %v1967_v11 = vmax.f32 %v1949_v38, %v1959_v33 }
 0x31e   : > { %v1975_v59 = vadd.f32 %v1967_v11, %v3495_v17 }
 0x31f   : > { %v1950_v8 = vpop.f32.mrf.mxu2 }
 0x320   : > { %v1951_v10 = vadd.f32 %v1950_v8, %v1922_v2 }
 0x322   : > { %v1960_v45 = vmul.f32 0.1, %v1951_v10 }
 0x324   : > { %v1968_v55 = vmax.f32 %v1951_v10, %v1960_v45 }
 0x326   : > { %v1976_v20 = vadd.f32 %v1968_v55, %v3499_v22 }
 0x328   : > { %v2653_v16 = vpack.c.bf16 %v1976_v20, %v1975_v59 }
 0x32a   : > { %2661 = vst [vmem:[%s3555_s28 + $0x18] sm:$0xff] %v2653_v16  }
 0x32b PF: > { %s3609_s27 = sld [smem:[#allocation17_spill]]  ;;  %s3610_s25 = smov %s3026_s26 }
 0x32c   : > { %s3611_s26 = smov %s3613_s8 }
 0x331   : > { %s27_s27 = sadd.s32 1, %s3609_s27  }
 0x332   : > { %p24_p8 = scmp.ge.s32.totalorder %s27_s27, 4  }
 0x334   :  { %26 = sbr.rel (!%p24_p8) target bundleno = 11 (0xb), region = 137 }
 0x339   :  { %2023 = vsyncpa [#allocation3], 1 }
 0x33a   :  { %2025 = vsyncpa [#allocation3 + $0x1], 1 }
 0x33b   :  { %2026 = vsyncpa [#allocation5], 1 }
 0x33c   :  { %2027 = vsyncpa [#allocation8], 1 }
 0x33d   :  { %2028 = vsyncpa [#allocation11], 1 }

// kernel: recon_generation_forward.6
= control target key start
LH: loop header
LB: loop body
LE: loop exit
PB: predicated region body
PF: predicated region fallthrough
CT: control target
= control target key end

     0   :  { %s3719_s0 = inlined_call_operand.vmem [shape: bf16[2,8,8,128], index: 0, kind: input, shape index: {}, may-alias: {0,1,2}]   ;;  %s3720_s1 = inlined_call_operand.vmem [shape: bf16[2,8,8,128], index: 1, kind: input, shape index: {}, may-alias: {0,1,2}]   ;;  %s3721_s2 = inlined_call_operand.vmem [shape: bf16[2,8,8,128], index: 2, kind: input, shape index: {}, may-alias: {0,1,2}]   ;;  %s3722_s3 = inlined_call_operand.hbm [shape: bf16[128,128], index: 3, kind: input, shape index: {}]   ;;  %s3723_s4 = inlined_call_operand.hbm [shape: f32[1,128], index: 4, kind: input, shape index: {}]   ;;  %s3724_s5 = inlined_call_operand.hbm [shape: f32[9,128], index: 5, kind: input, shape index: {}]   ;;  %s3725_s6 = inlined_call_operand.hbm [shape: f32[1,128], index: 6, kind: input, shape index: {}]   ;;  %s3726_s7 = inlined_call_operand.hbm [shape: bf16[128,128], index: 7, kind: input, shape index: {}]   ;;  %s3727_s8 = inlined_call_operand.hbm [shape: f32[1,128], index: 8, kind: input, shape index: {}]   ;;  %s3728_s9 = inlined_call_operand.hbm [shape: bf16[128,512], index: 9, kind: input, shape index: {}]   ;;  %s3729_s10 = inlined_call_operand.vmem [shape: f32[1,512], index: 10, kind: input, shape index: {}]   ;;  %s3730_s11 = inlined_call_operand.hbm [shape: bf16[512,128], index: 11, kind: input, shape index: {}]   ;;  %s3731_s12 = inlined_call_operand.hbm [shape: f32[1,128], index: 12, kind: input, shape index: {}]   ;;  %s3732_s13 = inlined_call_operand.vmem [shape: bf16[2,8,8,128], index: 13, kind: output, shape index: {}]  }
   0x1   :  { %3733 = sst [smem:[#allocation21_spill]] %s3722_s3 }
   0x2   :  { %3734 = sst [smem:[#allocation22_spill]] %s3723_s4 }
   0x3   :  { %3735 = sst [smem:[#allocation23_spill]] %s3724_s5 }
   0x4   :  { %3736 = sst [smem:[#allocation24_spill]] %s3725_s6 }
   0x5   :  { %3737 = sst [smem:[#allocation25_spill]] %s3727_s8 }
   0x6   :  { %3738 = sst [smem:[#allocation26_spill]] %s3730_s11 }
   0x7   :  { %18 = vsyncpa [#allocation3], 0 }
   0x8   :  { %19 = vsyncpa [#allocation5], 0 }
   0x9   :  { %20 = vsyncpa [#allocation8], 0 }
   0xa   :  { %21 = vsyncpa [#allocation11], 0 }
   0xb   :  { %22 = vsyncpa [#allocation14], 0  ;;  %s3259_s25 = smov 0   ;;  %s3261_s26 = smov 0  }
   0xc   :  { %s3263_s27 = smov 0  }
   0xd LB: > { %s3739_s4 = sld [smem:[#allocation22_spill]]  ;;  %s2237_s14 = sadd.s32 4294967295, %s3172_s27   ;;  %s3172_s27 = sphi %s3263_s27, %s28_s27   ;;  %s3168_s26 = sphi %s3261_s26, %s3749_s26   ;;  %s3164_s25 = sphi %s3259_s25, %s3748_s25  }
   0xe   : > { %p2239_p0 = scmp.ge.s32.totalorder %s3172_s27, 1  ;;  %p383_p1 = scmp.lt.s32.totalorder %s3172_s27, 3 }
   0xf   : > { %p3280_p2 = scmp.eq.s32.totalorder %s2237_s14, 0  ;;  %s3174_s17 = smov [#allocation4]  }
  0x10   : > { %p3284_p3 = pnand %p2239_p0, %p383_p1  ;;  %s411_s18 = sshll.u32 %s3174_s17, 4  ;;  %s412_s18 = int_to_ptr.vmem [resolvable:$true] %s411_s18 }
  0x11   : > { %s3742_s6 = sld [smem:[#allocation24_spill]]  ;;  %s3175_s29 = smov [#allocation7]  }
  0x12   : > { %p2770_p4 = pneg %p3284_p3  ;;  %s3743_s8 = sld [smem:[#allocation25_spill]] }
  0x13   : > { %s409_s30 = sshll.u32 %s3739_s4, 4  ;;  %s437_s14 = sshll.u32 %s3175_s29, 4  ;;  %s410_s30 = int_to_ptr.hbm [resolvable:$true] %s409_s30  ;;  %s438_s14 = int_to_ptr.vmem [resolvable:$true] %s437_s14 }
  0x14   : > { %p3298_p5 = pnand %p3280_p2, %p2770_p4  ;;  %s3176_s17 = smov [#allocation10]  }
  0x15   : > { %s463_s19 = sshll.u32 %s3176_s17, 4  ;;  %s3745_s11 = sld [smem:[#allocation26_spill]]  ;;  %s464_s19 = int_to_ptr.vmem [resolvable:$true] %s463_s19 }
  0x16   : > { %2776 = dma.hbm_to_vmem [thread:$0]  (!%p3298_p5), %s410_s30, 16, %s412_s18, [#allocation5]  }
  0x17   : > { %s435_s21 = sshll.u32 %s3742_s6, 4  ;;  %s3177_s4 = smov [#allocation13]   ;;  %s436_s21 = int_to_ptr.hbm [resolvable:$true] %s435_s21 }
  0x18   : > { %s461_s24 = sshll.u32 %s3743_s8, 4  ;;  %s491_s29 = sshll.u32 %s3177_s4, 4  ;;  %s462_s24 = int_to_ptr.hbm [resolvable:$true] %s461_s24  ;;  %s492_s29 = int_to_ptr.vmem [resolvable:$true] %s491_s29 }
  0x19   : > { %2782 = dma.hbm_to_vmem [thread:$0]  (!%p3298_p5), %s436_s21, 16, %s438_s14, [#allocation8]  }
  0x1a   : > { %2788 = dma.hbm_to_vmem [thread:$0]  (!%p3298_p5), %s462_s24, 16, %s464_s19, [#allocation11]  }
  0x1b   : > { %s489_s23 = sshll.u32 %s3745_s11, 4  ;;  %s3178_s6 = smov 64   ;;  %s490_s23 = int_to_ptr.hbm [resolvable:$true] %s489_s23 }
  0x1c   : > { %s3179_s8 = smov 4   ;;  %s3746_s3 = sld [smem:[#allocation21_spill]] }
  0x1d   : > { %2794 = dma.hbm_to_vmem [thread:$0]  (!%p3298_p5), %s490_s23, 4096, %s492_s29, [#allocation14], %s3178_s6, %s3178_s6, %s3179_s8  }
  0x1e   : > { %s40_s24 = sadd.s32 1, %s3168_s26  ;;  %s3180_s14 = smov [#allocation2]  }
  0x1f   : > { %p42_p6 = scmp.ge.s32.totalorder %s40_s24, 2  ;;  %s396_s17 = sshll.u32 %s3180_s14, 4  ;;  %s397_s17 = int_to_ptr.vmem [resolvable:$true] %s396_s17 }
  0x20   : > { %s3747_s5 = sld [smem:[#allocation23_spill]]  ;;  %s3181_s22 = smov [#allocation6]  }
  0x21   : > { %s3751_s24 = smov (%p42_p6, %s40_s24), 0  ;;  %s422_s23 = sshll.u32 %s3181_s22, 4  ;;  %s423_s23 = int_to_ptr.vmem [resolvable:$true] %s422_s23 }
  0x22   : > { %s394_s21 = sshll.u32 %s3746_s3, 4  ;;  %s446_s18 = sshll.u32 %s3726_s7, 4  ;;  %s395_s21 = int_to_ptr.hbm [resolvable:$true] %s394_s21  ;;  %s447_s18 = int_to_ptr.hbm [resolvable:$true] %s446_s18 }
  0x23   : > { %2773 = dma.hbm_to_vmem [thread:$0]  (!%p3298_p5), %s395_s21, 1024, %s397_s17, [#allocation3], %s3178_s6, %s3178_s6, %s3179_s8  }
  0x24   : > { %s3182_s14 = smov 128   ;;  %s3183_s19 = smov 8  }
  0x25   : > { %s3184_s4 = smov [#allocation9]   ;;  %s472_s21 = sshll.u32 %s3728_s9, 4  ;;  %s473_s21 = int_to_ptr.hbm [resolvable:$true] %s472_s21 }
  0x26   : > { %s420_s20 = sshll.u32 %s3747_s5, 4  ;;  %s448_s3 = sshll.u32 %s3184_s4, 4  ;;  %s421_s20 = int_to_ptr.hbm [resolvable:$true] %s420_s20  ;;  %s449_s3 = int_to_ptr.vmem [resolvable:$true] %s448_s3 }
  0x27   : > { %2779 = dma.hbm_to_vmem [thread:$0]  (!%p3298_p5), %s421_s20, 256, %s423_s23, [#allocation5], %s3182_s14, %s3182_s14, %s3183_s19  }
  0x28   : > { %2785 = dma.hbm_to_vmem [thread:$0]  (!%p3298_p5), %s447_s18, 1024, %s449_s3, [#allocation8], %s3178_s6, %s3178_s6, %s3179_s8  }
  0x29   : > { %s3185_s17 = smov [#allocation12]   ;;  %s504_s23 = sshll.u32 %s3731_s12, 4  ;;  %s505_s23 = int_to_ptr.hbm [resolvable:$true] %s504_s23 }
  0x2a   : > { %s474_s22 = sshll.u32 %s3185_s17, 4  ;;  %s3186_s30 = smov 256   ;;  %s475_s22 = int_to_ptr.vmem [resolvable:$true] %s474_s22 }
  0x2b   : > { %s3187_s14 = smov 16   ;;  %s3188_s5 = smov [#allocation15]  }
  0x2c   : > { %2791 = dma.hbm_to_vmem [thread:$0]  (!%p3298_p5), %s473_s21, 4096, %s475_s22, [#allocation11], %s3186_s30, %s3186_s30, %s3187_s14  }
  0x2d   : > { %s506_s11 = sshll.u32 %s3188_s5, 4  ;;  %570 = sbr.rel (%p3284_p3) target bundleno = 821 (0x335), region = 72  ;;  %s507_s11 = int_to_ptr.vmem [resolvable:$true] %s506_s11 }
  0x2e   : > { %2797 = dma.hbm_to_vmem [thread:$0]  (!%p3298_p5), %s505_s23, 16, %s507_s11, [#allocation14]  }
  0x32   : > { %3143 = dma.done.wait (%p3280_p2), [#allocation3], 1024  }
  0x33   : > { %3145 = vsyncadd (%p3280_p2), [#allocation3], 4294966272 }
  0x34   : > { %3147 = dma.done.wait (%p3280_p2), [#allocation5], 272  }
  0x35   : > { %3149 = vsyncadd (%p3280_p2), [#allocation5], 4294967024 }
  0x36   : > { %3151 = dma.done.wait (%p3280_p2), [#allocation8], 1040  }
  0x37   : > { %3153 = vsyncadd (%p3280_p2), [#allocation8], 4294966256 }
  0x38   : > { %3155 = dma.done.wait (%p3280_p2), [#allocation11], 4112  }
  0x39   : > { %3157 = vsyncadd (%p3280_p2), [#allocation11], 4294963184 }
  0x3a   : > { %3159 = dma.done.wait (%p3280_p2), [#allocation14], 4112  }
  0x3b   : > { %3161 = vsyncadd (%p3280_p2), [#allocation14], 4294963184  ;;  %v2602_v0 = vld [vmem:[#allocation2 + $0x38] sm:$0xff]  ;;  %v2601_v1 = vld [vmem:[#allocation2 + $0x30] sm:$0xff]  ;;  %p688_p7 = scmp.lt.s32.totalorder %s3164_s25, 1  ;;  %v892_v36 = vlaneseq }
  0x3c   : > { %832 = vmatpush.bf16.msra.mxu0 %v2602_v0  ;;  %v2600_v2 = vld [vmem:[#allocation2 + $0x28] sm:$0xff]  ;;  %v2599_v3 = vld [vmem:[#allocation2 + $0x20] sm:$0xff]  ;;  %v2598_v4 = vld [vmem:[#allocation2 + $0x18] sm:$0xff] }
  0x3d   : > { %s3753_s25 = smov (!%p688_p7, %s3164_s25), 1  ;;  %v2597_v5 = vld [vmem:[#allocation2 + $0x10] sm:$0xff]  ;;  %v2596_v6 = vld [vmem:[#allocation2 + $0x8] sm:$0xff]  ;;  %v2595_v11 = vld [vmem:[#allocation2] sm:$0xff]  ;;  %v3423_v40 = vshrl.u32 %v892_v36, 7 }
  0x3e   : > { %s3374_s3 = sshll.u32 %s3753_s25, 5  ;;  %v2610_v29 = vld [vmem:[#allocation9 + $0x38] sm:$0xff]  ;;  %v2609_v30 = vld [vmem:[#allocation9 + $0x30] sm:$0xff]  ;;  %v2608_v31 = vld [vmem:[#allocation9 + $0x28] sm:$0xff] }
  0x3f   : > { %s695_s15 = scalar_lea.vmem %s3719_s0, %s3374_s3  ;;  %s708_s18 = scalar_lea.vmem %s3720_s1, %s3374_s3  ;;  %1171 = vmatpush.bf16.msra.mxu1 %v2610_v29  ;;  %2718 = vmatpush.bf16.msra.mxu3 %v2610_v29  ;;  %v2607_v32 = vld [vmem:[#allocation9 + $0x20] sm:$0xff]  ;;  %v3420_v33 = vld [vmem:[#allocation4] ss:$0 sm:$0xff]  ;;  %v2606_v34 = vld [vmem:[#allocation9 + $0x18] sm:$0xff]  ;;  %vm894_vm0 = vcmp.eq.s32.totalorder %v3423_v40, 0  ;;  %vm917_vm1 = vcmp.eq.s32.totalorder %v3423_v40, 7 }
  0x40   : > { %833 = vmatpush.bf16.msra.mxu0 %v2601_v1  ;;  %v3384_v7 = vld [vmem:[%s695_s15] sm:$0xff]   ;;  %v3389_v13 = vld [vmem:[%s695_s15 + $0x8] sm:$0xff]   ;;  %v3397_v17 = vld [vmem:[%s695_s15 + $0x10] sm:$0xff]   ;;  %s2593_s25 = sadd.s32 28, %s3374_s3  ;;  %s3694_s23 = scalar_lea.vmem %s3732_s13, %s3374_s3 }
  0x41   : > { %v755_v8 = vld [vmem:[%s708_s18] sm:$0xf]  ;;  %v2677_v9 = vunpack.c.l.bf16 %v3384_v7  ;;  %v2678_v14 = vunpack.c.h.bf16 %v3384_v7  ;;  %v2681_v15 = vunpack.c.l.bf16 %v3389_v13  ;;  %v2682_v18 = vunpack.c.h.bf16 %v3389_v13  ;;  %v3405_v21 = vld [vmem:[%s695_s15 + $0x18] sm:$0xff]   ;;  %s724_s21 = scalar_lea.vmem %s3721_s2, %s2593_s25  ;;  %v2605_v38 = vld [vmem:[#allocation9 + $0x10] sm:$0xff] }
  0x42   : > { %v756_v10 = vunpack.c.l.bf16 %v755_v8  ;;  %v2685_v19 = vunpack.c.l.bf16 %v3397_v17  ;;  %v2686_v22 = vunpack.c.h.bf16 %v3397_v17  ;;  %v2689_v23 = vunpack.c.l.bf16 %v3405_v21  ;;  %v757_v25 = vld [vmem:[%s724_s21] sm:$0xf]  ;;  %v2603_v50 = vld [vmem:[#allocation9] sm:$0xff] }
  0x43   : > { %v760_v16 = vpack.c.bf16 %v2681_v15, %v2678_v14  ;;  %v2690_v26 = vunpack.c.h.bf16 %v3405_v21  ;;  %v758_v27 = vunpack.c.l.bf16 %v757_v25  ;;  %1172 = vmatpush.bf16.msra.mxu1 %v2609_v30  ;;  %2719 = vmatpush.bf16.msra.mxu3 %v2609_v30  ;;  %v2604_v42 = vld [vmem:[#allocation9 + $0x8] sm:$0xff]  ;;  %v2392_v13 = vld [vmem:[#allocation12 + $0x78] sm:$0xf0] }
  0x44   : > { %834 = vmatpush.bf16.msra.mxu0 %v2600_v2  ;;  %v759_v12 = vpack.c.bf16 %v2677_v9, %v756_v10  ;;  %v761_v20 = vpack.c.bf16 %v2685_v19, %v2682_v18  ;;  %v762_v24 = vpack.c.bf16 %v2689_v23, %v2686_v22  ;;  %v940_v43 = vld [vmem:[#allocation6] sm:$0xff]  ;;  %v2623_v40 = vld [vmem:[#allocation12 + $0x64] sm:$0xf] }
  0x45   : > { %v763_v28 = vpack.c.bf16 %v758_v27, %v2690_v26  ;;  %v3426_v45 = vperm.slane %v940_v43, 0  ;;  %v3428_v48 = vperm.slane %v940_v43, 1  ;;  %v3436_v56 = vperm.slane %v940_v43, 2  ;;  %v2648_v21 = vld [vmem:[#allocation13 + $0x28] sm:$0xff] }
  0x46   : > { %v3440_v59 = vperm.slane %v940_v43, 3  ;;  %v3454_v27 = vperm.slane %v940_v43, 5 }
  0x47   : > { %1173 = vmatpush.bf16.msra.mxu1 %v2608_v31  ;;  %2720 = vmatpush.bf16.msra.mxu3 %v2608_v31 }
  0x48   : > { %835 = vmatpush.bf16.msra.mxu0 %v2599_v3 }
  0x4b   : > { %1174 = vmatpush.bf16.msra.mxu1 %v2607_v32  ;;  %2721 = vmatpush.bf16.msra.mxu3 %v2607_v32 }
  0x4c   : > { %836 = vmatpush.bf16.msra.mxu0 %v2598_v4 }
  0x4f   : > { %1175 = vmatpush.bf16.msra.mxu1 %v2606_v34  ;;  %2722 = vmatpush.bf16.msra.mxu3 %v2606_v34 }
  0x50   : > { %837 = vmatpush.bf16.msra.mxu0 %v2597_v5 }
  0x53   : > { %1176 = vmatpush.bf16.msra.mxu1 %v2605_v38  ;;  %2723 = vmatpush.bf16.msra.mxu3 %v2605_v38 }
  0x54   : > { %838 = vmatpush.bf16.msra.mxu0 %v2596_v6  ;;  %v3448_v6 = vperm.slane %v940_v43, 4 }
  0x57   : > { %1177 = vmatpush.bf16.msra.mxu1 %v2604_v42  ;;  %2724 = vmatpush.bf16.msra.mxu3 %v2604_v42 }
  0x58   : > { %839 = vmatpush.bf16.msra.mxu0 %v2595_v11 }
  0x5b   : > { %840 = vmatmul.bf16.vlgmr.msra.gmra.mxu0 %v759_v12  ;;  %1178 = vmatpush.bf16.msra.mxu1 %v2603_v50 }
  0x5c   : > { %2725 = vmatpush.bf16.msra.mxu3 %v2603_v50 }
  0x6b   : > { %845 = vmatmul.bf16.gmra.mxu0 %v760_v16 }
  0x7b   : > { %850 = vmatmul.bf16.gmra.mxu0 %v761_v20 }
  0x8b   : > { %855 = vmatmul.bf16.gmra.mxu0 %v762_v24 }
  0x9b   : > { %860 = vmatmul.bf16.gmra.mxu0 %v763_v28  ;;  %v3456_v28 = vperm.slane %v940_v43, 6 }
  0xd8   : > { %v841_v35 = vpop.f32.mrf.mxu0 }
  0xd9   : > { %v842_v37 = vadd.f32 %v3420_v33, %v841_v35 }
  0xdb   : > { %v866_v39 = vmul.f32 0.01, %v842_v37 }
  0xdd   : > { %v876_v41 = vmax.f32 %v842_v37, %v866_v39 }
  0xdf   : > { %v890_v44 = vmul.f32 0.0, %v876_v41 }
  0xe0   : > { %v843_v46 = vpop.f32.mrf.mxu0 }
  0xe1   : > { %v895_v47 = vrot.slane %v890_v44, 7  ;;  %v844_v49 = vadd.f32 %v3420_v33, %v843_v46  ;;  %v918_v51 = vrot.slane %v890_v44, 1  ;;  %v952_v55 = vmul.f32 %v3428_v48, %v890_v44 }
  0xe3   : > { %v907_v52 = vsel %vm894_vm0, 0.0, %v895_v47  ;;  %v867_v53 = vmul.f32 0.01, %v844_v49  ;;  %v930_v58 = vsel %vm917_vm1, 0.0, %v918_v51  ;;  %v3467_v47 = vperm.slane %v940_v43, 7 }
  0xe4   : > { %v943_v54 = vmul.f32 %v3426_v45, %v907_v52  ;;  %v969_v63 = vmul.f32 %v3436_v56, %v930_v58 }
  0xe5   : > { %v877_v57 = vmax.f32 %v844_v49, %v867_v53 }
  0xe6   : > { %v960_v60 = vadd.f32 %v952_v55, %v943_v54 }
  0xe7   : > { %v896_v61 = vrot.slane %v877_v57, 7  ;;  %v919_v1 = vrot.slane %v877_v57, 1  ;;  %v953_v10 = vmul.f32 %v3428_v48, %v877_v57  ;;  %v1003_v24 = vmul.f32 %v3448_v6, %v877_v57 }
  0xe8   : > { %v846_v62 = vpop.f32.mrf.mxu0  ;;  %v977_v5 = vadd.f32 %v969_v63, %v960_v60 }
  0xe9   : > { %v908_v0 = vsel %vm894_vm0, 0.0, %v896_v61  ;;  %v847_v2 = vadd.f32 %v3420_v33, %v846_v62  ;;  %v931_v11 = vsel %vm917_vm1, 0.0, %v919_v1  ;;  %v3478_v1 = vld [vmem:[#allocation6 + $0x8] ss:$0 sm:$0xff] }
  0xea   : > { %v944_v3 = vmul.f32 %v3426_v45, %v908_v0  ;;  %v986_v4 = vmul.f32 %v3440_v59, %v908_v0  ;;  %v970_v29 = vmul.f32 %v3436_v56, %v931_v11  ;;  %v1020_v41 = vmul.f32 %v3454_v27, %v931_v11 }
  0xeb   : > { %v868_v8 = vmul.f32 0.01, %v847_v2 }
  0xec   : > { %v994_v12 = vadd.f32 %v986_v4, %v977_v5  ;;  %v961_v20 = vadd.f32 %v953_v10, %v944_v3 }
  0xed   : > { %v878_v16 = vmax.f32 %v847_v2, %v868_v8 }
  0xee   : > { %v1011_v31 = vadd.f32 %v1003_v24, %v994_v12  ;;  %v978_v36 = vadd.f32 %v970_v29, %v961_v20 }
  0xef   : > { %v897_v25 = vrot.slane %v878_v16, 7  ;;  %v920_v35 = vrot.slane %v878_v16, 1  ;;  %v954_v44 = vmul.f32 %v3428_v48, %v878_v16  ;;  %v1004_v49 = vmul.f32 %v3448_v6, %v878_v16 }
  0xf0   : > { %v848_v30 = vpop.f32.mrf.mxu0  ;;  %v1028_v52 = vadd.f32 %v1020_v41, %v1011_v31  ;;  %v1054_v0 = vmul.f32 %v3467_v47, %v878_v16 }
  0xf1   : > { %v849_v32 = vadd.f32 %v3420_v33, %v848_v30  ;;  %v909_v34 = vsel %vm894_vm0, 0.0, %v897_v25  ;;  %v932_v51 = vsel %vm917_vm1, 0.0, %v920_v35 }
  0xf2   : > { %v945_v37 = vmul.f32 %v3426_v45, %v909_v34  ;;  %v987_v38 = vmul.f32 %v3440_v59, %v909_v34  ;;  %v1037_v42 = vmul.f32 %v3456_v28, %v909_v34  ;;  %v971_v61 = vmul.f32 %v3436_v56, %v932_v51 }
  0xf3   : > { %v869_v39 = vmul.f32 0.01, %v849_v32  ;;  %v1021_v63 = vmul.f32 %v3454_v27, %v932_v51  ;;  %v1071_v30 = vmul.f32 %v3478_v1, %v932_v51 }
  0xf4   : > { %v995_v46 = vadd.f32 %v987_v38, %v978_v36  ;;  %v962_v53 = vadd.f32 %v954_v44, %v945_v37  ;;  %v1045_v57 = vadd.f32 %v1037_v42, %v1028_v52  ;;  %v3490_v38 = vld [vmem:[#allocation7] ss:$0 sm:$0xff] }
  0xf5   : > { %v879_v50 = vmax.f32 %v849_v32, %v869_v39 }
  0xf6   : > { %v1012_v55 = vadd.f32 %v1004_v49, %v995_v46  ;;  %v979_v3 = vadd.f32 %v971_v61, %v962_v53  ;;  %v1062_v11 = vadd.f32 %v1054_v0, %v1045_v57 }
  0xf7   : > { %v898_v54 = vrot.slane %v879_v50, 7  ;;  %v921_v60 = vrot.slane %v879_v50, 1  ;;  %v955_v12 = vmul.f32 %v3428_v48, %v879_v50  ;;  %v1055_v29 = vmul.f32 %v3467_v47, %v879_v50 }
  0xf8   : > { %v851_v58 = vpop.f32.mrf.mxu0  ;;  %v1029_v8 = vadd.f32 %v1021_v63, %v1012_v55  ;;  %v1005_v31 = vmul.f32 %v3448_v6, %v879_v50  ;;  %v1079_v37 = vadd.f32 %v1071_v30, %v1062_v11 }
  0xf9   : > { %v852_v62 = vadd.f32 %v3420_v33, %v851_v58  ;;  %v910_v43 = vsel %vm894_vm0, 0.0, %v898_v54  ;;  %v933_v20 = vsel %vm917_vm1, 0.0, %v921_v60 }
  0xfa   : > { %v946_v2 = vmul.f32 %v3426_v45, %v910_v43  ;;  %v988_v4 = vmul.f32 %v3440_v59, %v910_v43  ;;  %v1038_v10 = vmul.f32 %v3456_v28, %v910_v43  ;;  %v1072_v36 = vmul.f32 %v3478_v1, %v933_v20 }
  0xfb   : > { %v870_v5 = vmul.f32 0.01, %v852_v62  ;;  %v972_v41 = vmul.f32 %v3436_v56, %v933_v20  ;;  %v1022_v49 = vmul.f32 %v3454_v27, %v933_v20  ;;  %v1091_v60 = vadd.f32 %v3490_v38, %v1079_v37 }
  0xfc   : > { %v996_v24 = vadd.f32 %v988_v4, %v979_v3  ;;  %v1046_v16 = vadd.f32 %v1038_v10, %v1029_v8  ;;  %v963_v32 = vadd.f32 %v955_v12, %v946_v2 }
  0xfd   : > { %v880_v25 = vmax.f32 %v852_v62, %v870_v5 }
  0xfe   : > { %v1063_v35 = vadd.f32 %v1055_v29, %v1046_v16  ;;  %v1013_v44 = vadd.f32 %v1005_v31, %v996_v24  ;;  %v980_v52 = vadd.f32 %v972_v41, %v963_v32 }
  0xff   : > { %v899_v34 = vrot.slane %v880_v25, 7  ;;  %v922_v42 = vrot.slane %v880_v25, 1  ;;  %v956_v57 = vmul.f32 %v3428_v48, %v880_v25  ;;  %v1006_v0 = vmul.f32 %v3448_v6, %v880_v25 }
 0x100   : > { %v853_v39 = vpop.f32.mrf.mxu0  ;;  %v1080_v51 = vadd.f32 %v1072_v36, %v1063_v35  ;;  %v1030_v63 = vadd.f32 %v1022_v49, %v1013_v44  ;;  %v1056_v24 = vmul.f32 %v3467_v47, %v880_v25 }
 0x101   : > { %v854_v46 = vadd.f32 %v3420_v33, %v853_v39  ;;  %v911_v50 = vsel %vm894_vm0, 0.0, %v899_v34  ;;  %v934_v62 = vsel %vm917_vm1, 0.0, %v922_v42 }
 0x102   : > { %v947_v53 = vmul.f32 %v3426_v45, %v911_v50  ;;  %v989_v54 = vmul.f32 %v3440_v59, %v911_v50  ;;  %v1039_v55 = vmul.f32 %v3456_v28, %v911_v50  ;;  %v1092_v61 = vadd.f32 %v3490_v38, %v1080_v51 }
 0x103   : > { %v871_v58 = vmul.f32 0.01, %v854_v46  ;;  %v973_v11 = vmul.f32 %v3436_v56, %v934_v62  ;;  %v1023_v31 = vmul.f32 %v3454_v27, %v934_v62 }
 0x104   : > { %v997_v43 = vadd.f32 %v989_v54, %v980_v52  ;;  %v1099_v3 = vpack.c.bf16 %v1092_v61, %v1091_v60  ;;  %v964_v4 = vadd.f32 %v956_v57, %v947_v53  ;;  %v1047_v5 = vadd.f32 %v1039_v55, %v1030_v63 }
 0x105   : > { %v881_v2 = vmax.f32 %v854_v46, %v871_v58  ;;  %v1073_v52 = vmul.f32 %v3478_v1, %v934_v62 }
 0x106   : > { %1179 = vmatmul.bf16.vlgmr.msra.gmra.mxu1 %v1099_v3  ;;  %v1014_v12 = vadd.f32 %v1006_v0, %v997_v43  ;;  %v981_v30 = vadd.f32 %v973_v11, %v964_v4  ;;  %v1064_v36 = vadd.f32 %v1056_v24, %v1047_v5 }
 0x107   : > { %v900_v8 = vrot.slane %v881_v2, 7  ;;  %v923_v10 = vrot.slane %v881_v2, 1  ;;  %v957_v32 = vmul.f32 %v3428_v48, %v881_v2  ;;  %v1007_v42 = vmul.f32 %v3448_v6, %v881_v2 }
 0x108   : > { %v856_v20 = vpop.f32.mrf.mxu0  ;;  %v1031_v25 = vadd.f32 %v1023_v31, %v1014_v12  ;;  %v1057_v50 = vmul.f32 %v3467_v47, %v881_v2  ;;  %v1081_v60 = vadd.f32 %v1073_v52, %v1064_v36  ;;  %v2639_v52 = vld [vmem:[#allocation12 + $0xe4] sm:$0xf] }
 0x109   : > { %v857_v16 = vadd.f32 %v3420_v33, %v856_v20  ;;  %v912_v29 = vsel %vm894_vm0, 0.0, %v900_v8  ;;  %v935_v39 = vsel %vm917_vm1, 0.0, %v923_v10 }
 0x10a   : > { %v948_v34 = vmul.f32 %v3426_v45, %v912_v29  ;;  %v990_v35 = vmul.f32 %v3440_v59, %v912_v29  ;;  %v1040_v41 = vmul.f32 %v3456_v28, %v912_v29  ;;  %v974_v53 = vmul.f32 %v3436_v56, %v935_v39 }
 0x10b   : > { %v872_v37 = vmul.f32 0.01, %v857_v16  ;;  %v1074_v58 = vmul.f32 %v3478_v1, %v935_v39  ;;  %v1024_v63 = vmul.f32 %v3454_v27, %v935_v39  ;;  %v1093_v12 = vadd.f32 %v3490_v38, %v1081_v60 }
 0x10c   : > { %v965_v44 = vadd.f32 %v957_v32, %v948_v34  ;;  %v998_v46 = vadd.f32 %v990_v35, %v981_v30  ;;  %v1048_v51 = vadd.f32 %v1040_v41, %v1031_v25 }
 0x10d   : > { %v882_v49 = vmax.f32 %v857_v16, %v872_v37 }
 0x10e   : > { %v1015_v54 = vadd.f32 %v1007_v42, %v998_v46  ;;  %v1065_v57 = vadd.f32 %v1057_v50, %v1048_v51  ;;  %v982_v43 = vadd.f32 %v974_v53, %v965_v44  ;;  %v2446_v51 = vld [vmem:[#allocation12 + $0xe0] sm:$0xf]  ;;  %v2641_v50 = vld [vmem:[#allocation12 + $0xec] sm:$0xf0] }
 0x10f   : > { %v901_v55 = vrot.slane %v882_v49, 7  ;;  %v924_v4 = vrot.slane %v882_v49, 1  ;;  %v958_v24 = vmul.f32 %v3428_v48, %v882_v49  ;;  %v1008_v30 = vmul.f32 %v3448_v6, %v882_v49 }
 0x110   : > { %v858_v61 = vpop.f32.mrf.mxu0  ;;  %v1082_v3 = vadd.f32 %v1074_v58, %v1065_v57  ;;  %v1032_v8 = vadd.f32 %v1024_v63, %v1015_v54  ;;  %v1058_v36 = vmul.f32 %v3467_v47, %v882_v49  ;;  %v2448_v57 = vld [vmem:[#allocation12 + $0xf0] sm:$0xf0]  ;;  %v2454_v58 = vld [vmem:[#allocation12 + $0xe8] sm:$0xf] }
 0x111   : > { %v859_v0 = vadd.f32 %v3420_v33, %v858_v61  ;;  %v913_v2 = vsel %vm894_vm0, 0.0, %v901_v55  ;;  %v936_v34 = vsel %vm917_vm1, 0.0, %v924_v4  ;;  %v2447_v55 = vor.u32 %v2641_v50, %v2446_v51  ;;  %v2631_v51 = vld [vmem:[#allocation12 + $0xa4] sm:$0xf]  ;;  %v2416_v50 = vld [vmem:[#allocation12 + $0xb0] sm:$0xf0] }
 0x112   : > { %v949_v62 = vmul.f32 %v3426_v45, %v913_v2  ;;  %v991_v5 = vmul.f32 %v3440_v59, %v913_v2  ;;  %v1041_v10 = vmul.f32 %v3456_v28, %v913_v2  ;;  %v1094_v20 = vadd.f32 %v3490_v38, %v1082_v3  ;;  %v2430_v3 = vld [vmem:[#allocation12 + $0xc0] sm:$0xf]  ;;  %v2637_v2 = vld [vmem:[#allocation12 + $0xcc] sm:$0xf0] }
 0x113   : > { %v873_v11 = vmul.f32 0.01, %v859_v0  ;;  %v975_v42 = vmul.f32 %v3436_v56, %v936_v34  ;;  %v1025_v44 = vmul.f32 %v3454_v27, %v936_v34  ;;  %v1075_v63 = vmul.f32 %v3478_v1, %v936_v34  ;;  %1414 = vmatpush.bf16.msrb.mxu0 %v2447_v55  ;;  %2726 = vmatpush.bf16.msra.mxu2 %v2447_v55  ;;  %v2634_v55 = vld [vmem:[#allocation12 + $0xb4] sm:$0xf0] }
 0x114   : > { %v999_v16 = vadd.f32 %v991_v5, %v982_v43  ;;  %v1049_v29 = vadd.f32 %v1041_v10, %v1032_v8  ;;  %v1100_v32 = vpack.c.bf16 %v1094_v20, %v1093_v12  ;;  %v966_v35 = vadd.f32 %v958_v24, %v949_v62  ;;  %v2635_v10 = vld [vmem:[#allocation12 + $0xc4] sm:$0xf] }
 0x115   : > { %v883_v31 = vmax.f32 %v859_v0, %v873_v11  ;;  %v2642_v0 = vld [vmem:[#allocation12 + $0xf4] sm:$0xf0]  ;;  %v2432_v11 = vld [vmem:[#allocation12 + $0xd0] sm:$0xf0]  ;;  %v2451_v20 = vor.u32 %v2639_v52, %v2448_v57 }
 0x116   : > { %1184 = vmatmul.bf16.gmra.mxu1 %v1100_v32  ;;  %v1016_v25 = vadd.f32 %v1008_v30, %v999_v16  ;;  %v1066_v46 = vadd.f32 %v1058_v36, %v1049_v29  ;;  %v983_v61 = vadd.f32 %v975_v42, %v966_v35  ;;  %v2455_v24 = vor.u32 %v2642_v0, %v2454_v58  ;;  %v2438_v16 = vld [vmem:[#allocation12 + $0xc8] sm:$0xf]  ;;  %v2638_v29 = vld [vmem:[#allocation12 + $0xd4] sm:$0xf0]  ;;  %v2414_v35 = vld [vmem:[#allocation12 + $0xa0] sm:$0xf] }
 0x117   : > { %v902_v37 = vrot.slane %v883_v31, 7  ;;  %v925_v39 = vrot.slane %v883_v31, 1  ;;  %v959_v4 = vmul.f32 %v3428_v48, %v883_v31  ;;  %v2431_v48 = vor.u32 %v2637_v2, %v2430_v3  ;;  %v2633_v36 = vld [vmem:[#allocation12 + $0xac] sm:$0xf0]  ;;  %1443 = vmatpush.bf16.msrb.mxu3 %v2451_v20 }
 0x118   : > { %v861_v41 = vpop.f32.mrf.mxu0  ;;  %v1033_v5 = vadd.f32 %v1025_v44, %v1016_v25  ;;  %v1083_v12 = vadd.f32 %v1075_v63, %v1066_v46  ;;  %1472 = vmatpush.bf16.msrb.mxu1 %v2455_v24  ;;  %v2435_v25 = vor.u32 %v2635_v10, %v2432_v11  ;;  %v2439_v46 = vor.u32 %v2638_v29, %v2438_v16  ;;  %v2629_v63 = vld [vmem:[#allocation12 + $0x8c] sm:$0xf0]  ;;  %v2400_v10 = vld [vmem:[#allocation12 + $0x90] sm:$0xf0]  ;;  %v2406_v24 = vld [vmem:[#allocation12 + $0x88] sm:$0xf] }
 0x119   : > { %v862_v53 = vadd.f32 %v3420_v33, %v861_v41  ;;  %v914_v54 = vsel %vm894_vm0, 0.0, %v902_v37  ;;  %v3544_v49 = vsel %vm917_vm1, 0.0, %v925_v39  ;;  %1415 = vmatpush.bf16.msrb.mxu0 %v2431_v48  ;;  %2727 = vmatpush.bf16.msra.mxu2 %v2431_v48  ;;  %v1009_v52 = vmul.f32 %v3448_v6, %v883_v31  ;;  %v2630_v16 = vld [vmem:[#allocation12 + $0x94] sm:$0xf0] }
 0x11a   : > { %v950_v60 = vmul.f32 %v3426_v45, %v914_v54  ;;  %v992_v43 = vmul.f32 %v3440_v59, %v914_v54  ;;  %v1042_v8 = vmul.f32 %v3456_v28, %v914_v54  ;;  %v1059_v45 = vmul.f32 %v3467_v47, %v883_v31 }
 0x11b   : > { %v874_v62 = vmul.f32 0.01, %v862_v53  ;;  %v976_v37 = vmul.f32 %v3436_v56, %v3544_v49  ;;  %v1076_v44 = vmul.f32 %v3478_v1, %v3544_v49  ;;  %v2415_v54 = vor.u32 %v2633_v36, %v2414_v35  ;;  %v2422_v56 = vld [vmem:[#allocation12 + $0xa8] sm:$0xf]  ;;  %1444 = vmatpush.bf16.msrb.mxu3 %v2435_v25 }
 0x11c   : > { %v967_v32 = vadd.f32 %v959_v4, %v950_v60  ;;  %v1050_v34 = vadd.f32 %v1042_v8, %v1033_v5  ;;  %v1000_v39 = vadd.f32 %v992_v43, %v983_v61  ;;  %v2398_v43 = vld [vmem:[#allocation12 + $0x80] sm:$0xf]  ;;  %v2419_v31 = vor.u32 %v2631_v51, %v2416_v50  ;;  %1473 = vmatpush.bf16.msrb.mxu1 %v2439_v46  ;;  %v2627_v8 = vld [vmem:[#allocation12 + $0x84] sm:$0xf] }
 0x11d   : > { %v3552_v30 = vmax.f32 %v862_v53, %v874_v62  ;;  %v1095_v62 = vadd.f32 %v3490_v38, %v1083_v12  ;;  %1416 = vmatpush.bf16.msrb.mxu0 %v2415_v54  ;;  %v1026_v11 = vmul.f32 %v3454_v27, %v3544_v49  ;;  %2728 = vmatpush.bf16.msra.mxu2 %v2415_v54 }
 0x11e   : > { %v1067_v42 = vadd.f32 %v1059_v45, %v1050_v34  ;;  %v984_v58 = vadd.f32 %v976_v37, %v967_v32  ;;  %v1017_v2 = vadd.f32 %v1009_v52, %v1000_v39  ;;  %v2403_v48 = vor.u32 %v2627_v8, %v2400_v10  ;;  %v2622_v8 = vld [vmem:[#allocation12 + $0x54] sm:$0xf0] }
 0x11f   : > { %v903_v41 = vrot.slane %v3552_v30, 7  ;;  %v926_v0 = vrot.slane %v3552_v30, 1  ;;  %v1010_v12 = vmul.f32 %v3448_v6, %v3552_v30  ;;  %1445 = vmatpush.bf16.msrb.mxu3 %v2419_v31  ;;  %v2407_v36 = vor.u32 %v2630_v16, %v2406_v24  ;;  %v2352_v16 = vld [vmem:[#allocation12 + $0x30] sm:$0xf0] }
 0x120   : > { %v863_v53 = vpop.f32.mrf.mxu0  ;;  %v1084_v60 = vadd.f32 %v1076_v44, %v1067_v42  ;;  %v1034_v34 = vadd.f32 %v1026_v11, %v1017_v2  ;;  %v1060_v6 = vmul.f32 %v3467_v47, %v3552_v30 }
 0x121   : > { %v864_v57 = vadd.f32 %v3420_v33, %v863_v53  ;;  %v915_v61 = vsel %vm894_vm0, 0.0, %v903_v41  ;;  %v2423_v33 = vor.u32 %v2634_v55, %v2422_v56  ;;  %v938_v49 = vsel %vm917_vm1, 0.0, %v926_v0  ;;  %v2384_v0 = vld [vmem:[#allocation12 + $0x70] sm:$0xf0] }
 0x122   : > { %v993_v3 = vmul.f32 %v3440_v59, %v915_v61  ;;  %v1096_v5 = vadd.f32 %v3490_v38, %v1084_v60  ;;  %v1043_v20 = vmul.f32 %v3456_v28, %v915_v61  ;;  %v2399_v59 = vor.u32 %v2629_v63, %v2398_v43  ;;  %v2382_v61 = vld [vmem:[#allocation12 + $0x60] sm:$0xf]  ;;  %v2625_v43 = vld [vmem:[#allocation12 + $0x6c] sm:$0xf0] }
 0x123   : > { %v875_v4 = vmul.f32 0.01, %v864_v57  ;;  %1474 = vmatpush.bf16.msrb.mxu1 %v2423_v33  ;;  %v1027_v42 = vmul.f32 %v3454_v27, %v938_v49  ;;  %1446 = vmatpush.bf16.msrb.mxu3 %v2403_v48  ;;  %v1077_v27 = vmul.f32 %v3478_v1, %v938_v49  ;;  %v2383_v63 = vor.u32 %v2625_v43, %v2382_v61  ;;  %v2374_v33 = vld [vmem:[#allocation12 + $0x48] sm:$0xf]  ;;  %v2334_v48 = vld [vmem:[#allocation12] sm:$0xf] }
 0x124   : > { %v1001_v45 = vadd.f32 %v993_v3, %v984_v58  ;;  %v1101_v32 = vpack.c.bf16 %v1096_v5, %v1095_v62  ;;  %v1051_v39 = vadd.f32 %v1043_v20, %v1034_v34  ;;  %1417 = vmatpush.bf16.msrb.mxu0 %v2399_v59  ;;  %2729 = vmatpush.bf16.msra.mxu2 %v2399_v59  ;;  %v2626_v3 = vld [vmem:[#allocation12 + $0x74] sm:$0xf0]  ;;  %v2619_v62 = vld [vmem:[#allocation12 + $0x44] sm:$0xf]  ;;  %v2617_v20 = vld [vmem:[#allocation12 + $0x2c] sm:$0xf0] }
 0x125   : > { %v885_v29 = vmax.f32 %v864_v57, %v875_v4  ;;  %v2387_v2 = vor.u32 %v2623_v40, %v2384_v0  ;;  %v2621_v4 = vld [vmem:[#allocation12 + $0x4c] sm:$0xf0]  ;;  %v2375_v11 = vor.u32 %v2622_v8, %v2374_v33  ;;  %v2615_v59 = vld [vmem:[#allocation12 + $0x24] sm:$0xf]  ;;  %v2424_v40 = vld [vmem:[#allocation12 + $0xb8] sm:$0xf0] }
 0x126   : > { %1189 = vmatmul.bf16.vlgmr.msra.gmra.mxu3 %v1101_v32  ;;  %v1018_v37 = vadd.f32 %v1010_v12, %v1001_v45  ;;  %v1068_v50 = vadd.f32 %v1060_v6, %v1051_v39  ;;  %v2350_v45 = vld [vmem:[#allocation12 + $0x20] sm:$0xf]  ;;  %v2618_v32 = vld [vmem:[#allocation12 + $0x34] sm:$0xf0]  ;;  %v2355_v12 = vor.u32 %v2615_v59, %v2352_v16  ;;  %v2611_v49 = vld [vmem:[#allocation12 + $0x4] sm:$0xf] }
 0x127   : > { %v891_v35 = vmul.f32 0.0, %v885_v29  ;;  %1475 = vmatpush.bf16.msrb.mxu1 %v2407_v36  ;;  %1447 = vmatpush.bf16.msrb.mxu3 %v2387_v2  ;;  %v2351_v24 = vor.u32 %v2617_v20, %v2350_v45  ;;  %v2358_v29 = vld [vmem:[#allocation12 + $0x28] sm:$0xf]  ;;  %v2612_v45 = vld [vmem:[#allocation12 + $0xc] sm:$0xf] }
 0x128   : > { %v1035_v51 = vadd.f32 %v1027_v42, %v1018_v37  ;;  %v1085_v55 = vadd.f32 %v1077_v27, %v1068_v50  ;;  %1418 = vmatpush.bf16.msrb.mxu0 %v2383_v63  ;;  %2730 = vmatpush.bf16.msra.mxu2 %v2383_v63  ;;  %v2359_v34 = vor.u32 %v2618_v32, %v2358_v29  ;;  %v2336_v37 = vld [vmem:[#allocation12 + $0x10] sm:$0xf0]  ;;  %v2342_v39 = vld [vmem:[#allocation12 + $0x8] sm:$0xf]  ;;  %v2344_v20 = vld [vmem:[#allocation12 + $0x18] sm:$0xf0] }
 0x129   : > { %v904_v25 = vrot.slane %v891_v35, 7  ;;  %v927_v41 = vrot.slane %v891_v35, 1  ;;  %v1061_v53 = vmul.f32 %v3467_v47, %v891_v35  ;;  %v2390_v47 = vld [vmem:[#allocation12 + $0x68] sm:$0xf]  ;;  %v2613_v35 = vld [vmem:[#allocation12 + $0xc] sm:$0xf0]  ;;  %v2347_v16 = vor.u32 %v2612_v45, %v2344_v20 }
 0x12a   : > { %v1097_v58 = vadd.f32 %v3490_v38, %v1085_v55  ;;  %v2391_v31 = vor.u32 %v2626_v3, %v2390_v47  ;;  %v2335_v36 = vor.u32 %v2613_v35, %v2334_v48  ;;  %v2628_v47 = vld [vmem:[#allocation12 + $0x8c] sm:$0xf]  ;;  %v2408_v3 = vld [vmem:[#allocation12 + $0x98] sm:$0xf0] }
 0x12b   : > { %v916_v44 = vsel %vm894_vm0, 0.0, %v904_v25  ;;  %v939_v52 = vsel %vm917_vm1, 0.0, %v927_v41  ;;  %v2614_v25 = vld [vmem:[#allocation12 + $0x14] sm:$0xf0]  ;;  %v2339_v41 = vor.u32 %v2611_v49, %v2336_v37  ;;  %v2411_v2 = vor.u32 %v2628_v47, %v2408_v3  ;;  %v2649_v37 = vld [vmem:[#allocation13 + $0x30] sm:$0xff] }
 0x12c   : > { %v1044_v46 = vmul.f32 %v3456_v28, %v916_v44  ;;  %v1078_v30 = vmul.f32 %v3478_v1, %v939_v52  ;;  %1476 = vmatpush.bf16.msrb.mxu1 %v2391_v31  ;;  %v2366_v1 = vld [vmem:[#allocation12 + $0x40] sm:$0xf]  ;;  %v2343_v42 = vor.u32 %v2614_v25, %v2342_v39  ;;  %v3587_v44 = vld [vmem:[#allocation10] ss:$0 sm:$0xff]  ;;  %v2624_v31 = vld [vmem:[#allocation12 + $0x6c] sm:$0xf] }
 0x12d   : > { %v2367_v5 = vor.u32 %v2621_v4, %v2366_v1  ;;  %v2395_v1 = vor.u32 %v2624_v31, %v2392_v13  ;;  %v2376_v4 = vld [vmem:[#allocation12 + $0x58] sm:$0xf0]  ;;  %v2657_v39 = vld [vmem:[#allocation13 + $0x70] sm:$0xff]  ;;  %v2647_v25 = vld [vmem:[#allocation13 + $0x20] sm:$0xff] }
 0x12e   : > { %v1052_v54 = vadd.f32 %v1044_v46, %v1035_v51  ;;  %v2650_v35 = vld [vmem:[#allocation13 + $0x38] sm:$0xff] }
 0x12f   : > { %1419 = vmatpush.bf16.msrb.mxu0 %v2367_v5  ;;  %2731 = vmatpush.bf16.msra.mxu2 %v2367_v5  ;;  %v2616_v5 = vld [vmem:[#allocation12 + $0x2c] sm:$0xf]  ;;  %v2666_v49 = vld [vmem:[#allocation13 + $0xb8] sm:$0xff] }
 0x130   : > { %v1069_v56 = vadd.f32 %v1061_v53, %v1052_v54  ;;  %1477 = vmatpush.bf16.msrb.mxu1 %v2375_v11 }
 0x132   : > { %v1086_v57 = vadd.f32 %v1078_v30, %v1069_v56  ;;  %v2640_v56 = vld [vmem:[#allocation12 + $0xec] sm:$0xf]  ;;  %v2456_v30 = vld [vmem:[#allocation12 + $0xf8] sm:$0xf0] }
 0x133   : > { %1420 = vmatpush.bf16.msrb.mxu0 %v2351_v24  ;;  %2732 = vmatpush.bf16.msra.mxu2 %v2351_v24  ;;  %v2459_v55 = vor.u32 %v2640_v56, %v2456_v30  ;;  %v2660_v56 = vld [vmem:[#allocation13 + $0x88] sm:$0xff]  ;;  %v2653_v30 = vld [vmem:[#allocation13 + $0x50] sm:$0xff] }
 0x134   : > { %v1098_v60 = vadd.f32 %v3490_v38, %v1086_v57  ;;  %v2368_v38 = vld [vmem:[#allocation12 + $0x50] sm:$0xf0]  ;;  %1478 = vmatpush.bf16.msrb.mxu1 %v2359_v34 }
 0x135   : > { %v2371_v10 = vor.u32 %v2619_v62, %v2368_v38  ;;  %v2360_v38 = vld [vmem:[#allocation12 + $0x38] sm:$0xf0] }
 0x136   : > { %v1102_v28 = vpack.c.bf16 %v1098_v60, %v1097_v58  ;;  %v2440_v58 = vld [vmem:[#allocation12 + $0xd8] sm:$0xf0]  ;;  %v2632_v60 = vld [vmem:[#allocation12 + $0xac] sm:$0xf] }
 0x137   : > { %1448 = vmatpush.bf16.msrb.mxu3 %v2371_v10  ;;  %1421 = vmatpush.bf16.msrb.mxu0 %v2335_v36  ;;  %v2427_v0 = vor.u32 %v2632_v60, %v2424_v40  ;;  %v2363_v10 = vor.u32 %v2616_v5, %v2360_v38 }
 0x138   : > { %1194 = vmatmul.bf16.gmra.mxu3 %v1102_v28  ;;  %2733 = vmatpush.bf16.msra.mxu2 %v2335_v36  ;;  %v2658_v36 = vld [vmem:[#allocation13 + $0x78] sm:$0xff] }
 0x139   : > { %1479 = vmatpush.bf16.msrb.mxu1 %v2343_v42  ;;  %v2656_v42 = vld [vmem:[#allocation13 + $0x68] sm:$0xff] }
 0x13b   : > { %1449 = vmatpush.bf16.msrb.mxu3 %v2355_v12  ;;  %1899 = vmatpush.bf16.msra.mxu0 %v2658_v36  ;;  %v2672_v36 = vld [vmem:[#allocation13 + $0xe8] sm:$0xff] }
 0x13c   : > { %1501 = vmatpush.bf16.msrb.mxu2 %v2459_v55  ;;  %v2659_v55 = vld [vmem:[#allocation13 + $0x80] sm:$0xff] }
 0x13d   : > { %1928 = vmatpush.bf16.msra.mxu1 %v2666_v49 }
 0x13f   : > { %1450 = vmatpush.bf16.msrb.mxu3 %v2339_v41  ;;  %v2663_v41 = vld [vmem:[#allocation13 + $0xa0] sm:$0xff]  ;;  %1900 = vmatpush.bf16.msra.mxu0 %v2657_v39 }
 0x143   : > { %1870 = vmatpush.bf16.msra.mxu3 %v2650_v35  ;;  %1901 = vmatpush.bf16.msra.mxu0 %v2656_v42 }
 0x147   : > { %1871 = vmatpush.bf16.msra.mxu3 %v2649_v37 }
 0x14b   : > { %1872 = vmatpush.bf16.msra.mxu3 %v2648_v21 }
 0x14f   : > { %1873 = vmatpush.bf16.msra.mxu3 %v2647_v25 }
 0x183   : > { %v1180_v6 = vpop.f32.mrf.mxu1 }
 0x184   : > { %v1181_v46 = vadd.f32 %v3587_v44, %v1180_v6  ;;  %v2646_v6 = vld [vmem:[#allocation13 + $0x18] sm:$0xff] }
 0x185   : > { %1874 = vmatpush.bf16.msra.mxu3 %v2646_v6  ;;  %v2671_v6 = vld [vmem:[#allocation13 + $0xe0] sm:$0xff] }
 0x186   : > { %v3593_v52 = vadd.f32 %v2677_v9, %v1181_v46  ;;  %v2655_v46 = vld [vmem:[#allocation13 + $0x60] sm:$0xff] }
 0x187   : > { %1902 = vmatpush.bf16.msra.mxu0 %v2655_v46 }
 0x18b   : > { %v1182_v51 = vpop.f32.mrf.mxu1 }
 0x18c   : > { %v1183_v50 = vadd.f32 %v3587_v44, %v1182_v51  ;;  %v2645_v51 = vld [vmem:[#allocation13 + $0x10] sm:$0xff] }
 0x18d   : > { %1875 = vmatpush.bf16.msra.mxu3 %v2645_v51 }
 0x18e   : > { %v3597_v53 = vadd.f32 %v2678_v14, %v1183_v50  ;;  %v2636_v14 = vld [vmem:[#allocation12 + $0xcc] sm:$0xf]  ;;  %v2661_v50 = vld [vmem:[#allocation13 + $0x90] sm:$0xff] }
 0x18f   : > { %v2443_v43 = vor.u32 %v2636_v14, %v2440_v58  ;;  %v3646_v14 = vld [vmem:[%s3729_s10] sm:$0xf] }
 0x190   : > { %v3601_v54 = vpack.c.bf16 %v3597_v53, %v3593_v52  ;;  %v3649_v60 = vperm.slane %v3646_v14, 0  ;;  %v3652_v40 = vperm.slane %v3646_v14, 2 }
 0x191   : > { %1502 = vmatpush.bf16.msrb.mxu2 %v2443_v43 }
 0x192   : > { %1422 = vmatmul.bf16.vlgmr.msrb.gmra.mxu0 %v3601_v54  ;;  %1451 = vmatmul.bf16.vlgmr.msrb.gmra.mxu3 %v3601_v54 }
 0x193   : > { %1480 = vmatmul.bf16.vlgmr.msrb.gmra.mxu1 %v3601_v54  ;;  %v1185_v27 = vpop.f32.mrf.mxu1 }
 0x194   : > { %v1186_v9 = vadd.f32 %v3587_v44, %v1185_v27  ;;  %v2644_v27 = vld [vmem:[#allocation13 + $0x8] sm:$0xff] }
 0x195   : > { %1503 = vmatpush.bf16.msrb.mxu2 %v2427_v0  ;;  %1876 = vmatpush.bf16.msra.mxu3 %v2644_v27 }
 0x196   : > { %v3610_v28 = vadd.f32 %v2681_v15, %v1186_v9  ;;  %v2643_v9 = vld [vmem:[#allocation13] sm:$0xff] }
 0x199   : > { %1504 = vmatpush.bf16.msrb.mxu2 %v2411_v2  ;;  %1877 = vmatpush.bf16.msra.mxu3 %v2643_v9  ;;  %v3657_v2 = vperm.slane %v3646_v14, 1 }
 0x19b   : > { %v1187_v57 = vpop.f32.mrf.mxu1 }
 0x19c   : > { %v1188_v7 = vadd.f32 %v3587_v44, %v1187_v57  ;;  %v2652_v57 = vld [vmem:[#allocation13 + $0x48] sm:$0xff] }
 0x19d   : > { %1505 = vmatpush.bf16.msrb.mxu2 %v2395_v1 }
 0x19e   : > { %v3614_v61 = vadd.f32 %v2682_v18, %v1188_v7  ;;  %v2620_v18 = vld [vmem:[#allocation12 + $0x4c] sm:$0xf]  ;;  %v2651_v7 = vld [vmem:[#allocation13 + $0x40] sm:$0xff] }
 0x19f   : > { %v2379_v62 = vor.u32 %v2620_v18, %v2376_v4 }
 0x1a0   : > { %v1209_v63 = vpack.c.bf16 %v3614_v61, %v3610_v28 }
 0x1a1   : > { %1506 = vmatpush.bf16.msrb.mxu2 %v2379_v62 }
 0x1a2   : > { %1427 = vmatmul.bf16.gmra.mxu0 %v1209_v63  ;;  %1456 = vmatmul.bf16.gmra.mxu3 %v1209_v63 }
 0x1a3   : > { %1485 = vmatmul.bf16.gmra.mxu1 %v1209_v63 }
 0x1a5   : > { %1507 = vmatpush.bf16.msrb.mxu2 %v2363_v10 }
 0x1a9   : > { %v1190_v15 = vpop.f32.mrf.mxu3  ;;  %1508 = vmatpush.bf16.msrb.mxu2 %v2347_v16 }
 0x1aa   : > { %v1191_v33 = vadd.f32 %v3587_v44, %v1190_v15 }
 0x1ac   : > { %v3622_v59 = vadd.f32 %v2685_v19, %v1191_v33  ;;  %v2673_v33 = vld [vmem:[#allocation13 + $0xf0] sm:$0xff] }
 0x1b1   : > { %v1192_v8 = vpop.f32.mrf.mxu3 }
 0x1b2   : > { %v1193_v11 = vadd.f32 %v3587_v44, %v1192_v8 }
 0x1b4   : > { %v3626_v24 = vadd.f32 %v2686_v22, %v1193_v11 }
 0x1b6   : > { %v1210_v29 = vpack.c.bf16 %v3626_v24, %v3622_v59 }
 0x1b8   : > { %1432 = vmatmul.bf16.vlgmr.msra.gmra.mxu2 %v1210_v29  ;;  %1461 = vmatmul.bf16.gmra.mxu3 %v1210_v29 }
 0x1b9   : > { %1490 = vmatmul.bf16.gmra.mxu1 %v1210_v29 }
 0x1bb   : > { %v1195_v32 = vpop.f32.mrf.mxu3 }
 0x1bc   : > { %v1196_v12 = vadd.f32 %v3587_v44, %v1195_v32 }
 0x1be   : > { %v3634_v17 = vadd.f32 %v2689_v23, %v1196_v12  ;;  %v2665_v23 = vld [vmem:[#allocation13 + $0xb0] sm:$0xff] }
 0x1bf   : > { %1929 = vmatpush.bf16.msra.mxu1 %v2665_v23 }
 0x1c3   : > { %v1197_v34 = vpop.f32.mrf.mxu3 }
 0x1c4   : > { %v1198_v19 = vadd.f32 %v3587_v44, %v1197_v34  ;;  %v2662_v44 = vld [vmem:[#allocation13 + $0x98] sm:$0xff] }
 0x1c6   : > { %v3638_v22 = vadd.f32 %v2690_v26, %v1198_v19  ;;  %v2664_v26 = vld [vmem:[#allocation13 + $0xa8] sm:$0xff] }
 0x1c7   : > { %1930 = vmatpush.bf16.msra.mxu1 %v2664_v26 }
 0x1c8   : > { %v1211_v48 = vpack.c.bf16 %v3638_v22, %v3634_v17 }
 0x1ca   : > { %1437 = vmatmul.bf16.gmra.mxu2 %v1211_v48  ;;  %1466 = vmatmul.bf16.gmra.mxu3 %v1211_v48 }
 0x1cb   : > { %1495 = vmatmul.bf16.gmra.mxu1 %v1211_v48 }
 0x1cc   : > { %1931 = vmatpush.bf16.msra.mxu1 %v2663_v41 }
 0x1d0   : > { %1932 = vmatpush.bf16.msra.mxu1 %v2662_v44 }
 0x1d4   : > { %1933 = vmatpush.bf16.msra.mxu1 %v2661_v50 }
 0x1d8   : > { %1934 = vmatpush.bf16.msra.mxu1 %v2660_v56 }
 0x1da   : > { %1509 = vmatmul.bf16.vlgmr.msrb.gmra.mxu2 %v3601_v54  ;;  %v2654_v54 = vld [vmem:[#allocation13 + $0x58] sm:$0xff] }
 0x1db   : > { %1903 = vmatpush.bf16.msra.mxu0 %v2654_v54 }
 0x1dc   : > { %1935 = vmatpush.bf16.msra.mxu1 %v2659_v55 }
 0x1df   : > { %1904 = vmatpush.bf16.msra.mxu0 %v2653_v30 }
 0x1e3   : > { %1905 = vmatpush.bf16.msra.mxu0 %v2652_v57 }
 0x1e7   : > { %1906 = vmatpush.bf16.msra.mxu0 %v2651_v7 }
 0x1ea   : > { %1514 = vmatmul.bf16.gmra.mxu2 %v1209_v63  ;;  %v2674_v63 = vld [vmem:[#allocation13 + $0xf8] sm:$0xff] }
 0x1eb   : > { %1957 = vmatpush.bf16.msra.mxu2 %v2674_v63 }
 0x1ef   : > { %1958 = vmatpush.bf16.msra.mxu2 %v2673_v33 }
 0x1f3   : > { %1959 = vmatpush.bf16.msra.mxu2 %v2672_v36 }
 0x1f7   : > { %1960 = vmatpush.bf16.msra.mxu2 %v2671_v6 }
 0x1fa   : > { %1519 = vmatmul.bf16.gmra.mxu2 %v1210_v29 }
 0x20a   : > { %1524 = vmatmul.bf16.gmra.mxu2 %v1211_v48 }
 0x20f   : > { %v1423_v58 = vpop.f32.mrf.mxu0 }
 0x210   : > { %v1481_v43 = vpop.f32.mrf.mxu1  ;;  %v1424_v0 = vadd.f32 %v1423_v58, %v3649_v60 }
 0x211   : > { %v1482_v47 = vadd.f32 %v1481_v43, %v3652_v40 }
 0x212   : > { %v1530_v31 = vmul.f32 0.1, %v1424_v0 }
 0x213   : > { %v1532_v1 = vmul.f32 0.1, %v1482_v47 }
 0x214   : > { %v1562_v8 = vmax.f32 %v1424_v0, %v1530_v31  ;;  %v2670_v0 = vld [vmem:[#allocation13 + $0xd8] sm:$0xff] }
 0x215   : > { %v1452_v3 = vpop.f32.mrf.mxu3  ;;  %v1564_v11 = vmax.f32 %v1482_v47, %v1532_v1  ;;  %1961 = vmatpush.bf16.msra.mxu2 %v2670_v0 }
 0x216   : > { %v1453_v62 = vadd.f32 %v1452_v3, %v3657_v2 }
 0x217   : > { %v1425_v15 = vpop.f32.mrf.mxu0 }
 0x218   : > { %v1426_v13 = vadd.f32 %v1425_v15, %v3649_v60  ;;  %v1483_v18 = vpop.f32.mrf.mxu1  ;;  %v1531_v16 = vmul.f32 0.1, %v1453_v62 }
 0x219   : > { %v1484_v4 = vadd.f32 %v1483_v18, %v3652_v40 }
 0x21a   : > { %v1534_v5 = vmul.f32 0.1, %v1426_v13  ;;  %v1563_v35 = vmax.f32 %v1453_v62, %v1531_v16 }
 0x21b   : > { %v1536_v38 = vmul.f32 0.1, %v1484_v4 }
 0x21c   : > { %v1566_v10 = vmax.f32 %v1426_v13, %v1534_v5  ;;  %v2669_v13 = vld [vmem:[#allocation13 + $0xd0] sm:$0xff] }
 0x21d   : > { %v1568_v45 = vmax.f32 %v1484_v4, %v1536_v38  ;;  %v1454_v20 = vpop.f32.mrf.mxu3  ;;  %1962 = vmatpush.bf16.msra.mxu2 %v2669_v13 }
 0x21e   : > { %v1594_v29 = vpack.c.bf16 %v1566_v10, %v1562_v8  ;;  %v1455_v32 = vadd.f32 %v1454_v20, %v3657_v2 }
 0x21f   : > { %v1596_v12 = vpack.c.bf16 %v1568_v45, %v1564_v11  ;;  %v1428_v34 = vpop.f32.mrf.mxu0  ;;  %v2668_v11 = vld [vmem:[#allocation13 + $0xc8] sm:$0xff] }
 0x220   : > { %v1535_v19 = vmul.f32 0.1, %v1455_v32  ;;  %v1486_v48 = vpop.f32.mrf.mxu1  ;;  %1878 = vmatmul.bf16.vlgmr.msra.gmra.mxu3 %v1594_v29  ;;  %v1429_v23 = vadd.f32 %v1428_v34, %v3649_v60 }
 0x221   : > { %1936 = vmatmul.bf16.vlgmr.msra.gmra.mxu1 %v1596_v12  ;;  %v1487_v21 = vadd.f32 %v1486_v48, %v3652_v40  ;;  %1963 = vmatpush.bf16.msra.mxu2 %v2668_v11 }
 0x222   : > { %v1567_v49 = vmax.f32 %v1455_v32, %v1535_v19  ;;  %v1538_v25 = vmul.f32 0.1, %v1429_v23 }
 0x223   : > { %v1540_v44 = vmul.f32 0.1, %v1487_v21 }
 0x224   : > { %v1595_v37 = vpack.c.bf16 %v1567_v49, %v1563_v35  ;;  %v1570_v27 = vmax.f32 %v1429_v23, %v1538_v25 }
 0x225   : > { %v1457_v26 = vpop.f32.mrf.mxu3  ;;  %v1572_v30 = vmax.f32 %v1487_v21, %v1540_v44 }
 0x226   : > { %1907 = vmatmul.bf16.vlgmr.msra.gmra.mxu0 %v1595_v37  ;;  %v1458_v51 = vadd.f32 %v1457_v26, %v3657_v2 }
 0x227   : > { %v1430_v39 = vpop.f32.mrf.mxu0 }
 0x228   : > { %v1431_v41 = vadd.f32 %v1430_v39, %v3649_v60  ;;  %v1488_v42 = vpop.f32.mrf.mxu1  ;;  %v1539_v57 = vmul.f32 0.1, %v1458_v51 }
 0x229   : > { %v1489_v46 = vadd.f32 %v1488_v42, %v3652_v40 }
 0x22a   : > { %v1542_v50 = vmul.f32 0.1, %v1431_v41  ;;  %v1571_v47 = vmax.f32 %v1458_v51, %v1539_v57 }
 0x22b   : > { %v1544_v54 = vmul.f32 0.1, %v1489_v46 }
 0x22c   : > { %v1574_v56 = vmax.f32 %v1431_v41, %v1542_v50  ;;  %v2667_v41 = vld [vmem:[#allocation13 + $0xc0] sm:$0xff] }
 0x22d   : > { %v1576_v9 = vmax.f32 %v1489_v46, %v1544_v54  ;;  %v1459_v55 = vpop.f32.mrf.mxu3  ;;  %1964 = vmatpush.bf16.msra.mxu2 %v2667_v41 }
 0x22e   : > { %v1460_v7 = vadd.f32 %v1459_v55, %v3657_v2  ;;  %v1598_v58 = vpack.c.bf16 %v1574_v56, %v1570_v27 }
 0x22f   : > { %v1600_v43 = vpack.c.bf16 %v1576_v9, %v1572_v30 }
 0x230   : > { %v1543_v63 = vmul.f32 0.1, %v1460_v7  ;;  %1883 = vmatmul.bf16.gmra.mxu3 %v1598_v58 }
 0x231   : > { %1941 = vmatmul.bf16.gmra.mxu1 %v1600_v43 }
 0x232   : > { %v1575_v3 = vmax.f32 %v1460_v7, %v1543_v63 }
 0x234   : > { %v1599_v15 = vpack.c.bf16 %v1575_v3, %v1571_v47 }
 0x236   : > { %v1491_v31 = vpop.f32.mrf.mxu1  ;;  %1912 = vmatmul.bf16.gmra.mxu0 %v1599_v15 }
 0x237   : > { %v1492_v18 = vadd.f32 %v1491_v31, %v3652_v40 }
 0x239   : > { %v1548_v5 = vmul.f32 0.1, %v1492_v18 }
 0x23b   : > { %v1433_v1 = vpop.f32.mrf.mxu2  ;;  %v1462_v4 = vpop.f32.mrf.mxu3  ;;  %v1580_v45 = vmax.f32 %v1492_v18, %v1548_v5 }
 0x23c   : > { %v1434_v33 = vadd.f32 %v1433_v1, %v3649_v60  ;;  %v1463_v8 = vadd.f32 %v1462_v4, %v3657_v2 }
 0x23e   : > { %v1493_v62 = vpop.f32.mrf.mxu1  ;;  %v1546_v32 = vmul.f32 0.1, %v1434_v33  ;;  %v1547_v12 = vmul.f32 0.1, %v1463_v8 }
 0x23f   : > { %v1494_v38 = vadd.f32 %v1493_v62, %v3652_v40  ;;  %v1249_v62 = vperm.slane %v3646_v14, 3 }
 0x240   : > { %v1578_v37 = vmax.f32 %v1434_v33, %v1546_v32  ;;  %v1579_v23 = vmax.f32 %v1463_v8, %v1547_v12 }
 0x241   : > { %v1552_v10 = vmul.f32 0.1, %v1494_v38 }
 0x243   : > { %v1584_v20 = vmax.f32 %v1494_v38, %v1552_v10  ;;  %v1435_v16 = vpop.f32.mrf.mxu2  ;;  %v1464_v29 = vpop.f32.mrf.mxu3 }
 0x244   : > { %v1436_v34 = vadd.f32 %v1435_v16, %v3649_v60  ;;  %v1465_v19 = vadd.f32 %v1464_v29, %v3657_v2 }
 0x245   : > { %v1604_v48 = vpack.c.bf16 %v1584_v20, %v1580_v45 }
 0x246   : > { %v1550_v35 = vmul.f32 0.1, %v1436_v34  ;;  %v1551_v49 = vmul.f32 0.1, %v1465_v19 }
 0x247   : > { %1946 = vmatmul.bf16.gmra.mxu1 %v1604_v48 }
 0x248   : > { %v1496_v36 = vpop.f32.mrf.mxu1  ;;  %v1582_v21 = vmax.f32 %v1436_v34, %v1550_v35  ;;  %v1583_v26 = vmax.f32 %v1465_v19, %v1551_v49 }
 0x249   : > { %v1497_v42 = vadd.f32 %v1496_v36, %v3652_v40 }
 0x24a   : > { %v1602_v39 = vpack.c.bf16 %v1582_v21, %v1578_v37  ;;  %v1603_v25 = vpack.c.bf16 %v1583_v26, %v1579_v23 }
 0x24b   : > { %v1556_v51 = vmul.f32 0.1, %v1497_v42 }
 0x24c   : > { %1888 = vmatmul.bf16.gmra.mxu3 %v1602_v39  ;;  %1917 = vmatmul.bf16.gmra.mxu0 %v1603_v25 }
 0x24d   : > { %v1438_v6 = vpop.f32.mrf.mxu2  ;;  %v1467_v44 = vpop.f32.mrf.mxu3  ;;  %v1588_v30 = vmax.f32 %v1497_v42, %v1556_v51 }
 0x24e   : > { %v1439_v54 = vadd.f32 %v1438_v6, %v3649_v60  ;;  %v1468_v27 = vadd.f32 %v1467_v44, %v3657_v2 }
 0x250   : > { %v1498_v46 = vpop.f32.mrf.mxu1  ;;  %v1554_v7 = vmul.f32 0.1, %v1439_v54  ;;  %v1555_v58 = vmul.f32 0.1, %v1468_v27 }
 0x251   : > { %v1499_v50 = vadd.f32 %v1498_v46, %v3652_v40 }
 0x252   : > { %v1586_v40 = vmax.f32 %v1439_v54, %v1554_v7  ;;  %v1587_v15 = vmax.f32 %v1468_v27, %v1555_v58 }
 0x253   : > { %v1560_v56 = vmul.f32 0.1, %v1499_v50 }
 0x255   : > { %v1592_v9 = vmax.f32 %v1499_v50, %v1560_v56  ;;  %v1440_v55 = vpop.f32.mrf.mxu2  ;;  %v1469_v57 = vpop.f32.mrf.mxu3 }
 0x256   : > { %v1441_v43 = vadd.f32 %v1440_v55, %v3649_v60  ;;  %v1470_v63 = vadd.f32 %v1469_v57, %v3657_v2  ;;  %v3682_v55 = vld [vmem:[#allocation15] ss:$0 sm:$0xff] }
 0x257   : > { %v1608_v0 = vpack.c.bf16 %v1592_v9, %v1588_v30 }
 0x258   : > { %v1558_v47 = vmul.f32 0.1, %v1441_v43  ;;  %v1559_v3 = vmul.f32 0.1, %v1470_v63 }
 0x259   : > { %1951 = vmatmul.bf16.gmra.mxu1 %v1608_v0 }
 0x25a   : > { %v1590_v31 = vmax.f32 %v1441_v43, %v1558_v47  ;;  %v1591_v13 = vmax.f32 %v1470_v63, %v1559_v3 }
 0x25c   : > { %v1606_v18 = vpack.c.bf16 %v1590_v31, %v1586_v40  ;;  %v1607_v1 = vpack.c.bf16 %v1591_v13, %v1587_v15 }
 0x25d   : > { %v1510_v4 = vpop.f32.mrf.mxu2 }
 0x25e   : > { %1893 = vmatmul.bf16.gmra.mxu3 %v1606_v18  ;;  %1922 = vmatmul.bf16.gmra.mxu0 %v1607_v1  ;;  %v1511_v5 = vadd.f32 %v1510_v4, %v1249_v62 }
 0x260   : > { %v1533_v60 = vmul.f32 0.1, %v1511_v5 }
 0x262   : > { %v1565_v8 = vmax.f32 %v1511_v5, %v1533_v60 }
 0x265   : > { %v1512_v38 = vpop.f32.mrf.mxu2 }
 0x266   : > { %v1513_v33 = vadd.f32 %v1512_v38, %v1249_v62 }
 0x268   : > { %v1537_v2 = vmul.f32 0.1, %v1513_v33 }
 0x26a   : > { %v1569_v10 = vmax.f32 %v1513_v33, %v1537_v2 }
 0x26c   : > { %v1597_v11 = vpack.c.bf16 %v1569_v10, %v1565_v8 }
 0x26d   : > { %v1515_v45 = vpop.f32.mrf.mxu2 }
 0x26e   : > { %1965 = vmatmul.bf16.vlgmr.msra.gmra.mxu2 %v1597_v11  ;;  %v1516_v20 = vadd.f32 %v1515_v45, %v1249_v62 }
 0x270   : > { %v1541_v29 = vmul.f32 0.1, %v1516_v20 }
 0x272   : > { %v1573_v34 = vmax.f32 %v1516_v20, %v1541_v29 }
 0x275   : > { %v1517_v16 = vpop.f32.mrf.mxu2 }
 0x276   : > { %v1518_v32 = vadd.f32 %v1517_v16, %v1249_v62 }
 0x278   : > { %v1545_v12 = vmul.f32 0.1, %v1518_v32 }
 0x27a   : > { %v1577_v19 = vmax.f32 %v1518_v32, %v1545_v12 }
 0x27c   : > { %v1601_v14 = vpack.c.bf16 %v1577_v19, %v1573_v34 }
 0x27d   : > { %v1520_v48 = vpop.f32.mrf.mxu2 }
 0x27e   : > { %1970 = vmatmul.bf16.gmra.mxu2 %v1601_v14  ;;  %v1521_v35 = vadd.f32 %v1520_v48, %v1249_v62 }
 0x280   : > { %v1549_v36 = vmul.f32 0.1, %v1521_v35 }
 0x282   : > { %v1581_v21 = vmax.f32 %v1521_v35, %v1549_v36 }
 0x285   : > { %v1522_v49 = vpop.f32.mrf.mxu2 }
 0x286   : > { %v1523_v37 = vadd.f32 %v1522_v49, %v1249_v62 }
 0x288   : > { %v1553_v23 = vmul.f32 0.1, %v1523_v37 }
 0x28a   : > { %v1585_v26 = vmax.f32 %v1523_v37, %v1553_v23 }
 0x28c   : > { %v1605_v39 = vpack.c.bf16 %v1585_v26, %v1581_v21 }
 0x28d   : > { %v1525_v25 = vpop.f32.mrf.mxu2 }
 0x28e   : > { %1975 = vmatmul.bf16.gmra.mxu2 %v1605_v39  ;;  %v1526_v41 = vadd.f32 %v1525_v25, %v1249_v62 }
 0x290   : > { %v1557_v6 = vmul.f32 0.1, %v1526_v41 }
 0x292   : > { %v1589_v51 = vmax.f32 %v1526_v41, %v1557_v6 }
 0x295   : > { %v1527_v42 = vpop.f32.mrf.mxu2 }
 0x296   : > { %v1528_v44 = vadd.f32 %v1527_v42, %v1249_v62 }
 0x298   : > { %v1561_v46 = vmul.f32 0.1, %v1528_v44 }
 0x29a   : > { %v1593_v50 = vmax.f32 %v1528_v44, %v1561_v46 }
 0x29c   : > { %v1609_v54 = vpack.c.bf16 %v1593_v50, %v1589_v51 }
 0x29e   : > { %1980 = vmatmul.bf16.gmra.mxu2 %v1609_v54  ;;  %v1937_v30 = vpop.f32.mrf.mxu1 }
 0x2a3   : > { %v1879_v27 = vpop.f32.mrf.mxu3  ;;  %v1908_v56 = vpop.f32.mrf.mxu0 }
 0x2a4   : > { %v1880_v57 = vadd.f32 %v3682_v55, %v1879_v27 }
 0x2a6   : > { %v1909_v58 = vadd.f32 %v1908_v56, %v1880_v57  ;;  %v1939_v43 = vpop.f32.mrf.mxu1 }
 0x2a8   : > { %v1938_v3 = vadd.f32 %v1937_v30, %v1909_v58 }
 0x2ab   : > { %v1881_v9 = vpop.f32.mrf.mxu3  ;;  %v1910_v7 = vpop.f32.mrf.mxu0 }
 0x2ac   : > { %v1882_v0 = vadd.f32 %v3682_v55, %v1881_v9 }
 0x2ae   : > { %v1911_v40 = vadd.f32 %v1910_v7, %v1882_v0  ;;  %v1942_v13 = vpop.f32.mrf.mxu1 }
 0x2b0   : > { %v1940_v1 = vadd.f32 %v1939_v43, %v1911_v40 }
 0x2b3   : > { %v1884_v63 = vpop.f32.mrf.mxu3  ;;  %v1913_v31 = vpop.f32.mrf.mxu0 }
 0x2b4   : > { %v1885_v5 = vadd.f32 %v3682_v55, %v1884_v63 }
 0x2b6   : > { %v1914_v2 = vadd.f32 %v1913_v31, %v1885_v5  ;;  %v1944_v34 = vpop.f32.mrf.mxu1 }
 0x2b8   : > { %v1943_v12 = vadd.f32 %v1942_v13, %v1914_v2 }
 0x2bb   : > { %v1886_v4 = vpop.f32.mrf.mxu3  ;;  %v1915_v10 = vpop.f32.mrf.mxu0 }
 0x2bc   : > { %v1887_v11 = vadd.f32 %v3682_v55, %v1886_v4 }
 0x2be   : > { %v1916_v19 = vadd.f32 %v1915_v10, %v1887_v11 }
 0x2c0   : > { %v1945_v49 = vadd.f32 %v1944_v34, %v1916_v19 }
 0x2c4   : > { %v1947_v37 = vpop.f32.mrf.mxu1 }
 0x2c9   : > { %v1918_v48 = vpop.f32.mrf.mxu0 }
 0x2cc   : > { %v1949_v30 = vpop.f32.mrf.mxu1 }
 0x2cf   : > { %v1889_v16 = vpop.f32.mrf.mxu3 }
 0x2d1   : > { %v1920_v44 = vpop.f32.mrf.mxu0 }
 0x2d7   : > { %v1891_v23 = vpop.f32.mrf.mxu3 }
 0x2d8   : > { %v1892_v41 = vadd.f32 %v3682_v55, %v1891_v23 }
 0x2da   : > { %v1921_v27 = vadd.f32 %v1920_v44, %v1892_v41 }
 0x2db   : > { %v1923_v7 = vpop.f32.mrf.mxu0 }
 0x2dc   : > { %v1950_v57 = vadd.f32 %v1949_v30, %v1921_v27 }
 0x2e1   : > { %v1894_v54 = vpop.f32.mrf.mxu3 }
 0x2e2   : > { %v1895_v43 = vadd.f32 %v3682_v55, %v1894_v54 }
 0x2f1   : > { %v1966_v47 = vpop.f32.mrf.mxu2 }
 0x2f2   : > { %v1967_v15 = vadd.f32 %v1966_v47, %v1938_v3  ;;  %v1896_v47 = vpop.f32.mrf.mxu3  ;;  %v1924_v3 = vadd.f32 %v1923_v7, %v1895_v43 }
 0x2f4   : > { %v1986_v18 = vmul.f32 0.1, %v1967_v15 }
 0x2f6   : > { %v1994_v60 = vmax.f32 %v1967_v15, %v1986_v18  ;;  %v1897_v15 = vadd.f32 %v3682_v55, %v1896_v47 }
 0x2f8   : > { %v2002_v45 = vadd.f32 %v1994_v60, %v3593_v52 }
 0x2f9   : > { %v1968_v62 = vpop.f32.mrf.mxu2 }
 0x2fa   : > { %v1969_v38 = vadd.f32 %v1968_v62, %v1940_v1  ;;  %v1925_v62 = vpop.f32.mrf.mxu0 }
 0x2fb   : > { %v1926_v5 = vadd.f32 %v1925_v62, %v1897_v15 }
 0x2fc   : > { %v1987_v33 = vmul.f32 0.1, %v1969_v38 }
 0x2fe   : > { %v1995_v8 = vmax.f32 %v1969_v38, %v1987_v33 }
 0x300   : > { %v2003_v20 = vadd.f32 %v1995_v8, %v3597_v53  ;;  %v1890_v53 = vadd.f32 %v3682_v55, %v1889_v16 }
 0x301   : > { %v1971_v29 = vpop.f32.mrf.mxu2 }
 0x302   : > { %v2694_v32 = vpack.c.bf16 %v2003_v20, %v2002_v45  ;;  %v1972_v14 = vadd.f32 %v1971_v29, %v1943_v12  ;;  %v1919_v39 = vadd.f32 %v1918_v48, %v1890_v53 }
 0x304   : > { %2695 = vst [vmem:[%s3694_s23] sm:$0xff] %v2694_v32   ;;  %v1988_v35 = vmul.f32 0.1, %v1972_v14  ;;  %v1948_v50 = vadd.f32 %v1947_v37, %v1919_v39 }
 0x306   : > { %v1996_v21 = vmax.f32 %v1972_v14, %v1988_v35 }
 0x308   : > { %v2004_v42 = vadd.f32 %v1996_v21, %v3610_v28 }
 0x309   : > { %v1973_v52 = vpop.f32.mrf.mxu2 }
 0x30a   : > { %v1974_v36 = vadd.f32 %v1973_v52, %v1945_v49 }
 0x30c   : > { %v1989_v26 = vmul.f32 0.1, %v1974_v36 }
 0x30e   : > { %v1997_v25 = vmax.f32 %v1974_v36, %v1989_v26 }
 0x310   : > { %v2005_v6 = vadd.f32 %v1997_v25, %v3614_v61  ;;  %v1952_v61 = vpop.f32.mrf.mxu1 }
 0x311   : > { %v1976_v46 = vpop.f32.mrf.mxu2  ;;  %v1953_v4 = vadd.f32 %v1952_v61, %v1924_v3 }
 0x312   : > { %v2699_v51 = vpack.c.bf16 %v2005_v6, %v2004_v42  ;;  %v1977_v56 = vadd.f32 %v1976_v46, %v1948_v50 }
 0x314   : > { %2715 = vst [vmem:[%s3694_s23 + $0x8] sm:$0xff] %v2699_v51   ;;  %v1990_v9 = vmul.f32 0.1, %v1977_v56 }
 0x316   : > { %v1998_v28 = vmax.f32 %v1977_v56, %v1990_v9 }
 0x318   : > { %v2006_v31 = vadd.f32 %v1998_v28, %v3622_v59  ;;  %v1954_v60 = vpop.f32.mrf.mxu1 }
 0x319   : > { %v1978_v58 = vpop.f32.mrf.mxu2  ;;  %v1955_v2 = vadd.f32 %v1954_v60, %v1926_v5 }
 0x31a   : > { %v1979_v63 = vadd.f32 %v1978_v58, %v1950_v57 }
 0x31c   : > { %v1991_v0 = vmul.f32 0.1, %v1979_v63 }
 0x31e   : > { %v1999_v40 = vmax.f32 %v1979_v63, %v1991_v0 }
 0x320   : > { %v2007_v13 = vadd.f32 %v1999_v40, %v3626_v24 }
 0x321   : > { %v1981_v18 = vpop.f32.mrf.mxu2 }
 0x322   : > { %v2704_v1 = vpack.c.bf16 %v2007_v13, %v2006_v31  ;;  %v1982_v38 = vadd.f32 %v1981_v18, %v1953_v4 }
 0x324   : > { %2716 = vst [vmem:[%s3694_s23 + $0x10] sm:$0xff] %v2704_v1   ;;  %v1992_v33 = vmul.f32 0.1, %v1982_v38 }
 0x326   : > { %v2000_v11 = vmax.f32 %v1982_v38, %v1992_v33 }
 0x328   : > { %v2008_v59 = vadd.f32 %v2000_v11, %v3634_v17 }
 0x329   : > { %v1983_v8 = vpop.f32.mrf.mxu2 }
 0x32a   : > { %v1984_v10 = vadd.f32 %v1983_v8, %v1955_v2 }
 0x32c   : > { %v1993_v45 = vmul.f32 0.1, %v1984_v10 }
 0x32e   : > { %v2001_v55 = vmax.f32 %v1984_v10, %v1993_v45 }
 0x330   : > { %v2009_v24 = vadd.f32 %v2001_v55, %v3638_v22 }
 0x332   : > { %v2709_v20 = vpack.c.bf16 %v2009_v24, %v2008_v59 }
 0x334   : > { %2717 = vst [vmem:[%s3694_s23 + $0x18] sm:$0xff] %v2709_v20  }
 0x335 PF: > { %s28_s27 = sadd.s32 1, %s3172_s27   ;;  %s3748_s25 = smov %s3168_s26 }
 0x336   : > { %p25_p8 = scmp.ge.s32.totalorder %s28_s27, 4   ;;  %s3749_s26 = smov %s3751_s24 }
 0x338   :  { %27 = sbr.rel (!%p25_p8) target bundleno = 13 (0xd), region = 145 }
 0x33d   :  { %2056 = vsyncpa [#allocation3], 1 }
 0x33e   :  { %2058 = vsyncpa [#allocation3 + $0x1], 1 }
 0x33f   :  { %2059 = vsyncpa [#allocation5], 1 }
 0x340   :  { %2060 = vsyncpa [#allocation8], 1 }
 0x341   :  { %2061 = vsyncpa [#allocation11], 1 }
 0x342   :  { %2062 = vsyncpa [#allocation14], 1 }

// kernel: recon_generation_forward.5
= control target key start
LH: loop header
LB: loop body
LE: loop exit
PB: predicated region body
PF: predicated region fallthrough
CT: control target
= control target key end

     0   :  { %s3648_s0 = inlined_call_operand.vmem [shape: bf16[2,8,8,128], index: 0, kind: input, shape index: {}, may-alias: {0,1,2}]   ;;  %s3649_s1 = inlined_call_operand.vmem [shape: bf16[2,8,8,128], index: 1, kind: input, shape index: {}, may-alias: {0,1,2}]   ;;  %s3650_s2 = inlined_call_operand.vmem [shape: bf16[2,8,8,128], index: 2, kind: input, shape index: {}, may-alias: {0,1,2}]   ;;  %s3651_s3 = inlined_call_operand.hbm [shape: bf16[128,128], index: 3, kind: input, shape index: {}]   ;;  %s3652_s4 = inlined_call_operand.hbm [shape: f32[1,128], index: 4, kind: input, shape index: {}]   ;;  %s3653_s5 = inlined_call_operand.vmem [shape: f32[9,128], index: 5, kind: input, shape index: {}]   ;;  %s3654_s6 = inlined_call_operand.hbm [shape: f32[1,128], index: 6, kind: input, shape index: {}]   ;;  %s3655_s7 = inlined_call_operand.hbm [shape: bf16[128,128], index: 7, kind: input, shape index: {}]   ;;  %s3656_s8 = inlined_call_operand.hbm [shape: f32[1,128], index: 8, kind: input, shape index: {}]   ;;  %s3657_s9 = inlined_call_operand.hbm [shape: bf16[128,512], index: 9, kind: input, shape index: {}]   ;;  %s3658_s10 = inlined_call_operand.vmem [shape: f32[1,512], index: 10, kind: input, shape index: {}]   ;;  %s3659_s11 = inlined_call_operand.hbm [shape: bf16[512,128], index: 11, kind: input, shape index: {}]   ;;  %s3660_s12 = inlined_call_operand.hbm [shape: f32[1,128], index: 12, kind: input, shape index: {}]   ;;  %s3661_s13 = inlined_call_operand.vmem [shape: bf16[2,8,8,128], index: 13, kind: output, shape index: {}]  }
   0x1   :  { %3663 = sst [smem:[#allocation21_spill]] %s3651_s3 }
   0x2   :  { %3664 = sst [smem:[#allocation22_spill]] %s3652_s4 }
   0x3   :  { %3665 = sst [smem:[#allocation23_spill]] %s3655_s7 }
   0x4   :  { %3666 = sst [smem:[#allocation24_spill]] %s3657_s9 }
   0x5   :  { %18 = vsyncpa [#allocation3], 0 }
   0x6   :  { %19 = vsyncpa [#allocation5], 0 }
   0x7   :  { %20 = vsyncpa [#allocation8], 0 }
   0x8   :  { %21 = vsyncpa [#allocation11], 0 }
   0x9   :  { %22 = vsyncpa [#allocation14], 0  ;;  %s3187_s25 = smov 0   ;;  %s3189_s26 = smov 0  }
   0xa   :  { %s3191_s27 = smov 0  }
   0xb LB: > { %3667 = sst [smem:[#allocation20_spill]] %s3103_s27  ;;  %s2212_s14 = sadd.s32 4294967295, %s3103_s27   ;;  %s3103_s27 = sphi %s3191_s27, %s28_s27   ;;  %s3099_s26 = sphi %s3189_s26, %s3677_s26   ;;  %s3095_s25 = sphi %s3187_s25, %s3676_s25  }
   0xc   : > { %s3668_s4 = sld [smem:[#allocation22_spill]]  ;;  %p2214_p0 = scmp.ge.s32.totalorder %s3103_s27, 1 }
   0xd   : > { %p383_p1 = scmp.lt.s32.totalorder %s3103_s27, 3  ;;  %p3208_p2 = scmp.eq.s32.totalorder %s2212_s14, 0 }
   0xe   : > { %s3105_s17 = smov [#allocation4]   ;;  %s3671_s7 = sld [smem:[#allocation23_spill]] }
   0xf   : > { %p3212_p3 = pnand %p2214_p0, %p383_p1  ;;  %s411_s18 = sshll.u32 %s3105_s17, 4  ;;  %s412_s18 = int_to_ptr.vmem [resolvable:$true] %s411_s18 }
  0x10   : > { %s3106_s23 = smov [#allocation7]   ;;  %s3673_s9 = sld [smem:[#allocation24_spill]] }
  0x11   : > { %p2739_p4 = pneg %p3212_p3  ;;  %s437_s24 = sshll.u32 %s3106_s23, 4  ;;  %s438_s24 = int_to_ptr.vmem [resolvable:$true] %s437_s24 }
  0x12   : > { %s409_s30 = sshll.u32 %s3668_s4, 4  ;;  %s3107_s17 = smov 64   ;;  %s410_s30 = int_to_ptr.hbm [resolvable:$true] %s409_s30 }
  0x13   : > { %p3223_p5 = pnand %p3208_p2, %p2739_p4  ;;  %s3108_s19 = smov 4  }
  0x14   : > { %s435_s21 = sshll.u32 %s3671_s7, 4  ;;  %s3109_s20 = smov [#allocation10]   ;;  %s436_s21 = int_to_ptr.hbm [resolvable:$true] %s435_s21 }
  0x15   : > { %2745 = dma.hbm_to_vmem [thread:$0]  (!%p3223_p5), %s410_s30, 16, %s412_s18, [#allocation5]  }
  0x16   : > { %s461_s14 = sshll.u32 %s3673_s9, 4  ;;  %s463_s4 = sshll.u32 %s3109_s20, 4  ;;  %s462_s14 = int_to_ptr.hbm [resolvable:$true] %s461_s14  ;;  %s464_s4 = int_to_ptr.vmem [resolvable:$true] %s463_s4 }
  0x17   : > { %2751 = dma.hbm_to_vmem [thread:$0]  (!%p3223_p5), %s436_s21, 1024, %s438_s24, [#allocation8], %s3107_s17, %s3107_s17, %s3108_s19  }
  0x18   : > { %s3110_s23 = smov 256   ;;  %s3111_s7 = smov 16  }
  0x19   : > { %2757 = dma.hbm_to_vmem [thread:$0]  (!%p3223_p5), %s462_s14, 4096, %s464_s4, [#allocation11], %s3110_s23, %s3110_s23, %s3111_s7  }
  0x1a   : > { %s40_s28 = sadd.s32 1, %s3099_s26  ;;  %s3674_s3 = sld [smem:[#allocation21_spill]] }
  0x1b   : > { %p42_p6 = scmp.ge.s32.totalorder %s40_s28, 2  ;;  %s424_s21 = sshll.u32 %s3654_s6, 4  ;;  %s425_s21 = int_to_ptr.hbm [resolvable:$true] %s424_s21 }
  0x1c   : > { %s3112_s24 = smov [#allocation2]   ;;  %s3113_s4 = smov [#allocation6]  }
  0x1d   : > { %s3679_s28 = smov (%p42_p6, %s40_s28), 0  ;;  %s396_s20 = sshll.u32 %s3112_s24, 4  ;;  %s397_s20 = int_to_ptr.vmem [resolvable:$true] %s396_s20 }
  0x1e   : > { %s426_s7 = sshll.u32 %s3113_s4, 4  ;;  %s450_s27 = sshll.u32 %s3656_s8, 4  ;;  %s427_s7 = int_to_ptr.vmem [resolvable:$true] %s426_s7  ;;  %s451_s27 = int_to_ptr.hbm [resolvable:$true] %s450_s27 }
  0x1f   : > { %2748 = dma.hbm_to_vmem [thread:$0]  (!%p3223_p5), %s425_s21, 16, %s427_s7, [#allocation5]  }
  0x20   : > { %s394_s30 = sshll.u32 %s3674_s3, 4  ;;  %s478_s18 = sshll.u32 %s3659_s11, 4  ;;  %s395_s30 = int_to_ptr.hbm [resolvable:$true] %s394_s30  ;;  %s479_s18 = int_to_ptr.hbm [resolvable:$true] %s478_s18 }
  0x21   : > { %2742 = dma.hbm_to_vmem [thread:$0]  (!%p3223_p5), %s395_s30, 1024, %s397_s20, [#allocation3], %s3107_s17, %s3107_s17, %s3108_s19  }
  0x22   : > { %s3114_s24 = smov [#allocation9]   ;;  %s3115_s30 = smov [#allocation12]  }
  0x23   : > { %s452_s3 = sshll.u32 %s3114_s24, 4  ;;  %s480_s20 = sshll.u32 %s3115_s30, 4  ;;  %s453_s3 = int_to_ptr.vmem [resolvable:$true] %s452_s3  ;;  %s481_s20 = int_to_ptr.vmem [resolvable:$true] %s480_s20 }
  0x24   : > { %2754 = dma.hbm_to_vmem [thread:$0]  (!%p3223_p5), %s451_s27, 16, %s453_s3, [#allocation8]  }
  0x25   : > { %s493_s14 = sshll.u32 %s3660_s12, 4  ;;  %s3116_s21 = smov [#allocation13]   ;;  %s494_s14 = int_to_ptr.hbm [resolvable:$true] %s493_s14 }
  0x26   : > { %2760 = dma.hbm_to_vmem [thread:$0]  (!%p3223_p5), %s479_s18, 4096, %s481_s20, [#allocation11], %s3107_s17, %s3107_s17, %s3108_s19  }
  0x27   : > { %s495_s7 = sshll.u32 %s3116_s21, 4  ;;  %559 = sbr.rel (%p3212_p3) target bundleno = 815 (0x32f), region = 72  ;;  %s496_s7 = int_to_ptr.vmem [resolvable:$true] %s495_s7 }
  0x28   : > { %2763 = dma.hbm_to_vmem [thread:$0]  (!%p3223_p5), %s494_s14, 16, %s496_s7, [#allocation14]  }
  0x2c   : > { %3074 = dma.done.wait (%p3208_p2), [#allocation3], 1024  }
  0x2d   : > { %3076 = vsyncadd (%p3208_p2), [#allocation3], 4294966272 }
  0x2e   : > { %3078 = dma.done.wait (%p3208_p2), [#allocation5], 32  }
  0x2f   : > { %3080 = vsyncadd (%p3208_p2), [#allocation5], 4294967264 }
  0x30   : > { %3082 = dma.done.wait (%p3208_p2), [#allocation8], 1040  }
  0x31   : > { %3084 = vsyncadd (%p3208_p2), [#allocation8], 4294966256 }
  0x32   : > { %3086 = dma.done.wait (%p3208_p2), [#allocation11], 8192  }
  0x33   : > { %3088 = vsyncadd (%p3208_p2), [#allocation11], 4294959104 }
  0x34   : > { %3090 = dma.done.wait (%p3208_p2), [#allocation14], 16  }
  0x35   : > { %3092 = vsyncadd (%p3208_p2), [#allocation14], 4294967280  ;;  %v2575_v0 = vld [vmem:[#allocation2 + $0x38] sm:$0xff]  ;;  %v2574_v1 = vld [vmem:[#allocation2 + $0x30] sm:$0xff]  ;;  %p672_p7 = scmp.lt.s32.totalorder %s3095_s25, 1  ;;  %v876_v36 = vlaneseq }
  0x36   : > { %816 = vmatpush.bf16.msra.mxu0 %v2575_v0  ;;  %v2573_v2 = vld [vmem:[#allocation2 + $0x28] sm:$0xff]  ;;  %v2572_v3 = vld [vmem:[#allocation2 + $0x20] sm:$0xff]  ;;  %v2571_v4 = vld [vmem:[#allocation2 + $0x18] sm:$0xff] }
  0x37   : > { %s3681_s25 = smov (!%p672_p7, %s3095_s25), 1  ;;  %v2570_v5 = vld [vmem:[#allocation2 + $0x10] sm:$0xff]  ;;  %v2569_v6 = vld [vmem:[#allocation2 + $0x8] sm:$0xff]  ;;  %v2568_v11 = vld [vmem:[#allocation2] sm:$0xff]  ;;  %v3346_v40 = vshrl.u32 %v876_v36, 7 }
  0x38   : > { %s3297_s3 = sshll.u32 %s3681_s25, 5  ;;  %v2583_v29 = vld [vmem:[#allocation7 + $0x38] sm:$0xff]  ;;  %v2582_v30 = vld [vmem:[#allocation7 + $0x30] sm:$0xff]  ;;  %v2581_v31 = vld [vmem:[#allocation7 + $0x28] sm:$0xff] }
  0x39   : > { %s679_s22 = scalar_lea.vmem %s3648_s0, %s3297_s3  ;;  %s692_s27 = scalar_lea.vmem %s3649_s1, %s3297_s3  ;;  %1155 = vmatpush.bf16.msra.mxu1 %v2583_v29  ;;  %2691 = vmatpush.bf16.msra.mxu3 %v2583_v29  ;;  %v2580_v32 = vld [vmem:[#allocation7 + $0x20] sm:$0xff]  ;;  %v3343_v33 = vld [vmem:[#allocation4] ss:$0 sm:$0xff]  ;;  %v2578_v38 = vld [vmem:[#allocation7 + $0x10] sm:$0xff]  ;;  %vm878_vm0 = vcmp.eq.s32.totalorder %v3346_v40, 0  ;;  %vm901_vm1 = vcmp.eq.s32.totalorder %v3346_v40, 7 }
  0x3a   : > { %817 = vmatpush.bf16.msra.mxu0 %v2574_v1  ;;  %v3307_v7 = vld [vmem:[%s679_s22] sm:$0xff]   ;;  %v3312_v13 = vld [vmem:[%s679_s22 + $0x8] sm:$0xff]   ;;  %v3320_v17 = vld [vmem:[%s679_s22 + $0x10] sm:$0xff]   ;;  %s2566_s25 = sadd.s32 28, %s3297_s3  ;;  %s3623_s15 = scalar_lea.vmem %s3661_s13, %s3297_s3 }
  0x3b   : > { %v739_v8 = vld [vmem:[%s692_s27] sm:$0xf]  ;;  %v2650_v9 = vunpack.c.l.bf16 %v3307_v7  ;;  %v2651_v14 = vunpack.c.h.bf16 %v3307_v7  ;;  %v2654_v15 = vunpack.c.l.bf16 %v3312_v13  ;;  %v2655_v18 = vunpack.c.h.bf16 %v3312_v13  ;;  %v3328_v21 = vld [vmem:[%s679_s22 + $0x18] sm:$0xff]   ;;  %s708_s18 = scalar_lea.vmem %s3650_s2, %s2566_s25  ;;  %v2577_v42 = vld [vmem:[#allocation7 + $0x8] sm:$0xff] }
  0x3c   : > { %v740_v10 = vunpack.c.l.bf16 %v739_v8  ;;  %v2658_v19 = vunpack.c.l.bf16 %v3320_v17  ;;  %v2659_v22 = vunpack.c.h.bf16 %v3320_v17  ;;  %v2662_v23 = vunpack.c.l.bf16 %v3328_v21  ;;  %v741_v25 = vld [vmem:[%s708_s18] sm:$0xf]  ;;  %v2576_v50 = vld [vmem:[#allocation7] sm:$0xff] }
  0x3d   : > { %v744_v16 = vpack.c.bf16 %v2654_v15, %v2651_v14  ;;  %v2663_v26 = vunpack.c.h.bf16 %v3328_v21  ;;  %v742_v27 = vunpack.c.l.bf16 %v741_v25  ;;  %1156 = vmatpush.bf16.msra.mxu1 %v2582_v30  ;;  %2692 = vmatpush.bf16.msra.mxu3 %v2582_v30  ;;  %v2579_v34 = vld [vmem:[#allocation7 + $0x18] sm:$0xff]  ;;  %v2596_v40 = vld [vmem:[#allocation10 + $0x64] sm:$0xf]  ;;  %v2621_v21 = vld [vmem:[#allocation12 + $0x28] sm:$0xff] }
  0x3e   : > { %818 = vmatpush.bf16.msra.mxu0 %v2573_v2  ;;  %v743_v12 = vpack.c.bf16 %v2650_v9, %v740_v10  ;;  %v745_v20 = vpack.c.bf16 %v2658_v19, %v2655_v18  ;;  %v746_v24 = vpack.c.bf16 %v2662_v23, %v2659_v22  ;;  %v924_v43 = vld [vmem:[%s3653_s5] sm:$0xff] }
  0x3f   : > { %v747_v28 = vpack.c.bf16 %v742_v27, %v2663_v26  ;;  %v3352_v45 = vperm.slane %v924_v43, 0  ;;  %v3354_v48 = vperm.slane %v924_v43, 1  ;;  %v3362_v56 = vperm.slane %v924_v43, 2  ;;  %v2365_v13 = vld [vmem:[#allocation10 + $0x78] sm:$0xf0] }
  0x40   : > { %v3366_v59 = vperm.slane %v924_v43, 3  ;;  %v3380_v27 = vperm.slane %v924_v43, 5 }
  0x41   : > { %1157 = vmatpush.bf16.msra.mxu1 %v2581_v31  ;;  %2693 = vmatpush.bf16.msra.mxu3 %v2581_v31 }
  0x42   : > { %819 = vmatpush.bf16.msra.mxu0 %v2572_v3 }
  0x45   : > { %1158 = vmatpush.bf16.msra.mxu1 %v2580_v32  ;;  %2694 = vmatpush.bf16.msra.mxu3 %v2580_v32 }
  0x46   : > { %820 = vmatpush.bf16.msra.mxu0 %v2571_v4 }
  0x49   : > { %1159 = vmatpush.bf16.msra.mxu1 %v2579_v34  ;;  %2695 = vmatpush.bf16.msra.mxu3 %v2579_v34 }
  0x4a   : > { %821 = vmatpush.bf16.msra.mxu0 %v2570_v5 }
  0x4d   : > { %1160 = vmatpush.bf16.msra.mxu1 %v2578_v38  ;;  %2696 = vmatpush.bf16.msra.mxu3 %v2578_v38 }
  0x4e   : > { %822 = vmatpush.bf16.msra.mxu0 %v2569_v6  ;;  %v3374_v6 = vperm.slane %v924_v43, 4 }
  0x51   : > { %1161 = vmatpush.bf16.msra.mxu1 %v2577_v42  ;;  %2697 = vmatpush.bf16.msra.mxu3 %v2577_v42 }
  0x52   : > { %823 = vmatpush.bf16.msra.mxu0 %v2568_v11 }
  0x55   : > { %824 = vmatmul.bf16.vlgmr.msra.gmra.mxu0 %v743_v12  ;;  %1162 = vmatpush.bf16.msra.mxu1 %v2576_v50 }
  0x56   : > { %2698 = vmatpush.bf16.msra.mxu3 %v2576_v50 }
  0x65   : > { %829 = vmatmul.bf16.gmra.mxu0 %v744_v16 }
  0x75   : > { %834 = vmatmul.bf16.gmra.mxu0 %v745_v20 }
  0x85   : > { %839 = vmatmul.bf16.gmra.mxu0 %v746_v24 }
  0x95   : > { %844 = vmatmul.bf16.gmra.mxu0 %v747_v28  ;;  %v3382_v28 = vperm.slane %v924_v43, 6 }
  0xd2   : > { %v825_v35 = vpop.f32.mrf.mxu0 }
  0xd3   : > { %v826_v37 = vadd.f32 %v3343_v33, %v825_v35 }
  0xd5   : > { %v850_v39 = vmul.f32 0.01, %v826_v37 }
  0xd7   : > { %v860_v41 = vmax.f32 %v826_v37, %v850_v39 }
  0xd9   : > { %v874_v44 = vmul.f32 0.0, %v860_v41 }
  0xda   : > { %v827_v46 = vpop.f32.mrf.mxu0 }
  0xdb   : > { %v879_v47 = vrot.slane %v874_v44, 7  ;;  %v828_v49 = vadd.f32 %v3343_v33, %v827_v46  ;;  %v902_v51 = vrot.slane %v874_v44, 1  ;;  %v936_v55 = vmul.f32 %v3354_v48, %v874_v44 }
  0xdd   : > { %v891_v52 = vsel %vm878_vm0, 0.0, %v879_v47  ;;  %v851_v53 = vmul.f32 0.01, %v828_v49  ;;  %v914_v58 = vsel %vm901_vm1, 0.0, %v902_v51  ;;  %v3393_v47 = vperm.slane %v924_v43, 7 }
  0xde   : > { %v927_v54 = vmul.f32 %v3352_v45, %v891_v52  ;;  %v953_v63 = vmul.f32 %v3362_v56, %v914_v58 }
  0xdf   : > { %v861_v57 = vmax.f32 %v828_v49, %v851_v53 }
  0xe0   : > { %v944_v60 = vadd.f32 %v936_v55, %v927_v54 }
  0xe1   : > { %v880_v61 = vrot.slane %v861_v57, 7  ;;  %v903_v1 = vrot.slane %v861_v57, 1  ;;  %v937_v10 = vmul.f32 %v3354_v48, %v861_v57  ;;  %v987_v24 = vmul.f32 %v3374_v6, %v861_v57 }
  0xe2   : > { %v830_v62 = vpop.f32.mrf.mxu0  ;;  %v961_v5 = vadd.f32 %v953_v63, %v944_v60 }
  0xe3   : > { %v892_v0 = vsel %vm878_vm0, 0.0, %v880_v61  ;;  %v831_v2 = vadd.f32 %v3343_v33, %v830_v62  ;;  %v915_v11 = vsel %vm901_vm1, 0.0, %v903_v1  ;;  %v3407_v1 = vld [vmem:[%s3653_s5 + $0x8] ss:$0 sm:$0xff] }
  0xe4   : > { %v928_v3 = vmul.f32 %v3352_v45, %v892_v0  ;;  %v970_v4 = vmul.f32 %v3366_v59, %v892_v0  ;;  %v954_v29 = vmul.f32 %v3362_v56, %v915_v11  ;;  %v1004_v41 = vmul.f32 %v3380_v27, %v915_v11 }
  0xe5   : > { %v852_v8 = vmul.f32 0.01, %v831_v2 }
  0xe6   : > { %v978_v12 = vadd.f32 %v970_v4, %v961_v5  ;;  %v945_v20 = vadd.f32 %v937_v10, %v928_v3 }
  0xe7   : > { %v862_v16 = vmax.f32 %v831_v2, %v852_v8 }
  0xe8   : > { %v995_v31 = vadd.f32 %v987_v24, %v978_v12  ;;  %v962_v36 = vadd.f32 %v954_v29, %v945_v20 }
  0xe9   : > { %v881_v25 = vrot.slane %v862_v16, 7  ;;  %v904_v35 = vrot.slane %v862_v16, 1  ;;  %v938_v44 = vmul.f32 %v3354_v48, %v862_v16  ;;  %v988_v49 = vmul.f32 %v3374_v6, %v862_v16 }
  0xea   : > { %v832_v30 = vpop.f32.mrf.mxu0  ;;  %v1012_v52 = vadd.f32 %v1004_v41, %v995_v31  ;;  %v1038_v0 = vmul.f32 %v3393_v47, %v862_v16 }
  0xeb   : > { %v833_v32 = vadd.f32 %v3343_v33, %v832_v30  ;;  %v893_v34 = vsel %vm878_vm0, 0.0, %v881_v25  ;;  %v916_v51 = vsel %vm901_vm1, 0.0, %v904_v35 }
  0xec   : > { %v929_v37 = vmul.f32 %v3352_v45, %v893_v34  ;;  %v971_v38 = vmul.f32 %v3366_v59, %v893_v34  ;;  %v1021_v42 = vmul.f32 %v3382_v28, %v893_v34  ;;  %v955_v61 = vmul.f32 %v3362_v56, %v916_v51 }
  0xed   : > { %v853_v39 = vmul.f32 0.01, %v833_v32  ;;  %v1005_v63 = vmul.f32 %v3380_v27, %v916_v51  ;;  %v1055_v30 = vmul.f32 %v3407_v1, %v916_v51 }
  0xee   : > { %v979_v46 = vadd.f32 %v971_v38, %v962_v36  ;;  %v946_v53 = vadd.f32 %v938_v44, %v929_v37  ;;  %v1029_v57 = vadd.f32 %v1021_v42, %v1012_v52  ;;  %v3419_v38 = vld [vmem:[#allocation6] ss:$0 sm:$0xff] }
  0xef   : > { %v863_v50 = vmax.f32 %v833_v32, %v853_v39 }
  0xf0   : > { %v996_v55 = vadd.f32 %v988_v49, %v979_v46  ;;  %v963_v3 = vadd.f32 %v955_v61, %v946_v53  ;;  %v1046_v11 = vadd.f32 %v1038_v0, %v1029_v57 }
  0xf1   : > { %v882_v54 = vrot.slane %v863_v50, 7  ;;  %v905_v60 = vrot.slane %v863_v50, 1  ;;  %v939_v12 = vmul.f32 %v3354_v48, %v863_v50  ;;  %v1039_v29 = vmul.f32 %v3393_v47, %v863_v50 }
  0xf2   : > { %v835_v58 = vpop.f32.mrf.mxu0  ;;  %v1013_v8 = vadd.f32 %v1005_v63, %v996_v55  ;;  %v989_v31 = vmul.f32 %v3374_v6, %v863_v50  ;;  %v1063_v37 = vadd.f32 %v1055_v30, %v1046_v11 }
  0xf3   : > { %v836_v62 = vadd.f32 %v3343_v33, %v835_v58  ;;  %v894_v43 = vsel %vm878_vm0, 0.0, %v882_v54  ;;  %v917_v16 = vsel %vm901_vm1, 0.0, %v905_v60 }
  0xf4   : > { %v930_v2 = vmul.f32 %v3352_v45, %v894_v43  ;;  %v972_v4 = vmul.f32 %v3366_v59, %v894_v43  ;;  %v1022_v10 = vmul.f32 %v3382_v28, %v894_v43  ;;  %v1056_v36 = vmul.f32 %v3407_v1, %v917_v16 }
  0xf5   : > { %v854_v5 = vmul.f32 0.01, %v836_v62  ;;  %v956_v41 = vmul.f32 %v3362_v56, %v917_v16  ;;  %v1006_v49 = vmul.f32 %v3380_v27, %v917_v16  ;;  %v1075_v60 = vadd.f32 %v3419_v38, %v1063_v37 }
  0xf6   : > { %v980_v20 = vadd.f32 %v972_v4, %v963_v3  ;;  %v1030_v25 = vadd.f32 %v1022_v10, %v1013_v8  ;;  %v947_v32 = vadd.f32 %v939_v12, %v930_v2 }
  0xf7   : > { %v864_v24 = vmax.f32 %v836_v62, %v854_v5 }
  0xf8   : > { %v1047_v35 = vadd.f32 %v1039_v29, %v1030_v25  ;;  %v997_v44 = vadd.f32 %v989_v31, %v980_v20  ;;  %v964_v52 = vadd.f32 %v956_v41, %v947_v32 }
  0xf9   : > { %v883_v34 = vrot.slane %v864_v24, 7  ;;  %v906_v42 = vrot.slane %v864_v24, 1  ;;  %v940_v57 = vmul.f32 %v3354_v48, %v864_v24  ;;  %v990_v0 = vmul.f32 %v3374_v6, %v864_v24 }
  0xfa   : > { %v837_v39 = vpop.f32.mrf.mxu0  ;;  %v1064_v51 = vadd.f32 %v1056_v36, %v1047_v35  ;;  %v1014_v63 = vadd.f32 %v1006_v49, %v997_v44  ;;  %v1040_v20 = vmul.f32 %v3393_v47, %v864_v24 }
  0xfb   : > { %v838_v46 = vadd.f32 %v3343_v33, %v837_v39  ;;  %v895_v50 = vsel %vm878_vm0, 0.0, %v883_v34  ;;  %v918_v62 = vsel %vm901_vm1, 0.0, %v906_v42 }
  0xfc   : > { %v931_v53 = vmul.f32 %v3352_v45, %v895_v50  ;;  %v973_v54 = vmul.f32 %v3366_v59, %v895_v50  ;;  %v1023_v55 = vmul.f32 %v3382_v28, %v895_v50  ;;  %v1076_v61 = vadd.f32 %v3419_v38, %v1064_v51 }
  0xfd   : > { %v855_v58 = vmul.f32 0.01, %v838_v46  ;;  %v957_v11 = vmul.f32 %v3362_v56, %v918_v62  ;;  %v1007_v31 = vmul.f32 %v3380_v27, %v918_v62 }
  0xfe   : > { %v981_v43 = vadd.f32 %v973_v54, %v964_v52  ;;  %v1083_v3 = vpack.c.bf16 %v1076_v61, %v1075_v60  ;;  %v948_v4 = vadd.f32 %v940_v57, %v931_v53  ;;  %v1031_v5 = vadd.f32 %v1023_v55, %v1014_v63 }
  0xff   : > { %v865_v2 = vmax.f32 %v838_v46, %v855_v58  ;;  %v1057_v52 = vmul.f32 %v3407_v1, %v918_v62 }
 0x100   : > { %1163 = vmatmul.bf16.vlgmr.msra.gmra.mxu1 %v1083_v3  ;;  %v998_v12 = vadd.f32 %v990_v0, %v981_v43  ;;  %v965_v30 = vadd.f32 %v957_v11, %v948_v4  ;;  %v1048_v36 = vadd.f32 %v1040_v20, %v1031_v5 }
 0x101   : > { %v884_v8 = vrot.slane %v865_v2, 7  ;;  %v907_v10 = vrot.slane %v865_v2, 1  ;;  %v941_v32 = vmul.f32 %v3354_v48, %v865_v2  ;;  %v991_v42 = vmul.f32 %v3374_v6, %v865_v2 }
 0x102   : > { %v840_v16 = vpop.f32.mrf.mxu0  ;;  %v1015_v24 = vadd.f32 %v1007_v31, %v998_v12  ;;  %v1041_v50 = vmul.f32 %v3393_v47, %v865_v2  ;;  %v1065_v60 = vadd.f32 %v1057_v52, %v1048_v36  ;;  %v2612_v52 = vld [vmem:[#allocation10 + $0xe4] sm:$0xf] }
 0x103   : > { %v841_v25 = vadd.f32 %v3343_v33, %v840_v16  ;;  %v896_v29 = vsel %vm878_vm0, 0.0, %v884_v8  ;;  %v919_v39 = vsel %vm901_vm1, 0.0, %v907_v10 }
 0x104   : > { %v932_v34 = vmul.f32 %v3352_v45, %v896_v29  ;;  %v974_v35 = vmul.f32 %v3366_v59, %v896_v29  ;;  %v1024_v41 = vmul.f32 %v3382_v28, %v896_v29  ;;  %v958_v53 = vmul.f32 %v3362_v56, %v919_v39 }
 0x105   : > { %v856_v37 = vmul.f32 0.01, %v841_v25  ;;  %v1058_v58 = vmul.f32 %v3407_v1, %v919_v39  ;;  %v1008_v63 = vmul.f32 %v3380_v27, %v919_v39  ;;  %v1077_v12 = vadd.f32 %v3419_v38, %v1065_v60 }
 0x106   : > { %v949_v44 = vadd.f32 %v941_v32, %v932_v34  ;;  %v982_v46 = vadd.f32 %v974_v35, %v965_v30  ;;  %v1032_v51 = vadd.f32 %v1024_v41, %v1015_v24 }
 0x107   : > { %v866_v49 = vmax.f32 %v841_v25, %v856_v37 }
 0x108   : > { %v999_v54 = vadd.f32 %v991_v42, %v982_v46  ;;  %v1049_v57 = vadd.f32 %v1041_v50, %v1032_v51  ;;  %v966_v43 = vadd.f32 %v958_v53, %v949_v44  ;;  %v2419_v51 = vld [vmem:[#allocation10 + $0xe0] sm:$0xf]  ;;  %v2614_v50 = vld [vmem:[#allocation10 + $0xec] sm:$0xf0] }
 0x109   : > { %v885_v55 = vrot.slane %v866_v49, 7  ;;  %v908_v4 = vrot.slane %v866_v49, 1  ;;  %v942_v20 = vmul.f32 %v3354_v48, %v866_v49  ;;  %v992_v30 = vmul.f32 %v3374_v6, %v866_v49 }
 0x10a   : > { %v842_v61 = vpop.f32.mrf.mxu0  ;;  %v1066_v3 = vadd.f32 %v1058_v58, %v1049_v57  ;;  %v1016_v8 = vadd.f32 %v1008_v63, %v999_v54  ;;  %v1042_v36 = vmul.f32 %v3393_v47, %v866_v49  ;;  %v2421_v57 = vld [vmem:[#allocation10 + $0xf0] sm:$0xf0]  ;;  %v2427_v58 = vld [vmem:[#allocation10 + $0xe8] sm:$0xf] }
 0x10b   : > { %v843_v0 = vadd.f32 %v3343_v33, %v842_v61  ;;  %v897_v2 = vsel %vm878_vm0, 0.0, %v885_v55  ;;  %v920_v34 = vsel %vm901_vm1, 0.0, %v908_v4  ;;  %v2420_v55 = vor.u32 %v2614_v50, %v2419_v51  ;;  %v2604_v51 = vld [vmem:[#allocation10 + $0xa4] sm:$0xf]  ;;  %v2389_v50 = vld [vmem:[#allocation10 + $0xb0] sm:$0xf0] }
 0x10c   : > { %v933_v62 = vmul.f32 %v3352_v45, %v897_v2  ;;  %v975_v5 = vmul.f32 %v3366_v59, %v897_v2  ;;  %v1025_v10 = vmul.f32 %v3382_v28, %v897_v2  ;;  %v1078_v16 = vadd.f32 %v3419_v38, %v1066_v3  ;;  %v2403_v3 = vld [vmem:[#allocation10 + $0xc0] sm:$0xf]  ;;  %v2610_v2 = vld [vmem:[#allocation10 + $0xcc] sm:$0xf0] }
 0x10d   : > { %v857_v11 = vmul.f32 0.01, %v843_v0  ;;  %v959_v42 = vmul.f32 %v3362_v56, %v920_v34  ;;  %v1009_v44 = vmul.f32 %v3380_v27, %v920_v34  ;;  %v1059_v63 = vmul.f32 %v3407_v1, %v920_v34  ;;  %1398 = vmatpush.bf16.msrb.mxu0 %v2420_v55  ;;  %2699 = vmatpush.bf16.msra.mxu2 %v2420_v55  ;;  %v2607_v55 = vld [vmem:[#allocation10 + $0xb4] sm:$0xf0] }
 0x10e   : > { %v983_v25 = vadd.f32 %v975_v5, %v966_v43  ;;  %v1033_v29 = vadd.f32 %v1025_v10, %v1016_v8  ;;  %v1084_v32 = vpack.c.bf16 %v1078_v16, %v1077_v12  ;;  %v950_v35 = vadd.f32 %v942_v20, %v933_v62  ;;  %v2608_v10 = vld [vmem:[#allocation10 + $0xc4] sm:$0xf] }
 0x10f   : > { %v867_v31 = vmax.f32 %v843_v0, %v857_v11  ;;  %v2615_v0 = vld [vmem:[#allocation10 + $0xf4] sm:$0xf0]  ;;  %v2405_v11 = vld [vmem:[#allocation10 + $0xd0] sm:$0xf0]  ;;  %v2424_v16 = vor.u32 %v2612_v52, %v2421_v57 }
 0x110   : > { %1168 = vmatmul.bf16.gmra.mxu1 %v1084_v32  ;;  %v1000_v24 = vadd.f32 %v992_v30, %v983_v25  ;;  %v1050_v46 = vadd.f32 %v1042_v36, %v1033_v29  ;;  %v967_v61 = vadd.f32 %v959_v42, %v950_v35  ;;  %v2428_v20 = vor.u32 %v2615_v0, %v2427_v58  ;;  %v2411_v25 = vld [vmem:[#allocation10 + $0xc8] sm:$0xf]  ;;  %v2611_v29 = vld [vmem:[#allocation10 + $0xd4] sm:$0xf0]  ;;  %v2387_v35 = vld [vmem:[#allocation10 + $0xa0] sm:$0xf] }
 0x111   : > { %v886_v37 = vrot.slane %v867_v31, 7  ;;  %v909_v39 = vrot.slane %v867_v31, 1  ;;  %v943_v4 = vmul.f32 %v3354_v48, %v867_v31  ;;  %v2404_v48 = vor.u32 %v2610_v2, %v2403_v3  ;;  %v2606_v36 = vld [vmem:[#allocation10 + $0xac] sm:$0xf0]  ;;  %1427 = vmatpush.bf16.msrb.mxu3 %v2424_v16 }
 0x112   : > { %v845_v41 = vpop.f32.mrf.mxu0  ;;  %v1017_v5 = vadd.f32 %v1009_v44, %v1000_v24  ;;  %v1067_v12 = vadd.f32 %v1059_v63, %v1050_v46  ;;  %1456 = vmatpush.bf16.msrb.mxu1 %v2428_v20  ;;  %v2408_v24 = vor.u32 %v2608_v10, %v2405_v11  ;;  %v2412_v46 = vor.u32 %v2611_v29, %v2411_v25  ;;  %v2602_v63 = vld [vmem:[#allocation10 + $0x8c] sm:$0xf0]  ;;  %v2373_v10 = vld [vmem:[#allocation10 + $0x90] sm:$0xf0]  ;;  %v2379_v20 = vld [vmem:[#allocation10 + $0x88] sm:$0xf] }
 0x113   : > { %v846_v53 = vadd.f32 %v3343_v33, %v845_v41  ;;  %v898_v54 = vsel %vm878_vm0, 0.0, %v886_v37  ;;  %v3473_v49 = vsel %vm901_vm1, 0.0, %v909_v39  ;;  %1399 = vmatpush.bf16.msrb.mxu0 %v2404_v48  ;;  %2700 = vmatpush.bf16.msra.mxu2 %v2404_v48  ;;  %v993_v52 = vmul.f32 %v3374_v6, %v867_v31  ;;  %v2603_v25 = vld [vmem:[#allocation10 + $0x94] sm:$0xf0] }
 0x114   : > { %v934_v60 = vmul.f32 %v3352_v45, %v898_v54  ;;  %v976_v43 = vmul.f32 %v3366_v59, %v898_v54  ;;  %v1026_v8 = vmul.f32 %v3382_v28, %v898_v54  ;;  %v1043_v45 = vmul.f32 %v3393_v47, %v867_v31 }
 0x115   : > { %v858_v62 = vmul.f32 0.01, %v846_v53  ;;  %v960_v37 = vmul.f32 %v3362_v56, %v3473_v49  ;;  %v1060_v44 = vmul.f32 %v3407_v1, %v3473_v49  ;;  %v2388_v54 = vor.u32 %v2606_v36, %v2387_v35  ;;  %v2395_v56 = vld [vmem:[#allocation10 + $0xa8] sm:$0xf]  ;;  %1428 = vmatpush.bf16.msrb.mxu3 %v2408_v24 }
 0x116   : > { %v951_v32 = vadd.f32 %v943_v4, %v934_v60  ;;  %v1034_v34 = vadd.f32 %v1026_v8, %v1017_v5  ;;  %v984_v39 = vadd.f32 %v976_v43, %v967_v61  ;;  %v2371_v43 = vld [vmem:[#allocation10 + $0x80] sm:$0xf]  ;;  %v2392_v31 = vor.u32 %v2604_v51, %v2389_v50  ;;  %1457 = vmatpush.bf16.msrb.mxu1 %v2412_v46  ;;  %v2600_v8 = vld [vmem:[#allocation10 + $0x84] sm:$0xf] }
 0x117   : > { %v3481_v30 = vmax.f32 %v846_v53, %v858_v62  ;;  %v1079_v62 = vadd.f32 %v3419_v38, %v1067_v12  ;;  %1400 = vmatpush.bf16.msrb.mxu0 %v2388_v54  ;;  %v1010_v11 = vmul.f32 %v3380_v27, %v3473_v49  ;;  %2701 = vmatpush.bf16.msra.mxu2 %v2388_v54 }
 0x118   : > { %v1051_v42 = vadd.f32 %v1043_v45, %v1034_v34  ;;  %v968_v58 = vadd.f32 %v960_v37, %v951_v32  ;;  %v1001_v2 = vadd.f32 %v993_v52, %v984_v39  ;;  %v2376_v48 = vor.u32 %v2600_v8, %v2373_v10  ;;  %v2595_v8 = vld [vmem:[#allocation10 + $0x54] sm:$0xf0] }
 0x119   : > { %v887_v41 = vrot.slane %v3481_v30, 7  ;;  %v910_v0 = vrot.slane %v3481_v30, 1  ;;  %v994_v12 = vmul.f32 %v3374_v6, %v3481_v30  ;;  %1429 = vmatpush.bf16.msrb.mxu3 %v2392_v31  ;;  %v2380_v36 = vor.u32 %v2603_v25, %v2379_v20  ;;  %v2325_v25 = vld [vmem:[#allocation10 + $0x30] sm:$0xf0] }
 0x11a   : > { %v847_v53 = vpop.f32.mrf.mxu0  ;;  %v1068_v60 = vadd.f32 %v1060_v44, %v1051_v42  ;;  %v1018_v34 = vadd.f32 %v1010_v11, %v1001_v2  ;;  %v1044_v6 = vmul.f32 %v3393_v47, %v3481_v30 }
 0x11b   : > { %v848_v57 = vadd.f32 %v3343_v33, %v847_v53  ;;  %v899_v61 = vsel %vm878_vm0, 0.0, %v887_v41  ;;  %v2396_v33 = vor.u32 %v2607_v55, %v2395_v56  ;;  %v922_v49 = vsel %vm901_vm1, 0.0, %v910_v0  ;;  %v2357_v0 = vld [vmem:[#allocation10 + $0x70] sm:$0xf0] }
 0x11c   : > { %v977_v3 = vmul.f32 %v3366_v59, %v899_v61  ;;  %v1080_v5 = vadd.f32 %v3419_v38, %v1068_v60  ;;  %v1027_v16 = vmul.f32 %v3382_v28, %v899_v61  ;;  %v2372_v59 = vor.u32 %v2602_v63, %v2371_v43  ;;  %v2355_v61 = vld [vmem:[#allocation10 + $0x60] sm:$0xf]  ;;  %v2598_v43 = vld [vmem:[#allocation10 + $0x6c] sm:$0xf0] }
 0x11d   : > { %v859_v4 = vmul.f32 0.01, %v848_v57  ;;  %1458 = vmatpush.bf16.msrb.mxu1 %v2396_v33  ;;  %v1011_v42 = vmul.f32 %v3380_v27, %v922_v49  ;;  %1430 = vmatpush.bf16.msrb.mxu3 %v2376_v48  ;;  %v1061_v27 = vmul.f32 %v3407_v1, %v922_v49  ;;  %v2356_v63 = vor.u32 %v2598_v43, %v2355_v61  ;;  %v2347_v33 = vld [vmem:[#allocation10 + $0x48] sm:$0xf]  ;;  %v2307_v48 = vld [vmem:[#allocation10] sm:$0xf] }
 0x11e   : > { %v985_v45 = vadd.f32 %v977_v3, %v968_v58  ;;  %v1085_v32 = vpack.c.bf16 %v1080_v5, %v1079_v62  ;;  %v1035_v39 = vadd.f32 %v1027_v16, %v1018_v34  ;;  %1401 = vmatpush.bf16.msrb.mxu0 %v2372_v59  ;;  %2702 = vmatpush.bf16.msra.mxu2 %v2372_v59  ;;  %v2599_v3 = vld [vmem:[#allocation10 + $0x74] sm:$0xf0]  ;;  %v2592_v62 = vld [vmem:[#allocation10 + $0x44] sm:$0xf]  ;;  %v2590_v16 = vld [vmem:[#allocation10 + $0x2c] sm:$0xf0] }
 0x11f   : > { %v869_v29 = vmax.f32 %v848_v57, %v859_v4  ;;  %v2360_v2 = vor.u32 %v2596_v40, %v2357_v0  ;;  %v2594_v4 = vld [vmem:[#allocation10 + $0x4c] sm:$0xf0]  ;;  %v2348_v11 = vor.u32 %v2595_v8, %v2347_v33  ;;  %v2588_v59 = vld [vmem:[#allocation10 + $0x24] sm:$0xf]  ;;  %v2397_v40 = vld [vmem:[#allocation10 + $0xb8] sm:$0xf0] }
 0x120   : > { %1173 = vmatmul.bf16.vlgmr.msra.gmra.mxu3 %v1085_v32  ;;  %v1002_v37 = vadd.f32 %v994_v12, %v985_v45  ;;  %v1052_v50 = vadd.f32 %v1044_v6, %v1035_v39  ;;  %v2323_v45 = vld [vmem:[#allocation10 + $0x20] sm:$0xf]  ;;  %v2591_v32 = vld [vmem:[#allocation10 + $0x34] sm:$0xf0]  ;;  %v2328_v12 = vor.u32 %v2588_v59, %v2325_v25  ;;  %v2584_v49 = vld [vmem:[#allocation10 + $0x4] sm:$0xf] }
 0x121   : > { %v875_v35 = vmul.f32 0.0, %v869_v29  ;;  %1459 = vmatpush.bf16.msrb.mxu1 %v2380_v36  ;;  %1431 = vmatpush.bf16.msrb.mxu3 %v2360_v2  ;;  %v2324_v20 = vor.u32 %v2590_v16, %v2323_v45  ;;  %v2331_v29 = vld [vmem:[#allocation10 + $0x28] sm:$0xf]  ;;  %v2585_v45 = vld [vmem:[#allocation10 + $0xc] sm:$0xf] }
 0x122   : > { %v1019_v51 = vadd.f32 %v1011_v42, %v1002_v37  ;;  %v1069_v55 = vadd.f32 %v1061_v27, %v1052_v50  ;;  %1402 = vmatpush.bf16.msrb.mxu0 %v2356_v63  ;;  %2703 = vmatpush.bf16.msra.mxu2 %v2356_v63  ;;  %v2332_v34 = vor.u32 %v2591_v32, %v2331_v29  ;;  %v2309_v37 = vld [vmem:[#allocation10 + $0x10] sm:$0xf0]  ;;  %v2315_v39 = vld [vmem:[#allocation10 + $0x8] sm:$0xf]  ;;  %v2317_v16 = vld [vmem:[#allocation10 + $0x18] sm:$0xf0] }
 0x123   : > { %v888_v24 = vrot.slane %v875_v35, 7  ;;  %v911_v41 = vrot.slane %v875_v35, 1  ;;  %v1045_v53 = vmul.f32 %v3393_v47, %v875_v35  ;;  %v2363_v47 = vld [vmem:[#allocation10 + $0x68] sm:$0xf]  ;;  %v2586_v35 = vld [vmem:[#allocation10 + $0xc] sm:$0xf0]  ;;  %v2320_v25 = vor.u32 %v2585_v45, %v2317_v16 }
 0x124   : > { %v1081_v58 = vadd.f32 %v3419_v38, %v1069_v55  ;;  %v2364_v31 = vor.u32 %v2599_v3, %v2363_v47  ;;  %v2308_v36 = vor.u32 %v2586_v35, %v2307_v48  ;;  %v2601_v47 = vld [vmem:[#allocation10 + $0x8c] sm:$0xf]  ;;  %v2381_v3 = vld [vmem:[#allocation10 + $0x98] sm:$0xf0] }
 0x125   : > { %v900_v44 = vsel %vm878_vm0, 0.0, %v888_v24  ;;  %v923_v52 = vsel %vm901_vm1, 0.0, %v911_v41  ;;  %v2587_v24 = vld [vmem:[#allocation10 + $0x14] sm:$0xf0]  ;;  %v2312_v41 = vor.u32 %v2584_v49, %v2309_v37  ;;  %v2384_v2 = vor.u32 %v2601_v47, %v2381_v3  ;;  %v2622_v37 = vld [vmem:[#allocation12 + $0x30] sm:$0xff] }
 0x126   : > { %v1028_v46 = vmul.f32 %v3382_v28, %v900_v44  ;;  %v1062_v30 = vmul.f32 %v3407_v1, %v923_v52  ;;  %1460 = vmatpush.bf16.msrb.mxu1 %v2364_v31  ;;  %v2339_v1 = vld [vmem:[#allocation10 + $0x40] sm:$0xf]  ;;  %v2316_v42 = vor.u32 %v2587_v24, %v2315_v39  ;;  %v3516_v44 = vld [vmem:[#allocation9] ss:$0 sm:$0xff]  ;;  %v2597_v31 = vld [vmem:[#allocation10 + $0x6c] sm:$0xf] }
 0x127   : > { %v2340_v5 = vor.u32 %v2594_v4, %v2339_v1  ;;  %v2368_v1 = vor.u32 %v2597_v31, %v2365_v13  ;;  %v2349_v4 = vld [vmem:[#allocation10 + $0x58] sm:$0xf0]  ;;  %v2630_v39 = vld [vmem:[#allocation12 + $0x70] sm:$0xff]  ;;  %v2620_v24 = vld [vmem:[#allocation12 + $0x20] sm:$0xff] }
 0x128   : > { %v1036_v54 = vadd.f32 %v1028_v46, %v1019_v51  ;;  %v2623_v35 = vld [vmem:[#allocation12 + $0x38] sm:$0xff] }
 0x129   : > { %1403 = vmatpush.bf16.msrb.mxu0 %v2340_v5  ;;  %2704 = vmatpush.bf16.msra.mxu2 %v2340_v5  ;;  %v2589_v5 = vld [vmem:[#allocation10 + $0x2c] sm:$0xf]  ;;  %v2639_v49 = vld [vmem:[#allocation12 + $0xb8] sm:$0xff] }
 0x12a   : > { %v1053_v56 = vadd.f32 %v1045_v53, %v1036_v54  ;;  %1461 = vmatpush.bf16.msrb.mxu1 %v2348_v11 }
 0x12c   : > { %v1070_v57 = vadd.f32 %v1062_v30, %v1053_v56  ;;  %v2613_v56 = vld [vmem:[#allocation10 + $0xec] sm:$0xf]  ;;  %v2429_v30 = vld [vmem:[#allocation10 + $0xf8] sm:$0xf0] }
 0x12d   : > { %1404 = vmatpush.bf16.msrb.mxu0 %v2324_v20  ;;  %2705 = vmatpush.bf16.msra.mxu2 %v2324_v20  ;;  %v2432_v55 = vor.u32 %v2613_v56, %v2429_v30  ;;  %v2633_v56 = vld [vmem:[#allocation12 + $0x88] sm:$0xff]  ;;  %v2626_v30 = vld [vmem:[#allocation12 + $0x50] sm:$0xff] }
 0x12e   : > { %v1082_v60 = vadd.f32 %v3419_v38, %v1070_v57  ;;  %v2341_v38 = vld [vmem:[#allocation10 + $0x50] sm:$0xf0]  ;;  %1462 = vmatpush.bf16.msrb.mxu1 %v2332_v34 }
 0x12f   : > { %v2344_v10 = vor.u32 %v2592_v62, %v2341_v38  ;;  %v2333_v38 = vld [vmem:[#allocation10 + $0x38] sm:$0xf0] }
 0x130   : > { %v1086_v28 = vpack.c.bf16 %v1082_v60, %v1081_v58  ;;  %v2413_v58 = vld [vmem:[#allocation10 + $0xd8] sm:$0xf0]  ;;  %v2605_v60 = vld [vmem:[#allocation10 + $0xac] sm:$0xf] }
 0x131   : > { %1432 = vmatpush.bf16.msrb.mxu3 %v2344_v10  ;;  %1405 = vmatpush.bf16.msrb.mxu0 %v2308_v36  ;;  %v2400_v0 = vor.u32 %v2605_v60, %v2397_v40  ;;  %v2336_v10 = vor.u32 %v2589_v5, %v2333_v38 }
 0x132   : > { %1178 = vmatmul.bf16.gmra.mxu3 %v1086_v28  ;;  %2706 = vmatpush.bf16.msra.mxu2 %v2308_v36  ;;  %v2631_v36 = vld [vmem:[#allocation12 + $0x78] sm:$0xff] }
 0x133   : > { %1463 = vmatpush.bf16.msrb.mxu1 %v2316_v42  ;;  %v2629_v42 = vld [vmem:[#allocation12 + $0x68] sm:$0xff] }
 0x135   : > { %1433 = vmatpush.bf16.msrb.mxu3 %v2328_v12  ;;  %1883 = vmatpush.bf16.msra.mxu0 %v2631_v36  ;;  %v2645_v36 = vld [vmem:[#allocation12 + $0xe8] sm:$0xff] }
 0x136   : > { %1485 = vmatpush.bf16.msrb.mxu2 %v2432_v55  ;;  %v2632_v55 = vld [vmem:[#allocation12 + $0x80] sm:$0xff] }
 0x137   : > { %1912 = vmatpush.bf16.msra.mxu1 %v2639_v49 }
 0x139   : > { %1434 = vmatpush.bf16.msrb.mxu3 %v2312_v41  ;;  %v2636_v41 = vld [vmem:[#allocation12 + $0xa0] sm:$0xff]  ;;  %1884 = vmatpush.bf16.msra.mxu0 %v2630_v39 }
 0x13d   : > { %1854 = vmatpush.bf16.msra.mxu3 %v2623_v35  ;;  %1885 = vmatpush.bf16.msra.mxu0 %v2629_v42 }
 0x141   : > { %1855 = vmatpush.bf16.msra.mxu3 %v2622_v37 }
 0x145   : > { %1856 = vmatpush.bf16.msra.mxu3 %v2621_v21 }
 0x149   : > { %1857 = vmatpush.bf16.msra.mxu3 %v2620_v24 }
 0x17d   : > { %v1164_v6 = vpop.f32.mrf.mxu1 }
 0x17e   : > { %v1165_v46 = vadd.f32 %v3516_v44, %v1164_v6  ;;  %v2619_v6 = vld [vmem:[#allocation12 + $0x18] sm:$0xff] }
 0x17f   : > { %1858 = vmatpush.bf16.msra.mxu3 %v2619_v6  ;;  %v2644_v6 = vld [vmem:[#allocation12 + $0xe0] sm:$0xff] }
 0x180   : > { %v3522_v52 = vadd.f32 %v2650_v9, %v1165_v46  ;;  %v2628_v46 = vld [vmem:[#allocation12 + $0x60] sm:$0xff] }
 0x181   : > { %1886 = vmatpush.bf16.msra.mxu0 %v2628_v46 }
 0x185   : > { %v1166_v51 = vpop.f32.mrf.mxu1 }
 0x186   : > { %v1167_v50 = vadd.f32 %v3516_v44, %v1166_v51  ;;  %v2618_v51 = vld [vmem:[#allocation12 + $0x10] sm:$0xff] }
 0x187   : > { %1859 = vmatpush.bf16.msra.mxu3 %v2618_v51 }
 0x188   : > { %v3526_v53 = vadd.f32 %v2651_v14, %v1167_v50  ;;  %v2609_v14 = vld [vmem:[#allocation10 + $0xcc] sm:$0xf]  ;;  %v2634_v50 = vld [vmem:[#allocation12 + $0x90] sm:$0xff] }
 0x189   : > { %v2416_v43 = vor.u32 %v2609_v14, %v2413_v58  ;;  %v3575_v14 = vld [vmem:[%s3658_s10] sm:$0xf] }
 0x18a   : > { %v3530_v54 = vpack.c.bf16 %v3526_v53, %v3522_v52  ;;  %v3578_v60 = vperm.slane %v3575_v14, 0  ;;  %v3581_v40 = vperm.slane %v3575_v14, 2 }
 0x18b   : > { %1486 = vmatpush.bf16.msrb.mxu2 %v2416_v43 }
 0x18c   : > { %1406 = vmatmul.bf16.vlgmr.msrb.gmra.mxu0 %v3530_v54  ;;  %1435 = vmatmul.bf16.vlgmr.msrb.gmra.mxu3 %v3530_v54 }
 0x18d   : > { %1464 = vmatmul.bf16.vlgmr.msrb.gmra.mxu1 %v3530_v54  ;;  %v1169_v27 = vpop.f32.mrf.mxu1 }
 0x18e   : > { %v1170_v9 = vadd.f32 %v3516_v44, %v1169_v27  ;;  %v2617_v27 = vld [vmem:[#allocation12 + $0x8] sm:$0xff] }
 0x18f   : > { %1487 = vmatpush.bf16.msrb.mxu2 %v2400_v0  ;;  %1860 = vmatpush.bf16.msra.mxu3 %v2617_v27 }
 0x190   : > { %v3539_v28 = vadd.f32 %v2654_v15, %v1170_v9  ;;  %v2616_v9 = vld [vmem:[#allocation12] sm:$0xff] }
 0x193   : > { %1488 = vmatpush.bf16.msrb.mxu2 %v2384_v2  ;;  %1861 = vmatpush.bf16.msra.mxu3 %v2616_v9  ;;  %v3586_v2 = vperm.slane %v3575_v14, 1 }
 0x195   : > { %v1171_v57 = vpop.f32.mrf.mxu1 }
 0x196   : > { %v1172_v7 = vadd.f32 %v3516_v44, %v1171_v57  ;;  %v2625_v57 = vld [vmem:[#allocation12 + $0x48] sm:$0xff] }
 0x197   : > { %1489 = vmatpush.bf16.msrb.mxu2 %v2368_v1 }
 0x198   : > { %v3543_v61 = vadd.f32 %v2655_v18, %v1172_v7  ;;  %v2593_v18 = vld [vmem:[#allocation10 + $0x4c] sm:$0xf]  ;;  %v2624_v7 = vld [vmem:[#allocation12 + $0x40] sm:$0xff] }
 0x199   : > { %v2352_v62 = vor.u32 %v2593_v18, %v2349_v4 }
 0x19a   : > { %v1193_v63 = vpack.c.bf16 %v3543_v61, %v3539_v28 }
 0x19b   : > { %1490 = vmatpush.bf16.msrb.mxu2 %v2352_v62 }
 0x19c   : > { %1411 = vmatmul.bf16.gmra.mxu0 %v1193_v63  ;;  %1440 = vmatmul.bf16.gmra.mxu3 %v1193_v63 }
 0x19d   : > { %1469 = vmatmul.bf16.gmra.mxu1 %v1193_v63 }
 0x19f   : > { %1491 = vmatpush.bf16.msrb.mxu2 %v2336_v10 }
 0x1a3   : > { %v1174_v15 = vpop.f32.mrf.mxu3  ;;  %1492 = vmatpush.bf16.msrb.mxu2 %v2320_v25 }
 0x1a4   : > { %v1175_v33 = vadd.f32 %v3516_v44, %v1174_v15 }
 0x1a6   : > { %v3551_v59 = vadd.f32 %v2658_v19, %v1175_v33  ;;  %v2646_v33 = vld [vmem:[#allocation12 + $0xf0] sm:$0xff] }
 0x1ab   : > { %v1176_v8 = vpop.f32.mrf.mxu3 }
 0x1ac   : > { %v1177_v11 = vadd.f32 %v3516_v44, %v1176_v8 }
 0x1ae   : > { %v3555_v20 = vadd.f32 %v2659_v22, %v1177_v11 }
 0x1b0   : > { %v1194_v29 = vpack.c.bf16 %v3555_v20, %v3551_v59 }
 0x1b2   : > { %1416 = vmatmul.bf16.vlgmr.msra.gmra.mxu2 %v1194_v29  ;;  %1445 = vmatmul.bf16.gmra.mxu3 %v1194_v29 }
 0x1b3   : > { %1474 = vmatmul.bf16.gmra.mxu1 %v1194_v29 }
 0x1b5   : > { %v1179_v32 = vpop.f32.mrf.mxu3 }
 0x1b6   : > { %v1180_v12 = vadd.f32 %v3516_v44, %v1179_v32 }
 0x1b8   : > { %v3563_v17 = vadd.f32 %v2662_v23, %v1180_v12  ;;  %v2638_v23 = vld [vmem:[#allocation12 + $0xb0] sm:$0xff] }
 0x1b9   : > { %1913 = vmatpush.bf16.msra.mxu1 %v2638_v23 }
 0x1bd   : > { %v1181_v34 = vpop.f32.mrf.mxu3 }
 0x1be   : > { %v1182_v19 = vadd.f32 %v3516_v44, %v1181_v34  ;;  %v2635_v44 = vld [vmem:[#allocation12 + $0x98] sm:$0xff] }
 0x1c0   : > { %v3567_v22 = vadd.f32 %v2663_v26, %v1182_v19  ;;  %v2637_v26 = vld [vmem:[#allocation12 + $0xa8] sm:$0xff] }
 0x1c1   : > { %1914 = vmatpush.bf16.msra.mxu1 %v2637_v26 }
 0x1c2   : > { %v1195_v48 = vpack.c.bf16 %v3567_v22, %v3563_v17 }
 0x1c4   : > { %1421 = vmatmul.bf16.gmra.mxu2 %v1195_v48  ;;  %1450 = vmatmul.bf16.gmra.mxu3 %v1195_v48 }
 0x1c5   : > { %1479 = vmatmul.bf16.gmra.mxu1 %v1195_v48 }
 0x1c6   : > { %1915 = vmatpush.bf16.msra.mxu1 %v2636_v41 }
 0x1ca   : > { %1916 = vmatpush.bf16.msra.mxu1 %v2635_v44 }
 0x1ce   : > { %1917 = vmatpush.bf16.msra.mxu1 %v2634_v50 }
 0x1d2   : > { %1918 = vmatpush.bf16.msra.mxu1 %v2633_v56 }
 0x1d4   : > { %1493 = vmatmul.bf16.vlgmr.msrb.gmra.mxu2 %v3530_v54  ;;  %v2627_v54 = vld [vmem:[#allocation12 + $0x58] sm:$0xff] }
 0x1d5   : > { %1887 = vmatpush.bf16.msra.mxu0 %v2627_v54 }
 0x1d6   : > { %1919 = vmatpush.bf16.msra.mxu1 %v2632_v55 }
 0x1d9   : > { %1888 = vmatpush.bf16.msra.mxu0 %v2626_v30 }
 0x1dd   : > { %1889 = vmatpush.bf16.msra.mxu0 %v2625_v57 }
 0x1e1   : > { %1890 = vmatpush.bf16.msra.mxu0 %v2624_v7 }
 0x1e4   : > { %1498 = vmatmul.bf16.gmra.mxu2 %v1193_v63  ;;  %v2647_v63 = vld [vmem:[#allocation12 + $0xf8] sm:$0xff] }
 0x1e5   : > { %1941 = vmatpush.bf16.msra.mxu2 %v2647_v63 }
 0x1e9   : > { %1942 = vmatpush.bf16.msra.mxu2 %v2646_v33 }
 0x1ed   : > { %1943 = vmatpush.bf16.msra.mxu2 %v2645_v36 }
 0x1f1   : > { %1944 = vmatpush.bf16.msra.mxu2 %v2644_v6 }
 0x1f4   : > { %1503 = vmatmul.bf16.gmra.mxu2 %v1194_v29 }
 0x204   : > { %1508 = vmatmul.bf16.gmra.mxu2 %v1195_v48 }
 0x209   : > { %v1407_v58 = vpop.f32.mrf.mxu0 }
 0x20a   : > { %v1465_v43 = vpop.f32.mrf.mxu1  ;;  %v1408_v0 = vadd.f32 %v1407_v58, %v3578_v60 }
 0x20b   : > { %v1466_v47 = vadd.f32 %v1465_v43, %v3581_v40 }
 0x20c   : > { %v1514_v31 = vmul.f32 0.1, %v1408_v0 }
 0x20d   : > { %v1516_v1 = vmul.f32 0.1, %v1466_v47 }
 0x20e   : > { %v1546_v8 = vmax.f32 %v1408_v0, %v1514_v31  ;;  %v2643_v0 = vld [vmem:[#allocation12 + $0xd8] sm:$0xff] }
 0x20f   : > { %v1436_v3 = vpop.f32.mrf.mxu3  ;;  %v1548_v11 = vmax.f32 %v1466_v47, %v1516_v1  ;;  %1945 = vmatpush.bf16.msra.mxu2 %v2643_v0 }
 0x210   : > { %v1437_v62 = vadd.f32 %v1436_v3, %v3586_v2 }
 0x211   : > { %v1409_v15 = vpop.f32.mrf.mxu0 }
 0x212   : > { %v1410_v13 = vadd.f32 %v1409_v15, %v3578_v60  ;;  %v1467_v18 = vpop.f32.mrf.mxu1  ;;  %v1515_v25 = vmul.f32 0.1, %v1437_v62 }
 0x213   : > { %v1468_v4 = vadd.f32 %v1467_v18, %v3581_v40 }
 0x214   : > { %v1518_v5 = vmul.f32 0.1, %v1410_v13  ;;  %v1547_v35 = vmax.f32 %v1437_v62, %v1515_v25 }
 0x215   : > { %v1520_v38 = vmul.f32 0.1, %v1468_v4 }
 0x216   : > { %v1550_v10 = vmax.f32 %v1410_v13, %v1518_v5  ;;  %v2642_v13 = vld [vmem:[#allocation12 + $0xd0] sm:$0xff] }
 0x217   : > { %v1552_v45 = vmax.f32 %v1468_v4, %v1520_v38  ;;  %v1438_v16 = vpop.f32.mrf.mxu3  ;;  %1946 = vmatpush.bf16.msra.mxu2 %v2642_v13 }
 0x218   : > { %v1578_v29 = vpack.c.bf16 %v1550_v10, %v1546_v8  ;;  %v1439_v32 = vadd.f32 %v1438_v16, %v3586_v2 }
 0x219   : > { %v1580_v12 = vpack.c.bf16 %v1552_v45, %v1548_v11  ;;  %v1412_v34 = vpop.f32.mrf.mxu0  ;;  %v2641_v11 = vld [vmem:[#allocation12 + $0xc8] sm:$0xff] }
 0x21a   : > { %v1519_v19 = vmul.f32 0.1, %v1439_v32  ;;  %v1470_v48 = vpop.f32.mrf.mxu1  ;;  %1862 = vmatmul.bf16.vlgmr.msra.gmra.mxu3 %v1578_v29  ;;  %v1413_v23 = vadd.f32 %v1412_v34, %v3578_v60 }
 0x21b   : > { %1920 = vmatmul.bf16.vlgmr.msra.gmra.mxu1 %v1580_v12  ;;  %v1471_v21 = vadd.f32 %v1470_v48, %v3581_v40  ;;  %1947 = vmatpush.bf16.msra.mxu2 %v2641_v11 }
 0x21c   : > { %v1551_v49 = vmax.f32 %v1439_v32, %v1519_v19  ;;  %v1522_v24 = vmul.f32 0.1, %v1413_v23 }
 0x21d   : > { %v1524_v44 = vmul.f32 0.1, %v1471_v21 }
 0x21e   : > { %v1579_v37 = vpack.c.bf16 %v1551_v49, %v1547_v35  ;;  %v1554_v27 = vmax.f32 %v1413_v23, %v1522_v24 }
 0x21f   : > { %v1441_v26 = vpop.f32.mrf.mxu3  ;;  %v1556_v30 = vmax.f32 %v1471_v21, %v1524_v44 }
 0x220   : > { %1891 = vmatmul.bf16.vlgmr.msra.gmra.mxu0 %v1579_v37  ;;  %v1442_v51 = vadd.f32 %v1441_v26, %v3586_v2 }
 0x221   : > { %v1414_v39 = vpop.f32.mrf.mxu0 }
 0x222   : > { %v1415_v41 = vadd.f32 %v1414_v39, %v3578_v60  ;;  %v1472_v42 = vpop.f32.mrf.mxu1  ;;  %v1523_v57 = vmul.f32 0.1, %v1442_v51 }
 0x223   : > { %v1473_v46 = vadd.f32 %v1472_v42, %v3581_v40 }
 0x224   : > { %v1526_v50 = vmul.f32 0.1, %v1415_v41  ;;  %v1555_v47 = vmax.f32 %v1442_v51, %v1523_v57 }
 0x225   : > { %v1528_v54 = vmul.f32 0.1, %v1473_v46 }
 0x226   : > { %v1558_v56 = vmax.f32 %v1415_v41, %v1526_v50  ;;  %v2640_v41 = vld [vmem:[#allocation12 + $0xc0] sm:$0xff] }
 0x227   : > { %v1560_v9 = vmax.f32 %v1473_v46, %v1528_v54  ;;  %v1443_v55 = vpop.f32.mrf.mxu3  ;;  %1948 = vmatpush.bf16.msra.mxu2 %v2640_v41 }
 0x228   : > { %v1444_v7 = vadd.f32 %v1443_v55, %v3586_v2  ;;  %v1582_v58 = vpack.c.bf16 %v1558_v56, %v1554_v27 }
 0x229   : > { %v1584_v43 = vpack.c.bf16 %v1560_v9, %v1556_v30 }
 0x22a   : > { %v1527_v63 = vmul.f32 0.1, %v1444_v7  ;;  %1867 = vmatmul.bf16.gmra.mxu3 %v1582_v58 }
 0x22b   : > { %1925 = vmatmul.bf16.gmra.mxu1 %v1584_v43 }
 0x22c   : > { %v1559_v3 = vmax.f32 %v1444_v7, %v1527_v63 }
 0x22e   : > { %v1583_v15 = vpack.c.bf16 %v1559_v3, %v1555_v47 }
 0x230   : > { %v1475_v31 = vpop.f32.mrf.mxu1  ;;  %1896 = vmatmul.bf16.gmra.mxu0 %v1583_v15 }
 0x231   : > { %v1476_v18 = vadd.f32 %v1475_v31, %v3581_v40 }
 0x233   : > { %v1532_v5 = vmul.f32 0.1, %v1476_v18 }
 0x235   : > { %v1417_v1 = vpop.f32.mrf.mxu2  ;;  %v1446_v4 = vpop.f32.mrf.mxu3  ;;  %v1564_v45 = vmax.f32 %v1476_v18, %v1532_v5 }
 0x236   : > { %v1418_v33 = vadd.f32 %v1417_v1, %v3578_v60  ;;  %v1447_v8 = vadd.f32 %v1446_v4, %v3586_v2 }
 0x238   : > { %v1477_v62 = vpop.f32.mrf.mxu1  ;;  %v1530_v32 = vmul.f32 0.1, %v1418_v33  ;;  %v1531_v12 = vmul.f32 0.1, %v1447_v8 }
 0x239   : > { %v1478_v38 = vadd.f32 %v1477_v62, %v3581_v40  ;;  %v1233_v62 = vperm.slane %v3575_v14, 3 }
 0x23a   : > { %v1562_v37 = vmax.f32 %v1418_v33, %v1530_v32  ;;  %v1563_v23 = vmax.f32 %v1447_v8, %v1531_v12 }
 0x23b   : > { %v1536_v10 = vmul.f32 0.1, %v1478_v38 }
 0x23d   : > { %v1568_v16 = vmax.f32 %v1478_v38, %v1536_v10  ;;  %v1419_v25 = vpop.f32.mrf.mxu2  ;;  %v1448_v29 = vpop.f32.mrf.mxu3 }
 0x23e   : > { %v1420_v34 = vadd.f32 %v1419_v25, %v3578_v60  ;;  %v1449_v19 = vadd.f32 %v1448_v29, %v3586_v2 }
 0x23f   : > { %v1588_v48 = vpack.c.bf16 %v1568_v16, %v1564_v45 }
 0x240   : > { %v1534_v35 = vmul.f32 0.1, %v1420_v34  ;;  %v1535_v49 = vmul.f32 0.1, %v1449_v19 }
 0x241   : > { %1930 = vmatmul.bf16.gmra.mxu1 %v1588_v48 }
 0x242   : > { %v1480_v36 = vpop.f32.mrf.mxu1  ;;  %v1566_v21 = vmax.f32 %v1420_v34, %v1534_v35  ;;  %v1567_v26 = vmax.f32 %v1449_v19, %v1535_v49 }
 0x243   : > { %v1481_v42 = vadd.f32 %v1480_v36, %v3581_v40 }
 0x244   : > { %v1586_v39 = vpack.c.bf16 %v1566_v21, %v1562_v37  ;;  %v1587_v24 = vpack.c.bf16 %v1567_v26, %v1563_v23 }
 0x245   : > { %v1540_v51 = vmul.f32 0.1, %v1481_v42 }
 0x246   : > { %1872 = vmatmul.bf16.gmra.mxu3 %v1586_v39  ;;  %1901 = vmatmul.bf16.gmra.mxu0 %v1587_v24 }
 0x247   : > { %v1422_v6 = vpop.f32.mrf.mxu2  ;;  %v1451_v44 = vpop.f32.mrf.mxu3  ;;  %v1572_v30 = vmax.f32 %v1481_v42, %v1540_v51 }
 0x248   : > { %v1423_v54 = vadd.f32 %v1422_v6, %v3578_v60  ;;  %v1452_v27 = vadd.f32 %v1451_v44, %v3586_v2 }
 0x24a   : > { %v1482_v46 = vpop.f32.mrf.mxu1  ;;  %v1538_v7 = vmul.f32 0.1, %v1423_v54  ;;  %v1539_v58 = vmul.f32 0.1, %v1452_v27 }
 0x24b   : > { %v1483_v50 = vadd.f32 %v1482_v46, %v3581_v40 }
 0x24c   : > { %v1570_v40 = vmax.f32 %v1423_v54, %v1538_v7  ;;  %v1571_v15 = vmax.f32 %v1452_v27, %v1539_v58 }
 0x24d   : > { %v1544_v56 = vmul.f32 0.1, %v1483_v50 }
 0x24f   : > { %v1576_v9 = vmax.f32 %v1483_v50, %v1544_v56  ;;  %v1424_v55 = vpop.f32.mrf.mxu2  ;;  %v1453_v57 = vpop.f32.mrf.mxu3 }
 0x250   : > { %v1425_v43 = vadd.f32 %v1424_v55, %v3578_v60  ;;  %v1454_v63 = vadd.f32 %v1453_v57, %v3586_v2  ;;  %v3611_v55 = vld [vmem:[#allocation13] ss:$0 sm:$0xff] }
 0x251   : > { %v1592_v0 = vpack.c.bf16 %v1576_v9, %v1572_v30 }
 0x252   : > { %v1542_v47 = vmul.f32 0.1, %v1425_v43  ;;  %v1543_v3 = vmul.f32 0.1, %v1454_v63 }
 0x253   : > { %1935 = vmatmul.bf16.gmra.mxu1 %v1592_v0 }
 0x254   : > { %v1574_v31 = vmax.f32 %v1425_v43, %v1542_v47  ;;  %v1575_v13 = vmax.f32 %v1454_v63, %v1543_v3 }
 0x256   : > { %v1590_v18 = vpack.c.bf16 %v1574_v31, %v1570_v40  ;;  %v1591_v1 = vpack.c.bf16 %v1575_v13, %v1571_v15 }
 0x257   : > { %v1494_v4 = vpop.f32.mrf.mxu2 }
 0x258   : > { %1877 = vmatmul.bf16.gmra.mxu3 %v1590_v18  ;;  %1906 = vmatmul.bf16.gmra.mxu0 %v1591_v1  ;;  %v1495_v5 = vadd.f32 %v1494_v4, %v1233_v62 }
 0x25a   : > { %v1517_v60 = vmul.f32 0.1, %v1495_v5 }
 0x25c   : > { %v1549_v8 = vmax.f32 %v1495_v5, %v1517_v60 }
 0x25f   : > { %v1496_v38 = vpop.f32.mrf.mxu2 }
 0x260   : > { %v1497_v33 = vadd.f32 %v1496_v38, %v1233_v62 }
 0x262   : > { %v1521_v2 = vmul.f32 0.1, %v1497_v33 }
 0x264   : > { %v1553_v10 = vmax.f32 %v1497_v33, %v1521_v2 }
 0x266   : > { %v1581_v11 = vpack.c.bf16 %v1553_v10, %v1549_v8 }
 0x267   : > { %v1499_v45 = vpop.f32.mrf.mxu2 }
 0x268   : > { %1949 = vmatmul.bf16.vlgmr.msra.gmra.mxu2 %v1581_v11  ;;  %v1500_v16 = vadd.f32 %v1499_v45, %v1233_v62 }
 0x26a   : > { %v1525_v29 = vmul.f32 0.1, %v1500_v16 }
 0x26c   : > { %v1557_v34 = vmax.f32 %v1500_v16, %v1525_v29 }
 0x26f   : > { %v1501_v25 = vpop.f32.mrf.mxu2 }
 0x270   : > { %v1502_v32 = vadd.f32 %v1501_v25, %v1233_v62 }
 0x272   : > { %v1529_v12 = vmul.f32 0.1, %v1502_v32 }
 0x274   : > { %v1561_v19 = vmax.f32 %v1502_v32, %v1529_v12 }
 0x276   : > { %v1585_v14 = vpack.c.bf16 %v1561_v19, %v1557_v34 }
 0x277   : > { %v1504_v48 = vpop.f32.mrf.mxu2 }
 0x278   : > { %1954 = vmatmul.bf16.gmra.mxu2 %v1585_v14  ;;  %v1505_v35 = vadd.f32 %v1504_v48, %v1233_v62 }
 0x27a   : > { %v1533_v36 = vmul.f32 0.1, %v1505_v35 }
 0x27c   : > { %v1565_v21 = vmax.f32 %v1505_v35, %v1533_v36 }
 0x27f   : > { %v1506_v49 = vpop.f32.mrf.mxu2 }
 0x280   : > { %v1507_v37 = vadd.f32 %v1506_v49, %v1233_v62 }
 0x282   : > { %v1537_v23 = vmul.f32 0.1, %v1507_v37 }
 0x284   : > { %v1569_v26 = vmax.f32 %v1507_v37, %v1537_v23 }
 0x286   : > { %v1589_v39 = vpack.c.bf16 %v1569_v26, %v1565_v21 }
 0x287   : > { %v1509_v24 = vpop.f32.mrf.mxu2 }
 0x288   : > { %1959 = vmatmul.bf16.gmra.mxu2 %v1589_v39  ;;  %v1510_v41 = vadd.f32 %v1509_v24, %v1233_v62 }
 0x28a   : > { %v1541_v6 = vmul.f32 0.1, %v1510_v41 }
 0x28c   : > { %v1573_v51 = vmax.f32 %v1510_v41, %v1541_v6 }
 0x28f   : > { %v1511_v42 = vpop.f32.mrf.mxu2 }
 0x290   : > { %v1512_v44 = vadd.f32 %v1511_v42, %v1233_v62 }
 0x292   : > { %v1545_v46 = vmul.f32 0.1, %v1512_v44 }
 0x294   : > { %v1577_v50 = vmax.f32 %v1512_v44, %v1545_v46 }
 0x296   : > { %v1593_v54 = vpack.c.bf16 %v1577_v50, %v1573_v51 }
 0x298   : > { %1964 = vmatmul.bf16.gmra.mxu2 %v1593_v54  ;;  %v1921_v30 = vpop.f32.mrf.mxu1 }
 0x29d   : > { %v1863_v27 = vpop.f32.mrf.mxu3  ;;  %v1892_v56 = vpop.f32.mrf.mxu0 }
 0x29e   : > { %v1864_v57 = vadd.f32 %v3611_v55, %v1863_v27 }
 0x2a0   : > { %v1893_v58 = vadd.f32 %v1892_v56, %v1864_v57  ;;  %v1923_v43 = vpop.f32.mrf.mxu1 }
 0x2a2   : > { %v1922_v3 = vadd.f32 %v1921_v30, %v1893_v58 }
 0x2a5   : > { %v1865_v9 = vpop.f32.mrf.mxu3  ;;  %v1894_v7 = vpop.f32.mrf.mxu0 }
 0x2a6   : > { %v1866_v0 = vadd.f32 %v3611_v55, %v1865_v9 }
 0x2a8   : > { %v1895_v40 = vadd.f32 %v1894_v7, %v1866_v0  ;;  %v1926_v13 = vpop.f32.mrf.mxu1 }
 0x2aa   : > { %v1924_v1 = vadd.f32 %v1923_v43, %v1895_v40 }
 0x2ad   : > { %v1868_v63 = vpop.f32.mrf.mxu3  ;;  %v1897_v31 = vpop.f32.mrf.mxu0 }
 0x2ae   : > { %v1869_v5 = vadd.f32 %v3611_v55, %v1868_v63 }
 0x2b0   : > { %v1898_v2 = vadd.f32 %v1897_v31, %v1869_v5  ;;  %v1928_v34 = vpop.f32.mrf.mxu1 }
 0x2b2   : > { %v1927_v12 = vadd.f32 %v1926_v13, %v1898_v2 }
 0x2b5   : > { %v1870_v4 = vpop.f32.mrf.mxu3  ;;  %v1899_v10 = vpop.f32.mrf.mxu0 }
 0x2b6   : > { %v1871_v11 = vadd.f32 %v3611_v55, %v1870_v4 }
 0x2b8   : > { %v1900_v19 = vadd.f32 %v1899_v10, %v1871_v11 }
 0x2ba   : > { %v1929_v49 = vadd.f32 %v1928_v34, %v1900_v19 }
 0x2be   : > { %v1931_v37 = vpop.f32.mrf.mxu1 }
 0x2c3   : > { %v1902_v48 = vpop.f32.mrf.mxu0 }
 0x2c6   : > { %v1933_v30 = vpop.f32.mrf.mxu1 }
 0x2c9   : > { %v1873_v25 = vpop.f32.mrf.mxu3 }
 0x2cb   : > { %v1904_v44 = vpop.f32.mrf.mxu0 }
 0x2d1   : > { %v1875_v23 = vpop.f32.mrf.mxu3 }
 0x2d2   : > { %v1876_v41 = vadd.f32 %v3611_v55, %v1875_v23 }
 0x2d4   : > { %v1905_v27 = vadd.f32 %v1904_v44, %v1876_v41 }
 0x2d5   : > { %v1907_v7 = vpop.f32.mrf.mxu0 }
 0x2d6   : > { %v1934_v57 = vadd.f32 %v1933_v30, %v1905_v27 }
 0x2db   : > { %v1878_v54 = vpop.f32.mrf.mxu3 }
 0x2dc   : > { %v1879_v43 = vadd.f32 %v3611_v55, %v1878_v54 }
 0x2eb   : > { %v1950_v47 = vpop.f32.mrf.mxu2 }
 0x2ec   : > { %v1951_v15 = vadd.f32 %v1950_v47, %v1922_v3  ;;  %v1880_v47 = vpop.f32.mrf.mxu3  ;;  %v1908_v3 = vadd.f32 %v1907_v7, %v1879_v43 }
 0x2ee   : > { %v1970_v18 = vmul.f32 0.1, %v1951_v15 }
 0x2f0   : > { %v1978_v60 = vmax.f32 %v1951_v15, %v1970_v18  ;;  %v1881_v15 = vadd.f32 %v3611_v55, %v1880_v47 }
 0x2f2   : > { %v1986_v45 = vadd.f32 %v1978_v60, %v3522_v52 }
 0x2f3   : > { %v1952_v62 = vpop.f32.mrf.mxu2 }
 0x2f4   : > { %v1953_v38 = vadd.f32 %v1952_v62, %v1924_v1  ;;  %v1909_v62 = vpop.f32.mrf.mxu0 }
 0x2f5   : > { %v1910_v5 = vadd.f32 %v1909_v62, %v1881_v15 }
 0x2f6   : > { %v1971_v33 = vmul.f32 0.1, %v1953_v38 }
 0x2f8   : > { %v1979_v8 = vmax.f32 %v1953_v38, %v1971_v33 }
 0x2fa   : > { %v1987_v16 = vadd.f32 %v1979_v8, %v3526_v53  ;;  %v1874_v53 = vadd.f32 %v3611_v55, %v1873_v25 }
 0x2fb   : > { %v1955_v29 = vpop.f32.mrf.mxu2 }
 0x2fc   : > { %v2667_v32 = vpack.c.bf16 %v1987_v16, %v1986_v45  ;;  %v1956_v14 = vadd.f32 %v1955_v29, %v1927_v12  ;;  %v1903_v39 = vadd.f32 %v1902_v48, %v1874_v53 }
 0x2fe   : > { %2668 = vst [vmem:[%s3623_s15] sm:$0xff] %v2667_v32   ;;  %v1972_v35 = vmul.f32 0.1, %v1956_v14  ;;  %v1932_v50 = vadd.f32 %v1931_v37, %v1903_v39 }
 0x300   : > { %v1980_v21 = vmax.f32 %v1956_v14, %v1972_v35 }
 0x302   : > { %v1988_v42 = vadd.f32 %v1980_v21, %v3539_v28 }
 0x303   : > { %v1957_v52 = vpop.f32.mrf.mxu2 }
 0x304   : > { %v1958_v36 = vadd.f32 %v1957_v52, %v1929_v49 }
 0x306   : > { %v1973_v26 = vmul.f32 0.1, %v1958_v36 }
 0x308   : > { %v1981_v24 = vmax.f32 %v1958_v36, %v1973_v26 }
 0x30a   : > { %v1989_v6 = vadd.f32 %v1981_v24, %v3543_v61  ;;  %v1936_v61 = vpop.f32.mrf.mxu1 }
 0x30b   : > { %v1960_v46 = vpop.f32.mrf.mxu2  ;;  %v1937_v4 = vadd.f32 %v1936_v61, %v1908_v3 }
 0x30c   : > { %v2672_v51 = vpack.c.bf16 %v1989_v6, %v1988_v42  ;;  %v1961_v56 = vadd.f32 %v1960_v46, %v1932_v50 }
 0x30e   : > { %2688 = vst [vmem:[%s3623_s15 + $0x8] sm:$0xff] %v2672_v51   ;;  %v1974_v9 = vmul.f32 0.1, %v1961_v56 }
 0x310   : > { %v1982_v28 = vmax.f32 %v1961_v56, %v1974_v9 }
 0x312   : > { %v1990_v31 = vadd.f32 %v1982_v28, %v3551_v59  ;;  %v1938_v60 = vpop.f32.mrf.mxu1 }
 0x313   : > { %v1962_v58 = vpop.f32.mrf.mxu2  ;;  %v1939_v2 = vadd.f32 %v1938_v60, %v1910_v5 }
 0x314   : > { %v1963_v63 = vadd.f32 %v1962_v58, %v1934_v57 }
 0x316   : > { %v1975_v0 = vmul.f32 0.1, %v1963_v63 }
 0x318   : > { %v1983_v40 = vmax.f32 %v1963_v63, %v1975_v0 }
 0x31a   : > { %v1991_v13 = vadd.f32 %v1983_v40, %v3555_v20 }
 0x31b   : > { %v1965_v18 = vpop.f32.mrf.mxu2 }
 0x31c   : > { %v2677_v1 = vpack.c.bf16 %v1991_v13, %v1990_v31  ;;  %v1966_v38 = vadd.f32 %v1965_v18, %v1937_v4 }
 0x31e   : > { %2689 = vst [vmem:[%s3623_s15 + $0x10] sm:$0xff] %v2677_v1   ;;  %v1976_v33 = vmul.f32 0.1, %v1966_v38 }
 0x320   : > { %v1984_v11 = vmax.f32 %v1966_v38, %v1976_v33 }
 0x322   : > { %v1992_v59 = vadd.f32 %v1984_v11, %v3563_v17 }
 0x323   : > { %v1967_v8 = vpop.f32.mrf.mxu2 }
 0x324   : > { %v1968_v10 = vadd.f32 %v1967_v8, %v1939_v2 }
 0x326   : > { %v1977_v45 = vmul.f32 0.1, %v1968_v10 }
 0x328   : > { %v1985_v55 = vmax.f32 %v1968_v10, %v1977_v45 }
 0x32a   : > { %v1993_v20 = vadd.f32 %v1985_v55, %v3567_v22 }
 0x32c   : > { %v2682_v16 = vpack.c.bf16 %v1993_v20, %v1992_v59 }
 0x32e   : > { %2690 = vst [vmem:[%s3623_s15 + $0x18] sm:$0xff] %v2682_v16  }
 0x32f PF: > { %s3675_s3 = sld [smem:[#allocation20_spill]]  ;;  %s3676_s25 = smov %s3099_s26 }
 0x330   : > { %s3677_s26 = smov %s3679_s28 }
 0x335   : > { %s28_s27 = sadd.s32 1, %s3675_s3  }
 0x336   : > { %p25_p8 = scmp.ge.s32.totalorder %s28_s27, 4  }
 0x338   :  { %27 = sbr.rel (!%p25_p8) target bundleno = 11 (0xb), region = 141 }
 0x33d   :  { %2040 = vsyncpa [#allocation3], 1 }
 0x33e   :  { %2042 = vsyncpa [#allocation3 + $0x1], 1 }
 0x33f   :  { %2043 = vsyncpa [#allocation5], 1 }
 0x340   :  { %2044 = vsyncpa [#allocation8], 1 }
 0x341   :  { %2045 = vsyncpa [#allocation11], 1 }
 0x342   :  { %2046 = vsyncpa [#allocation14], 1 }

// kernel: recon_generation_forward.7
= control target key start
LH: loop header
LB: loop body
LE: loop exit
PB: predicated region body
PF: predicated region fallthrough
CT: control target
= control target key end

     0   :  { %s3456_s0 = inlined_call_operand.vmem [shape: bf16[2,8,8,128], index: 0, kind: input, shape index: {}, may-alias: {0,1,2}]   ;;  %s3457_s1 = inlined_call_operand.vmem [shape: bf16[2,8,8,128], index: 1, kind: input, shape index: {}, may-alias: {0,1,2}]   ;;  %s3458_s2 = inlined_call_operand.vmem [shape: bf16[2,8,8,128], index: 2, kind: input, shape index: {}, may-alias: {0,1,2}]   ;;  %s3459_s3 = inlined_call_operand.vmem [shape: bf16[128,128], index: 3, kind: input, shape index: {}]   ;;  %s3460_s4 = inlined_call_operand.vmem [shape: f32[1,128], index: 4, kind: input, shape index: {}]   ;;  %s3461_s5 = inlined_call_operand.vmem [shape: f32[9,128], index: 5, kind: input, shape index: {}]   ;;  %s3462_s6 = inlined_call_operand.vmem [shape: f32[1,128], index: 6, kind: input, shape index: {}]   ;;  %s3463_s7 = inlined_call_operand.vmem [shape: bf16[128,128], index: 7, kind: input, shape index: {}]   ;;  %s3464_s8 = inlined_call_operand.vmem [shape: f32[1,128], index: 8, kind: input, shape index: {}]   ;;  %s3465_s9 = inlined_call_operand.hbm [shape: bf16[128,512], index: 9, kind: input, shape index: {}]   ;;  %s3466_s10 = inlined_call_operand.vmem [shape: f32[1,512], index: 10, kind: input, shape index: {}]   ;;  %s3467_s11 = inlined_call_operand.hbm [shape: bf16[512,128], index: 11, kind: input, shape index: {}]   ;;  %s3468_s12 = inlined_call_operand.vmem [shape: f32[1,128], index: 12, kind: input, shape index: {}]   ;;  %s3469_s13 = inlined_call_operand.vmem [shape: bf16[128,128], index: 13, kind: input, shape index: {}]   ;;  %s3470_s14 = inlined_call_operand.vmem [shape: f32[1,128], index: 14, kind: input, shape index: {}]   ;;  %s3471_s15 = inlined_call_operand.vmem [shape: bf16[2,8,8,128], index: 15, kind: output, shape index: {}]  }
   0x1   :  { %3473 = sst [smem:[#allocation10_spill]] %s3465_s9 }
   0x2   :  { %20 = vsyncpa [#allocation3], 0 }
   0x3   :  { %21 = vsyncpa [#allocation5], 0  ;;  %s2983_s18 = smov 0   ;;  %s2985_s19 = smov 0  }
   0x4   :  { %s2987_s20 = smov 0  }
   0x5 LB: > { %3474 = sst [smem:[#allocation8_spill]] %s2891_s19  ;;  %s2235_s21 = sadd.s32 4294967295, %s2895_s20   ;;  %s2895_s20 = sphi %s2987_s20, %s27_s20   ;;  %s2891_s19 = sphi %s2985_s19, %s3480_s19   ;;  %s2887_s18 = sphi %s2983_s18, %s3479_s18  }
   0x6   : > { %s39_s22 = sadd.s32 1, %s2891_s19  ;;  %p2237_p1 = scmp.ge.s32.totalorder %s2895_s20, 1 }
   0x7   : > { %p41_p0 = scmp.ge.s32.totalorder %s39_s22, 2  ;;  %p424_p2 = scmp.lt.s32.totalorder %s2895_s20, 3 }
   0x8   : > { %p3008_p4 = scmp.eq.s32.totalorder %s2235_s21, 0  ;;  %s3478_s9 = sld [smem:[#allocation10_spill]] }
   0x9   : > { %s3482_s22 = smov (%p41_p0, %s39_s22), 0  ;;  %p3004_p3 = pnand %p2237_p1, %p424_p2 }
   0xa   : > { %3475 = sst [smem:[#allocation9_spill]] %s3482_s22  ;;  %s2897_s28 = smov [#allocation2]  }
   0xb   : > { %p2758_p5 = pneg %p3004_p3  ;;  %s455_s29 = sshll.u32 %s2897_s28, 4  ;;  %s456_s29 = int_to_ptr.vmem [resolvable:$true] %s455_s29 }
   0xc   : > { %s470_s17 = sshll.u32 %s3467_s11, 4  ;;  %s2898_s21 = smov 256   ;;  %s471_s17 = int_to_ptr.hbm [resolvable:$true] %s470_s17 }
   0xd   : > { %p2759_p6 = pnand %p3008_p4, %p2758_p5  ;;  %s2899_s22 = smov 16  }
   0xe   : > { %s453_s27 = sshll.u32 %s3478_s9, 4  ;;  %s2900_s19 = smov [#allocation4]   ;;  %s454_s27 = int_to_ptr.hbm [resolvable:$true] %s453_s27 }
   0xf   : > { %2761 = dma.hbm_to_vmem [thread:$0]  (!%p2759_p6), %s454_s27, 4096, %s456_s29, [#allocation3], %s2898_s21, %s2898_s21, %s2899_s22  }
  0x10   : > { %s472_s25 = sshll.u32 %s2900_s19, 4  ;;  %s2901_s26 = smov 64   ;;  %s473_s25 = int_to_ptr.vmem [resolvable:$true] %s472_s25 }
  0x11   : > { %s2902_s9 = smov 4   ;;  %548 = sbr.rel (%p3004_p3) target bundleno = 929 (0x3a1), region = 80 }
  0x12   : > { %2764 = dma.hbm_to_vmem [thread:$0]  (!%p2759_p6), %s471_s17, 4096, %s473_s25, [#allocation5], %s2901_s26, %s2901_s26, %s2902_s9  }
  0x16   : > { %2878 = dma.done.wait (%p3008_p4), [#allocation3], 4096  }
  0x17   : > { %2880 = vsyncadd (%p3008_p4), [#allocation3], 4294963200 }
  0x18   : > { %2882 = dma.done.wait (%p3008_p4), [#allocation5], 4096  }
  0x19   : > { %2884 = vsyncadd (%p3008_p4), [#allocation5], 4294963200  ;;  %v2618_v0 = vld [vmem:[%s3459_s3 + $0x38] sm:$0xff]  ;;  %v2617_v1 = vld [vmem:[%s3459_s3 + $0x30] sm:$0xff]  ;;  %p635_p7 = scmp.lt.s32.totalorder %s2887_s18, 1  ;;  %v839_v38 = vlaneseq }
  0x1a   : > { %779 = vmatpush.bf16.msra.mxu0 %v2618_v0  ;;  %v2616_v2 = vld [vmem:[%s3459_s3 + $0x28] sm:$0xff]  ;;  %v2615_v3 = vld [vmem:[%s3459_s3 + $0x20] sm:$0xff]  ;;  %v2614_v4 = vld [vmem:[%s3459_s3 + $0x18] sm:$0xff] }
  0x1b   : > { %s3484_s18 = smov (!%p635_p7, %s2887_s18), 1  ;;  %v2613_v5 = vld [vmem:[%s3459_s3 + $0x10] sm:$0xff]  ;;  %v2612_v6 = vld [vmem:[%s3459_s3 + $0x8] sm:$0xff]  ;;  %v2611_v11 = vld [vmem:[%s3459_s3] sm:$0xff]  ;;  %v3131_v41 = vshrl.u32 %v839_v38, 7 }
  0x1c   : > { %s3049_s17 = sshll.u32 %s3484_s18, 5  ;;  %v2626_v21 = vld [vmem:[%s3463_s7 + $0x38] sm:$0xff]  ;;  %v2625_v22 = vld [vmem:[%s3463_s7 + $0x30] sm:$0xff]  ;;  %v2624_v24 = vld [vmem:[%s3463_s7 + $0x28] sm:$0xff] }
  0x1d   : > { %s642_s22 = scalar_lea.vmem %s3456_s0, %s3049_s17  ;;  %s655_s27 = scalar_lea.vmem %s3457_s1, %s3049_s17  ;;  %2742 = vmatpush.bf16.msra.mxu1 %v2626_v21  ;;  %v2623_v27 = vld [vmem:[%s3463_s7 + $0x20] sm:$0xff]  ;;  %v2622_v33 = vld [vmem:[%s3463_s7 + $0x18] sm:$0xff]  ;;  %v2621_v34 = vld [vmem:[%s3463_s7 + $0x10] sm:$0xff]  ;;  %vm841_vm0 = vcmp.eq.s32.totalorder %v3131_v41, 0  ;;  %vm864_vm1 = vcmp.eq.s32.totalorder %v3131_v41, 7 }
  0x1e   : > { %780 = vmatpush.bf16.msra.mxu0 %v2617_v1  ;;  %v3065_v7 = vld [vmem:[%s642_s22] sm:$0xff]   ;;  %v3073_v13 = vld [vmem:[%s642_s22 + $0x8] sm:$0xff]   ;;  %v3081_v17 = vld [vmem:[%s642_s22 + $0x10] sm:$0xff]   ;;  %s3441_s18 = scalar_lea.vmem %s3471_s15, %s3049_s17 }
  0x1f   : > { %v702_v8 = vld [vmem:[%s655_s27] sm:$0xf]  ;;  %v2701_v9 = vunpack.c.l.bf16 %v3065_v7  ;;  %v2702_v14 = vunpack.c.h.bf16 %v3065_v7  ;;  %v2705_v15 = vunpack.c.l.bf16 %v3073_v13  ;;  %v2706_v18 = vunpack.c.h.bf16 %v3073_v13  ;;  %v3095_v23 = vld [vmem:[%s642_s22 + $0x18] sm:$0xff]   ;;  %s2609_s22 = sadd.s32 28, %s3049_s17  ;;  %v2620_v36 = vld [vmem:[%s3463_s7 + $0x8] sm:$0xff] }
  0x20   : > { %v703_v10 = vunpack.c.l.bf16 %v702_v8  ;;  %v2709_v19 = vunpack.c.l.bf16 %v3081_v17  ;;  %v2710_v25 = vunpack.c.h.bf16 %v3081_v17  ;;  %v2713_v26 = vunpack.c.l.bf16 %v3095_v23  ;;  %s671_s24 = scalar_lea.vmem %s3458_s2, %s2609_s22  ;;  %v3125_v35 = vld [vmem:[%s3460_s4] ss:$0 sm:$0xff]  ;;  %v2639_v41 = vld [vmem:[#allocation2 + $0x64] sm:$0xf] }
  0x21   : > { %v707_v16 = vpack.c.bf16 %v2705_v15, %v2702_v14  ;;  %2743 = vmatpush.bf16.msra.mxu1 %v2625_v22  ;;  %v704_v29 = vld [vmem:[%s671_s24] sm:$0xf]  ;;  %v2714_v30 = vunpack.c.h.bf16 %v3095_v23  ;;  %v2673_v23 = vld [vmem:[#allocation4 + $0x70] sm:$0xff] }
  0x22   : > { %781 = vmatpush.bf16.msra.mxu0 %v2616_v2  ;;  %v706_v12 = vpack.c.bf16 %v2701_v9, %v703_v10  ;;  %v708_v20 = vpack.c.bf16 %v2709_v19, %v2706_v18  ;;  %v709_v28 = vpack.c.bf16 %v2713_v26, %v2710_v25  ;;  %v705_v31 = vunpack.c.l.bf16 %v704_v29  ;;  %v887_v43 = vld [vmem:[%s3461_s5] sm:$0xff] }
  0x23   : > { %v2619_v45 = vld [vmem:[%s3463_s7] sm:$0xff]  ;;  %v3140_v46 = vperm.slane %v887_v43, 0  ;;  %v3142_v47 = vperm.slane %v887_v43, 1  ;;  %v3150_v56 = vperm.slane %v887_v43, 2  ;;  %v3154_v60 = vperm.slane %v887_v43, 3 }
  0x24   : > { %v710_v32 = vpack.c.bf16 %v705_v31, %v2714_v30  ;;  %v3159_v2 = vperm.slane %v887_v43, 4 }
  0x25   : > { %2744 = vmatpush.bf16.msra.mxu1 %v2624_v24 }
  0x26   : > { %782 = vmatpush.bf16.msra.mxu0 %v2615_v3 }
  0x29   : > { %2745 = vmatpush.bf16.msra.mxu1 %v2623_v27 }
  0x2a   : > { %783 = vmatpush.bf16.msra.mxu0 %v2614_v4 }
  0x2d   : > { %2746 = vmatpush.bf16.msra.mxu1 %v2622_v33 }
  0x2e   : > { %784 = vmatpush.bf16.msra.mxu0 %v2613_v5 }
  0x31   : > { %2747 = vmatpush.bf16.msra.mxu1 %v2621_v34 }
  0x32   : > { %785 = vmatpush.bf16.msra.mxu0 %v2612_v6 }
  0x35   : > { %2748 = vmatpush.bf16.msra.mxu1 %v2620_v36 }
  0x36   : > { %786 = vmatpush.bf16.msra.mxu0 %v2611_v11 }
  0x39   : > { %787 = vmatmul.bf16.vlgmr.msra.gmra.mxu0 %v706_v12  ;;  %2749 = vmatpush.bf16.msra.mxu1 %v2619_v45 }
  0x3a   : > { %1118 = vmatpush.bf16.msrb.mxu0 %v2626_v21 }
  0x3e   : > { %1119 = vmatpush.bf16.msrb.mxu0 %v2625_v22 }
  0x42   : > { %1120 = vmatpush.bf16.msrb.mxu0 %v2624_v24 }
  0x46   : > { %1121 = vmatpush.bf16.msrb.mxu0 %v2623_v27 }
  0x49   : > { %792 = vmatmul.bf16.gmra.mxu0 %v707_v16 }
  0x4a   : > { %1122 = vmatpush.bf16.msrb.mxu0 %v2622_v33 }
  0x4e   : > { %1123 = vmatpush.bf16.msrb.mxu0 %v2621_v34 }
  0x52   : > { %1124 = vmatpush.bf16.msrb.mxu0 %v2620_v36 }
  0x56   : > { %1125 = vmatpush.bf16.msrb.mxu0 %v2619_v45 }
  0x59   : > { %797 = vmatmul.bf16.gmra.mxu0 %v708_v20  ;;  %v3168_v20 = vperm.slane %v887_v43, 5 }
  0x69   : > { %802 = vmatmul.bf16.gmra.mxu0 %v709_v28  ;;  %v3170_v28 = vperm.slane %v887_v43, 6 }
  0x79   : > { %807 = vmatmul.bf16.gmra.mxu0 %v710_v32 }
  0xb6   : > { %v788_v37 = vpop.f32.mrf.mxu0 }
  0xb7   : > { %v789_v39 = vadd.f32 %v3125_v35, %v788_v37 }
  0xb9   : > { %v813_v40 = vmul.f32 0.01, %v789_v39 }
  0xbb   : > { %v823_v42 = vmax.f32 %v789_v39, %v813_v40  ;;  %v3178_v39 = vperm.slane %v887_v43, 7  ;;  %v3189_v43 = vld [vmem:[%s3461_s5 + $0x8] ss:$0 sm:$0xff] }
  0xbd   : > { %v837_v44 = vmul.f32 0.0, %v823_v42 }
  0xbe   : > { %v790_v48 = vpop.f32.mrf.mxu0 }
  0xbf   : > { %v842_v49 = vrot.slane %v837_v44, 7  ;;  %v865_v50 = vrot.slane %v837_v44, 1  ;;  %v791_v51 = vadd.f32 %v3125_v35, %v790_v48  ;;  %v899_v55 = vmul.f32 %v3142_v47, %v837_v44 }
  0xc1   : > { %v854_v52 = vsel %vm841_vm0, 0.0, %v842_v49  ;;  %v814_v53 = vmul.f32 0.01, %v791_v51  ;;  %v877_v57 = vsel %vm864_vm1, 0.0, %v865_v50 }
  0xc2   : > { %v890_v54 = vmul.f32 %v3140_v46, %v854_v52  ;;  %v916_v62 = vmul.f32 %v3150_v56, %v877_v57 }
  0xc3   : > { %v824_v58 = vmax.f32 %v791_v51, %v814_v53 }
  0xc4   : > { %v907_v59 = vadd.f32 %v899_v55, %v890_v54 }
  0xc5   : > { %v843_v61 = vrot.slane %v824_v58, 7  ;;  %v866_v1 = vrot.slane %v824_v58, 1  ;;  %v900_v10 = vmul.f32 %v3142_v47, %v824_v58  ;;  %v950_v16 = vmul.f32 %v3159_v2, %v824_v58 }
  0xc6   : > { %v793_v63 = vpop.f32.mrf.mxu0  ;;  %v924_v4 = vadd.f32 %v916_v62, %v907_v59 }
  0xc7   : > { %v855_v0 = vsel %vm841_vm0, 0.0, %v843_v61  ;;  %v794_v3 = vadd.f32 %v3125_v35, %v793_v63  ;;  %v878_v12 = vsel %vm864_vm1, 0.0, %v866_v1 }
  0xc8   : > { %v891_v5 = vmul.f32 %v3140_v46, %v855_v0  ;;  %v933_v6 = vmul.f32 %v3154_v60, %v855_v0  ;;  %v917_v29 = vmul.f32 %v3150_v56, %v878_v12  ;;  %v967_v32 = vmul.f32 %v3168_v20, %v878_v12 }
  0xc9   : > { %v815_v8 = vmul.f32 0.01, %v794_v3 }
  0xca   : > { %v941_v11 = vadd.f32 %v933_v6, %v924_v4  ;;  %v908_v22 = vadd.f32 %v900_v10, %v891_v5 }
  0xcb   : > { %v825_v21 = vmax.f32 %v794_v3, %v815_v8 }
  0xcc   : > { %v958_v24 = vadd.f32 %v950_v16, %v941_v11  ;;  %v925_v37 = vadd.f32 %v917_v29, %v908_v22 }
  0xcd   : > { %v844_v27 = vrot.slane %v825_v21, 7  ;;  %v867_v36 = vrot.slane %v825_v21, 1  ;;  %v951_v48 = vmul.f32 %v3159_v2, %v825_v21  ;;  %v901_v50 = vmul.f32 %v3142_v47, %v825_v21 }
  0xce   : > { %v795_v31 = vpop.f32.mrf.mxu0  ;;  %v975_v44 = vadd.f32 %v967_v32, %v958_v24  ;;  %v1001_v59 = vmul.f32 %v3178_v39, %v825_v21 }
  0xcf   : > { %v796_v33 = vadd.f32 %v3125_v35, %v795_v31  ;;  %v856_v34 = vsel %vm841_vm0, 0.0, %v844_v27  ;;  %v879_v52 = vsel %vm864_vm1, 0.0, %v867_v36  ;;  %v3208_v31 = vld [vmem:[%s3462_s6] ss:$0 sm:$0xff] }
  0xd0   : > { %v934_v38 = vmul.f32 %v3154_v60, %v856_v34  ;;  %v892_v42 = vmul.f32 %v3140_v46, %v856_v34  ;;  %v984_v45 = vmul.f32 %v3170_v28, %v856_v34  ;;  %v968_v62 = vmul.f32 %v3168_v20, %v879_v52 }
  0xd1   : > { %v816_v40 = vmul.f32 0.01, %v796_v33  ;;  %v918_v1 = vmul.f32 %v3150_v56, %v879_v52  ;;  %v1018_v8 = vmul.f32 %v3189_v43, %v879_v52 }
  0xd2   : > { %v942_v49 = vadd.f32 %v934_v38, %v925_v37  ;;  %v992_v53 = vadd.f32 %v984_v45, %v975_v44  ;;  %v909_v58 = vadd.f32 %v901_v50, %v892_v42 }
  0xd3   : > { %v826_v51 = vmax.f32 %v796_v33, %v816_v40 }
  0xd4   : > { %v959_v54 = vadd.f32 %v951_v48, %v942_v49  ;;  %v1009_v3 = vadd.f32 %v1001_v59, %v992_v53  ;;  %v926_v12 = vadd.f32 %v918_v1, %v909_v58 }
  0xd5   : > { %v845_v55 = vrot.slane %v826_v51, 7  ;;  %v868_v57 = vrot.slane %v826_v51, 1  ;;  %v902_v21 = vmul.f32 %v3142_v47, %v826_v51  ;;  %v1002_v24 = vmul.f32 %v3178_v39, %v826_v51 }
  0xd6   : > { %v798_v61 = vpop.f32.mrf.mxu0  ;;  %v976_v5 = vadd.f32 %v968_v62, %v959_v54  ;;  %v1026_v29 = vadd.f32 %v1018_v8, %v1009_v3  ;;  %v952_v37 = vmul.f32 %v3159_v2, %v826_v51 }
  0xd7   : > { %v799_v63 = vadd.f32 %v3125_v35, %v798_v61  ;;  %v857_v0 = vsel %vm841_vm0, 0.0, %v845_v55  ;;  %v880_v11 = vsel %vm864_vm1, 0.0, %v868_v57 }
  0xd8   : > { %v893_v4 = vmul.f32 %v3140_v46, %v857_v0  ;;  %v985_v6 = vmul.f32 %v3170_v28, %v857_v0  ;;  %v935_v16 = vmul.f32 %v3154_v60, %v857_v0  ;;  %v1019_v36 = vmul.f32 %v3189_v43, %v880_v11 }
  0xd9   : > { %v817_v10 = vmul.f32 0.01, %v799_v63  ;;  %v919_v42 = vmul.f32 %v3150_v56, %v880_v11  ;;  %v1038_v49 = vadd.f32 %v3208_v31, %v1026_v29  ;;  %v969_v59 = vmul.f32 %v3168_v20, %v880_v11 }
  0xda   : > { %v993_v22 = vadd.f32 %v985_v6, %v976_v5  ;;  %v943_v32 = vadd.f32 %v935_v16, %v926_v12  ;;  %v910_v33 = vadd.f32 %v902_v21, %v893_v4 }
  0xdb   : > { %v827_v27 = vmax.f32 %v799_v63, %v817_v10 }
  0xdc   : > { %v1010_v34 = vadd.f32 %v1002_v24, %v993_v22  ;;  %v960_v52 = vadd.f32 %v952_v37, %v943_v32  ;;  %v927_v53 = vadd.f32 %v919_v42, %v910_v33 }
  0xdd   : > { %v846_v38 = vrot.slane %v827_v27, 7  ;;  %v869_v45 = vrot.slane %v827_v27, 1  ;;  %v903_v57 = vmul.f32 %v3142_v47, %v827_v27  ;;  %v953_v62 = vmul.f32 %v3159_v2, %v827_v27 }
  0xde   : > { %v800_v40 = vpop.f32.mrf.mxu0  ;;  %v1027_v44 = vadd.f32 %v1019_v36, %v1010_v34  ;;  %v977_v5 = vadd.f32 %v969_v59, %v960_v52  ;;  %v1003_v32 = vmul.f32 %v3178_v39, %v827_v27 }
  0xdf   : > { %v801_v48 = vadd.f32 %v3125_v35, %v800_v40  ;;  %v858_v50 = vsel %vm841_vm0, 0.0, %v846_v38  ;;  %v881_v0 = vsel %vm864_vm1, 0.0, %v869_v45 }
  0xe0   : > { %v1039_v54 = vadd.f32 %v3208_v31, %v1027_v44  ;;  %v894_v55 = vmul.f32 %v3140_v46, %v858_v50  ;;  %v936_v51 = vmul.f32 %v3154_v60, %v858_v50  ;;  %v986_v61 = vmul.f32 %v3170_v28, %v858_v50 }
  0xe1   : > { %v818_v58 = vmul.f32 0.01, %v801_v48  ;;  %v920_v12 = vmul.f32 %v3150_v56, %v881_v0  ;;  %v970_v21 = vmul.f32 %v3168_v20, %v881_v0 }
  0xe2   : > { %v1046_v63 = vpack.c.bf16 %v1039_v54, %v1038_v49  ;;  %v944_v1 = vadd.f32 %v936_v51, %v927_v53  ;;  %v911_v4 = vadd.f32 %v903_v57, %v894_v55  ;;  %v994_v16 = vadd.f32 %v986_v61, %v977_v5 }
  0xe3   : > { %v828_v3 = vmax.f32 %v801_v48, %v818_v58  ;;  %v1020_v53 = vmul.f32 %v3189_v43, %v881_v0 }
  0xe4   : > { %1126 = vmatmul.bf16.vlgmr.msrb.gmra.mxu0 %v1046_v63  ;;  %v961_v6 = vadd.f32 %v953_v62, %v944_v1  ;;  %v928_v29 = vadd.f32 %v920_v12, %v911_v4  ;;  %v1011_v44 = vadd.f32 %v1003_v32, %v994_v16 }
  0xe5   : > { %v847_v8 = vrot.slane %v828_v3, 7  ;;  %v870_v10 = vrot.slane %v828_v3, 1  ;;  %v904_v33 = vmul.f32 %v3142_v47, %v828_v3  ;;  %v954_v45 = vmul.f32 %v3159_v2, %v828_v3 }
  0xe6   : > { %v803_v11 = vpop.f32.mrf.mxu0  ;;  %v978_v37 = vadd.f32 %v970_v21, %v961_v6  ;;  %v1004_v52 = vmul.f32 %v3178_v39, %v828_v3  ;;  %v1028_v59 = vadd.f32 %v1020_v53, %v1011_v44  ;;  %v2655_v53 = vld [vmem:[#allocation2 + $0xe4] sm:$0xf] }
  0xe7   : > { %v804_v22 = vadd.f32 %v3125_v35, %v803_v11  ;;  %v859_v24 = vsel %vm841_vm0, 0.0, %v847_v8  ;;  %v882_v40 = vsel %vm864_vm1, 0.0, %v870_v10 }
  0xe8   : > { %v895_v34 = vmul.f32 %v3140_v46, %v859_v24  ;;  %v937_v36 = vmul.f32 %v3154_v60, %v859_v24  ;;  %v987_v42 = vmul.f32 %v3170_v28, %v859_v24  ;;  %v921_v54 = vmul.f32 %v3150_v56, %v882_v40 }
  0xe9   : > { %v819_v38 = vmul.f32 0.01, %v804_v22  ;;  %v1021_v58 = vmul.f32 %v3189_v43, %v882_v40  ;;  %v971_v63 = vmul.f32 %v3168_v20, %v882_v40  ;;  %v1040_v16 = vadd.f32 %v3208_v31, %v1028_v59 }
  0xea   : > { %v912_v48 = vadd.f32 %v904_v33, %v895_v34  ;;  %v945_v49 = vadd.f32 %v937_v36, %v928_v29  ;;  %v995_v27 = vadd.f32 %v987_v42, %v978_v37 }
  0xeb   : > { %v829_v50 = vmax.f32 %v804_v22, %v819_v38 }
  0xec   : > { %v962_v55 = vadd.f32 %v954_v45, %v945_v49  ;;  %v1012_v57 = vadd.f32 %v1004_v52, %v995_v27  ;;  %v929_v62 = vadd.f32 %v921_v54, %v912_v48  ;;  %v2430_v27 = vld [vmem:[#allocation2 + $0xe0] sm:$0xf]  ;;  %v2657_v52 = vld [vmem:[#allocation2 + $0xec] sm:$0xf0] }
  0xed   : > { %v848_v51 = vrot.slane %v829_v50, 7  ;;  %v871_v5 = vrot.slane %v829_v50, 1  ;;  %v905_v21 = vmul.f32 %v3142_v47, %v829_v50  ;;  %v955_v29 = vmul.f32 %v3159_v2, %v829_v50 }
  0xee   : > { %v805_v61 = vpop.f32.mrf.mxu0  ;;  %v1029_v4 = vadd.f32 %v1021_v58, %v1012_v57  ;;  %v979_v8 = vadd.f32 %v971_v63, %v962_v55  ;;  %v1005_v37 = vmul.f32 %v3178_v39, %v829_v50  ;;  %v2432_v57 = vld [vmem:[#allocation2 + $0xf0] sm:$0xf0]  ;;  %v2438_v58 = vld [vmem:[#allocation2 + $0xe8] sm:$0xf] }
  0xef   : > { %v806_v1 = vadd.f32 %v3125_v35, %v805_v61  ;;  %v860_v3 = vsel %vm841_vm0, 0.0, %v848_v51  ;;  %v883_v34 = vsel %vm864_vm1, 0.0, %v871_v5  ;;  %v2431_v51 = vor.u32 %v2657_v52, %v2430_v27  ;;  %v2647_v27 = vld [vmem:[#allocation2 + $0xa4] sm:$0xf]  ;;  %v2400_v52 = vld [vmem:[#allocation2 + $0xb0] sm:$0xf0] }
  0xf0   : > { %v896_v0 = vmul.f32 %v3140_v46, %v860_v3  ;;  %v938_v6 = vmul.f32 %v3154_v60, %v860_v3  ;;  %v988_v10 = vmul.f32 %v3170_v28, %v860_v3  ;;  %v1041_v11 = vadd.f32 %v3208_v31, %v1029_v4  ;;  %v2414_v4 = vld [vmem:[#allocation2 + $0xc0] sm:$0xf]  ;;  %v2653_v3 = vld [vmem:[#allocation2 + $0xcc] sm:$0xf0] }
  0xf1   : > { %v820_v12 = vmul.f32 0.01, %v806_v1  ;;  %v922_v45 = vmul.f32 %v3150_v56, %v883_v34  ;;  %v972_v48 = vmul.f32 %v3168_v20, %v883_v34  ;;  %v1022_v63 = vmul.f32 %v3189_v43, %v883_v34  ;;  %1361 = vmatpush.bf16.msra.mxu2 %v2431_v51  ;;  %v2382_v51 = vld [vmem:[#allocation2 + $0x80] sm:$0xf] }
  0xf2   : > { %v946_v22 = vadd.f32 %v938_v6, %v929_v62  ;;  %v996_v24 = vadd.f32 %v988_v10, %v979_v8  ;;  %v1047_v33 = vpack.c.bf16 %v1041_v11, %v1040_v16  ;;  %v913_v36 = vadd.f32 %v905_v21, %v896_v0  ;;  %v2651_v10 = vld [vmem:[#allocation2 + $0xc4] sm:$0xf] }
  0xf3   : > { %v830_v32 = vmax.f32 %v806_v1, %v820_v12  ;;  %v2658_v1 = vld [vmem:[#allocation2 + $0xf4] sm:$0xf0]  ;;  %v2416_v12 = vld [vmem:[#allocation2 + $0xd0] sm:$0xf0]  ;;  %v2435_v11 = vor.u32 %v2655_v53, %v2432_v57 }
  0xf4   : > { %1131 = vmatmul.bf16.gmra.mxu0 %v1047_v33  ;;  %v963_v42 = vadd.f32 %v955_v29, %v946_v22  ;;  %v1013_v49 = vadd.f32 %v1005_v37, %v996_v24  ;;  %v930_v61 = vadd.f32 %v922_v45, %v913_v36  ;;  %v2439_v21 = vor.u32 %v2658_v1, %v2438_v58  ;;  %v2422_v22 = vld [vmem:[#allocation2 + $0xc8] sm:$0xf]  ;;  %v2654_v24 = vld [vmem:[#allocation2 + $0xd4] sm:$0xf0]  ;;  %v2649_v37 = vld [vmem:[#allocation2 + $0xac] sm:$0xf0] }
  0xf5   : > { %v849_v38 = vrot.slane %v830_v32, 7  ;;  %v872_v40 = vrot.slane %v830_v32, 1  ;;  %v906_v5 = vmul.f32 %v3142_v47, %v830_v32  ;;  %v1006_v16 = vmul.f32 %v3178_v39, %v830_v32  ;;  %v2398_v47 = vld [vmem:[#allocation2 + $0xa0] sm:$0xf]  ;;  %1390 = vmatpush.bf16.msra.mxu3 %v2435_v11 }
  0xf6   : > { %v808_v44 = vpop.f32.mrf.mxu0  ;;  %v980_v6 = vadd.f32 %v972_v48, %v963_v42  ;;  %v2415_v36 = vor.u32 %v2653_v3, %v2414_v4  ;;  %1419 = vmatpush.bf16.msrb.mxu1 %v2439_v21  ;;  %v2419_v42 = vor.u32 %v2651_v10, %v2416_v12  ;;  %v956_v53 = vmul.f32 %v3159_v2, %v830_v32  ;;  %v2384_v10 = vld [vmem:[#allocation2 + $0x90] sm:$0xf0] }
  0xf7   : > { %v809_v54 = vadd.f32 %v3125_v35, %v808_v44  ;;  %v861_v55 = vsel %vm841_vm0, 0.0, %v849_v38  ;;  %v3264_v50 = vsel %vm864_vm1, 0.0, %v872_v40  ;;  %v2403_v32 = vor.u32 %v2647_v27, %v2400_v52 }
  0xf8   : > { %v897_v59 = vmul.f32 %v3140_v46, %v861_v55  ;;  %v939_v62 = vmul.f32 %v3154_v60, %v861_v55  ;;  %v989_v8 = vmul.f32 %v3170_v28, %v861_v55  ;;  %v1030_v46 = vadd.f32 %v1022_v63, %v1013_v49  ;;  %1362 = vmatpush.bf16.msra.mxu2 %v2415_v36  ;;  %v2650_v63 = vld [vmem:[#allocation2 + $0xb4] sm:$0xf0] }
  0xf9   : > { %v821_v0 = vmul.f32 0.01, %v809_v54  ;;  %v923_v38 = vmul.f32 %v3150_v56, %v3264_v50  ;;  %v1023_v48 = vmul.f32 %v3189_v43, %v3264_v50  ;;  %v2423_v49 = vor.u32 %v2654_v24, %v2422_v22  ;;  %v2645_v56 = vld [vmem:[#allocation2 + $0x8c] sm:$0xf0]  ;;  %1391 = vmatpush.bf16.msra.mxu3 %v2419_v42  ;;  %v2390_v24 = vld [vmem:[#allocation2 + $0x88] sm:$0xf] }
  0xfa   : > { %v914_v33 = vadd.f32 %v906_v5, %v897_v59  ;;  %v997_v34 = vadd.f32 %v989_v8, %v980_v6  ;;  %v947_v40 = vadd.f32 %v939_v62, %v930_v61  ;;  %v2399_v55 = vor.u32 %v2649_v37, %v2398_v47  ;;  %v2406_v62 = vld [vmem:[#allocation2 + $0xa8] sm:$0xf]  ;;  %v2643_v8 = vld [vmem:[#allocation2 + $0x84] sm:$0xf] }
  0xfb   : > { %v3272_v29 = vmax.f32 %v809_v54, %v821_v0  ;;  %v1042_v0 = vadd.f32 %v3208_v31, %v1030_v46  ;;  %1420 = vmatpush.bf16.msrb.mxu1 %v2423_v49  ;;  %v973_v12 = vmul.f32 %v3168_v20, %v3264_v50  ;;  %v2387_v36 = vor.u32 %v2643_v8, %v2384_v10  ;;  %v2638_v8 = vld [vmem:[#allocation2 + $0x54] sm:$0xf0] }
  0xfc   : > { %v1014_v45 = vadd.f32 %v1006_v16, %v997_v34  ;;  %v931_v58 = vadd.f32 %v923_v38, %v914_v33  ;;  %v964_v3 = vadd.f32 %v956_v53, %v947_v40  ;;  %1363 = vmatpush.bf16.msra.mxu2 %v2399_v55  ;;  %v2646_v33 = vld [vmem:[#allocation2 + $0x94] sm:$0xf0] }
  0xfd   : > { %v850_v44 = vrot.slane %v3272_v29, 7  ;;  %v873_v1 = vrot.slane %v3272_v29, 1  ;;  %v957_v46 = vmul.f32 %v3159_v2, %v3272_v29  ;;  %1392 = vmatpush.bf16.msra.mxu3 %v2403_v32  ;;  %v2391_v40 = vor.u32 %v2646_v33, %v2390_v24  ;;  %v2342_v24 = vld [vmem:[#allocation2 + $0x28] sm:$0xf]  ;;  %v2634_v33 = vld [vmem:[#allocation2 + $0x34] sm:$0xf0] }
  0xfe   : > { %v810_v54 = vpop.f32.mrf.mxu0  ;;  %v1031_v59 = vadd.f32 %v1023_v48, %v1014_v45  ;;  %v981_v34 = vadd.f32 %v973_v12, %v964_v3  ;;  %v1007_v2 = vmul.f32 %v3178_v39, %v3272_v29 }
  0xff   : > { %v811_v57 = vadd.f32 %v3125_v35, %v810_v54  ;;  %v862_v61 = vsel %vm841_vm0, 0.0, %v850_v44  ;;  %v2383_v35 = vor.u32 %v2645_v56, %v2382_v51  ;;  %v885_v37 = vsel %vm864_vm1, 0.0, %v873_v1  ;;  %v2368_v1 = vld [vmem:[#allocation2 + $0x70] sm:$0xf0] }
 0x100   : > { %v940_v4 = vmul.f32 %v3154_v60, %v862_v61  ;;  %v1043_v6 = vadd.f32 %v3208_v31, %v1031_v59  ;;  %v990_v11 = vmul.f32 %v3170_v28, %v862_v61  ;;  %v2407_v60 = vor.u32 %v2650_v63, %v2406_v62  ;;  %v2366_v61 = vld [vmem:[#allocation2 + $0x60] sm:$0xf]  ;;  %v2641_v62 = vld [vmem:[#allocation2 + $0x6c] sm:$0xf0] }
 0x101   : > { %v822_v5 = vmul.f32 0.01, %v811_v57  ;;  %1364 = vmatpush.bf16.msra.mxu2 %v2383_v35  ;;  %v974_v45 = vmul.f32 %v3168_v20, %v885_v37  ;;  %1393 = vmatpush.bf16.msra.mxu3 %v2387_v36  ;;  %v1024_v20 = vmul.f32 %v3189_v43, %v885_v37  ;;  %v2367_v63 = vor.u32 %v2641_v62, %v2366_v61  ;;  %v2352_v35 = vld [vmem:[#allocation2 + $0x50] sm:$0xf0]  ;;  %v2318_v36 = vld [vmem:[#allocation2] sm:$0xf] }
 0x102   : > { %v948_v16 = vadd.f32 %v940_v4, %v931_v58  ;;  %v1048_v22 = vpack.c.bf16 %v1043_v6, %v1042_v0  ;;  %v998_v38 = vadd.f32 %v990_v11, %v981_v34  ;;  %1421 = vmatpush.bf16.msrb.mxu1 %v2407_v60  ;;  %v2642_v4 = vld [vmem:[#allocation2 + $0x74] sm:$0xf0]  ;;  %v2371_v3 = vor.u32 %v2639_v41, %v2368_v1  ;;  %v2635_v0 = vld [vmem:[#allocation2 + $0x44] sm:$0xf]  ;;  %v2633_v11 = vld [vmem:[#allocation2 + $0x2c] sm:$0xf0] }
 0x103   : > { %v832_v21 = vmax.f32 %v811_v57, %v822_v5  ;;  %v2350_v5 = vld [vmem:[#allocation2 + $0x40] sm:$0xf]  ;;  %v2355_v10 = vor.u32 %v2635_v0, %v2352_v35  ;;  %v2631_v60 = vld [vmem:[#allocation2 + $0x24] sm:$0xf]  ;;  %v2343_v34 = vor.u32 %v2634_v33, %v2342_v24  ;;  %v2644_v62 = vld [vmem:[#allocation2 + $0x8c] sm:$0xf] }
 0x104   : > { %1136 = vmatmul.bf16.vlgmr.msra.gmra.mxu1 %v1048_v22  ;;  %v965_v50 = vadd.f32 %v957_v46, %v948_v16  ;;  %v1015_v52 = vadd.f32 %v1007_v2, %v998_v38  ;;  %v2334_v16 = vld [vmem:[#allocation2 + $0x20] sm:$0xf]  ;;  %v2336_v22 = vld [vmem:[#allocation2 + $0x30] sm:$0xf0]  ;;  %v2627_v37 = vld [vmem:[#allocation2 + $0x4] sm:$0xf] }
 0x105   : > { %v838_v47 = vmul.f32 0.0, %v832_v21  ;;  %1365 = vmatpush.bf16.msra.mxu2 %v2367_v63  ;;  %1394 = vmatpush.bf16.msra.mxu3 %v2371_v3  ;;  %v2335_v21 = vor.u32 %v2633_v11, %v2334_v16  ;;  %v2339_v46 = vor.u32 %v2631_v60, %v2336_v22  ;;  %v2320_v38 = vld [vmem:[#allocation2 + $0x10] sm:$0xf0]  ;;  %v2656_v2 = vld [vmem:[#allocation2 + $0xec] sm:$0xf] }
 0x106   : > { %v982_v27 = vadd.f32 %v974_v45, %v965_v50  ;;  %1422 = vmatpush.bf16.msrb.mxu1 %v2391_v40  ;;  %v1032_v56 = vadd.f32 %v1024_v20, %v1015_v52  ;;  %v2326_v40 = vld [vmem:[#allocation2 + $0x8] sm:$0xf]  ;;  %v2424_v52 = vld [vmem:[#allocation2 + $0xd8] sm:$0xf0]  ;;  %v2648_v20 = vld [vmem:[#allocation2 + $0xac] sm:$0xf] }
 0x107   : > { %v851_v42 = vrot.slane %v838_v47, 7  ;;  %v874_v44 = vrot.slane %v838_v47, 1  ;;  %v1008_v54 = vmul.f32 %v3178_v39, %v838_v47  ;;  %v2374_v39 = vld [vmem:[#allocation2 + $0x68] sm:$0xf]  ;;  %v2629_v47 = vld [vmem:[#allocation2 + $0xc] sm:$0xf0] }
 0x108   : > { %v1044_v58 = vadd.f32 %v3208_v31, %v1032_v56  ;;  %v2375_v32 = vor.u32 %v2642_v4, %v2374_v39  ;;  %v2319_v50 = vor.u32 %v2629_v47, %v2318_v36  ;;  %v2392_v41 = vld [vmem:[#allocation2 + $0x98] sm:$0xf0]  ;;  %v2640_v39 = vld [vmem:[#allocation2 + $0x6c] sm:$0xf] }
 0x109   : > { %v863_v48 = vsel %vm841_vm0, 0.0, %v851_v42  ;;  %v886_v53 = vsel %vm864_vm1, 0.0, %v874_v44  ;;  %1395 = vmatpush.bf16.msra.mxu3 %v2355_v10  ;;  %v2630_v42 = vld [vmem:[#allocation2 + $0x14] sm:$0xf0]  ;;  %v2323_v44 = vor.u32 %v2627_v37, %v2320_v38  ;;  %v2395_v63 = vor.u32 %v2644_v62, %v2392_v41  ;;  %v2376_v4 = vld [vmem:[#allocation2 + $0x78] sm:$0xf0] }
 0x10a   : > { %v991_v49 = vmul.f32 %v3170_v28, %v863_v48  ;;  %v1025_v29 = vmul.f32 %v3189_v43, %v886_v53  ;;  %v2637_v43 = vld [vmem:[#allocation2 + $0x4c] sm:$0xf0]  ;;  %1423 = vmatpush.bf16.msrb.mxu1 %v2375_v32  ;;  %v2327_v45 = vor.u32 %v2630_v42, %v2326_v40  ;;  %v2440_v48 = vld [vmem:[#allocation2 + $0xf8] sm:$0xf0]  ;;  %v2379_v3 = vor.u32 %v2640_v39, %v2376_v4  ;;  %v2664_v42 = vld [vmem:[#allocation4 + $0x28] sm:$0xff] }
 0x10b   : > { %v2351_v6 = vor.u32 %v2637_v43, %v2350_v5  ;;  %v2360_v32 = vld [vmem:[#allocation2 + $0x58] sm:$0xf0]  ;;  %v2681_v37 = vld [vmem:[#allocation4 + $0xb0] sm:$0xff] }
 0x10c   : > { %v999_v55 = vadd.f32 %v991_v49, %v982_v27  ;;  %v2443_v49 = vor.u32 %v2656_v2, %v2440_v48  ;;  %v2652_v27 = vld [vmem:[#allocation2 + $0xcc] sm:$0xf]  ;;  %v2344_v10 = vld [vmem:[#allocation2 + $0x38] sm:$0xf0]  ;;  %v2665_v40 = vld [vmem:[#allocation4 + $0x30] sm:$0xff] }
 0x10d   : > { %1366 = vmatpush.bf16.msra.mxu2 %v2351_v6  ;;  %1396 = vmatpush.bf16.msra.mxu3 %v2339_v46  ;;  %v2427_v53 = vor.u32 %v2652_v27, %v2424_v52  ;;  %v2328_v11 = vld [vmem:[#allocation2 + $0x18] sm:$0xf0]  ;;  %v2663_v2 = vld [vmem:[#allocation4 + $0x20] sm:$0xff] }
 0x10e   : > { %v1016_v51 = vadd.f32 %v1008_v54, %v999_v55  ;;  %v2802_v55 = vld [vmem:[%s3464_s8] ss:$0 sm:$0xff]  ;;  %v2674_v38 = vld [vmem:[#allocation4 + $0x78] sm:$0xff] }
 0x10f   : > { %1846 = vmatpush.bf16.msra.mxu0 %v2674_v38  ;;  %v2671_v48 = vld [vmem:[#allocation4 + $0x60] sm:$0xff]  ;;  %v2662_v27 = vld [vmem:[#allocation4 + $0x18] sm:$0xff] }
 0x110   : > { %v1033_v57 = vadd.f32 %v1025_v29, %v1016_v51  ;;  %v2408_v51 = vld [vmem:[#allocation2 + $0xb8] sm:$0xf0] }
 0x111   : > { %1367 = vmatpush.bf16.msra.mxu2 %v2335_v21  ;;  %1397 = vmatpush.bf16.msra.mxu3 %v2323_v44  ;;  %v2411_v29 = vor.u32 %v2648_v20, %v2408_v51  ;;  %v2672_v44 = vld [vmem:[#allocation4 + $0x68] sm:$0xff]  ;;  %v2670_v52 = vld [vmem:[#allocation4 + $0x58] sm:$0xff]  ;;  %v2675_v20 = vld [vmem:[#allocation4 + $0x80] sm:$0xff] }
 0x112   : > { %v1045_v28 = vadd.f32 %v3208_v31, %v1033_v57  ;;  %v2358_v31 = vld [vmem:[#allocation2 + $0x48] sm:$0xf] }
 0x113   : > { %v2359_v12 = vor.u32 %v2638_v8, %v2358_v31  ;;  %v2632_v8 = vld [vmem:[#allocation2 + $0x2c] sm:$0xf]  ;;  %1847 = vmatpush.bf16.msra.mxu0 %v2673_v23 }
 0x114   : > { %v1049_v59 = vpack.c.bf16 %v1045_v28, %v1044_v58  ;;  %v2347_v16 = vor.u32 %v2632_v8, %v2344_v10  ;;  %v2660_v51 = vld [vmem:[#allocation4 + $0x8] sm:$0xff] }
 0x115   : > { %1424 = vmatpush.bf16.msrb.mxu1 %v2359_v12  ;;  %1368 = vmatpush.bf16.msra.mxu2 %v2319_v50  ;;  %v2628_v12 = vld [vmem:[#allocation2 + $0xc] sm:$0xf]  ;;  %v2666_v50 = vld [vmem:[#allocation4 + $0x38] sm:$0xff] }
 0x116   : > { %1141 = vmatmul.bf16.gmra.mxu1 %v1049_v59  ;;  %v2331_v60 = vor.u32 %v2628_v12, %v2328_v11  ;;  %1817 = vmatpush.bf16.msrb.mxu3 %v2666_v50 }
 0x117   : > { %1848 = vmatpush.bf16.msra.mxu0 %v2672_v44 }
 0x119   : > { %1425 = vmatpush.bf16.msrb.mxu1 %v2343_v34  ;;  %1448 = vmatpush.bf16.msrb.mxu2 %v2443_v49  ;;  %v2677_v49 = vld [vmem:[#allocation4 + $0x90] sm:$0xff] }
 0x11a   : > { %1818 = vmatpush.bf16.msrb.mxu3 %v2665_v40 }
 0x11b   : > { %1849 = vmatpush.bf16.msra.mxu0 %v2671_v48 }
 0x11d   : > { %1426 = vmatpush.bf16.msrb.mxu1 %v2327_v45  ;;  %1449 = vmatpush.bf16.msrb.mxu2 %v2427_v53  ;;  %v2678_v45 = vld [vmem:[#allocation4 + $0x98] sm:$0xff]  ;;  %v2676_v53 = vld [vmem:[#allocation4 + $0x88] sm:$0xff] }
 0x11e   : > { %1819 = vmatpush.bf16.msrb.mxu3 %v2664_v42 }
 0x11f   : > { %1850 = vmatpush.bf16.msra.mxu0 %v2670_v52 }
 0x121   : > { %1450 = vmatpush.bf16.msrb.mxu2 %v2411_v29  ;;  %v2668_v29 = vld [vmem:[#allocation4 + $0x48] sm:$0xff] }
 0x122   : > { %1820 = vmatpush.bf16.msrb.mxu3 %v2663_v2 }
 0x125   : > { %1451 = vmatpush.bf16.msrb.mxu2 %v2395_v63 }
 0x126   : > { %1821 = vmatpush.bf16.msrb.mxu3 %v2662_v27 }
 0x129   : > { %1452 = vmatpush.bf16.msrb.mxu2 %v2379_v3 }
 0x161   : > { %v1127_v54 = vpop.f32.mrf.mxu0 }
 0x162   : > { %v1128_v56 = vadd.f32 %v2802_v55, %v1127_v54  ;;  %v2661_v54 = vld [vmem:[#allocation4 + $0x10] sm:$0xff] }
 0x163   : > { %1822 = vmatpush.bf16.msrb.mxu3 %v2661_v54 }
 0x164   : > { %v3312_v28 = vadd.f32 %v2701_v9, %v1128_v56  ;;  %v2636_v9 = vld [vmem:[#allocation2 + $0x4c] sm:$0xf]  ;;  %v2659_v56 = vld [vmem:[#allocation4] sm:$0xff] }
 0x165   : > { %v2363_v7 = vor.u32 %v2636_v9, %v2360_v32  ;;  %v2689_v9 = vld [vmem:[#allocation4 + $0xf0] sm:$0xff] }
 0x167   : > { %1453 = vmatpush.bf16.msrb.mxu2 %v2363_v7  ;;  %1823 = vmatpush.bf16.msrb.mxu3 %v2660_v51 }
 0x169   : > { %v1129_v57 = vpop.f32.mrf.mxu0 }
 0x16a   : > { %v1130_v58 = vadd.f32 %v2802_v55, %v1129_v57  ;;  %v2667_v57 = vld [vmem:[#allocation4 + $0x40] sm:$0xff] }
 0x16b   : > { %1454 = vmatpush.bf16.msrb.mxu2 %v2347_v16  ;;  %1824 = vmatpush.bf16.msrb.mxu3 %v2659_v56 }
 0x16c   : > { %v3316_v59 = vadd.f32 %v2702_v14, %v1130_v58  ;;  %v3353_v58 = vld [vmem:[%s3466_s10] sm:$0xf] }
 0x16d   : > { %v3356_v41 = vperm.slane %v3353_v58, 2  ;;  %v3360_v4 = vperm.slane %v3353_v58, 0  ;;  %v3363_v3 = vperm.slane %v3353_v58, 1 }
 0x16e   : > { %v1155_v61 = vpack.c.bf16 %v3316_v59, %v3312_v28 }
 0x16f   : > { %1455 = vmatpush.bf16.msrb.mxu2 %v2331_v60 }
 0x170   : > { %1369 = vmatmul.bf16.vlgmr.msra.gmra.mxu2 %v1155_v61  ;;  %1398 = vmatmul.bf16.vlgmr.msra.gmra.mxu3 %v1155_v61 }
 0x171   : > { %1427 = vmatmul.bf16.vlgmr.msrb.gmra.mxu1 %v1155_v61  ;;  %v1132_v1 = vpop.f32.mrf.mxu0 }
 0x172   : > { %v1133_v14 = vadd.f32 %v2802_v55, %v1132_v1 }
 0x174   : > { %v3322_v0 = vadd.f32 %v2705_v15, %v1133_v14 }
 0x179   : > { %v1134_v5 = vpop.f32.mrf.mxu0 }
 0x17a   : > { %v1135_v43 = vadd.f32 %v2802_v55, %v1134_v5 }
 0x17c   : > { %v3326_v6 = vadd.f32 %v2706_v18, %v1135_v43 }
 0x17e   : > { %v1156_v35 = vpack.c.bf16 %v3326_v6, %v3322_v0 }
 0x180   : > { %1374 = vmatmul.bf16.gmra.mxu2 %v1156_v35  ;;  %1403 = vmatmul.bf16.gmra.mxu3 %v1156_v35 }
 0x181   : > { %1432 = vmatmul.bf16.gmra.mxu1 %v1156_v35  ;;  %v1137_v31 = vpop.f32.mrf.mxu1 }
 0x182   : > { %v1138_v15 = vadd.f32 %v2802_v55, %v1137_v31 }
 0x184   : > { %v3332_v18 = vadd.f32 %v2709_v19, %v1138_v15 }
 0x189   : > { %v1139_v21 = vpop.f32.mrf.mxu1 }
 0x18a   : > { %v1140_v13 = vadd.f32 %v2802_v55, %v1139_v21  ;;  %v2688_v21 = vld [vmem:[#allocation4 + $0xe8] sm:$0xff] }
 0x18c   : > { %v3336_v22 = vadd.f32 %v2710_v25, %v1140_v13  ;;  %v2682_v25 = vld [vmem:[#allocation4 + $0xb8] sm:$0xff] }
 0x18d   : > { %1875 = vmatpush.bf16.msra.mxu1 %v2682_v25 }
 0x18e   : > { %v1157_v24 = vpack.c.bf16 %v3336_v22, %v3332_v18 }
 0x190   : > { %1379 = vmatmul.bf16.gmra.mxu2 %v1157_v24  ;;  %1408 = vmatmul.bf16.gmra.mxu3 %v1157_v24 }
 0x191   : > { %1437 = vmatmul.bf16.gmra.mxu1 %v1157_v24 }
 0x192   : > { %1876 = vmatpush.bf16.msra.mxu1 %v2681_v37  ;;  %v2687_v37 = vld [vmem:[#allocation4 + $0xe0] sm:$0xff] }
 0x193   : > { %v1142_v33 = vpop.f32.mrf.mxu1 }
 0x194   : > { %v1143_v46 = vadd.f32 %v2802_v55, %v1142_v33 }
 0x196   : > { %v3342_v47 = vadd.f32 %v2713_v26, %v1143_v46  ;;  %v2680_v26 = vld [vmem:[#allocation4 + $0xa8] sm:$0xff] }
 0x197   : > { %1877 = vmatpush.bf16.msra.mxu1 %v2680_v26 }
 0x19b   : > { %v1144_v34 = vpop.f32.mrf.mxu1 }
 0x19c   : > { %v1145_v36 = vadd.f32 %v2802_v55, %v1144_v34  ;;  %v2669_v55 = vld [vmem:[#allocation4 + $0x50] sm:$0xff] }
 0x19d   : > { %1851 = vmatpush.bf16.msra.mxu0 %v2669_v55 }
 0x19e   : > { %v3346_v19 = vadd.f32 %v2714_v30, %v1145_v36  ;;  %v2679_v30 = vld [vmem:[#allocation4 + $0xa0] sm:$0xff] }
 0x19f   : > { %1878 = vmatpush.bf16.msra.mxu1 %v2679_v30 }
 0x1a0   : > { %v1158_v17 = vpack.c.bf16 %v3346_v19, %v3342_v47 }
 0x1a1   : > { %1852 = vmatpush.bf16.msra.mxu0 %v2668_v29 }
 0x1a2   : > { %1384 = vmatmul.bf16.gmra.mxu2 %v1158_v17  ;;  %1413 = vmatmul.bf16.gmra.mxu3 %v1158_v17 }
 0x1a3   : > { %1442 = vmatmul.bf16.gmra.mxu1 %v1158_v17 }
 0x1a4   : > { %1879 = vmatpush.bf16.msra.mxu1 %v2678_v45 }
 0x1a5   : > { %1853 = vmatpush.bf16.msra.mxu0 %v2667_v57 }
 0x1a8   : > { %1880 = vmatpush.bf16.msra.mxu1 %v2677_v49  ;;  %v2686_v49 = vld [vmem:[#allocation4 + $0xd8] sm:$0xff] }
 0x1ac   : > { %1881 = vmatpush.bf16.msra.mxu1 %v2676_v53 }
 0x1b0   : > { %1882 = vmatpush.bf16.msra.mxu1 %v2675_v20 }
 0x1b2   : > { %1456 = vmatmul.bf16.vlgmr.msrb.gmra.mxu2 %v1155_v61  ;;  %v2690_v61 = vld [vmem:[#allocation4 + $0xf8] sm:$0xff] }
 0x1b3   : > { %1904 = vmatpush.bf16.msra.mxu2 %v2690_v61 }
 0x1b7   : > { %1905 = vmatpush.bf16.msra.mxu2 %v2689_v9 }
 0x1bb   : > { %1906 = vmatpush.bf16.msra.mxu2 %v2688_v21 }
 0x1bf   : > { %1907 = vmatpush.bf16.msra.mxu2 %v2687_v37 }
 0x1c2   : > { %1461 = vmatmul.bf16.gmra.mxu2 %v1156_v35 }
 0x1c3   : > { %1908 = vmatpush.bf16.msra.mxu2 %v2686_v49 }
 0x1d2   : > { %1466 = vmatmul.bf16.gmra.mxu2 %v1157_v24 }
 0x1e2   : > { %1471 = vmatmul.bf16.gmra.mxu2 %v1158_v17 }
 0x1ee   : > { %v1428_v62 = vpop.f32.mrf.mxu1 }
 0x1ef   : > { %v1429_v63 = vadd.f32 %v1428_v62, %v3356_v41 }
 0x1f1   : > { %v1479_v7 = vmul.f32 0.1, %v1429_v63 }
 0x1f3   : > { %v1370_v1 = vpop.f32.mrf.mxu2  ;;  %v1399_v39 = vpop.f32.mrf.mxu3  ;;  %v1511_v31 = vmax.f32 %v1429_v63, %v1479_v7 }
 0x1f4   : > { %v1371_v5 = vadd.f32 %v1370_v1, %v3360_v4  ;;  %v1400_v43 = vadd.f32 %v1399_v39, %v3363_v3 }
 0x1f6   : > { %v1430_v32 = vpop.f32.mrf.mxu1  ;;  %v1477_v16 = vmul.f32 0.1, %v1371_v5  ;;  %v1478_v11 = vmul.f32 0.1, %v1400_v43 }
 0x1f7   : > { %v1431_v14 = vadd.f32 %v1430_v32, %v3356_v41  ;;  %v2685_v32 = vld [vmem:[#allocation4 + $0xd0] sm:$0xff] }
 0x1f8   : > { %v1509_v34 = vmax.f32 %v1371_v5, %v1477_v16  ;;  %v1510_v36 = vmax.f32 %v1400_v43, %v1478_v11  ;;  %1909 = vmatpush.bf16.msra.mxu2 %v2685_v32 }
 0x1f9   : > { %v1483_v35 = vmul.f32 0.1, %v1431_v14 }
 0x1fb   : > { %v1515_v8 = vmax.f32 %v1431_v14, %v1483_v35  ;;  %v1372_v10 = vpop.f32.mrf.mxu2  ;;  %v1401_v12 = vpop.f32.mrf.mxu3 }
 0x1fc   : > { %v1373_v60 = vadd.f32 %v1372_v10, %v3360_v4  ;;  %v1402_v15 = vadd.f32 %v1401_v12, %v3363_v3 }
 0x1fd   : > { %v1543_v13 = vpack.c.bf16 %v1515_v8, %v1511_v31 }
 0x1fe   : > { %v1481_v24 = vmul.f32 0.1, %v1373_v60  ;;  %v1482_v33 = vmul.f32 0.1, %v1402_v15  ;;  %v1433_v46 = vpop.f32.mrf.mxu1 }
 0x1ff   : > { %1883 = vmatmul.bf16.vlgmr.msra.gmra.mxu1 %v1543_v13  ;;  %v1434_v26 = vadd.f32 %v1433_v46, %v3356_v41 }
 0x200   : > { %v1513_v17 = vmax.f32 %v1373_v60, %v1481_v24  ;;  %v1514_v25 = vmax.f32 %v1402_v15, %v1482_v33  ;;  %v2684_v60 = vld [vmem:[#allocation4 + $0xc8] sm:$0xff] }
 0x201   : > { %v1487_v42 = vmul.f32 0.1, %v1434_v26  ;;  %1910 = vmatpush.bf16.msra.mxu2 %v2684_v60 }
 0x202   : > { %v1542_v50 = vpack.c.bf16 %v1514_v25, %v1510_v36  ;;  %v1541_v38 = vpack.c.bf16 %v1513_v17, %v1509_v34 }
 0x203   : > { %v1375_v40 = vpop.f32.mrf.mxu2  ;;  %v1404_v23 = vpop.f32.mrf.mxu3  ;;  %v1519_v27 = vmax.f32 %v1434_v26, %v1487_v42 }
 0x204   : > { %1825 = vmatmul.bf16.vlgmr.msrb.gmra.mxu3 %v1541_v38  ;;  %1854 = vmatmul.bf16.vlgmr.msra.gmra.mxu0 %v1542_v50  ;;  %v1376_v45 = vadd.f32 %v1375_v40, %v3360_v4  ;;  %v1405_v2 = vadd.f32 %v1404_v23, %v3363_v3 }
 0x206   : > { %v1435_v30 = vpop.f32.mrf.mxu1  ;;  %v1485_v55 = vmul.f32 0.1, %v1376_v45  ;;  %v1486_v20 = vmul.f32 0.1, %v1405_v2 }
 0x207   : > { %v1436_v44 = vadd.f32 %v1435_v30, %v3356_v41 }
 0x208   : > { %v1517_v63 = vmax.f32 %v1376_v45, %v1485_v55  ;;  %v1518_v1 = vmax.f32 %v1405_v2, %v1486_v20 }
 0x209   : > { %v1491_v48 = vmul.f32 0.1, %v1436_v44 }
 0x20b   : > { %v1523_v52 = vmax.f32 %v1436_v44, %v1491_v48  ;;  %v1377_v53 = vpop.f32.mrf.mxu2  ;;  %v1406_v54 = vpop.f32.mrf.mxu3  ;;  %v2683_v44 = vld [vmem:[#allocation4 + $0xc0] sm:$0xff] }
 0x20c   : > { %v1378_v51 = vadd.f32 %v1377_v53, %v3360_v4  ;;  %v1407_v29 = vadd.f32 %v1406_v54, %v3363_v3  ;;  %1911 = vmatpush.bf16.msra.mxu2 %v2683_v44 }
 0x20d   : > { %v1547_v56 = vpack.c.bf16 %v1523_v52, %v1519_v27 }
 0x20e   : > { %v1489_v57 = vmul.f32 0.1, %v1378_v51  ;;  %v1490_v61 = vmul.f32 0.1, %v1407_v29  ;;  %v1438_v62 = vpop.f32.mrf.mxu1 }
 0x20f   : > { %1888 = vmatmul.bf16.gmra.mxu1 %v1547_v56  ;;  %v1439_v5 = vadd.f32 %v1438_v62, %v3356_v41 }
 0x210   : > { %v1521_v39 = vmax.f32 %v1378_v51, %v1489_v57  ;;  %v1522_v9 = vmax.f32 %v1407_v29, %v1490_v61 }
 0x211   : > { %v1495_v8 = vmul.f32 0.1, %v1439_v5 }
 0x212   : > { %v1545_v7 = vpack.c.bf16 %v1521_v39, %v1517_v63  ;;  %v1546_v14 = vpack.c.bf16 %v1522_v9, %v1518_v1 }
 0x213   : > { %v1380_v43 = vpop.f32.mrf.mxu2  ;;  %v1409_v35 = vpop.f32.mrf.mxu3  ;;  %v1527_v15 = vmax.f32 %v1439_v5, %v1495_v8 }
 0x214   : > { %1830 = vmatmul.bf16.gmra.mxu3 %v1545_v7  ;;  %1859 = vmatmul.bf16.gmra.mxu0 %v1546_v14  ;;  %v1381_v12 = vadd.f32 %v1380_v43, %v3360_v4  ;;  %v1410_v16 = vadd.f32 %v1409_v35, %v3363_v3 }
 0x216   : > { %v1440_v31 = vpop.f32.mrf.mxu1  ;;  %v1493_v33 = vmul.f32 0.1, %v1381_v12  ;;  %v1494_v46 = vmul.f32 0.1, %v1410_v16 }
 0x217   : > { %v1441_v10 = vadd.f32 %v1440_v31, %v3356_v41  ;;  %v1196_v31 = vperm.slane %v3353_v58, 3 }
 0x218   : > { %v1525_v38 = vmax.f32 %v1381_v12, %v1493_v33  ;;  %v1526_v26 = vmax.f32 %v1410_v16, %v1494_v46 }
 0x219   : > { %v1499_v11 = vmul.f32 0.1, %v1441_v10 }
 0x21b   : > { %v1531_v21 = vmax.f32 %v1441_v10, %v1499_v11  ;;  %v1382_v13 = vpop.f32.mrf.mxu2  ;;  %v1411_v24 = vpop.f32.mrf.mxu3 }
 0x21c   : > { %v1383_v34 = vadd.f32 %v1382_v13, %v3360_v4  ;;  %v1412_v36 = vadd.f32 %v1411_v24, %v3363_v3 }
 0x21d   : > { %v1551_v17 = vpack.c.bf16 %v1531_v21, %v1527_v15 }
 0x21e   : > { %v1497_v25 = vmul.f32 0.1, %v1383_v34  ;;  %v1498_v37 = vmul.f32 0.1, %v1412_v36 }
 0x21f   : > { %1893 = vmatmul.bf16.gmra.mxu1 %v1551_v17 }
 0x220   : > { %v1443_v50 = vpop.f32.mrf.mxu1  ;;  %v1529_v40 = vmax.f32 %v1383_v34, %v1497_v25  ;;  %v1530_v23 = vmax.f32 %v1412_v36, %v1498_v37 }
 0x221   : > { %v1444_v45 = vadd.f32 %v1443_v50, %v3356_v41 }
 0x222   : > { %v1549_v30 = vpack.c.bf16 %v1529_v40, %v1525_v38  ;;  %v1550_v42 = vpack.c.bf16 %v1530_v23, %v1526_v26 }
 0x223   : > { %v1503_v27 = vmul.f32 0.1, %v1444_v45 }
 0x224   : > { %1835 = vmatmul.bf16.gmra.mxu3 %v1549_v30  ;;  %1864 = vmatmul.bf16.gmra.mxu0 %v1550_v42 }
 0x225   : > { %v1385_v2 = vpop.f32.mrf.mxu2  ;;  %v1414_v48 = vpop.f32.mrf.mxu3  ;;  %v1535_v20 = vmax.f32 %v1444_v45, %v1503_v27 }
 0x226   : > { %v1386_v53 = vadd.f32 %v1385_v2, %v3360_v4  ;;  %v1415_v54 = vadd.f32 %v1414_v48, %v3363_v3 }
 0x228   : > { %v1445_v49 = vpop.f32.mrf.mxu1  ;;  %v1501_v57 = vmul.f32 0.1, %v1386_v53  ;;  %v1502_v61 = vmul.f32 0.1, %v1415_v54 }
 0x229   : > { %v1446_v52 = vadd.f32 %v1445_v49, %v3356_v41 }
 0x22a   : > { %v1533_v41 = vmax.f32 %v1386_v53, %v1501_v57  ;;  %v1534_v32 = vmax.f32 %v1415_v54, %v1502_v61  ;;  %v2698_v54 = vld [vmem:[%s3469_s13 + $0x38] sm:$0xff]  ;;  %v2692_v57 = vld [vmem:[%s3469_s13 + $0x8] sm:$0xff] }
 0x22b   : > { %v1507_v55 = vmul.f32 0.1, %v1446_v52  ;;  %2029 = vmatpush.bf16.msra.mxu3 %v2698_v54 }
 0x22d   : > { %v1539_v51 = vmax.f32 %v1446_v52, %v1507_v55  ;;  %v1387_v29 = vpop.f32.mrf.mxu2  ;;  %v1416_v56 = vpop.f32.mrf.mxu3  ;;  %v2697_v55 = vld [vmem:[%s3469_s13 + $0x30] sm:$0xff] }
 0x22e   : > { %v1388_v62 = vadd.f32 %v1387_v29, %v3360_v4  ;;  %v1417_v63 = vadd.f32 %v1416_v56, %v3363_v3  ;;  %v2694_v29 = vld [vmem:[%s3469_s13 + $0x18] sm:$0xff]  ;;  %v2693_v56 = vld [vmem:[%s3469_s13 + $0x10] sm:$0xff] }
 0x22f   : > { %v1555_v1 = vpack.c.bf16 %v1539_v51, %v1535_v20  ;;  %2030 = vmatpush.bf16.msra.mxu3 %v2697_v55  ;;  %v2696_v20 = vld [vmem:[%s3469_s13 + $0x28] sm:$0xff]  ;;  %v2695_v51 = vld [vmem:[%s3469_s13 + $0x20] sm:$0xff] }
 0x230   : > { %v1505_v39 = vmul.f32 0.1, %v1388_v62  ;;  %v1506_v9 = vmul.f32 0.1, %v1417_v63 }
 0x231   : > { %1898 = vmatmul.bf16.gmra.mxu1 %v1555_v1  ;;  %v2691_v1 = vld [vmem:[%s3469_s13] sm:$0xff] }
 0x232   : > { %v1537_v7 = vmax.f32 %v1388_v62, %v1505_v39  ;;  %v1538_v14 = vmax.f32 %v1417_v63, %v1506_v9  ;;  %v3416_v9 = vld [vmem:[%s3468_s12] ss:$0 sm:$0xff] }
 0x233   : > { %2031 = vmatpush.bf16.msra.mxu3 %v2696_v20 }
 0x234   : > { %v1553_v5 = vpack.c.bf16 %v1537_v7, %v1533_v41  ;;  %v1554_v43 = vpack.c.bf16 %v1538_v14, %v1534_v32 }
 0x235   : > { %v1457_v35 = vpop.f32.mrf.mxu2 }
 0x236   : > { %1840 = vmatmul.bf16.gmra.mxu3 %v1553_v5  ;;  %1869 = vmatmul.bf16.gmra.mxu0 %v1554_v43  ;;  %v1458_v8 = vadd.f32 %v1457_v35, %v1196_v31 }
 0x237   : > { %2032 = vmatpush.bf16.msra.mxu3 %v2695_v51 }
 0x238   : > { %v1480_v4 = vmul.f32 0.1, %v1458_v8 }
 0x23a   : > { %v1512_v16 = vmax.f32 %v1458_v8, %v1480_v4 }
 0x23b   : > { %2033 = vmatpush.bf16.msra.mxu3 %v2694_v29 }
 0x23d   : > { %v1459_v10 = vpop.f32.mrf.mxu2 }
 0x23e   : > { %v1460_v12 = vadd.f32 %v1459_v10, %v1196_v31 }
 0x23f   : > { %2034 = vmatpush.bf16.msra.mxu3 %v2693_v56 }
 0x240   : > { %v1484_v3 = vmul.f32 0.1, %v1460_v12 }
 0x242   : > { %v1516_v11 = vmax.f32 %v1460_v12, %v1484_v3 }
 0x243   : > { %2035 = vmatpush.bf16.msra.mxu3 %v2692_v57 }
 0x244   : > { %v1544_v60 = vpack.c.bf16 %v1516_v11, %v1512_v16 }
 0x245   : > { %v1462_v15 = vpop.f32.mrf.mxu2 }
 0x246   : > { %1912 = vmatmul.bf16.vlgmr.msra.gmra.mxu2 %v1544_v60  ;;  %v1463_v21 = vadd.f32 %v1462_v15, %v1196_v31 }
 0x247   : > { %2036 = vmatpush.bf16.msra.mxu3 %v2691_v1 }
 0x248   : > { %v1488_v24 = vmul.f32 0.1, %v1463_v21 }
 0x24a   : > { %v1520_v34 = vmax.f32 %v1463_v21, %v1488_v24 }
 0x24d   : > { %v1464_v13 = vpop.f32.mrf.mxu2 }
 0x24e   : > { %v1465_v33 = vadd.f32 %v1464_v13, %v1196_v31 }
 0x250   : > { %v1492_v46 = vmul.f32 0.1, %v1465_v33 }
 0x252   : > { %v1524_v36 = vmax.f32 %v1465_v33, %v1492_v46 }
 0x254   : > { %v1548_v58 = vpack.c.bf16 %v1524_v36, %v1520_v34 }
 0x255   : > { %v1467_v17 = vpop.f32.mrf.mxu2 }
 0x256   : > { %1917 = vmatmul.bf16.gmra.mxu2 %v1548_v58  ;;  %v1468_v25 = vadd.f32 %v1467_v17, %v1196_v31 }
 0x258   : > { %v1496_v50 = vmul.f32 0.1, %v1468_v25 }
 0x25a   : > { %v1528_v40 = vmax.f32 %v1468_v25, %v1496_v50 }
 0x25d   : > { %v1469_v37 = vpop.f32.mrf.mxu2 }
 0x25e   : > { %v1470_v38 = vadd.f32 %v1469_v37, %v1196_v31 }
 0x260   : > { %v1500_v26 = vmul.f32 0.1, %v1470_v38 }
 0x262   : > { %v1532_v23 = vmax.f32 %v1470_v38, %v1500_v26 }
 0x264   : > { %v1552_v30 = vpack.c.bf16 %v1532_v23, %v1528_v40 }
 0x265   : > { %v1472_v42 = vpop.f32.mrf.mxu2 }
 0x266   : > { %1922 = vmatmul.bf16.gmra.mxu2 %v1552_v30  ;;  %v1473_v44 = vadd.f32 %v1472_v42, %v1196_v31 }
 0x268   : > { %v1504_v2 = vmul.f32 0.1, %v1473_v44 }
 0x26a   : > { %v1536_v27 = vmax.f32 %v1473_v44, %v1504_v2 }
 0x26d   : > { %v1474_v45 = vpop.f32.mrf.mxu2 }
 0x26e   : > { %v1475_v48 = vadd.f32 %v1474_v45, %v1196_v31 }
 0x270   : > { %v1508_v49 = vmul.f32 0.1, %v1475_v48 }
 0x272   : > { %v1540_v52 = vmax.f32 %v1475_v48, %v1508_v49 }
 0x274   : > { %v1556_v53 = vpack.c.bf16 %v1540_v52, %v1536_v27 }
 0x276   : > { %1927 = vmatmul.bf16.gmra.mxu2 %v1556_v53 }
 0x27c   : > { %v1884_v63 = vpop.f32.mrf.mxu1 }
 0x281   : > { %v1855_v62 = vpop.f32.mrf.mxu0 }
 0x284   : > { %v1886_v7 = vpop.f32.mrf.mxu1 }
 0x287   : > { %v1826_v61 = vpop.f32.mrf.mxu3 }
 0x288   : > { %v1827_v32 = vadd.f32 %v3416_v9, %v1826_v61 }
 0x289   : > { %v1857_v41 = vpop.f32.mrf.mxu0 }
 0x28a   : > { %v1856_v5 = vadd.f32 %v1855_v62, %v1827_v32 }
 0x28c   : > { %v1885_v31 = vadd.f32 %v1884_v63, %v1856_v5  ;;  %v1889_v12 = vpop.f32.mrf.mxu1 }
 0x28f   : > { %v1828_v39 = vpop.f32.mrf.mxu3 }
 0x290   : > { %v1829_v43 = vadd.f32 %v3416_v9, %v1828_v39 }
 0x291   : > { %v1860_v8 = vpop.f32.mrf.mxu0 }
 0x292   : > { %v1858_v10 = vadd.f32 %v1857_v41, %v1829_v43 }
 0x294   : > { %v1887_v11 = vadd.f32 %v1886_v7, %v1858_v10  ;;  %v1891_v36 = vpop.f32.mrf.mxu1 }
 0x297   : > { %v1831_v14 = vpop.f32.mrf.mxu3 }
 0x298   : > { %v1832_v15 = vadd.f32 %v3416_v9, %v1831_v14 }
 0x299   : > { %v1862_v33 = vpop.f32.mrf.mxu0 }
 0x29a   : > { %v1861_v46 = vadd.f32 %v1860_v8, %v1832_v15 }
 0x29c   : > { %v1890_v26 = vadd.f32 %v1889_v12, %v1861_v46  ;;  %v1894_v49 = vpop.f32.mrf.mxu1 }
 0x29f   : > { %v1833_v3 = vpop.f32.mrf.mxu3 }
 0x2a0   : > { %v1834_v58 = vadd.f32 %v3416_v9, %v1833_v3 }
 0x2a1   : > { %v1865_v30 = vpop.f32.mrf.mxu0 }
 0x2a2   : > { %v1863_v40 = vadd.f32 %v1862_v33, %v1834_v58 }
 0x2a4   : > { %v1892_v44 = vadd.f32 %v1891_v36, %v1863_v40  ;;  %v1896_v1 = vpop.f32.mrf.mxu1 }
 0x2a7   : > { %v1836_v37 = vpop.f32.mrf.mxu3 }
 0x2a8   : > { %v1837_v2 = vadd.f32 %v3416_v9, %v1836_v37  ;;  %v2804_v37 = vld [vmem:[%s3470_s14] ss:$0 sm:$0xff] }
 0x2a9   : > { %v1867_v51 = vpop.f32.mrf.mxu0 }
 0x2aa   : > { %v1866_v53 = vadd.f32 %v1865_v30, %v1837_v2 }
 0x2ac   : > { %v1895_v56 = vadd.f32 %v1894_v49, %v1866_v53 }
 0x2af   : > { %v1838_v27 = vpop.f32.mrf.mxu3 }
 0x2b0   : > { %v1839_v54 = vadd.f32 %v3416_v9, %v1838_v27 }
 0x2b2   : > { %v1868_v62 = vadd.f32 %v1867_v51, %v1839_v54 }
 0x2b3   : > { %v1870_v32 = vpop.f32.mrf.mxu0 }
 0x2b4   : > { %v1897_v41 = vadd.f32 %v1896_v1, %v1868_v62 }
 0x2b9   : > { %v1841_v61 = vpop.f32.mrf.mxu3 }
 0x2ba   : > { %v1842_v14 = vadd.f32 %v3416_v9, %v1841_v61 }
 0x2c9   : > { %v1913_v35 = vpop.f32.mrf.mxu2 }
 0x2ca   : > { %v1914_v4 = vadd.f32 %v1913_v35, %v1885_v31  ;;  %v1899_v35 = vpop.f32.mrf.mxu1  ;;  %v1871_v31 = vadd.f32 %v1870_v32, %v1842_v14 }
 0x2cc   : > { %v1933_v16 = vmul.f32 0.1, %v1914_v4 }
 0x2ce   : > { %v1941_v13 = vmax.f32 %v1914_v4, %v1933_v16  ;;  %v1900_v16 = vadd.f32 %v1899_v35, %v1871_v31 }
 0x2d0   : > { %v1949_v17 = vadd.f32 %v1941_v13, %v3312_v28 }
 0x2d1   : > { %v1915_v60 = vpop.f32.mrf.mxu2 }
 0x2d2   : > { %v1916_v21 = vadd.f32 %v1915_v60, %v1887_v11  ;;  %v1872_v60 = vpop.f32.mrf.mxu0  ;;  %v1901_v13 = vpop.f32.mrf.mxu1 }
 0x2d4   : > { %v1934_v24 = vmul.f32 0.1, %v1916_v21 }
 0x2d6   : > { %v1942_v34 = vmax.f32 %v1916_v21, %v1934_v24 }
 0x2d8   : > { %v1950_v25 = vadd.f32 %v1942_v34, %v3316_v59 }
 0x2d9   : > { %v1918_v50 = vpop.f32.mrf.mxu2 }
 0x2da   : > { %v1957_v38 = vpack.c.bf16 %v1950_v25, %v1949_v17  ;;  %v1919_v23 = vadd.f32 %v1918_v50, %v1890_v26 }
 0x2dc   : > { %2037 = vmatmul.bf16.vlgmr.msra.gmra.mxu3 %v1957_v38  ;;  %v1935_v42 = vmul.f32 0.1, %v1919_v23 }
 0x2de   : > { %v1943_v52 = vmax.f32 %v1919_v23, %v1935_v42 }
 0x2e0   : > { %v1951_v55 = vadd.f32 %v1943_v52, %v3322_v0 }
 0x2e1   : > { %v1920_v45 = vpop.f32.mrf.mxu2 }
 0x2e2   : > { %v1921_v48 = vadd.f32 %v1920_v45, %v1892_v44 }
 0x2e4   : > { %v1936_v28 = vmul.f32 0.1, %v1921_v48 }
 0x2e6   : > { %v1944_v59 = vmax.f32 %v1921_v48, %v1936_v28 }
 0x2e8   : > { %v1952_v20 = vadd.f32 %v1944_v59, %v3326_v6  ;;  %v1843_v6 = vpop.f32.mrf.mxu3 }
 0x2e9   : > { %v1923_v29 = vpop.f32.mrf.mxu2  ;;  %v1844_v10 = vadd.f32 %v3416_v9, %v1843_v6 }
 0x2ea   : > { %v1958_v57 = vpack.c.bf16 %v1952_v20, %v1951_v55  ;;  %v1924_v63 = vadd.f32 %v1923_v29, %v1895_v56 }
 0x2eb   : > { %v1873_v15 = vadd.f32 %v1872_v60, %v1844_v10 }
 0x2ec   : > { %2042 = vmatmul.bf16.gmra.mxu3 %v1958_v57  ;;  %v1937_v39 = vmul.f32 0.1, %v1924_v63 }
 0x2ed   : > { %v1902_v33 = vadd.f32 %v1901_v13, %v1873_v15 }
 0x2ee   : > { %v1945_v43 = vmax.f32 %v1924_v63, %v1937_v39 }
 0x2f0   : > { %v1953_v4 = vadd.f32 %v1945_v43, %v3332_v18 }
 0x2f1   : > { %v1925_v7 = vpop.f32.mrf.mxu2 }
 0x2f2   : > { %v1926_v5 = vadd.f32 %v1925_v7, %v1897_v41 }
 0x2f4   : > { %v1938_v0 = vmul.f32 0.1, %v1926_v5 }
 0x2f6   : > { %v1946_v8 = vmax.f32 %v1926_v5, %v1938_v0 }
 0x2f8   : > { %v1954_v12 = vadd.f32 %v1946_v8, %v3336_v22 }
 0x2f9   : > { %v1928_v3 = vpop.f32.mrf.mxu2 }
 0x2fa   : > { %v1959_v11 = vpack.c.bf16 %v1954_v12, %v1953_v4  ;;  %v1929_v21 = vadd.f32 %v1928_v3, %v1900_v16 }
 0x2fc   : > { %2047 = vmatmul.bf16.gmra.mxu3 %v1959_v11  ;;  %v1939_v24 = vmul.f32 0.1, %v1929_v21 }
 0x2fe   : > { %v1947_v36 = vmax.f32 %v1929_v21, %v1939_v24 }
 0x300   : > { %v1955_v18 = vadd.f32 %v1947_v36, %v3342_v47 }
 0x301   : > { %v1930_v46 = vpop.f32.mrf.mxu2 }
 0x302   : > { %v1931_v34 = vadd.f32 %v1930_v46, %v1902_v33 }
 0x304   : > { %v1940_v58 = vmul.f32 0.1, %v1931_v34 }
 0x306   : > { %v1948_v9 = vmax.f32 %v1931_v34, %v1940_v58 }
 0x308   : > { %v1956_v22 = vadd.f32 %v1948_v9, %v3346_v19 }
 0x30a   : > { %v1960_v17 = vpack.c.bf16 %v1956_v22, %v1955_v18 }
 0x30c   : > { %2052 = vmatmul.bf16.gmra.mxu3 %v1960_v17 }
 0x35f   : > { %v2038_v25 = vpop.f32.mrf.mxu3 }
 0x360   : > { %v2039_v50 = vadd.f32 %v2804_v37, %v2038_v25 }
 0x362   : > { %v2058_v26 = vmax.f32 %v2039_v50, 0.0 }
 0x364   : > { %v2066_v30 = vmin.f32 %v2058_v26, 1.0 }
 0x367   : > { %v2040_v38 = vpop.f32.mrf.mxu3 }
 0x368   : > { %v2041_v40 = vadd.f32 %v2804_v37, %v2040_v38 }
 0x36a   : > { %v2059_v23 = vmax.f32 %v2041_v40, 0.0 }
 0x36c   : > { %v2067_v42 = vmin.f32 %v2059_v23, 1.0 }
 0x36e   : > { %v2718_v47 = vpack.c.bf16 %v2067_v42, %v2066_v30 }
 0x36f   : > { %v2043_v19 = vpop.f32.mrf.mxu3 }
 0x370   : > { %2719 = vst [vmem:[%s3441_s18] sm:$0xff] %v2718_v47   ;;  %v2044_v44 = vadd.f32 %v2804_v37, %v2043_v19 }
 0x372   : > { %v2060_v2 = vmax.f32 %v2044_v44, 0.0 }
 0x374   : > { %v2068_v27 = vmin.f32 %v2060_v2, 1.0 }
 0x377   : > { %v2045_v45 = vpop.f32.mrf.mxu3 }
 0x378   : > { %v2046_v48 = vadd.f32 %v2804_v37, %v2045_v45 }
 0x37a   : > { %v2061_v49 = vmax.f32 %v2046_v48, 0.0 }
 0x37c   : > { %v2069_v52 = vmin.f32 %v2061_v49, 1.0 }
 0x37e   : > { %v2723_v28 = vpack.c.bf16 %v2069_v52, %v2068_v27 }
 0x37f   : > { %v2048_v53 = vpop.f32.mrf.mxu3 }
 0x380   : > { %2739 = vst [vmem:[%s3441_s18 + $0x8] sm:$0xff] %v2723_v28   ;;  %v2049_v59 = vadd.f32 %v2804_v37, %v2048_v53 }
 0x382   : > { %v2062_v55 = vmax.f32 %v2049_v59, 0.0 }
 0x384   : > { %v2070_v29 = vmin.f32 %v2062_v55, 1.0 }
 0x387   : > { %v2050_v54 = vpop.f32.mrf.mxu3 }
 0x388   : > { %v2051_v20 = vadd.f32 %v2804_v37, %v2050_v54 }
 0x38a   : > { %v2063_v51 = vmax.f32 %v2051_v20, 0.0 }
 0x38c   : > { %v2071_v56 = vmin.f32 %v2063_v51, 1.0 }
 0x38e   : > { %v2728_v57 = vpack.c.bf16 %v2071_v56, %v2070_v29 }
 0x38f   : > { %v2053_v61 = vpop.f32.mrf.mxu3 }
 0x390   : > { %2740 = vst [vmem:[%s3441_s18 + $0x10] sm:$0xff] %v2728_v57   ;;  %v2054_v62 = vadd.f32 %v2804_v37, %v2053_v61 }
 0x392   : > { %v2064_v1 = vmax.f32 %v2054_v62, 0.0 }
 0x394   : > { %v2072_v32 = vmin.f32 %v2064_v1, 1.0 }
 0x397   : > { %v2055_v63 = vpop.f32.mrf.mxu3 }
 0x398   : > { %v2056_v39 = vadd.f32 %v2804_v37, %v2055_v63 }
 0x39a   : > { %v2065_v41 = vmax.f32 %v2056_v39, 0.0 }
 0x39c   : > { %v2073_v7 = vmin.f32 %v2065_v41, 1.0 }
 0x39e   : > { %v2733_v14 = vpack.c.bf16 %v2073_v7, %v2072_v32 }
 0x3a0   : > { %2741 = vst [vmem:[%s3441_s18 + $0x18] sm:$0xff] %v2733_v14  }
 0x3a1 PF: > { %s27_s20 = sadd.s32 1, %s2895_s20   ;;  %s3479_s18 = sld [smem:[#allocation8_spill]] }
 0x3a2   : > { %p24_p8 = scmp.ge.s32.totalorder %s27_s20, 4   ;;  %s3480_s19 = sld [smem:[#allocation9_spill]] }
 0x3a4   :  { %26 = sbr.rel (!%p24_p8) target bundleno = 5 (0x5), region = 125 }
 0x3a9   :  { %2120 = vsyncpa [#allocation3], 1 }
 0x3aa   :  { %2122 = vsyncpa [#allocation3 + $0x1], 1 }
 0x3ab   :  { %2123 = vsyncpa [#allocation5], 1 }

</bundles_post_ra>
